<compile_context>
chip_gen: v7x
topology: tpu7x:2x2x1
jax: 0.10.0
libtpu: 0.0.40
codegen_flags: <defaults>
</compile_context>

<pallas_src>
import functools
import math

import jax
import jax.numpy as jnp
from jax import lax
from jax.experimental import pallas as pl
from jax.experimental.pallas import tpu as pltpu


def _mha_kernel(q_ref, k_ref, v_ref,
                wq_ref, bq_ref, wk_ref, wv_ref, bv_ref, wf_ref, bf_ref,
                o_ref,
                qp_s, kp_s, vp_s, ctx_s,
                *, n_heads: int, head_pad: int, batch_tile: int,
                approx_recip: bool):
    cdt = wq_ref.dtype          # MXU compute dtype (bf16 or f32)

    def bt_body(bt, carry):
        # ---- Q/K/V projections: one dense (S, H) @ (H, Hp) matmul each ----
        # H-deep contraction, lane-dense Hp output; no per-head broadcasts.
        q = q_ref[bt]                                        # (Sq, H)
        k = k_ref[bt]                                        # (Sk, H)
        v = v_ref[bt]                                        # (Sk, H)
        qp_s[...] = (jnp.dot(q, wq_ref[...],
                             preferred_element_type=jnp.float32)
                     + bq_ref[...]).astype(cdt)
        # Key bias dropped: it only adds a per-query constant to the scores
        # and cancels exactly under softmax.
        kp_s[...] = jnp.dot(k, wk_ref[...],
                            preferred_element_type=jnp.float32).astype(cdt)
        vp_s[...] = (jnp.dot(v, wv_ref[...],
                             preferred_element_type=jnp.float32)
                     + bv_ref[...]).astype(cdt)

        # ---- per-head attention core (128-lane-aligned head slices) ----
        for h in range(n_heads):                             # static unroll
            sl = slice(h * head_pad, (h + 1) * head_pad)
            qh = qp_s[:, sl]                                 # (Sq, head_pad)
            kh = kp_s[:, sl]                                 # (Sk, head_pad)
            vh = vp_s[:, sl]                                 # (Sk, head_pad)

            # Scores (Q already pre-scaled by 1/sqrt(head_dim) via weights).
            s = lax.dot_general(qh, kh, (((1,), (1,)), ((), ())),
                                preferred_element_type=jnp.float32)  # (Sq,Sk)

            # Softmax over keys in f32; normalization deferred past P@V.
            m = jnp.max(s, axis=-1, keepdims=True)
            p = jnp.exp(s - m)
            denom = jnp.sum(p, axis=-1, keepdims=True)
            inv = (pl.reciprocal(denom, approx=True) if approx_recip
                   else 1.0 / denom)

            # TODO(synk): dropout on the attention weights is identity here
            # (inference / eval mode); no RNG-matched torch dropout.
            ctx = jnp.dot(p.astype(cdt), vh,
                          preferred_element_type=jnp.float32) * inv
            ctx_s[:, sl] = ctx.astype(cdt)                   # head-concat slab

        # ---- output projection: single joint contraction over (head, dim) --
        out = jnp.dot(ctx_s[...], wf_ref[...],
                      preferred_element_type=jnp.float32) + bf_ref[...]
        o_ref[bt] = out.astype(o_ref.dtype)
        return carry

    lax.fori_loop(0, batch_tile, bt_body, 0, unroll=batch_tile <= 2)


def multihead_attention(query, key, value, params, *, n_heads: int,
                        batch_tile: int | None = None,
                        compute_dtype=jnp.bfloat16):
    """query: (B, Sq, H); key/value: (B, Sk, H). Returns (B, Sq, H)."""
    B, Sq, H = query.shape
    Bk, Sk, Hk = key.shape
    assert key.shape == value.shape and Bk == B and Hk == H
    assert H % n_heads == 0
    hd = H // n_heads
    hdp = ((hd + 127) // 128) * 128      # per-head width padded to lane tile
    Hp = n_heads * hdp

    if batch_tile is None:
        batch_tile = 1
        for c in (8, 4, 2):
            # keep >= 2 grid steps so both v7x TensorCores get work
            if B % c == 0 and B // c >= 2:
                batch_tile = c
                break
    assert B % batch_tile == 0

    out_dtype = query.dtype
    inv_scale = 1.0 / math.sqrt(hd)

    def head_cols_padded(w):
        # torch Linear weight (out=H, in=H) -> pre-transposed (H_in, Hp) with
        # each head's hd output columns zero-padded to hdp (128-lane aligned).
        wt = jnp.transpose(w).reshape(H, n_heads, hd)
        wt = jnp.pad(wt, ((0, 0), (0, 0), (0, hdp - hd)))
        return wt.reshape(H, Hp)

    def head_bias_padded(b):
        b2 = jnp.pad(b.reshape(n_heads, hd), ((0, 0), (0, hdp - hd)))
        return b2.reshape(1, Hp).astype(jnp.float32)

    wq_p = (head_cols_padded(params["wq"]) * inv_scale).astype(compute_dtype)
    wk_p = head_cols_padded(params["wk"]).astype(compute_dtype)
    wv_p = head_cols_padded(params["wv"]).astype(compute_dtype)
    bq_p = head_bias_padded(params["bq"] * inv_scale)
    bv_p = head_bias_padded(params["bv"])
    # bk is intentionally not used (cancels under softmax).

    # fc^T with its rows grouped per head and zero-padded to hdp rows/head,
    # so the head-concat context slab can be contracted in one matmul.
    wf_t = jnp.transpose(params["fc"]).reshape(n_heads, hd, H)
    wf_t = jnp.pad(wf_t, ((0, 0), (0, hdp - hd), (0, 0)))
    wf_p = wf_t.reshape(Hp, H).astype(compute_dtype)
    bf2 = params["bfc"].reshape(1, H).astype(jnp.float32)

    q_in = query.astype(compute_dtype)
    k_in = key.astype(compute_dtype)
    v_in = value.astype(compute_dtype)

    approx_recip = jnp.dtype(compute_dtype) == jnp.dtype(jnp.bfloat16)
    kernel = functools.partial(_mha_kernel, n_heads=n_heads, head_pad=hdp,
                               batch_tile=batch_tile,
                               approx_recip=bool(approx_recip))

    def const2(shape):
        return pl.BlockSpec(shape, lambda b: (0, 0))

    return pl.pallas_call(
        kernel,
        out_shape=jax.ShapeDtypeStruct((B, Sq, H), out_dtype),
        grid_spec=pltpu.PrefetchScalarGridSpec(
            num_scalar_prefetch=0,
            grid=(B // batch_tile,),
            in_specs=[
                pl.BlockSpec((batch_tile, Sq, H), lambda b: (b, 0, 0)),  # query
                pl.BlockSpec((batch_tile, Sk, H), lambda b: (b, 0, 0)),  # key
                pl.BlockSpec((batch_tile, Sk, H), lambda b: (b, 0, 0)),  # value
                const2((H, Hp)),    # Wq^T, head-padded cols, scale folded in
                const2((1, Hp)),    # bq, head-padded, scale folded in
                const2((H, Hp)),    # Wk^T, head-padded cols
                const2((H, Hp)),    # Wv^T, head-padded cols
                const2((1, Hp)),    # bv, head-padded
                const2((Hp, H)),    # fc^T, head-padded rows
                const2((1, H)),     # bfc
            ],
            out_specs=pl.BlockSpec((batch_tile, Sq, H), lambda b: (b, 0, 0)),
            scratch_shapes=[
                pltpu.VMEM((Sq, Hp), compute_dtype),   # projected Q
                pltpu.VMEM((Sk, Hp), compute_dtype),   # projected K
                pltpu.VMEM((Sk, Hp), compute_dtype),   # projected V
                pltpu.VMEM((Sq, Hp), compute_dtype),   # head-concat context
            ]),
        compiler_params=pltpu.CompilerParams(
            dimension_semantics=("parallel",)),
    )(q_in, k_in, v_in, wq_p, bq_p, wk_p, wv_p, bv_p, wf_p, bf2)


def _reference(query, key, value, params, *, n_heads: int):
    """Pure-JAX f32 reference mirroring the PyTorch forward (eval mode)."""
    B, Sq, H = query.shape
    hd = H // n_heads
    scale = jnp.sqrt(jnp.float32(hd))

    def lin(x, w, b):
        return x @ w.T + b

    Q = lin(query, params["wq"], params["bq"])
    K = lin(key, params["wk"], params["bk"])
    V = lin(value, params["wv"], params["bv"])

    Q = Q.reshape(B, -1, n_heads, hd).transpose(0, 2, 1, 3)
    K = K.reshape(B, -1, n_heads, hd).transpose(0, 2, 1, 3)
    V = V.reshape(B, -1, n_heads, hd).transpose(0, 2, 1, 3)

    att = jnp.einsum("bhqd,bhkd->bhqk", Q, K) / scale
    att = jax.nn.softmax(att, axis=-1)
    x = jnp.einsum("bhqk,bhkd->bhqd", att, V)
    x = x.transpose(0, 2, 1, 3).reshape(B, -1, H)
    return lin(x, params["fc"], params["bfc"])


def _init_params(key, hid_dim):
    ks = jax.random.split(key, 8)
    bound = 1.0 / jnp.sqrt(hid_dim)

    def w(k):
        return jax.random.uniform(k, (hid_dim, hid_dim), jnp.float32,
                                  -bound, bound)

    def b(k):
        return jax.random.uniform(k, (hid_dim,), jnp.float32, -bound, bound)

    return {
        "wq": w(ks[0]), "bq": b(ks[1]),
        "wk": w(ks[2]), "bk": b(ks[3]),
        "wv": w(ks[4]), "bv": b(ks[5]),
        "fc": w(ks[6]), "bfc": b(ks[7]),
    }


if __name__ == "__main__":
    # Small shapes consistent with the module: hid_dim=300, n_heads=6,
    # q-seq=12, kv-seq=10, small batch=8 (module example uses batch=64).
    B, Sq, Sk, H, NH = 8, 12, 10, 300, 6

    root = jax.random.PRNGKey(0)
    kq, kk, kv, kp = jax.random.split(root, 4)

    query = jax.random.uniform(kq, (B, Sq, H), jnp.float32)
    key = jax.random.uniform(kk, (B, Sk, H), jnp.float32)
    value = jax.random.uniform(kv, (B, Sk, H), jnp.float32)
    params = _init_params(kp, H)

    with jax.default_matmul_precision("highest"):
        ref = _reference(query, key, value, params, n_heads=NH)
        ref = jax.block_until_ready(ref)

    # Strict accuracy path: f32 MXU inputs, exact reciprocal.
    out_f32 = multihead_attention(query, key, value, params, n_heads=NH,
                                  batch_tile=2, compute_dtype=jnp.float32)
    out_f32 = jax.block_until_ready(out_f32)
    assert out_f32.shape == (B, Sq, H)
    assert jnp.allclose(out_f32, ref, atol=1e-3, rtol=1e-3), "f32 mismatch"

    # Performance path (default): bf16 MXU inputs, f32 accumulation/softmax.
    out_bf16 = multihead_attention(query, key, value, params, n_heads=NH)
    out_bf16 = jax.block_until_ready(out_bf16)
    assert out_bf16.shape == (B, Sq, H)
    assert jnp.allclose(out_bf16, ref, atol=5e-2, rtol=5e-2), "bf16 mismatch"

    print("KERNEL_OK")
</pallas_src>

<mosaic_0001>
module attributes {stable_mosaic.version = 11 : i64} {
  func.func @_mha_kernel(%arg0: i32, %arg1: memref<2x12x300xf32, #tpu.memory_space<vmem>>, %arg2: memref<2x10x300xf32, #tpu.memory_space<vmem>>, %arg3: memref<2x10x300xf32, #tpu.memory_space<vmem>>, %arg4: memref<300x768xf32, #tpu.memory_space<vmem>>, %arg5: memref<1x768xf32, #tpu.memory_space<vmem>>, %arg6: memref<300x768xf32, #tpu.memory_space<vmem>>, %arg7: memref<300x768xf32, #tpu.memory_space<vmem>>, %arg8: memref<1x768xf32, #tpu.memory_space<vmem>>, %arg9: memref<768x300xf32, #tpu.memory_space<vmem>>, %arg10: memref<1x300xf32, #tpu.memory_space<vmem>>, %arg11: memref<2x12x300xf32, #tpu.memory_space<vmem>>, %arg12: memref<12x768xf32, #tpu.memory_space<vmem>>, %arg13: memref<10x768xf32, #tpu.memory_space<vmem>>, %arg14: memref<10x768xf32, #tpu.memory_space<vmem>>, %arg15: memref<12x768xf32, #tpu.memory_space<vmem>>) attributes {dimension_semantics = [#tpu.dimension_semantics<parallel>], iteration_bounds = array<i64: 4>, scalar_prefetch = 0 : i64, scratch_operands = 4 : i64, tpu.core_type = #tpu.core_type<tc>, window_params = [{transform_indices = @transform_0, window_bounds = array<i64: 2, 12, 300>}, {transform_indices = @transform_1, window_bounds = array<i64: 2, 10, 300>}, {transform_indices = @transform_2, window_bounds = array<i64: 2, 10, 300>}, {pipeline_mode = #tpu.pipeline_mode<synchronous>, transform_indices = @transform_3, window_bounds = array<i64: 300, 768>}, {pipeline_mode = #tpu.pipeline_mode<synchronous>, transform_indices = @transform_4, window_bounds = array<i64: 1, 768>}, {pipeline_mode = #tpu.pipeline_mode<synchronous>, transform_indices = @transform_5, window_bounds = array<i64: 300, 768>}, {pipeline_mode = #tpu.pipeline_mode<synchronous>, transform_indices = @transform_6, window_bounds = array<i64: 300, 768>}, {pipeline_mode = #tpu.pipeline_mode<synchronous>, transform_indices = @transform_7, window_bounds = array<i64: 1, 768>}, {pipeline_mode = #tpu.pipeline_mode<synchronous>, transform_indices = @transform_8, window_bounds = array<i64: 768, 300>}, {pipeline_mode = #tpu.pipeline_mode<synchronous>, transform_indices = @transform_9, window_bounds = array<i64: 1, 300>}, {transform_indices = @transform_10, window_bounds = array<i64: 2, 12, 300>}]} {
    %c0_i32 = arith.constant 0 : i32
    %0 = arith.index_cast %c0_i32 : i32 to index
    %c0 = arith.constant 0 : index
    %c0_0 = arith.constant 0 : index
    %1 = vector.load %arg1[%0, %c0, %c0_0] : memref<2x12x300xf32, #tpu.memory_space<vmem>>, vector<1x12x300xf32>
    %2 = vector.shape_cast %1 : vector<1x12x300xf32> to vector<12x300xf32>
    %3 = arith.index_cast %c0_i32 : i32 to index
    %c0_1 = arith.constant 0 : index
    %c0_2 = arith.constant 0 : index
    %4 = vector.load %arg2[%3, %c0_1, %c0_2] : memref<2x10x300xf32, #tpu.memory_space<vmem>>, vector<1x10x300xf32>
    %5 = vector.shape_cast %4 : vector<1x10x300xf32> to vector<10x300xf32>
    %6 = arith.index_cast %c0_i32 : i32 to index
    %c0_3 = arith.constant 0 : index
    %c0_4 = arith.constant 0 : index
    %7 = vector.load %arg3[%6, %c0_3, %c0_4] : memref<2x10x300xf32, #tpu.memory_space<vmem>>, vector<1x10x300xf32>
    %8 = vector.shape_cast %7 : vector<1x10x300xf32> to vector<10x300xf32>
    %c0_5 = arith.constant 0 : index
    %c0_6 = arith.constant 0 : index
    %9 = vector.load %arg4[%c0_5, %c0_6] : memref<300x768xf32, #tpu.memory_space<vmem>>, vector<300x768xf32>
    %cst = arith.constant dense<0.000000e+00> : vector<12x768xf32>
    %10 = tpu.matmul %2, %9, %cst {dimension_numbers = #tpu.dot_dimension_numbers<[1], [0], [0], [1], [0, 0, 1, 1], [], []>} : vector<12x300xf32>, vector<300x768xf32>, vector<12x768xf32> -> vector<12x768xf32>
    %c0_7 = arith.constant 0 : index
    %c0_8 = arith.constant 0 : index
    %11 = vector.load %arg5[%c0_7, %c0_8] : memref<1x768xf32, #tpu.memory_space<vmem>>, vector<1x768xf32>
    %12 = vector.broadcast %11 : vector<1x768xf32> to vector<12x768xf32>
    %13 = arith.addf %10, %12 : vector<12x768xf32>
    %c0_9 = arith.constant 0 : index
    %c0_10 = arith.constant 0 : index
    %14 = vector.load %arg12[%c0_9, %c0_10] : memref<12x768xf32, #tpu.memory_space<vmem>>, vector<12x768xf32>
    tpu.vector_store %arg12[%c0_9, %c0_10], %13 {strides = array<i32>} : memref<12x768xf32, #tpu.memory_space<vmem>>, vector<12x768xf32>,
    %c0_11 = arith.constant 0 : index
    %c0_12 = arith.constant 0 : index
    %15 = vector.load %arg6[%c0_11, %c0_12] : memref<300x768xf32, #tpu.memory_space<vmem>>, vector<300x768xf32>
    %cst_13 = arith.constant dense<0.000000e+00> : vector<10x768xf32>
    %16 = tpu.matmul %5, %15, %cst_13 {dimension_numbers = #tpu.dot_dimension_numbers<[1], [0], [0], [1], [0, 0, 1, 1], [], []>} : vector<10x300xf32>, vector<300x768xf32>, vector<10x768xf32> -> vector<10x768xf32>
    %c0_14 = arith.constant 0 : index
    %c0_15 = arith.constant 0 : index
    %17 = vector.load %arg13[%c0_14, %c0_15] : memref<10x768xf32, #tpu.memory_space<vmem>>, vector<10x768xf32>
    tpu.vector_store %arg13[%c0_14, %c0_15], %16 {strides = array<i32>} : memref<10x768xf32, #tpu.memory_space<vmem>>, vector<10x768xf32>,
    %c0_16 = arith.constant 0 : index
    %c0_17 = arith.constant 0 : index
    %18 = vector.load %arg7[%c0_16, %c0_17] : memref<300x768xf32, #tpu.memory_space<vmem>>, vector<300x768xf32>
    %cst_18 = arith.constant dense<0.000000e+00> : vector<10x768xf32>
    %19 = tpu.matmul %8, %18, %cst_18 {dimension_numbers = #tpu.dot_dimension_numbers<[1], [0], [0], [1], [0, 0, 1, 1], [], []>} : vector<10x300xf32>, vector<300x768xf32>, vector<10x768xf32> -> vector<10x768xf32>
    %c0_19 = arith.constant 0 : index
    %c0_20 = arith.constant 0 : index
    %20 = vector.load %arg8[%c0_19, %c0_20] : memref<1x768xf32, #tpu.memory_space<vmem>>, vector<1x768xf32>
    %21 = vector.broadcast %20 : vector<1x768xf32> to vector<10x768xf32>
    %22 = arith.addf %19, %21 : vector<10x768xf32>
    %c0_21 = arith.constant 0 : index
    %c0_22 = arith.constant 0 : index
    %23 = vector.load %arg14[%c0_21, %c0_22] : memref<10x768xf32, #tpu.memory_space<vmem>>, vector<10x768xf32>
    tpu.vector_store %arg14[%c0_21, %c0_22], %22 {strides = array<i32>} : memref<10x768xf32, #tpu.memory_space<vmem>>, vector<10x768xf32>,
    %c0_23 = arith.constant 0 : index
    %c0_24 = arith.constant 0 : index
    %24 = vector.load %arg12[%c0_23, %c0_24] : memref<12x768xf32, #tpu.memory_space<vmem>>, vector<12x128xf32>
    %c0_25 = arith.constant 0 : index
    %c0_26 = arith.constant 0 : index
    %25 = vector.load %arg13[%c0_25, %c0_26] : memref<10x768xf32, #tpu.memory_space<vmem>>, vector<10x128xf32>
    %c0_27 = arith.constant 0 : index
    %c0_28 = arith.constant 0 : index
    %26 = vector.load %arg14[%c0_27, %c0_28] : memref<10x768xf32, #tpu.memory_space<vmem>>, vector<10x128xf32>
    %cst_29 = arith.constant dense<0.000000e+00> : vector<12x10xf32>
    %27 = tpu.matmul %24, %25, %cst_29 {dimension_numbers = #tpu.dot_dimension_numbers<[1], [1], [0], [0], [0, 0, 1, 0], [], []>} : vector<12x128xf32>, vector<10x128xf32>, vector<12x10xf32> -> vector<12x10xf32>
    %cst_30 = arith.constant dense<0xFF800000> : vector<12xf32>
    %28 = vector.multi_reduction <maximumf>, %27, %cst_30 [1] : vector<12x10xf32> to vector<12xf32>
    %29 = vector.shape_cast %28 : vector<12xf32> to vector<12x1xf32>
    %30 = vector.broadcast %29 : vector<12x1xf32> to vector<12x10xf32>
    %31 = arith.subf %27, %30 : vector<12x10xf32>
    %32 = math.exp %31 : vector<12x10xf32>
    %cst_31 = arith.constant dense<0.000000e+00> : vector<12xf32>
    %33 = vector.multi_reduction <add>, %32, %cst_31 [1] : vector<12x10xf32> to vector<12xf32>
    %34 = vector.shape_cast %33 : vector<12xf32> to vector<12x1xf32>
    %cst_32 = arith.constant 1.000000e+00 : f32
    %35 = vector.broadcast %cst_32 : f32 to vector<12x1xf32>
    %36 = arith.divf %35, %34 : vector<12x1xf32>
    %cst_33 = arith.constant dense<0.000000e+00> : vector<12x128xf32>
    %37 = tpu.matmul %32, %26, %cst_33 {dimension_numbers = #tpu.dot_dimension_numbers<[1], [0], [0], [1], [0, 0, 1, 1], [], []>} : vector<12x10xf32>, vector<10x128xf32>, vector<12x128xf32> -> vector<12x128xf32>
    %38 = vector.broadcast %36 : vector<12x1xf32> to vector<12x128xf32>
    %39 = arith.mulf %37, %38 : vector<12x128xf32>
    %c0_34 = arith.constant 0 : index
    %c0_35 = arith.constant 0 : index
    %40 = vector.load %arg15[%c0_34, %c0_35] : memref<12x768xf32, #tpu.memory_space<vmem>>, vector<12x128xf32>
    tpu.vector_store %arg15[%c0_34, %c0_35], %39 {strides = array<i32>} : memref<12x768xf32, #tpu.memory_space<vmem>>, vector<12x128xf32>,
    %c0_36 = arith.constant 0 : index
    %c128 = arith.constant 128 : index
    %41 = vector.load %arg12[%c0_36, %c128] : memref<12x768xf32, #tpu.memory_space<vmem>>, vector<12x128xf32>
    %c0_37 = arith.constant 0 : index
    %c128_38 = arith.constant 128 : index
    %42 = vector.load %arg13[%c0_37, %c128_38] : memref<10x768xf32, #tpu.memory_space<vmem>>, vector<10x128xf32>
    %c0_39 = arith.constant 0 : index
    %c128_40 = arith.constant 128 : index
    %43 = vector.load %arg14[%c0_39, %c128_40] : memref<10x768xf32, #tpu.memory_space<vmem>>, vector<10x128xf32>
    %cst_41 = arith.constant dense<0.000000e+00> : vector<12x10xf32>
    %44 = tpu.matmul %41, %42, %cst_41 {dimension_numbers = #tpu.dot_dimension_numbers<[1], [1], [0], [0], [0, 0, 1, 0], [], []>} : vector<12x128xf32>, vector<10x128xf32>, vector<12x10xf32> -> vector<12x10xf32>
    %cst_42 = arith.constant dense<0xFF800000> : vector<12xf32>
    %45 = vector.multi_reduction <maximumf>, %44, %cst_42 [1] : vector<12x10xf32> to vector<12xf32>
    %46 = vector.shape_cast %45 : vector<12xf32> to vector<12x1xf32>
    %47 = vector.broadcast %46 : vector<12x1xf32> to vector<12x10xf32>
    %48 = arith.subf %44, %47 : vector<12x10xf32>
    %49 = math.exp %48 : vector<12x10xf32>
    %cst_43 = arith.constant dense<0.000000e+00> : vector<12xf32>
    %50 = vector.multi_reduction <add>, %49, %cst_43 [1] : vector<12x10xf32> to vector<12xf32>
    %51 = vector.shape_cast %50 : vector<12xf32> to vector<12x1xf32>
    %cst_44 = arith.constant 1.000000e+00 : f32
    %52 = vector.broadcast %cst_44 : f32 to vector<12x1xf32>
    %53 = arith.divf %52, %51 : vector<12x1xf32>
    %cst_45 = arith.constant dense<0.000000e+00> : vector<12x128xf32>
    %54 = tpu.matmul %49, %43, %cst_45 {dimension_numbers = #tpu.dot_dimension_numbers<[1], [0], [0], [1], [0, 0, 1, 1], [], []>} : vector<12x10xf32>, vector<10x128xf32>, vector<12x128xf32> -> vector<12x128xf32>
    %55 = vector.broadcast %53 : vector<12x1xf32> to vector<12x128xf32>
    %56 = arith.mulf %54, %55 : vector<12x128xf32>
    %c0_46 = arith.constant 0 : index
    %c128_47 = arith.constant 128 : index
    %57 = vector.load %arg15[%c0_46, %c128_47] : memref<12x768xf32, #tpu.memory_space<vmem>>, vector<12x128xf32>
    tpu.vector_store %arg15[%c0_46, %c128_47], %56 {strides = array<i32>} : memref<12x768xf32, #tpu.memory_space<vmem>>, vector<12x128xf32>,
    %c0_48 = arith.constant 0 : index
    %c256 = arith.constant 256 : index
    %58 = vector.load %arg12[%c0_48, %c256] : memref<12x768xf32, #tpu.memory_space<vmem>>, vector<12x128xf32>
    %c0_49 = arith.constant 0 : index
    %c256_50 = arith.constant 256 : index
    %59 = vector.load %arg13[%c0_49, %c256_50] : memref<10x768xf32, #tpu.memory_space<vmem>>, vector<10x128xf32>
    %c0_51 = arith.constant 0 : index
    %c256_52 = arith.constant 256 : index
    %60 = vector.load %arg14[%c0_51, %c256_52] : memref<10x768xf32, #tpu.memory_space<vmem>>, vector<10x128xf32>
    %cst_53 = arith.constant dense<0.000000e+00> : vector<12x10xf32>
    %61 = tpu.matmul %58, %59, %cst_53 {dimension_numbers = #tpu.dot_dimension_numbers<[1], [1], [0], [0], [0, 0, 1, 0], [], []>} : vector<12x128xf32>, vector<10x128xf32>, vector<12x10xf32> -> vector<12x10xf32>
    %cst_54 = arith.constant dense<0xFF800000> : vector<12xf32>
    %62 = vector.multi_reduction <maximumf>, %61, %cst_54 [1] : vector<12x10xf32> to vector<12xf32>
    %63 = vector.shape_cast %62 : vector<12xf32> to vector<12x1xf32>
    %64 = vector.broadcast %63 : vector<12x1xf32> to vector<12x10xf32>
    %65 = arith.subf %61, %64 : vector<12x10xf32>
    %66 = math.exp %65 : vector<12x10xf32>
    %cst_55 = arith.constant dense<0.000000e+00> : vector<12xf32>
    %67 = vector.multi_reduction <add>, %66, %cst_55 [1] : vector<12x10xf32> to vector<12xf32>
    %68 = vector.shape_cast %67 : vector<12xf32> to vector<12x1xf32>
    %cst_56 = arith.constant 1.000000e+00 : f32
    %69 = vector.broadcast %cst_56 : f32 to vector<12x1xf32>
    %70 = arith.divf %69, %68 : vector<12x1xf32>
    %cst_57 = arith.constant dense<0.000000e+00> : vector<12x128xf32>
    %71 = tpu.matmul %66, %60, %cst_57 {dimension_numbers = #tpu.dot_dimension_numbers<[1], [0], [0], [1], [0, 0, 1, 1], [], []>} : vector<12x10xf32>, vector<10x128xf32>, vector<12x128xf32> -> vector<12x128xf32>
    %72 = vector.broadcast %70 : vector<12x1xf32> to vector<12x128xf32>
    %73 = arith.mulf %71, %72 : vector<12x128xf32>
    %c0_58 = arith.constant 0 : index
    %c256_59 = arith.constant 256 : index
    %74 = vector.load %arg15[%c0_58, %c256_59] : memref<12x768xf32, #tpu.memory_space<vmem>>, vector<12x128xf32>
    tpu.vector_store %arg15[%c0_58, %c256_59], %73 {strides = array<i32>} : memref<12x768xf32, #tpu.memory_space<vmem>>, vector<12x128xf32>,
    %c0_60 = arith.constant 0 : index
    %c384 = arith.constant 384 : index
    %75 = vector.load %arg12[%c0_60, %c384] : memref<12x768xf32, #tpu.memory_space<vmem>>, vector<12x128xf32>
    %c0_61 = arith.constant 0 : index
    %c384_62 = arith.constant 384 : index
    %76 = vector.load %arg13[%c0_61, %c384_62] : memref<10x768xf32, #tpu.memory_space<vmem>>, vector<10x128xf32>
    %c0_63 = arith.constant 0 : index
    %c384_64 = arith.constant 384 : index
    %77 = vector.load %arg14[%c0_63, %c384_64] : memref<10x768xf32, #tpu.memory_space<vmem>>, vector<10x128xf32>
    %cst_65 = arith.constant dense<0.000000e+00> : vector<12x10xf32>
    %78 = tpu.matmul %75, %76, %cst_65 {dimension_numbers = #tpu.dot_dimension_numbers<[1], [1], [0], [0], [0, 0, 1, 0], [], []>} : vector<12x128xf32>, vector<10x128xf32>, vector<12x10xf32> -> vector<12x10xf32>
    %cst_66 = arith.constant dense<0xFF800000> : vector<12xf32>
    %79 = vector.multi_reduction <maximumf>, %78, %cst_66 [1] : vector<12x10xf32> to vector<12xf32>
    %80 = vector.shape_cast %79 : vector<12xf32> to vector<12x1xf32>
    %81 = vector.broadcast %80 : vector<12x1xf32> to vector<12x10xf32>
    %82 = arith.subf %78, %81 : vector<12x10xf32>
    %83 = math.exp %82 : vector<12x10xf32>
    %cst_67 = arith.constant dense<0.000000e+00> : vector<12xf32>
    %84 = vector.multi_reduction <add>, %83, %cst_67 [1] : vector<12x10xf32> to vector<12xf32>
    %85 = vector.shape_cast %84 : vector<12xf32> to vector<12x1xf32>
    %cst_68 = arith.constant 1.000000e+00 : f32
    %86 = vector.broadcast %cst_68 : f32 to vector<12x1xf32>
    %87 = arith.divf %86, %85 : vector<12x1xf32>
    %cst_69 = arith.constant dense<0.000000e+00> : vector<12x128xf32>
    %88 = tpu.matmul %83, %77, %cst_69 {dimension_numbers = #tpu.dot_dimension_numbers<[1], [0], [0], [1], [0, 0, 1, 1], [], []>} : vector<12x10xf32>, vector<10x128xf32>, vector<12x128xf32> -> vector<12x128xf32>
    %89 = vector.broadcast %87 : vector<12x1xf32> to vector<12x128xf32>
    %90 = arith.mulf %88, %89 : vector<12x128xf32>
    %c0_70 = arith.constant 0 : index
    %c384_71 = arith.constant 384 : index
    %91 = vector.load %arg15[%c0_70, %c384_71] : memref<12x768xf32, #tpu.memory_space<vmem>>, vector<12x128xf32>
    tpu.vector_store %arg15[%c0_70, %c384_71], %90 {strides = array<i32>} : memref<12x768xf32, #tpu.memory_space<vmem>>, vector<12x128xf32>,
    %c0_72 = arith.constant 0 : index
    %c512 = arith.constant 512 : index
    %92 = vector.load %arg12[%c0_72, %c512] : memref<12x768xf32, #tpu.memory_space<vmem>>, vector<12x128xf32>
    %c0_73 = arith.constant 0 : index
    %c512_74 = arith.constant 512 : index
    %93 = vector.load %arg13[%c0_73, %c512_74] : memref<10x768xf32, #tpu.memory_space<vmem>>, vector<10x128xf32>
    %c0_75 = arith.constant 0 : index
    %c512_76 = arith.constant 512 : index
    %94 = vector.load %arg14[%c0_75, %c512_76] : memref<10x768xf32, #tpu.memory_space<vmem>>, vector<10x128xf32>
    %cst_77 = arith.constant dense<0.000000e+00> : vector<12x10xf32>
    %95 = tpu.matmul %92, %93, %cst_77 {dimension_numbers = #tpu.dot_dimension_numbers<[1], [1], [0], [0], [0, 0, 1, 0], [], []>} : vector<12x128xf32>, vector<10x128xf32>, vector<12x10xf32> -> vector<12x10xf32>
    %cst_78 = arith.constant dense<0xFF800000> : vector<12xf32>
    %96 = vector.multi_reduction <maximumf>, %95, %cst_78 [1] : vector<12x10xf32> to vector<12xf32>
    %97 = vector.shape_cast %96 : vector<12xf32> to vector<12x1xf32>
    %98 = vector.broadcast %97 : vector<12x1xf32> to vector<12x10xf32>
    %99 = arith.subf %95, %98 : vector<12x10xf32>
    %100 = math.exp %99 : vector<12x10xf32>
    %cst_79 = arith.constant dense<0.000000e+00> : vector<12xf32>
    %101 = vector.multi_reduction <add>, %100, %cst_79 [1] : vector<12x10xf32> to vector<12xf32>
    %102 = vector.shape_cast %101 : vector<12xf32> to vector<12x1xf32>
    %cst_80 = arith.constant 1.000000e+00 : f32
    %103 = vector.broadcast %cst_80 : f32 to vector<12x1xf32>
    %104 = arith.divf %103, %102 : vector<12x1xf32>
    %cst_81 = arith.constant dense<0.000000e+00> : vector<12x128xf32>
    %105 = tpu.matmul %100, %94, %cst_81 {dimension_numbers = #tpu.dot_dimension_numbers<[1], [0], [0], [1], [0, 0, 1, 1], [], []>} : vector<12x10xf32>, vector<10x128xf32>, vector<12x128xf32> -> vector<12x128xf32>
    %106 = vector.broadcast %104 : vector<12x1xf32> to vector<12x128xf32>
    %107 = arith.mulf %105, %106 : vector<12x128xf32>
    %c0_82 = arith.constant 0 : index
    %c512_83 = arith.constant 512 : index
    %108 = vector.load %arg15[%c0_82, %c512_83] : memref<12x768xf32, #tpu.memory_space<vmem>>, vector<12x128xf32>
    tpu.vector_store %arg15[%c0_82, %c512_83], %107 {strides = array<i32>} : memref<12x768xf32, #tpu.memory_space<vmem>>, vector<12x128xf32>,
    %c0_84 = arith.constant 0 : index
    %c640 = arith.constant 640 : index
    %109 = vector.load %arg12[%c0_84, %c640] : memref<12x768xf32, #tpu.memory_space<vmem>>, vector<12x128xf32>
    %c0_85 = arith.constant 0 : index
    %c640_86 = arith.constant 640 : index
    %110 = vector.load %arg13[%c0_85, %c640_86] : memref<10x768xf32, #tpu.memory_space<vmem>>, vector<10x128xf32>
    %c0_87 = arith.constant 0 : index
    %c640_88 = arith.constant 640 : index
    %111 = vector.load %arg14[%c0_87, %c640_88] : memref<10x768xf32, #tpu.memory_space<vmem>>, vector<10x128xf32>
    %cst_89 = arith.constant dense<0.000000e+00> : vector<12x10xf32>
    %112 = tpu.matmul %109, %110, %cst_89 {dimension_numbers = #tpu.dot_dimension_numbers<[1], [1], [0], [0], [0, 0, 1, 0], [], []>} : vector<12x128xf32>, vector<10x128xf32>, vector<12x10xf32> -> vector<12x10xf32>
    %cst_90 = arith.constant dense<0xFF800000> : vector<12xf32>
    %113 = vector.multi_reduction <maximumf>, %112, %cst_90 [1] : vector<12x10xf32> to vector<12xf32>
    %114 = vector.shape_cast %113 : vector<12xf32> to vector<12x1xf32>
    %115 = vector.broadcast %114 : vector<12x1xf32> to vector<12x10xf32>
    %116 = arith.subf %112, %115 : vector<12x10xf32>
    %117 = math.exp %116 : vector<12x10xf32>
    %cst_91 = arith.constant dense<0.000000e+00> : vector<12xf32>
    %118 = vector.multi_reduction <add>, %117, %cst_91 [1] : vector<12x10xf32> to vector<12xf32>
    %119 = vector.shape_cast %118 : vector<12xf32> to vector<12x1xf32>
    %cst_92 = arith.constant 1.000000e+00 : f32
    %120 = vector.broadcast %cst_92 : f32 to vector<12x1xf32>
    %121 = arith.divf %120, %119 : vector<12x1xf32>
    %cst_93 = arith.constant dense<0.000000e+00> : vector<12x128xf32>
    %122 = tpu.matmul %117, %111, %cst_93 {dimension_numbers = #tpu.dot_dimension_numbers<[1], [0], [0], [1], [0, 0, 1, 1], [], []>} : vector<12x10xf32>, vector<10x128xf32>, vector<12x128xf32> -> vector<12x128xf32>
    %123 = vector.broadcast %121 : vector<12x1xf32> to vector<12x128xf32>
    %124 = arith.mulf %122, %123 : vector<12x128xf32>
    %c0_94 = arith.constant 0 : index
    %c640_95 = arith.constant 640 : index
    %125 = vector.load %arg15[%c0_94, %c640_95] : memref<12x768xf32, #tpu.memory_space<vmem>>, vector<12x128xf32>
    tpu.vector_store %arg15[%c0_94, %c640_95], %124 {strides = array<i32>} : memref<12x768xf32, #tpu.memory_space<vmem>>, vector<12x128xf32>,
    %c0_96 = arith.constant 0 : index
    %c0_97 = arith.constant 0 : index
    %126 = vector.load %arg15[%c0_96, %c0_97] : memref<12x768xf32, #tpu.memory_space<vmem>>, vector<12x768xf32>
    %c0_98 = arith.constant 0 : index
    %c0_99 = arith.constant 0 : index
    %127 = vector.load %arg9[%c0_98, %c0_99] : memref<768x300xf32, #tpu.memory_space<vmem>>, vector<768x300xf32>
    %cst_100 = arith.constant dense<0.000000e+00> : vector<12x300xf32>
    %128 = tpu.matmul %126, %127, %cst_100 {dimension_numbers = #tpu.dot_dimension_numbers<[1], [0], [0], [1], [0, 0, 1, 1], [], []>} : vector<12x768xf32>, vector<768x300xf32>, vector<12x300xf32> -> vector<12x300xf32>
    %c0_101 = arith.constant 0 : index
    %c0_102 = arith.constant 0 : index
    %129 = vector.load %arg10[%c0_101, %c0_102] : memref<1x300xf32, #tpu.memory_space<vmem>>, vector<1x300xf32>
    %130 = vector.broadcast %129 : vector<1x300xf32> to vector<12x300xf32>
    %131 = arith.addf %128, %130 : vector<12x300xf32>
    %132 = arith.index_cast %c0_i32 : i32 to index
    %c0_103 = arith.constant 0 : index
    %c0_104 = arith.constant 0 : index
    %133 = vector.load %arg11[%132, %c0_103, %c0_104] : memref<2x12x300xf32, #tpu.memory_space<vmem>>, vector<1x12x300xf32>
    %134 = vector.shape_cast %133 : vector<1x12x300xf32> to vector<12x300xf32>
    %135 = vector.shape_cast %131 : vector<12x300xf32> to vector<1x12x300xf32>
    tpu.vector_store %arg11[%132, %c0_103, %c0_104], %135 {strides = array<i32>} : memref<2x12x300xf32, #tpu.memory_space<vmem>>, vector<1x12x300xf32>,
    %c1_i32 = arith.constant 1 : i32
    %136 = arith.index_cast %c1_i32 : i32 to index
    %c0_105 = arith.constant 0 : index
    %c0_106 = arith.constant 0 : index
    %137 = vector.load %arg1[%136, %c0_105, %c0_106] : memref<2x12x300xf32, #tpu.memory_space<vmem>>, vector<1x12x300xf32>
    %138 = vector.shape_cast %137 : vector<1x12x300xf32> to vector<12x300xf32>
    %139 = arith.index_cast %c1_i32 : i32 to index
    %c0_107 = arith.constant 0 : index
    %c0_108 = arith.constant 0 : index
    %140 = vector.load %arg2[%139, %c0_107, %c0_108] : memref<2x10x300xf32, #tpu.memory_space<vmem>>, vector<1x10x300xf32>
    %141 = vector.shape_cast %140 : vector<1x10x300xf32> to vector<10x300xf32>
    %142 = arith.index_cast %c1_i32 : i32 to index
    %c0_109 = arith.constant 0 : index
    %c0_110 = arith.constant 0 : index
    %143 = vector.load %arg3[%142, %c0_109, %c0_110] : memref<2x10x300xf32, #tpu.memory_space<vmem>>, vector<1x10x300xf32>
    %144 = vector.shape_cast %143 : vector<1x10x300xf32> to vector<10x300xf32>
    %c0_111 = arith.constant 0 : index
    %c0_112 = arith.constant 0 : index
    %145 = vector.load %arg4[%c0_111, %c0_112] : memref<300x768xf32, #tpu.memory_space<vmem>>, vector<300x768xf32>
    %cst_113 = arith.constant dense<0.000000e+00> : vector<12x768xf32>
    %146 = tpu.matmul %138, %145, %cst_113 {dimension_numbers = #tpu.dot_dimension_numbers<[1], [0], [0], [1], [0, 0, 1, 1], [], []>} : vector<12x300xf32>, vector<300x768xf32>, vector<12x768xf32> -> vector<12x768xf32>
    %c0_114 = arith.constant 0 : index
    %c0_115 = arith.constant 0 : index
    %147 = vector.load %arg5[%c0_114, %c0_115] : memref<1x768xf32, #tpu.memory_space<vmem>>, vector<1x768xf32>
    %148 = vector.broadcast %147 : vector<1x768xf32> to vector<12x768xf32>
    %149 = arith.addf %146, %148 : vector<12x768xf32>
    %c0_116 = arith.constant 0 : index
    %c0_117 = arith.constant 0 : index
    %150 = vector.load %arg12[%c0_116, %c0_117] : memref<12x768xf32, #tpu.memory_space<vmem>>, vector<12x768xf32>
    tpu.vector_store %arg12[%c0_116, %c0_117], %149 {strides = array<i32>} : memref<12x768xf32, #tpu.memory_space<vmem>>, vector<12x768xf32>,
    %c0_118 = arith.constant 0 : index
    %c0_119 = arith.constant 0 : index
    %151 = vector.load %arg6[%c0_118, %c0_119] : memref<300x768xf32, #tpu.memory_space<vmem>>, vector<300x768xf32>
    %cst_120 = arith.constant dense<0.000000e+00> : vector<10x768xf32>
    %152 = tpu.matmul %141, %151, %cst_120 {dimension_numbers = #tpu.dot_dimension_numbers<[1], [0], [0], [1], [0, 0, 1, 1], [], []>} : vector<10x300xf32>, vector<300x768xf32>, vector<10x768xf32> -> vector<10x768xf32>
    %c0_121 = arith.constant 0 : index
    %c0_122 = arith.constant 0 : index
    %153 = vector.load %arg13[%c0_121, %c0_122] : memref<10x768xf32, #tpu.memory_space<vmem>>, vector<10x768xf32>
    tpu.vector_store %arg13[%c0_121, %c0_122], %152 {strides = array<i32>} : memref<10x768xf32, #tpu.memory_space<vmem>>, vector<10x768xf32>,
    %c0_123 = arith.constant 0 : index
    %c0_124 = arith.constant 0 : index
    %154 = vector.load %arg7[%c0_123, %c0_124] : memref<300x768xf32, #tpu.memory_space<vmem>>, vector<300x768xf32>
    %cst_125 = arith.constant dense<0.000000e+00> : vector<10x768xf32>
    %155 = tpu.matmul %144, %154, %cst_125 {dimension_numbers = #tpu.dot_dimension_numbers<[1], [0], [0], [1], [0, 0, 1, 1], [], []>} : vector<10x300xf32>, vector<300x768xf32>, vector<10x768xf32> -> vector<10x768xf32>
    %c0_126 = arith.constant 0 : index
    %c0_127 = arith.constant 0 : index
    %156 = vector.load %arg8[%c0_126, %c0_127] : memref<1x768xf32, #tpu.memory_space<vmem>>, vector<1x768xf32>
    %157 = vector.broadcast %156 : vector<1x768xf32> to vector<10x768xf32>
    %158 = arith.addf %155, %157 : vector<10x768xf32>
    %c0_128 = arith.constant 0 : index
    %c0_129 = arith.constant 0 : index
    %159 = vector.load %arg14[%c0_128, %c0_129] : memref<10x768xf32, #tpu.memory_space<vmem>>, vector<10x768xf32>
    tpu.vector_store %arg14[%c0_128, %c0_129], %158 {strides = array<i32>} : memref<10x768xf32, #tpu.memory_space<vmem>>, vector<10x768xf32>,
    %c0_130 = arith.constant 0 : index
    %c0_131 = arith.constant 0 : index
    %160 = vector.load %arg12[%c0_130, %c0_131] : memref<12x768xf32, #tpu.memory_space<vmem>>, vector<12x128xf32>
    %c0_132 = arith.constant 0 : index
    %c0_133 = arith.constant 0 : index
    %161 = vector.load %arg13[%c0_132, %c0_133] : memref<10x768xf32, #tpu.memory_space<vmem>>, vector<10x128xf32>
    %c0_134 = arith.constant 0 : index
    %c0_135 = arith.constant 0 : index
    %162 = vector.load %arg14[%c0_134, %c0_135] : memref<10x768xf32, #tpu.memory_space<vmem>>, vector<10x128xf32>
    %cst_136 = arith.constant dense<0.000000e+00> : vector<12x10xf32>
    %163 = tpu.matmul %160, %161, %cst_136 {dimension_numbers = #tpu.dot_dimension_numbers<[1], [1], [0], [0], [0, 0, 1, 0], [], []>} : vector<12x128xf32>, vector<10x128xf32>, vector<12x10xf32> -> vector<12x10xf32>
    %cst_137 = arith.constant dense<0xFF800000> : vector<12xf32>
    %164 = vector.multi_reduction <maximumf>, %163, %cst_137 [1] : vector<12x10xf32> to vector<12xf32>
    %165 = vector.shape_cast %164 : vector<12xf32> to vector<12x1xf32>
    %166 = vector.broadcast %165 : vector<12x1xf32> to vector<12x10xf32>
    %167 = arith.subf %163, %166 : vector<12x10xf32>
    %168 = math.exp %167 : vector<12x10xf32>
    %cst_138 = arith.constant dense<0.000000e+00> : vector<12xf32>
    %169 = vector.multi_reduction <add>, %168, %cst_138 [1] : vector<12x10xf32> to vector<12xf32>
    %170 = vector.shape_cast %169 : vector<12xf32> to vector<12x1xf32>
    %cst_139 = arith.constant 1.000000e+00 : f32
    %171 = vector.broadcast %cst_139 : f32 to vector<12x1xf32>
    %172 = arith.divf %171, %170 : vector<12x1xf32>
    %cst_140 = arith.constant dense<0.000000e+00> : vector<12x128xf32>
    %173 = tpu.matmul %168, %162, %cst_140 {dimension_numbers = #tpu.dot_dimension_numbers<[1], [0], [0], [1], [0, 0, 1, 1], [], []>} : vector<12x10xf32>, vector<10x128xf32>, vector<12x128xf32> -> vector<12x128xf32>
    %174 = vector.broadcast %172 : vector<12x1xf32> to vector<12x128xf32>
    %175 = arith.mulf %173, %174 : vector<12x128xf32>
    %c0_141 = arith.constant 0 : index
    %c0_142 = arith.constant 0 : index
    %176 = vector.load %arg15[%c0_141, %c0_142] : memref<12x768xf32, #tpu.memory_space<vmem>>, vector<12x128xf32>
    tpu.vector_store %arg15[%c0_141, %c0_142], %175 {strides = array<i32>} : memref<12x768xf32, #tpu.memory_space<vmem>>, vector<12x128xf32>,
    %c0_143 = arith.constant 0 : index
    %c128_144 = arith.constant 128 : index
    %177 = vector.load %arg12[%c0_143, %c128_144] : memref<12x768xf32, #tpu.memory_space<vmem>>, vector<12x128xf32>
    %c0_145 = arith.constant 0 : index
    %c128_146 = arith.constant 128 : index
    %178 = vector.load %arg13[%c0_145, %c128_146] : memref<10x768xf32, #tpu.memory_space<vmem>>, vector<10x128xf32>
    %c0_147 = arith.constant 0 : index
    %c128_148 = arith.constant 128 : index
    %179 = vector.load %arg14[%c0_147, %c128_148] : memref<10x768xf32, #tpu.memory_space<vmem>>, vector<10x128xf32>
    %cst_149 = arith.constant dense<0.000000e+00> : vector<12x10xf32>
    %180 = tpu.matmul %177, %178, %cst_149 {dimension_numbers = #tpu.dot_dimension_numbers<[1], [1], [0], [0], [0, 0, 1, 0], [], []>} : vector<12x128xf32>, vector<10x128xf32>, vector<12x10xf32> -> vector<12x10xf32>
    %cst_150 = arith.constant dense<0xFF800000> : vector<12xf32>
    %181 = vector.multi_reduction <maximumf>, %180, %cst_150 [1] : vector<12x10xf32> to vector<12xf32>
    %182 = vector.shape_cast %181 : vector<12xf32> to vector<12x1xf32>
    %183 = vector.broadcast %182 : vector<12x1xf32> to vector<12x10xf32>
    %184 = arith.subf %180, %183 : vector<12x10xf32>
    %185 = math.exp %184 : vector<12x10xf32>
    %cst_151 = arith.constant dense<0.000000e+00> : vector<12xf32>
    %186 = vector.multi_reduction <add>, %185, %cst_151 [1] : vector<12x10xf32> to vector<12xf32>
    %187 = vector.shape_cast %186 : vector<12xf32> to vector<12x1xf32>
    %cst_152 = arith.constant 1.000000e+00 : f32
    %188 = vector.broadcast %cst_152 : f32 to vector<12x1xf32>
    %189 = arith.divf %188, %187 : vector<12x1xf32>
    %cst_153 = arith.constant dense<0.000000e+00> : vector<12x128xf32>
    %190 = tpu.matmul %185, %179, %cst_153 {dimension_numbers = #tpu.dot_dimension_numbers<[1], [0], [0], [1], [0, 0, 1, 1], [], []>} : vector<12x10xf32>, vector<10x128xf32>, vector<12x128xf32> -> vector<12x128xf32>
    %191 = vector.broadcast %189 : vector<12x1xf32> to vector<12x128xf32>
    %192 = arith.mulf %190, %191 : vector<12x128xf32>
    %c0_154 = arith.constant 0 : index
    %c128_155 = arith.constant 128 : index
    %193 = vector.load %arg15[%c0_154, %c128_155] : memref<12x768xf32, #tpu.memory_space<vmem>>, vector<12x128xf32>
    tpu.vector_store %arg15[%c0_154, %c128_155], %192 {strides = array<i32>} : memref<12x768xf32, #tpu.memory_space<vmem>>, vector<12x128xf32>,
    %c0_156 = arith.constant 0 : index
    %c256_157 = arith.constant 256 : index
    %194 = vector.load %arg12[%c0_156, %c256_157] : memref<12x768xf32, #tpu.memory_space<vmem>>, vector<12x128xf32>
    %c0_158 = arith.constant 0 : index
    %c256_159 = arith.constant 256 : index
    %195 = vector.load %arg13[%c0_158, %c256_159] : memref<10x768xf32, #tpu.memory_space<vmem>>, vector<10x128xf32>
    %c0_160 = arith.constant 0 : index
    %c256_161 = arith.constant 256 : index
    %196 = vector.load %arg14[%c0_160, %c256_161] : memref<10x768xf32, #tpu.memory_space<vmem>>, vector<10x128xf32>
    %cst_162 = arith.constant dense<0.000000e+00> : vector<12x10xf32>
    %197 = tpu.matmul %194, %195, %cst_162 {dimension_numbers = #tpu.dot_dimension_numbers<[1], [1], [0], [0], [0, 0, 1, 0], [], []>} : vector<12x128xf32>, vector<10x128xf32>, vector<12x10xf32> -> vector<12x10xf32>
    %cst_163 = arith.constant dense<0xFF800000> : vector<12xf32>
    %198 = vector.multi_reduction <maximumf>, %197, %cst_163 [1] : vector<12x10xf32> to vector<12xf32>
    %199 = vector.shape_cast %198 : vector<12xf32> to vector<12x1xf32>
    %200 = vector.broadcast %199 : vector<12x1xf32> to vector<12x10xf32>
    %201 = arith.subf %197, %200 : vector<12x10xf32>
    %202 = math.exp %201 : vector<12x10xf32>
    %cst_164 = arith.constant dense<0.000000e+00> : vector<12xf32>
    %203 = vector.multi_reduction <add>, %202, %cst_164 [1] : vector<12x10xf32> to vector<12xf32>
    %204 = vector.shape_cast %203 : vector<12xf32> to vector<12x1xf32>
    %cst_165 = arith.constant 1.000000e+00 : f32
    %205 = vector.broadcast %cst_165 : f32 to vector<12x1xf32>
    %206 = arith.divf %205, %204 : vector<12x1xf32>
    %cst_166 = arith.constant dense<0.000000e+00> : vector<12x128xf32>
    %207 = tpu.matmul %202, %196, %cst_166 {dimension_numbers = #tpu.dot_dimension_numbers<[1], [0], [0], [1], [0, 0, 1, 1], [], []>} : vector<12x10xf32>, vector<10x128xf32>, vector<12x128xf32> -> vector<12x128xf32>
    %208 = vector.broadcast %206 : vector<12x1xf32> to vector<12x128xf32>
    %209 = arith.mulf %207, %208 : vector<12x128xf32>
    %c0_167 = arith.constant 0 : index
    %c256_168 = arith.constant 256 : index
    %210 = vector.load %arg15[%c0_167, %c256_168] : memref<12x768xf32, #tpu.memory_space<vmem>>, vector<12x128xf32>
    tpu.vector_store %arg15[%c0_167, %c256_168], %209 {strides = array<i32>} : memref<12x768xf32, #tpu.memory_space<vmem>>, vector<12x128xf32>,
    %c0_169 = arith.constant 0 : index
    %c384_170 = arith.constant 384 : index
    %211 = vector.load %arg12[%c0_169, %c384_170] : memref<12x768xf32, #tpu.memory_space<vmem>>, vector<12x128xf32>
    %c0_171 = arith.constant 0 : index
    %c384_172 = arith.constant 384 : index
    %212 = vector.load %arg13[%c0_171, %c384_172] : memref<10x768xf32, #tpu.memory_space<vmem>>, vector<10x128xf32>
    %c0_173 = arith.constant 0 : index
    %c384_174 = arith.constant 384 : index
    %213 = vector.load %arg14[%c0_173, %c384_174] : memref<10x768xf32, #tpu.memory_space<vmem>>, vector<10x128xf32>
    %cst_175 = arith.constant dense<0.000000e+00> : vector<12x10xf32>
    %214 = tpu.matmul %211, %212, %cst_175 {dimension_numbers = #tpu.dot_dimension_numbers<[1], [1], [0], [0], [0, 0, 1, 0], [], []>} : vector<12x128xf32>, vector<10x128xf32>, vector<12x10xf32> -> vector<12x10xf32>
    %cst_176 = arith.constant dense<0xFF800000> : vector<12xf32>
    %215 = vector.multi_reduction <maximumf>, %214, %cst_176 [1] : vector<12x10xf32> to vector<12xf32>
    %216 = vector.shape_cast %215 : vector<12xf32> to vector<12x1xf32>
    %217 = vector.broadcast %216 : vector<12x1xf32> to vector<12x10xf32>
    %218 = arith.subf %214, %217 : vector<12x10xf32>
    %219 = math.exp %218 : vector<12x10xf32>
    %cst_177 = arith.constant dense<0.000000e+00> : vector<12xf32>
    %220 = vector.multi_reduction <add>, %219, %cst_177 [1] : vector<12x10xf32> to vector<12xf32>
    %221 = vector.shape_cast %220 : vector<12xf32> to vector<12x1xf32>
    %cst_178 = arith.constant 1.000000e+00 : f32
    %222 = vector.broadcast %cst_178 : f32 to vector<12x1xf32>
    %223 = arith.divf %222, %221 : vector<12x1xf32>
    %cst_179 = arith.constant dense<0.000000e+00> : vector<12x128xf32>
    %224 = tpu.matmul %219, %213, %cst_179 {dimension_numbers = #tpu.dot_dimension_numbers<[1], [0], [0], [1], [0, 0, 1, 1], [], []>} : vector<12x10xf32>, vector<10x128xf32>, vector<12x128xf32> -> vector<12x128xf32>
    %225 = vector.broadcast %223 : vector<12x1xf32> to vector<12x128xf32>
    %226 = arith.mulf %224, %225 : vector<12x128xf32>
    %c0_180 = arith.constant 0 : index
    %c384_181 = arith.constant 384 : index
    %227 = vector.load %arg15[%c0_180, %c384_181] : memref<12x768xf32, #tpu.memory_space<vmem>>, vector<12x128xf32>
    tpu.vector_store %arg15[%c0_180, %c384_181], %226 {strides = array<i32>} : memref<12x768xf32, #tpu.memory_space<vmem>>, vector<12x128xf32>,
    %c0_182 = arith.constant 0 : index
    %c512_183 = arith.constant 512 : index
    %228 = vector.load %arg12[%c0_182, %c512_183] : memref<12x768xf32, #tpu.memory_space<vmem>>, vector<12x128xf32>
    %c0_184 = arith.constant 0 : index
    %c512_185 = arith.constant 512 : index
    %229 = vector.load %arg13[%c0_184, %c512_185] : memref<10x768xf32, #tpu.memory_space<vmem>>, vector<10x128xf32>
    %c0_186 = arith.constant 0 : index
    %c512_187 = arith.constant 512 : index
    %230 = vector.load %arg14[%c0_186, %c512_187] : memref<10x768xf32, #tpu.memory_space<vmem>>, vector<10x128xf32>
    %cst_188 = arith.constant dense<0.000000e+00> : vector<12x10xf32>
    %231 = tpu.matmul %228, %229, %cst_188 {dimension_numbers = #tpu.dot_dimension_numbers<[1], [1], [0], [0], [0, 0, 1, 0], [], []>} : vector<12x128xf32>, vector<10x128xf32>, vector<12x10xf32> -> vector<12x10xf32>
    %cst_189 = arith.constant dense<0xFF800000> : vector<12xf32>
    %232 = vector.multi_reduction <maximumf>, %231, %cst_189 [1] : vector<12x10xf32> to vector<12xf32>
    %233 = vector.shape_cast %232 : vector<12xf32> to vector<12x1xf32>
    %234 = vector.broadcast %233 : vector<12x1xf32> to vector<12x10xf32>
    %235 = arith.subf %231, %234 : vector<12x10xf32>
    %236 = math.exp %235 : vector<12x10xf32>
    %cst_190 = arith.constant dense<0.000000e+00> : vector<12xf32>
    %237 = vector.multi_reduction <add>, %236, %cst_190 [1] : vector<12x10xf32> to vector<12xf32>
    %238 = vector.shape_cast %237 : vector<12xf32> to vector<12x1xf32>
    %cst_191 = arith.constant 1.000000e+00 : f32
    %239 = vector.broadcast %cst_191 : f32 to vector<12x1xf32>
    %240 = arith.divf %239, %238 : vector<12x1xf32>
    %cst_192 = arith.constant dense<0.000000e+00> : vector<12x128xf32>
    %241 = tpu.matmul %236, %230, %cst_192 {dimension_numbers = #tpu.dot_dimension_numbers<[1], [0], [0], [1], [0, 0, 1, 1], [], []>} : vector<12x10xf32>, vector<10x128xf32>, vector<12x128xf32> -> vector<12x128xf32>
    %242 = vector.broadcast %240 : vector<12x1xf32> to vector<12x128xf32>
    %243 = arith.mulf %241, %242 : vector<12x128xf32>
    %c0_193 = arith.constant 0 : index
    %c512_194 = arith.constant 512 : index
    %244 = vector.load %arg15[%c0_193, %c512_194] : memref<12x768xf32, #tpu.memory_space<vmem>>, vector<12x128xf32>
    tpu.vector_store %arg15[%c0_193, %c512_194], %243 {strides = array<i32>} : memref<12x768xf32, #tpu.memory_space<vmem>>, vector<12x128xf32>,
    %c0_195 = arith.constant 0 : index
    %c640_196 = arith.constant 640 : index
    %245 = vector.load %arg12[%c0_195, %c640_196] : memref<12x768xf32, #tpu.memory_space<vmem>>, vector<12x128xf32>
    %c0_197 = arith.constant 0 : index
    %c640_198 = arith.constant 640 : index
    %246 = vector.load %arg13[%c0_197, %c640_198] : memref<10x768xf32, #tpu.memory_space<vmem>>, vector<10x128xf32>
    %c0_199 = arith.constant 0 : index
    %c640_200 = arith.constant 640 : index
    %247 = vector.load %arg14[%c0_199, %c640_200] : memref<10x768xf32, #tpu.memory_space<vmem>>, vector<10x128xf32>
    %cst_201 = arith.constant dense<0.000000e+00> : vector<12x10xf32>
    %248 = tpu.matmul %245, %246, %cst_201 {dimension_numbers = #tpu.dot_dimension_numbers<[1], [1], [0], [0], [0, 0, 1, 0], [], []>} : vector<12x128xf32>, vector<10x128xf32>, vector<12x10xf32> -> vector<12x10xf32>
    %cst_202 = arith.constant dense<0xFF800000> : vector<12xf32>
    %249 = vector.multi_reduction <maximumf>, %248, %cst_202 [1] : vector<12x10xf32> to vector<12xf32>
    %250 = vector.shape_cast %249 : vector<12xf32> to vector<12x1xf32>
    %251 = vector.broadcast %250 : vector<12x1xf32> to vector<12x10xf32>
    %252 = arith.subf %248, %251 : vector<12x10xf32>
    %253 = math.exp %252 : vector<12x10xf32>
    %cst_203 = arith.constant dense<0.000000e+00> : vector<12xf32>
    %254 = vector.multi_reduction <add>, %253, %cst_203 [1] : vector<12x10xf32> to vector<12xf32>
    %255 = vector.shape_cast %254 : vector<12xf32> to vector<12x1xf32>
    %cst_204 = arith.constant 1.000000e+00 : f32
    %256 = vector.broadcast %cst_204 : f32 to vector<12x1xf32>
    %257 = arith.divf %256, %255 : vector<12x1xf32>
    %cst_205 = arith.constant dense<0.000000e+00> : vector<12x128xf32>
    %258 = tpu.matmul %253, %247, %cst_205 {dimension_numbers = #tpu.dot_dimension_numbers<[1], [0], [0], [1], [0, 0, 1, 1], [], []>} : vector<12x10xf32>, vector<10x128xf32>, vector<12x128xf32> -> vector<12x128xf32>
    %259 = vector.broadcast %257 : vector<12x1xf32> to vector<12x128xf32>
    %260 = arith.mulf %258, %259 : vector<12x128xf32>
    %c0_206 = arith.constant 0 : index
    %c640_207 = arith.constant 640 : index
    %261 = vector.load %arg15[%c0_206, %c640_207] : memref<12x768xf32, #tpu.memory_space<vmem>>, vector<12x128xf32>
    tpu.vector_store %arg15[%c0_206, %c640_207], %260 {strides = array<i32>} : memref<12x768xf32, #tpu.memory_space<vmem>>, vector<12x128xf32>,
    %c0_208 = arith.constant 0 : index
    %c0_209 = arith.constant 0 : index
    %262 = vector.load %arg15[%c0_208, %c0_209] : memref<12x768xf32, #tpu.memory_space<vmem>>, vector<12x768xf32>
    %c0_210 = arith.constant 0 : index
    %c0_211 = arith.constant 0 : index
    %263 = vector.load %arg9[%c0_210, %c0_211] : memref<768x300xf32, #tpu.memory_space<vmem>>, vector<768x300xf32>
    %cst_212 = arith.constant dense<0.000000e+00> : vector<12x300xf32>
    %264 = tpu.matmul %262, %263, %cst_212 {dimension_numbers = #tpu.dot_dimension_numbers<[1], [0], [0], [1], [0, 0, 1, 1], [], []>} : vector<12x768xf32>, vector<768x300xf32>, vector<12x300xf32> -> vector<12x300xf32>
    %c0_213 = arith.constant 0 : index
    %c0_214 = arith.constant 0 : index
    %265 = vector.load %arg10[%c0_213, %c0_214] : memref<1x300xf32, #tpu.memory_space<vmem>>, vector<1x300xf32>
    %266 = vector.broadcast %265 : vector<1x300xf32> to vector<12x300xf32>
    %267 = arith.addf %264, %266 : vector<12x300xf32>
    %268 = arith.index_cast %c1_i32 : i32 to index
    %c0_215 = arith.constant 0 : index
    %c0_216 = arith.constant 0 : index
    %269 = vector.load %arg11[%268, %c0_215, %c0_216] : memref<2x12x300xf32, #tpu.memory_space<vmem>>, vector<1x12x300xf32>
    %270 = vector.shape_cast %269 : vector<1x12x300xf32> to vector<12x300xf32>
    %271 = vector.shape_cast %267 : vector<12x300xf32> to vector<1x12x300xf32>
    tpu.vector_store %arg11[%268, %c0_215, %c0_216], %271 {strides = array<i32>} : memref<2x12x300xf32, #tpu.memory_space<vmem>>, vector<1x12x300xf32>,
    %c2_i32 = arith.constant 2 : i32
    return
  }
  func.func @transform_0(%arg0: i32) -> (i32, i32, i32) {
    %c0_i32 = arith.constant 0 : i32
    %c0_i32_0 = arith.constant 0 : i32
    %c0_i32_1 = arith.constant 0 : i32
    return %arg0, %c0_i32, %c0_i32_0 : i32, i32, i32
  }
  func.func @transform_1(%arg0: i32) -> (i32, i32, i32) {
    %c0_i32 = arith.constant 0 : i32
    %c0_i32_0 = arith.constant 0 : i32
    %c0_i32_1 = arith.constant 0 : i32
    return %arg0, %c0_i32, %c0_i32_0 : i32, i32, i32
  }
  func.func @transform_2(%arg0: i32) -> (i32, i32, i32) {
    %c0_i32 = arith.constant 0 : i32
    %c0_i32_0 = arith.constant 0 : i32
    %c0_i32_1 = arith.constant 0 : i32
    return %arg0, %c0_i32, %c0_i32_0 : i32, i32, i32
  }
  func.func @transform_3(%arg0: i32) -> (i32, i32) {
    %c0_i32 = arith.constant 0 : i32
    %c0_i32_0 = arith.constant 0 : i32
    %c0_i32_1 = arith.constant 0 : i32
    return %c0_i32, %c0_i32_0 : i32, i32
  }
  func.func @transform_4(%arg0: i32) -> (i32, i32) {
    %c0_i32 = arith.constant 0 : i32
    %c0_i32_0 = arith.constant 0 : i32
    %c0_i32_1 = arith.constant 0 : i32
    return %c0_i32, %c0_i32_0 : i32, i32
  }
  func.func @transform_5(%arg0: i32) -> (i32, i32) {
    %c0_i32 = arith.constant 0 : i32
    %c0_i32_0 = arith.constant 0 : i32
    %c0_i32_1 = arith.constant 0 : i32
    return %c0_i32, %c0_i32_0 : i32, i32
  }
  func.func @transform_6(%arg0: i32) -> (i32, i32) {
    %c0_i32 = arith.constant 0 : i32
    %c0_i32_0 = arith.constant 0 : i32
    %c0_i32_1 = arith.constant 0 : i32
    return %c0_i32, %c0_i32_0 : i32, i32
  }
  func.func @transform_7(%arg0: i32) -> (i32, i32) {
    %c0_i32 = arith.constant 0 : i32
    %c0_i32_0 = arith.constant 0 : i32
    %c0_i32_1 = arith.constant 0 : i32
    return %c0_i32, %c0_i32_0 : i32, i32
  }
  func.func @transform_8(%arg0: i32) -> (i32, i32) {
    %c0_i32 = arith.constant 0 : i32
    %c0_i32_0 = arith.constant 0 : i32
    %c0_i32_1 = arith.constant 0 : i32
    return %c0_i32, %c0_i32_0 : i32, i32
  }
  func.func @transform_9(%arg0: i32) -> (i32, i32) {
    %c0_i32 = arith.constant 0 : i32
    %c0_i32_0 = arith.constant 0 : i32
    %c0_i32_1 = arith.constant 0 : i32
    return %c0_i32, %c0_i32_0 : i32, i32
  }
  func.func @transform_10(%arg0: i32) -> (i32, i32, i32) {
    %c0_i32 = arith.constant 0 : i32
    %c0_i32_0 = arith.constant 0 : i32
    %c0_i32_1 = arith.constant 0 : i32
    return %arg0, %c0_i32, %c0_i32_0 : i32, i32, i32
  }
}

</mosaic_0001>

<bundles_post_ra>
// kernel: tpu_custom_call.1
= control target key start
LH: loop header
LB: loop body
LE: loop exit
PB: predicated region body
PF: predicated region fallthrough
CT: control target
= control target key end

     0   :  { %15 = vsyncpa [#allocation7], 0  ;;  %s12029_s13 = smov 0   ;;  %s17515_s0 = inlined_call_operand.vmem [shape: f32[8,12,300], index: 0, kind: input, shape index: {}]   ;;  %s17516_s1 = inlined_call_operand.vmem [shape: f32[8,10,300], index: 1, kind: input, shape index: {}]   ;;  %s17517_s2 = inlined_call_operand.vmem [shape: f32[8,10,300], index: 2, kind: input, shape index: {}]   ;;  %s17518_s3 = inlined_call_operand.vmem [shape: f32[300,768], index: 3, kind: input, shape index: {}]   ;;  %s17519_s4 = inlined_call_operand.vmem [shape: f32[1,768], index: 4, kind: input, shape index: {}]   ;;  %s17520_s5 = inlined_call_operand.vmem [shape: f32[300,768], index: 5, kind: input, shape index: {}]   ;;  %s17521_s6 = inlined_call_operand.hbm [shape: f32[300,768], index: 6, kind: input, shape index: {}]   ;;  %s17522_s7 = inlined_call_operand.vmem [shape: f32[1,768], index: 7, kind: input, shape index: {}]   ;;  %s17523_s8 = inlined_call_operand.vmem [shape: f32[768,300], index: 8, kind: input, shape index: {}]   ;;  %s17524_s9 = inlined_call_operand.vmem [shape: f32[1,300], index: 9, kind: input, shape index: {}]   ;;  %s17525_s10 = inlined_call_operand.vmem [shape: f32[8,12,300], index: 10, kind: output, shape index: {}]  }
   0x1 LB: > { %s8907_s14 = sadd.s32 4294967295, %s11967_s13   ;;  %p8909_p0 = scmp.ge.s32.totalorder %s11967_s13, 1  ;;  %s11967_s13 = sphi %s12029_s13, %s21_s13  }
   0x2   : > { %p277_p1 = scmp.lt.s32.totalorder %s11967_s13, 5  ;;  %s11969_s15 = smov [#allocation6]  }
   0x3   : > { %s298_s16 = sshll.u32 %s11969_s15, 4  ;;  %p12043_p3 = scmp.eq.s32.totalorder %s8907_s14, 0  ;;  %s299_s16 = int_to_ptr.vmem [resolvable:$true] %s298_s16 }
   0x4   : > { %p12037_p2 = pnand %p8909_p0, %p277_p1  ;;  %s11929_s22 = scalar_lea.hbm %s17521_s6, 29184 }
   0x5   : > { %s17530_s18 = scalar_select %p12043_p3, 1, 0 }
   0x6   : > { %s17529_s17 = scalar_select %p12037_p2, 1, 0 }
   0x7   : > { %p11797_p4 = pneg %p12037_p2  ;;  %p11930_p6 = scmp.ne.s32.totalorder %s17521_s6, %s11929_s22 }
   0x8   : > { %p11936_p10 = scmp.lt.u32.totalorder %s11929_s22, %s17521_s6 }
   0x9   : > { %p12051_p5 = pnand %p12043_p3, %p11797_p4 }
   0xb   : > { %p11931_p7 = pneg %p12051_p5 }
   0xd   : > { %p11932_p8 = pnand %p11931_p7, %p11930_p6 }
   0xf   : > { %p11933_p9 = pneg %p11932_p8 }
  0x11   : > { %p11938_p11 = pnand %p11936_p10, %p11933_p9 }
  0x13   : > { %11941 = shalt.err (!%p11938_p11)
}
  0x14   : > { %s11942_s27 = scalar_lea.vmem %s299_s16, 29184  ;;  %p11950_p1 = scmp.lt.s32.totalorder %s299_s16, %s299_s16 }
  0x15   : > { %p11943_p12 = scmp.ne.s32.totalorder %s299_s16, %s11942_s27  ;;  %p11951_p4 = scmp.lt.s32.totalorder %s11942_s27, %s11942_s27 }
  0x17   : > { %p11945_p13 = pnand %p11943_p12, %p11931_p7  ;;  %p11952_p3 = por %p11951_p4, %p11950_p1 }
  0x19   : > { %p11946_p0 = pneg %p11945_p13 }
  0x1b   : > { %p11953_p2 = pnand %p11952_p3, %p11946_p0 }
  0x1d   : > { %11956 = shalt.err (!%p11953_p2)
}
  0x1e   : > { %s11970_s28 = smov 768   ;;  %s11971_s29 = smov 48  }
  0x1f   : > { %11800 = dma.hbm_to_vmem [thread:$0]  (!%p12051_p5), %s17521_s6, 29184, %s299_s16, [#allocation7], %s11970_s28, %s11970_s28, %s11971_s29  }
  0x20   : > { %p17532_p6 = scmp.ne.s32.totalorder %s17529_s17, 0 }
  0x21   : > { %p17533_p8 = scmp.ne.s32.totalorder (!%p17532_p6), %s17530_s18, 0 }
  0x22   : > { %353 = sbr.rel (%p17532_p6) target bundleno = 5031 (0x13a7), region = 60 }
  0x29   : > { %11962 = dma.done.wait (%p17533_p8), [#allocation7], 29184  }
  0x2a   : > { %11964 = vsyncadd (%p17533_p8), [#allocation7], 4294938112  ;;  %v11972_v0 = vmov 0.0   ;;  %s8914_s12 = sshll.u32 %s8907_s14, 1  ;;  %vm718_vm0 = vcmask 1043456   ;;  %vm11973_vm1 = vmmov 1  }
  0x2b   : > { %878 = vmatprep.mubr.f32.mxu0 %v11972_v0  ;;  %p406_p2 = scmp.lt.s32.totalorder %s8914_s12, 7  ;;  %vm12081_vm2 = vmpackc.low %vm718_vm0, %vm11973_vm1  ;;  %v452_v2 = vld [vmem:[%s17518_s3 + $0x8] sm:$0xff]  ;;  %v458_v3 = vld [vmem:[%s17518_s3 + $0x38] sm:$0xff]  ;;  %vm711_vm3 = vcmask 359424   ;;  %vm2806_vm4 = vcmask 1041408   ;;  %vm2776_vm6 = vcmask 80896  }
  0x2c   : > { %v644_v4 = vld [vmem:[%s17518_s3 + $0x608] sm:$0xff]  ;;  %v9548_v5 = vpack.c.bf16 %v458_v3, %v452_v2  ;;  %v650_v6 = vld [vmem:[%s17518_s3 + $0x638] sm:$0xff]  ;;  %v451_v7 = vld [vmem:[%s17518_s3] sm:$0xff]  ;;  %vm2780_vm7 = vcmask 76800   ;;  %vm4622_vm8 = vcmask 355328  }
  0x2d   : > { %v457_v8 = vld [vmem:[%s17518_s3 + $0x30] sm:$0xff]  ;;  %s17539_s12 = smov (!%p406_p2, %s8914_s12), 7  ;;  %v9612_v9 = vpack.c.bf16 %v650_v6, %v644_v4  ;;  %v643_v11 = vld [vmem:[%s17518_s3 + $0x600] sm:$0xff]  ;;  %v464_v13 = vld [vmem:[%s17518_s3 + $0x68] sm:$0xff] }
  0x2e   : > { %v9550_v10 = vpack.c.bf16 %v457_v8, %v451_v7  ;;  %v649_v12 = vld [vmem:[%s17518_s3 + $0x630] sm:$0xff]  ;;  %9549 = vmatprep.subr.bf16.mxu1 %v9548_v5  ;;  %v470_v15 = vld [vmem:[%s17518_s3 + $0x98] sm:$0xff]  ;;  %v656_v16 = vld [vmem:[%s17518_s3 + $0x668] sm:$0xff]  ;;  %s12139_s15 = smul.u32 48, %s17539_s12 }
  0x2f   : > { %v9614_v14 = vpack.c.bf16 %v649_v12, %v643_v11  ;;  %v662_v17 = vld [vmem:[%s17518_s3 + $0x698] sm:$0xff]  ;;  %9613 = vmatprep.subr.bf16.mxu0 %v9612_v9  ;;  %v9552_v18 = vpack.c.bf16 %v470_v15, %v464_v13  ;;  %v463_v20 = vld [vmem:[%s17518_s3 + $0x60] sm:$0xff]  ;;  %v469_v21 = vld [vmem:[%s17518_s3 + $0x90] sm:$0xff] }
  0x30   : > { %9551 = vmatpush1.bf16.msra.mxu1 %v9550_v10  ;;  %v9616_v19 = vpack.c.bf16 %v662_v17, %v656_v16  ;;  %v655_v22 = vld [vmem:[%s17518_s3 + $0x660] sm:$0xff]  ;;  %v9554_v23 = vpack.c.bf16 %v469_v21, %v463_v20  ;;  %v661_v24 = vld [vmem:[%s17518_s3 + $0x690] sm:$0xff]  ;;  %v476_v25 = vld [vmem:[%s17518_s3 + $0xc8] sm:$0xff]  ;;  %s12181_s22 = scalar_lea.vmem %s17515_s0, %s12139_s15  ;;  %s12846_s20 = scalar_lea.vmem %s17516_s1, %s12139_s15 }
  0x31   : > { %9615 = vmatpush1.bf16.msra.mxu0 %v9614_v14  ;;  %v482_v26 = vld [vmem:[%s17518_s3 + $0xf8] sm:$0xff]  ;;  %9553 = vmatprep.subr.bf16.mxu1 %v9552_v18  ;;  %v9618_v27 = vpack.c.bf16 %v661_v24, %v655_v22  ;;  %v668_v29 = vld [vmem:[%s17518_s3 + $0x6c8] sm:$0xff]  ;;  %v475_v31 = vld [vmem:[%s17518_s3 + $0xc0] sm:$0xff]  ;;  %s13278_s30 = scalar_lea.vmem %s17517_s2, %s12139_s15  ;;  %s16053_s21 = scalar_lea.vmem %s17525_s10, %s12139_s15 }
  0x32   : > { %9617 = vmatprep.subr.bf16.mxu0 %v9616_v19  ;;  %v9556_v28 = vpack.c.bf16 %v482_v26, %v476_v25  ;;  %v674_v30 = vld [vmem:[%s17518_s3 + $0x6f8] sm:$0xf]  ;;  %v481_v33 = vld [vmem:[%s17518_s3 + $0xf0] sm:$0xff]  ;;  %v667_v34 = vld [vmem:[%s17518_s3 + $0x6c0] sm:$0xff] }
  0x33   : > { %v9620_v32 = vpack.c.bf16 %v674_v30, %v668_v29  ;;  %v673_v35 = vld [vmem:[%s17518_s3 + $0x6f0] sm:$0xf]  ;;  %v9558_v36 = vpack.c.bf16 %v481_v33, %v475_v31  ;;  %v488_v37 = vld [vmem:[%s17518_s3 + $0x128] sm:$0xff]  ;;  %v494_v38 = vld [vmem:[%s17518_s3 + $0x158] sm:$0xff] }
  0x34   : > { %9555 = vmatpush1.bf16.msra.mxu1 %v9554_v23  ;;  %v646_v39 = vld [vmem:[%s17518_s3 + $0x618] sm:$0xff]  ;;  %v9623_v40 = vpack.c.bf16 %v673_v35, %v667_v34  ;;  %v9560_v41 = vpack.c.bf16 %v494_v38, %v488_v37  ;;  %v652_v42 = vld [vmem:[%s17518_s3 + $0x648] sm:$0xff]  ;;  %v487_v43 = vld [vmem:[%s17518_s3 + $0x120] sm:$0xff] }
  0x35   : > { %9619 = vmatpush1.bf16.msra.mxu0 %v9618_v27  ;;  %9557 = vmatprep.subr.bf16.mxu1 %v9556_v28  ;;  %v493_v44 = vld [vmem:[%s17518_s3 + $0x150] sm:$0xff]  ;;  %v9690_v45 = vpack.c.bf16 %v652_v42, %v646_v39  ;;  %v651_v47 = vld [vmem:[%s17518_s3 + $0x640] sm:$0xff]  ;;  %v500_v48 = vld [vmem:[%s17518_s3 + $0x188] sm:$0xff] }
  0x36   : > { %9622 = vmatprep.subr.msk.bf16.mxu0 %vm12081_vm2, %v9620_v32  ;;  %v645_v46 = vld [vmem:[%s17518_s3 + $0x610] sm:$0xff]  ;;  %v506_v49 = vld [vmem:[%s17518_s3 + $0x1b8] sm:$0xff]  ;;  %v9562_v51 = vpack.c.bf16 %v493_v44, %v487_v43  ;;  %v664_v53 = vld [vmem:[%s17518_s3 + $0x6a8] sm:$0xff] }
  0x37   : > { %v658_v50 = vld [vmem:[%s17518_s3 + $0x678] sm:$0xff]  ;;  %v12201_v52 = vld [vmem:[%s12181_s22 + $0x10] sm:$0xff]  ;;  %v9692_v54 = vpack.c.bf16 %v651_v47, %v645_v46  ;;  %v9564_v55 = vpack.c.bf16 %v506_v49, %v500_v48  ;;  %v499_v56 = vld [vmem:[%s17518_s3 + $0x180] sm:$0xff] }
  0x38   : > { %9559 = vmatpush1.bf16.msra.mxu1 %v9558_v36  ;;  %v505_v57 = vld [vmem:[%s17518_s3 + $0x1b0] sm:$0xff]  ;;  %v9694_v59 = vpack.c.bf16 %v664_v53, %v658_v50  ;;  %v663_v60 = vld [vmem:[%s17518_s3 + $0x6a0] sm:$0xff]  ;;  %v512_v61 = vld [vmem:[%s17518_s3 + $0x1e8] sm:$0xff] }
  0x39   : > { %9625 = vmatpush1.bf16.msk.msra.mxu0 %vm12081_vm2, %v9623_v40  ;;  %9561 = vmatprep.subr.bf16.mxu1 %v9560_v41  ;;  %v657_v58 = vld [vmem:[%s17518_s3 + $0x670] sm:$0xff]  ;;  %v518_v62 = vld [vmem:[%s17518_s3 + $0x218] sm:$0xff]  ;;  %v676_v2 = vld [vmem:[%s17518_s3 + $0x708] sm:$0xf]  ;;  %v9566_v3 = vpack.c.bf16 %v505_v57, %v499_v56 }
  0x3a   : > { %9691 = vmatprep.subr.bf16.mxu0 %v9690_v45  ;;  %v670_v63 = vld [vmem:[%s17518_s3 + $0x6d8] sm:$0xff]  ;;  %v511_v4 = vld [vmem:[%s17518_s3 + $0x1e0] sm:$0xff]  ;;  %v9696_v5 = vpack.c.bf16 %v663_v60, %v657_v58  ;;  %v9568_v6 = vpack.c.bf16 %v518_v62, %v512_v61  ;;  %v517_v7 = vld [vmem:[%s17518_s3 + $0x210] sm:$0xff] }
  0x3b   : > { %v12241_v8 = vld [vmem:[%s12181_s22 + $0x28] sm:$0xf]  ;;  %v669_v9 = vld [vmem:[%s17518_s3 + $0x6d0] sm:$0xff]  ;;  %v9698_v10 = vpack.c.bf16 %v676_v2, %v670_v63  ;;  %v675_v11 = vld [vmem:[%s17518_s3 + $0x700] sm:$0xf]  ;;  %v9570_v16 = vpack.c.bf16 %v517_v7, %v511_v4 }
  0x3c   : > { %9563 = vmatpush1.bf16.msra.mxu1 %v9562_v51  ;;  %8924 = vmatmul.mubr.msk.f32.vlgmr.msra.gmra.mrb[0].mxu0 %vm711_vm3, %v12201_v52  ;;  %v524_v12 = vld [vmem:[%s17518_s3 + $0x248] sm:$0xff]  ;;  %v530_v13 = vld [vmem:[%s17518_s3 + $0x278] sm:$0xff]  ;;  %v9701_v17 = vpack.c.bf16 %v675_v11, %v669_v9  ;;  %v523_v19 = vld [vmem:[%s17518_s3 + $0x240] sm:$0xff] }
  0x3d   : > { %9693 = vmatpush1.bf16.msra.mxu0 %v9692_v54  ;;  %9565 = vmatprep.subr.bf16.mxu1 %v9564_v55  ;;  %v456_v14 = vld [vmem:[%s17518_s3 + $0x28] sm:$0xff]  ;;  %v462_v15 = vld [vmem:[%s17518_s3 + $0x58] sm:$0xff]  ;;  %v9572_v18 = vpack.c.bf16 %v530_v13, %v524_v12  ;;  %v529_v20 = vld [vmem:[%s17518_s3 + $0x270] sm:$0xff] }
  0x3e   : > { %9695 = vmatprep.subr.bf16.mxu0 %v9694_v59  ;;  %884 = vmatprep.mubr.f32.mxu0 %v11972_v0  ;;  %v455_v21 = vld [vmem:[%s17518_s3 + $0x20] sm:$0xff]  ;;  %v9704_v22 = vpack.c.bf16 %v462_v15, %v456_v14  ;;  %v461_v23 = vld [vmem:[%s17518_s3 + $0x50] sm:$0xff]  ;;  %v536_v24 = vld [vmem:[%s17518_s3 + $0x2a8] sm:$0xff]  ;;  %v9574_v28 = vpack.c.bf16 %v529_v20, %v523_v19 }
  0x3f   : > { %v542_v25 = vld [vmem:[%s17518_s3 + $0x2d8] sm:$0xff]  ;;  %v468_v26 = vld [vmem:[%s17518_s3 + $0x88] sm:$0xff]  ;;  %v9706_v29 = vpack.c.bf16 %v461_v23, %v455_v21  ;;  %v535_v31 = vld [vmem:[%s17518_s3 + $0x2a0] sm:$0xff] }
  0x40   : > { %9567 = vmatpush1.bf16.msra.mxu1 %v9566_v3  ;;  %8925 = vmatmul.mubr.msk.f32.gmra.mrb[2].mxu0 %vm711_vm3, %v12241_v8  ;;  %v474_v27 = vld [vmem:[%s17518_s3 + $0xb8] sm:$0xff]  ;;  %v9576_v30 = vpack.c.bf16 %v542_v25, %v536_v24  ;;  %v541_v32 = vld [vmem:[%s17518_s3 + $0x2d0] sm:$0xff]  ;;  %v467_v33 = vld [vmem:[%s17518_s3 + $0x80] sm:$0xff] }
  0x41   : > { %9697 = vmatpush1.bf16.msra.mxu0 %v9696_v5  ;;  %9569 = vmatprep.subr.bf16.mxu1 %v9568_v6  ;;  %v9708_v34 = vpack.c.bf16 %v474_v27, %v468_v26  ;;  %v473_v35 = vld [vmem:[%s17518_s3 + $0xb0] sm:$0xff]  ;;  %v548_v36 = vld [vmem:[%s17518_s3 + $0x308] sm:$0xff]  ;;  %v554_v37 = vld [vmem:[%s17518_s3 + $0x338] sm:$0xff]  ;;  %v9578_v40 = vpack.c.bf16 %v541_v32, %v535_v31 }
  0x42   : > { %9700 = vmatprep.subr.msk.bf16.mxu0 %vm12081_vm2, %v9698_v10  ;;  %1032 = vmatprep.mubr.f32.mxu0 %v11972_v0  ;;  %v480_v38 = vld [vmem:[%s17518_s3 + $0xe8] sm:$0xff]  ;;  %v486_v39 = vld [vmem:[%s17518_s3 + $0x118] sm:$0xff]  ;;  %v9710_v41 = vpack.c.bf16 %v473_v35, %v467_v33  ;;  %v9580_v42 = vpack.c.bf16 %v554_v37, %v548_v36  ;;  %v547_v43 = vld [vmem:[%s17518_s3 + $0x300] sm:$0xff] }
  0x43   : > { %v553_v44 = vld [vmem:[%s17518_s3 + $0x330] sm:$0xff]  ;;  %v479_v45 = vld [vmem:[%s17518_s3 + $0xe0] sm:$0xff]  ;;  %v9712_v46 = vpack.c.bf16 %v486_v39, %v480_v38  ;;  %v560_v48 = vld [vmem:[%s17518_s3 + $0x368] sm:$0xff] }
  0x44   : > { %9571 = vmatpush1.bf16.msra.mxu1 %v9570_v16  ;;  %v485_v47 = vld [vmem:[%s17518_s3 + $0x110] sm:$0xff]  ;;  %v566_v49 = vld [vmem:[%s17518_s3 + $0x398] sm:$0xff]  ;;  %v492_v50 = vld [vmem:[%s17518_s3 + $0x148] sm:$0xff]  ;;  %v9582_v53 = vpack.c.bf16 %v553_v44, %v547_v43 }
  0x45   : > { %9703 = vmatpush1.bf16.msk.msra.mxu0 %vm12081_vm2, %v9701_v17  ;;  %9573 = vmatprep.subr.bf16.mxu1 %v9572_v18  ;;  %v498_v51 = vld [vmem:[%s17518_s3 + $0x178] sm:$0xff]  ;;  %v9714_v54 = vpack.c.bf16 %v485_v47, %v479_v45  ;;  %v9584_v55 = vpack.c.bf16 %v566_v49, %v560_v48  ;;  %v559_v56 = vld [vmem:[%s17518_s3 + $0x360] sm:$0xff]  ;;  %v565_v57 = vld [vmem:[%s17518_s3 + $0x390] sm:$0xff] }
  0x46   : > { %9705 = vmatprep.subr.bf16.mxu0 %v9704_v22  ;;  %v491_v58 = vld [vmem:[%s17518_s3 + $0x140] sm:$0xff]  ;;  %v9716_v59 = vpack.c.bf16 %v498_v51, %v492_v50  ;;  %v497_v60 = vld [vmem:[%s17518_s3 + $0x170] sm:$0xff]  ;;  %v572_v61 = vld [vmem:[%s17518_s3 + $0x3c8] sm:$0xff]  ;;  %v9586_v3 = vpack.c.bf16 %v565_v57, %v559_v56 }
  0x47   : > { %v578_v62 = vld [vmem:[%s17518_s3 + $0x3f8] sm:$0xff]  ;;  %v504_v63 = vld [vmem:[%s17518_s3 + $0x1a8] sm:$0xff]  ;;  %v9718_v4 = vpack.c.bf16 %v497_v60, %v491_v58  ;;  %v571_v6 = vld [vmem:[%s17518_s3 + $0x3c0] sm:$0xff] }
  0x48   : > { %9575 = vmatpush1.bf16.msra.mxu1 %v9574_v28  ;;  %8928 = vmatmul.mubr.msk.f32.vlgmr.msra.gmra.mrb[4].mxu0 %vm711_vm3, %v12201_v52  ;;  %v510_v2 = vld [vmem:[%s17518_s3 + $0x1d8] sm:$0xff]  ;;  %v9588_v5 = vpack.c.bf16 %v578_v62, %v572_v61  ;;  %v577_v7 = vld [vmem:[%s17518_s3 + $0x3f0] sm:$0xff]  ;;  %v503_v9 = vld [vmem:[%s17518_s3 + $0x1a0] sm:$0xff] }
  0x49   : > { %9707 = vmatpush1.bf16.msra.mxu0 %v9706_v29  ;;  %9577 = vmatprep.subr.bf16.mxu1 %v9576_v30  ;;  %v9720_v10 = vpack.c.bf16 %v510_v2, %v504_v63  ;;  %v509_v11 = vld [vmem:[%s17518_s3 + $0x1d0] sm:$0xff]  ;;  %v584_v12 = vld [vmem:[%s17518_s3 + $0x428] sm:$0xff]  ;;  %v590_v13 = vld [vmem:[%s17518_s3 + $0x458] sm:$0xff]  ;;  %v9590_v16 = vpack.c.bf16 %v577_v7, %v571_v6 }
  0x4a   : > { %9709 = vmatprep.subr.bf16.mxu0 %v9708_v34  ;;  %1038 = vmatprep.mubr.f32.mxu0 %v11972_v0  ;;  %v516_v14 = vld [vmem:[%s17518_s3 + $0x208] sm:$0xff]  ;;  %v522_v15 = vld [vmem:[%s17518_s3 + $0x238] sm:$0xff]  ;;  %v9722_v17 = vpack.c.bf16 %v509_v11, %v503_v9  ;;  %v9592_v18 = vpack.c.bf16 %v590_v13, %v584_v12  ;;  %v583_v19 = vld [vmem:[%s17518_s3 + $0x420] sm:$0xff] }
  0x4b   : > { %v589_v20 = vld [vmem:[%s17518_s3 + $0x450] sm:$0xff]  ;;  %v515_v21 = vld [vmem:[%s17518_s3 + $0x200] sm:$0xff]  ;;  %v9724_v22 = vpack.c.bf16 %v522_v15, %v516_v14  ;;  %v596_v24 = vld [vmem:[%s17518_s3 + $0x488] sm:$0xff] }
  0x4c   : > { %9579 = vmatpush1.bf16.msra.mxu1 %v9578_v40  ;;  %8929 = vmatmul.mubr.msk.f32.gmra.mrb[6].mxu0 %vm711_vm3, %v12241_v8  ;;  %v521_v23 = vld [vmem:[%s17518_s3 + $0x230] sm:$0xff]  ;;  %v602_v25 = vld [vmem:[%s17518_s3 + $0x4b8] sm:$0xff]  ;;  %v528_v26 = vld [vmem:[%s17518_s3 + $0x268] sm:$0xff]  ;;  %v9594_v29 = vpack.c.bf16 %v589_v20, %v583_v19 }
  0x4d   : > { %9711 = vmatpush1.bf16.msra.mxu0 %v9710_v41  ;;  %9581 = vmatprep.subr.bf16.mxu1 %v9580_v42  ;;  %v534_v27 = vld [vmem:[%s17518_s3 + $0x298] sm:$0xff]  ;;  %v12419_v28 = vld [vmem:[%s12181_s22 + $0x8] sm:$0xff]  ;;  %v9726_v30 = vpack.c.bf16 %v521_v23, %v515_v21  ;;  %v9596_v31 = vpack.c.bf16 %v602_v25, %v596_v24  ;;  %v595_v32 = vld [vmem:[%s17518_s3 + $0x480] sm:$0xff] }
  0x4e   : > { %9713 = vmatprep.subr.bf16.mxu0 %v9712_v46  ;;  %801 = vmatprep.mubr.f32.mxu1 %v12419_v28  ;;  %v601_v33 = vld [vmem:[%s17518_s3 + $0x4b0] sm:$0xff]  ;;  %v527_v34 = vld [vmem:[%s17518_s3 + $0x260] sm:$0xff]  ;;  %v9728_v35 = vpack.c.bf16 %v534_v27, %v528_v26  ;;  %v608_v37 = vld [vmem:[%s17518_s3 + $0x4e8] sm:$0xff] }
  0x4f   : > { %v533_v36 = vld [vmem:[%s17518_s3 + $0x290] sm:$0xff]  ;;  %v614_v38 = vld [vmem:[%s17518_s3 + $0x518] sm:$0xff]  ;;  %1109 = vmatprep.mubr.f32.mxu0 %v12419_v28  ;;  %v540_v39 = vld [vmem:[%s17518_s3 + $0x2c8] sm:$0xff]  ;;  %v9598_v41 = vpack.c.bf16 %v601_v33, %v595_v32 }
  0x50   : > { %9583 = vmatpush1.bf16.msra.mxu1 %v9582_v53  ;;  %v546_v40 = vld [vmem:[%s17518_s3 + $0x2f8] sm:$0xff]  ;;  %v9730_v42 = vpack.c.bf16 %v533_v36, %v527_v34  ;;  %v9600_v43 = vpack.c.bf16 %v614_v38, %v608_v37  ;;  %v607_v44 = vld [vmem:[%s17518_s3 + $0x4e0] sm:$0xff]  ;;  %v613_v45 = vld [vmem:[%s17518_s3 + $0x510] sm:$0xff] }
  0x51   : > { %9715 = vmatpush1.bf16.msra.mxu0 %v9714_v54  ;;  %9585 = vmatprep.subr.bf16.mxu1 %v9584_v55  ;;  %v539_v46 = vld [vmem:[%s17518_s3 + $0x2c0] sm:$0xff]  ;;  %v9732_v47 = vpack.c.bf16 %v546_v40, %v540_v39  ;;  %v545_v48 = vld [vmem:[%s17518_s3 + $0x2f0] sm:$0xff]  ;;  %v620_v49 = vld [vmem:[%s17518_s3 + $0x548] sm:$0xff]  ;;  %v9602_v54 = vpack.c.bf16 %v613_v45, %v607_v44 }
  0x52   : > { %9717 = vmatprep.subr.bf16.mxu0 %v9716_v59  ;;  %v626_v50 = vld [vmem:[%s17518_s3 + $0x578] sm:$0xff]  ;;  %v552_v51 = vld [vmem:[%s17518_s3 + $0x328] sm:$0xff]  ;;  %v9734_v55 = vpack.c.bf16 %v545_v48, %v539_v46  ;;  %v619_v57 = vld [vmem:[%s17518_s3 + $0x540] sm:$0xff] }
  0x53   : > { %v558_v53 = vld [vmem:[%s17518_s3 + $0x358] sm:$0xff]  ;;  %v9604_v56 = vpack.c.bf16 %v626_v50, %v620_v49  ;;  %v625_v58 = vld [vmem:[%s17518_s3 + $0x570] sm:$0xff]  ;;  %v551_v59 = vld [vmem:[%s17518_s3 + $0x320] sm:$0xff] }
  0x54   : > { %9587 = vmatpush1.bf16.msra.mxu1 %v9586_v3  ;;  %v9736_v60 = vpack.c.bf16 %v558_v53, %v552_v51  ;;  %v557_v61 = vld [vmem:[%s17518_s3 + $0x350] sm:$0xff]  ;;  %v632_v62 = vld [vmem:[%s17518_s3 + $0x5a8] sm:$0xff]  ;;  %v638_v63 = vld [vmem:[%s17518_s3 + $0x5d8] sm:$0xff] }
  0x55   : > { %9719 = vmatpush1.bf16.msra.mxu0 %v9718_v4  ;;  %9589 = vmatprep.subr.bf16.mxu1 %v9588_v5  ;;  %v564_v2 = vld [vmem:[%s17518_s3 + $0x388] sm:$0xff]  ;;  %v570_v3 = vld [vmem:[%s17518_s3 + $0x3b8] sm:$0xff]  ;;  %v9606_v4 = vpack.c.bf16 %v625_v58, %v619_v57  ;;  %v9738_v5 = vpack.c.bf16 %v557_v61, %v551_v59  ;;  %v9608_v6 = vpack.c.bf16 %v638_v63, %v632_v62  ;;  %v631_v7 = vld [vmem:[%s17518_s3 + $0x5a0] sm:$0xff] }
  0x56   : > { %9721 = vmatprep.subr.bf16.mxu0 %v9720_v10  ;;  %v637_v9 = vld [vmem:[%s17518_s3 + $0x5d0] sm:$0xff]  ;;  %v563_v10 = vld [vmem:[%s17518_s3 + $0x380] sm:$0xff]  ;;  %v9740_v11 = vpack.c.bf16 %v570_v3, %v564_v2  ;;  %v454_v13 = vld [vmem:[%s17518_s3 + $0x18] sm:$0xff] }
  0x57   : > { %v569_v12 = vld [vmem:[%s17518_s3 + $0x3b0] sm:$0xff]  ;;  %v460_v14 = vld [vmem:[%s17518_s3 + $0x48] sm:$0xff]  ;;  %v459_v21 = vld [vmem:[%s17518_s3 + $0x40] sm:$0xff] }
  0x58   : > { %9591 = vmatpush1.bf16.msra.mxu1 %v9590_v16  ;;  %v576_v15 = vld [vmem:[%s17518_s3 + $0x3e8] sm:$0xff]  ;;  %v582_v16 = vld [vmem:[%s17518_s3 + $0x418] sm:$0xff]  ;;  %v9626_v19 = vpack.c.bf16 %v460_v14, %v454_v13  ;;  %v453_v20 = vld [vmem:[%s17518_s3 + $0x10] sm:$0xff] }
  0x59   : > { %9723 = vmatpush1.bf16.msra.mxu0 %v9722_v17  ;;  %9593 = vmatprep.subr.bf16.mxu1 %v9592_v18  ;;  %v9610_v17 = vpack.c.bf16 %v637_v9, %v631_v7  ;;  %v9742_v18 = vpack.c.bf16 %v569_v12, %v563_v10  ;;  %v9744_v23 = vpack.c.bf16 %v582_v16, %v576_v15  ;;  %v581_v24 = vld [vmem:[%s17518_s3 + $0x410] sm:$0xff]  ;;  %v466_v25 = vld [vmem:[%s17518_s3 + $0x78] sm:$0xff]  ;;  %v472_v26 = vld [vmem:[%s17518_s3 + $0xa8] sm:$0xff] }
  0x5a   : > { %9725 = vmatprep.subr.bf16.mxu0 %v9724_v22  ;;  %v575_v22 = vld [vmem:[%s17518_s3 + $0x3e0] sm:$0xff]  ;;  %v588_v27 = vld [vmem:[%s17518_s3 + $0x448] sm:$0xff]  ;;  %v9630_v33 = vpack.c.bf16 %v472_v26, %v466_v25  ;;  %v465_v34 = vld [vmem:[%s17518_s3 + $0x70] sm:$0xff] }
  0x5b   : > { %v9746_v32 = vpack.c.bf16 %v581_v24, %v575_v22  ;;  %v587_v36 = vld [vmem:[%s17518_s3 + $0x440] sm:$0xff]  ;;  %v593_v38 = vld [vmem:[%s17518_s3 + $0x470] sm:$0xff]  ;;  %v478_v39 = vld [vmem:[%s17518_s3 + $0xd8] sm:$0xff] }
  0x5c   : > { %9595 = vmatpush1.bf16.msra.mxu1 %v9594_v29  ;;  %v594_v29 = vld [vmem:[%s17518_s3 + $0x478] sm:$0xff]  ;;  %v484_v40 = vld [vmem:[%s17518_s3 + $0x108] sm:$0xff]  ;;  %v477_v45 = vld [vmem:[%s17518_s3 + $0xd0] sm:$0xff]  ;;  %v9750_v46 = vpack.c.bf16 %v593_v38, %v587_v36 }
  0x5d   : > { %9727 = vmatpush1.bf16.msra.mxu0 %v9726_v30  ;;  %9597 = vmatprep.subr.bf16.mxu1 %v9596_v31  ;;  %v12544_v30 = vld [vmem:[%s12181_s22] sm:$0xff]  ;;  %v9628_v31 = vpack.c.bf16 %v459_v21, %v453_v20  ;;  %v9748_v37 = vpack.c.bf16 %v594_v29, %v588_v27  ;;  %v605_v50 = vld [vmem:[%s17518_s3 + $0x4d0] sm:$0xff]  ;;  %v490_v53 = vld [vmem:[%s17518_s3 + $0x138] sm:$0xff] }
  0x5e   : > { %9729 = vmatprep.subr.bf16.mxu0 %v9728_v35  ;;  %v471_v35 = vld [vmem:[%s17518_s3 + $0xa0] sm:$0xff]  ;;  %v618_v57 = vld [vmem:[%s17518_s3 + $0x538] sm:$0xff]  ;;  %v489_v61 = vld [vmem:[%s17518_s3 + $0x130] sm:$0xff] }
  0x5f   : > { %v9632_v44 = vpack.c.bf16 %v471_v35, %v465_v34  ;;  %v483_v48 = vld [vmem:[%s17518_s3 + $0x100] sm:$0xff]  ;;  %v502_v3 = vld [vmem:[%s17518_s3 + $0x198] sm:$0xff]  ;;  %v629_v15 = vld [vmem:[%s17518_s3 + $0x590] sm:$0xff] }
  0x60   : > { %9599 = vmatpush1.bf16.msra.mxu1 %v9598_v41  ;;  %v600_v41 = vld [vmem:[%s17518_s3 + $0x4a8] sm:$0xff]  ;;  %v599_v49 = vld [vmem:[%s17518_s3 + $0x4a0] sm:$0xff]  ;;  %v9636_v58 = vpack.c.bf16 %v483_v48, %v477_v45  ;;  %v514_v16 = vld [vmem:[%s17518_s3 + $0x1f8] sm:$0xff] }
  0x61   : > { %9731 = vmatpush1.bf16.msra.mxu0 %v9730_v42  ;;  %9601 = vmatprep.subr.bf16.mxu1 %v9600_v43  ;;  %v606_v42 = vld [vmem:[%s17518_s3 + $0x4d8] sm:$0xff]  ;;  %v12572_v43 = vld [vmem:[%s12181_s22 + $0x20] sm:$0xf]  ;;  %v9754_v59 = vpack.c.bf16 %v605_v50, %v599_v49  ;;  %v641_v27 = vld [vmem:[%s17518_s3 + $0x5f0] sm:$0xff] }
  0x62   : > { %9733 = vmatprep.subr.bf16.mxu0 %v9732_v47  ;;  %v9634_v47 = vpack.c.bf16 %v484_v40, %v478_v39  ;;  %v9752_v51 = vpack.c.bf16 %v606_v42, %v600_v41  ;;  %v495_v62 = vld [vmem:[%s17518_s3 + $0x160] sm:$0xff]  ;;  %v526_v29 = vld [vmem:[%s17518_s3 + $0x258] sm:$0xff]  ;;  %v653_v41 = vld [vmem:[%s17518_s3 + $0x650] sm:$0xff] }
  0x63   : > { %v611_v63 = vld [vmem:[%s17518_s3 + $0x500] sm:$0xff]  ;;  %v9640_v7 = vpack.c.bf16 %v495_v62, %v489_v61  ;;  %v538_v42 = vld [vmem:[%s17518_s3 + $0x2b8] sm:$0xff]  ;;  %v660_v45 = vld [vmem:[%s17518_s3 + $0x688] sm:$0xff] }
  0x64   : > { %9603 = vmatpush1.bf16.msra.mxu1 %v9602_v54  ;;  %v496_v54 = vld [vmem:[%s17518_s3 + $0x168] sm:$0xff]  ;;  %v507_v12 = vld [vmem:[%s17518_s3 + $0x1c0] sm:$0xff]  ;;  %v537_v50 = vld [vmem:[%s17518_s3 + $0x2b0] sm:$0xff] }
  0x65   : > { %9735 = vmatpush1.bf16.msra.mxu0 %v9734_v55  ;;  %9605 = vmatprep.subr.bf16.mxu1 %v9604_v56  ;;  %v12594_v55 = vld [vmem:[%s12181_s22 + $0x18] sm:$0xf]  ;;  %v612_v56 = vld [vmem:[%s17518_s3 + $0x508] sm:$0xff]  ;;  %v623_v13 = vld [vmem:[%s17518_s3 + $0x560] sm:$0xff] }
  0x66   : > { %9737 = vmatprep.subr.bf16.mxu0 %v9736_v60  ;;  %v9638_v60 = vpack.c.bf16 %v496_v54, %v490_v53  ;;  %v9756_v2 = vpack.c.bf16 %v618_v57, %v612_v56  ;;  %v9762_v21 = vpack.c.bf16 %v629_v15, %v623_v13  ;;  %v519_v24 = vld [vmem:[%s17518_s3 + $0x220] sm:$0xff]  ;;  %v665_v56 = vld [vmem:[%s17518_s3 + $0x6b0] sm:$0xff]  ;;  %v550_v57 = vld [vmem:[%s17518_s3 + $0x318] sm:$0xff] }
  0x67   : > { %v635_v25 = vld [vmem:[%s17518_s3 + $0x5c0] sm:$0xff]  ;;  %vm13727_vm5 = vmpackc.low %vm2806_vm4, %vm11973_vm1 }
  0x68   : > { %9607 = vmatpush1.bf16.msra.mxu1 %v9606_v4  ;;  %v508_v4 = vld [vmem:[%s17518_s3 + $0x1c8] sm:$0xff]  ;;  %v9766_v35 = vpack.c.bf16 %v641_v27, %v635_v25  ;;  %v531_v38 = vld [vmem:[%s17518_s3 + $0x280] sm:$0xff] }
  0x69   : > { %9739 = vmatpush1.bf16.msra.mxu0 %v9738_v5  ;;  %9609 = vmatprep.subr.bf16.mxu1 %v9608_v6  ;;  %v624_v5 = vld [vmem:[%s17518_s3 + $0x568] sm:$0xff]  ;;  %v630_v6 = vld [vmem:[%s17518_s3 + $0x598] sm:$0xff]  ;;  %v9642_v10 = vpack.c.bf16 %v508_v4, %v502_v3  ;;  %v647_v39 = vld [vmem:[%s17518_s3 + $0x620] sm:$0xff] }
  0x6a   : > { %9741 = vmatprep.subr.bf16.mxu0 %v9740_v11  ;;  %v501_v11 = vld [vmem:[%s17518_s3 + $0x190] sm:$0xff]  ;;  %v9760_v14 = vpack.c.bf16 %v630_v6, %v624_v5  ;;  %v9770_v48 = vpack.c.bf16 %v653_v41, %v647_v39  ;;  %v659_v53 = vld [vmem:[%s17518_s3 + $0x680] sm:$0xff]  ;;  %v562_v6 = vld [vmem:[%s17518_s3 + $0x378] sm:$0xff] }
  0x6b   : > { %v9644_v20 = vpack.c.bf16 %v507_v12, %v501_v11  ;;  %v9774_v62 = vpack.c.bf16 %v665_v56, %v659_v53  ;;  %v671_v3 = vld [vmem:[%s17518_s3 + $0x6e0] sm:$0xff]  ;;  %v677_v5 = vld [vmem:[%s17518_s3 + $0x710] sm:$0xf] }
  0x6c   : > { %9611 = vmatpush1.bf16.msra.mxu1 %v9610_v17  ;;  %v520_v17 = vld [vmem:[%s17518_s3 + $0x228] sm:$0xff]  ;;  %v9779_v12 = vpack.c.bf16 %v677_v5, %v671_v3  ;;  %v567_v15 = vld [vmem:[%s17518_s3 + $0x3a0] sm:$0xff]  ;;  %v597_v53 = vld [vmem:[%s17518_s3 + $0x490] sm:$0xff] }
  0x6d   : > { %9743 = vmatpush1.bf16.msra.mxu0 %v9742_v18  ;;  %9627 = vmatprep.subr.bf16.mxu1 %v9626_v19  ;;  %v636_v18 = vld [vmem:[%s17518_s3 + $0x5c8] sm:$0xff]  ;;  %v642_v19 = vld [vmem:[%s17518_s3 + $0x5f8] sm:$0xff]  ;;  %v9646_v22 = vpack.c.bf16 %v520_v17, %v514_v16  ;;  %v1213_v16 = vld [vmem:[%s17520_s5 + $0x10] sm:$0xff] }
  0x6e   : > { %9745 = vmatprep.subr.bf16.mxu0 %v9744_v23  ;;  %v513_v23 = vld [vmem:[%s17518_s3 + $0x1f0] sm:$0xff]  ;;  %v9764_v26 = vpack.c.bf16 %v642_v19, %v636_v18  ;;  %v1219_v18 = vld [vmem:[%s17520_s5 + $0x40] sm:$0xff]  ;;  %v574_v19 = vld [vmem:[%s17518_s3 + $0x3d8] sm:$0xff] }
  0x6f   : > { %802 = vmatmul.mubr.f32.vlgmr.msra.gmra.mrb[0].mxu1 %v12544_v30  ;;  %v9648_v34 = vpack.c.bf16 %v519_v24, %v513_v23  ;;  %v9862_v24 = vpack.c.bf16 %v1219_v18, %v1213_v16  ;;  %v579_v27 = vld [vmem:[%s17518_s3 + $0x400] sm:$0xff]  ;;  %v1249_v56 = vld [vmem:[%s17520_s5 + $0x130] sm:$0xff] }
  0x70   : > { %9629 = vmatpush1.bf16.msra.mxu1 %v9628_v31  ;;  %807 = vmatprep.mubr.f32.mxu1 %v12572_v43  ;;  %v532_v31 = vld [vmem:[%s17518_s3 + $0x288] sm:$0xff]  ;;  %v591_v41 = vld [vmem:[%s17518_s3 + $0x460] sm:$0xff]  ;;  %v609_v3 = vld [vmem:[%s17518_s3 + $0x4f0] sm:$0xff] }
  0x71   : > { %9747 = vmatpush1.bf16.msra.mxu0 %v9746_v32  ;;  %9631 = vmatprep.subr.bf16.mxu1 %v9630_v33  ;;  %v648_v32 = vld [vmem:[%s17518_s3 + $0x628] sm:$0xff]  ;;  %v654_v33 = vld [vmem:[%s17518_s3 + $0x658] sm:$0xff]  ;;  %v9650_v36 = vpack.c.bf16 %v532_v31, %v526_v29  ;;  %v1225_v29 = vld [vmem:[%s17520_s5 + $0x70] sm:$0xff] }
  0x72   : > { %9749 = vmatprep.subr.bf16.mxu0 %v9748_v37  ;;  %v525_v37 = vld [vmem:[%s17518_s3 + $0x250] sm:$0xff]  ;;  %v9768_v40 = vpack.c.bf16 %v654_v33, %v648_v32  ;;  %v1231_v32 = vld [vmem:[%s17520_s5 + $0xa0] sm:$0xff]  ;;  %v586_v33 = vld [vmem:[%s17518_s3 + $0x438] sm:$0xff] }
  0x73   : > { %808 = vmatmul.mubr.f32.gmra.mrb[2].mxu1 %v12594_v55  ;;  %v1261_v5 = vld [vmem:[%s17520_s5 + $0x190] sm:$0xff] }
  0x74   : > { %9633 = vmatpush1.bf16.msra.mxu1 %v9632_v44  ;;  %955 = vmatprep.mubr.f32.mxu1 %v12419_v28  ;;  %v617_v28 = vld [vmem:[%s17518_s3 + $0x530] sm:$0xff]  ;;  %v544_v44 = vld [vmem:[%s17518_s3 + $0x2e8] sm:$0xff] }
  0x75   : > { %9751 = vmatpush1.bf16.msra.mxu0 %v9750_v46  ;;  %9635 = vmatprep.subr.bf16.mxu1 %v9634_v47  ;;  %v9758_v9 = vpack.c.bf16 %v617_v28, %v611_v63  ;;  %v666_v46 = vld [vmem:[%s17518_s3 + $0x6b8] sm:$0xff]  ;;  %v9652_v47 = vpack.c.bf16 %v531_v38, %v525_v37  ;;  %v9654_v49 = vpack.c.bf16 %v544_v44, %v538_v42  ;;  %v555_v28 = vld [vmem:[%s17518_s3 + $0x340] sm:$0xff]  ;;  %v1237_v42 = vld [vmem:[%s17520_s5 + $0xd0] sm:$0xff] }
  0x76   : > { %9753 = vmatprep.subr.bf16.mxu0 %v9752_v51  ;;  %v543_v51 = vld [vmem:[%s17518_s3 + $0x2e0] sm:$0xff]  ;;  %v9772_v54 = vpack.c.bf16 %v666_v46, %v660_v45  ;;  %v9866_v38 = vpack.c.bf16 %v1231_v32, %v1225_v29  ;;  %v598_v45 = vld [vmem:[%s17518_s3 + $0x498] sm:$0xff]  ;;  %v604_v46 = vld [vmem:[%s17518_s3 + $0x4c8] sm:$0xff] }
  0x77   : > { %v9656_v61 = vpack.c.bf16 %v543_v51, %v537_v50  ;;  %v9674_v51 = vpack.c.bf16 %v604_v46, %v598_v45  ;;  %v621_v16 = vld [vmem:[%s17518_s3 + $0x550] sm:$0xff]  ;;  %v1303_v46 = vld [vmem:[%s17520_s5 + $0x2e0] sm:$0xff] }
  0x78   : > { %9637 = vmatpush1.bf16.msra.mxu1 %v9636_v58  ;;  %v556_v58 = vld [vmem:[%s17518_s3 + $0x348] sm:$0xff]  ;;  %v1273_v18 = vld [vmem:[%s17520_s5 + $0x1f0] sm:$0xff] }
  0x79   : > { %9755 = vmatpush1.bf16.msra.mxu0 %v9754_v59  ;;  %9639 = vmatprep.subr.bf16.mxu1 %v9638_v60  ;;  %v672_v59 = vld [vmem:[%s17518_s3 + $0x6e8] sm:$0xff]  ;;  %v678_v60 = vld [vmem:[%s17518_s3 + $0x718] sm:$0xf]  ;;  %v9658_v63 = vpack.c.bf16 %v556_v58, %v550_v57  ;;  %v1255_v57 = vld [vmem:[%s17520_s5 + $0x160] sm:$0xff] }
  0x7a   : > { %9757 = vmatprep.subr.bf16.mxu0 %v9756_v2  ;;  %v549_v2 = vld [vmem:[%s17518_s3 + $0x310] sm:$0xff]  ;;  %v9776_v4 = vpack.c.bf16 %v678_v60, %v672_v59  ;;  %v610_v58 = vld [vmem:[%s17518_s3 + $0x4f8] sm:$0xff]  ;;  %v616_v59 = vld [vmem:[%s17518_s3 + $0x528] sm:$0xff] }
  0x7b   : > { %v9660_v11 = vpack.c.bf16 %v555_v28, %v549_v2  ;;  %v1262_v60 = vld [vmem:[%s17520_s5 + $0x198] sm:$0xff]  ;;  %v9874_v2 = vpack.c.bf16 %v1255_v57, %v1249_v56  ;;  %v9678_v28 = vpack.c.bf16 %v616_v59, %v610_v58  ;;  %v633_v29 = vld [vmem:[%s17518_s3 + $0x5b0] sm:$0xff]  ;;  %v1223_v56 = vld [vmem:[%s17520_s5 + $0x60] sm:$0xff] }
  0x7c   : > { %9641 = vmatpush1.bf16.msra.mxu1 %v9640_v7  ;;  %v568_v7 = vld [vmem:[%s17518_s3 + $0x3a8] sm:$0xff]  ;;  %v1285_v32 = vld [vmem:[%s17520_s5 + $0x250] sm:$0xff]  ;;  %v1315_v59 = vld [vmem:[%s17520_s5 + $0x340] sm:$0xff] }
  0x7d   : > { %9759 = vmatpush1.bf16.msra.mxu0 %v9758_v9  ;;  %9643 = vmatprep.subr.bf16.mxu1 %v9642_v10  ;;  %v1214_v9 = vld [vmem:[%s17520_s5 + $0x18] sm:$0xff]  ;;  %v1220_v10 = vld [vmem:[%s17520_s5 + $0x48] sm:$0xff]  ;;  %v9662_v13 = vpack.c.bf16 %v568_v7, %v562_v6  ;;  %v1267_v7 = vld [vmem:[%s17520_s5 + $0x1c0] sm:$0xff] }
  0x7e   : > { %9761 = vmatprep.subr.bf16.mxu0 %v9760_v14  ;;  %v561_v14 = vld [vmem:[%s17518_s3 + $0x370] sm:$0xff]  ;;  %v9860_v17 = vpack.c.bf16 %v1220_v10, %v1214_v9  ;;  %v622_v9 = vld [vmem:[%s17518_s3 + $0x558] sm:$0xff]  ;;  %v628_v10 = vld [vmem:[%s17518_s3 + $0x588] sm:$0xff] }
  0x7f   : > { %v9664_v23 = vpack.c.bf16 %v567_v15, %v561_v14  ;;  %v9878_v14 = vpack.c.bf16 %v1267_v7, %v1261_v5  ;;  %v9682_v15 = vpack.c.bf16 %v628_v10, %v622_v9  ;;  %v1309_v57 = vld [vmem:[%s17520_s5 + $0x310] sm:$0xff]  ;;  %v1248_v9 = vld [vmem:[%s17520_s5 + $0x128] sm:$0xff]  ;;  %v1254_v10 = vld [vmem:[%s17520_s5 + $0x158] sm:$0xff] }
  0x80   : > { %9645 = vmatpush1.bf16.msra.mxu1 %v9644_v20  ;;  %v580_v20 = vld [vmem:[%s17518_s3 + $0x408] sm:$0xff]  ;;  %v1241_v5 = vld [vmem:[%s17520_s5 + $0xf0] sm:$0xff] }
  0x81   : > { %9763 = vmatpush1.bf16.msra.mxu0 %v9762_v21  ;;  %9647 = vmatprep.subr.bf16.mxu1 %v9646_v22  ;;  %v1226_v21 = vld [vmem:[%s17520_s5 + $0x78] sm:$0xff]  ;;  %v1232_v22 = vld [vmem:[%s17520_s5 + $0xa8] sm:$0xff]  ;;  %v9666_v25 = vpack.c.bf16 %v580_v20, %v574_v19  ;;  %v1279_v20 = vld [vmem:[%s17520_s5 + $0x220] sm:$0xff] }
  0x82   : > { %9765 = vmatprep.subr.bf16.mxu0 %v9764_v26  ;;  %v573_v26 = vld [vmem:[%s17518_s3 + $0x3d0] sm:$0xff]  ;;  %v9864_v31 = vpack.c.bf16 %v1232_v22, %v1226_v21  ;;  %v634_v21 = vld [vmem:[%s17518_s3 + $0x5b8] sm:$0xff]  ;;  %v640_v22 = vld [vmem:[%s17518_s3 + $0x5e8] sm:$0xff] }
  0x83   : > { %v9668_v37 = vpack.c.bf16 %v579_v27, %v573_v26  ;;  %v9882_v26 = vpack.c.bf16 %v1279_v20, %v1273_v18  ;;  %v9686_v27 = vpack.c.bf16 %v640_v22, %v634_v21  ;;  %v1260_v20 = vld [vmem:[%s17520_s5 + $0x188] sm:$0xff]  ;;  %v1266_v21 = vld [vmem:[%s17520_s5 + $0x1b8] sm:$0xff] }
  0x84   : > { %9649 = vmatpush1.bf16.msra.mxu1 %v9648_v34  ;;  %v592_v34 = vld [vmem:[%s17518_s3 + $0x468] sm:$0xff]  ;;  %v1346_v22 = vld [vmem:[%s17520_s5 + $0x438] sm:$0xff] }
  0x85   : > { %9767 = vmatpush1.bf16.msra.mxu0 %v9766_v35  ;;  %9651 = vmatprep.subr.bf16.mxu1 %v9650_v36  ;;  %v1238_v35 = vld [vmem:[%s17520_s5 + $0xd8] sm:$0xff]  ;;  %v1244_v36 = vld [vmem:[%s17520_s5 + $0x108] sm:$0xff]  ;;  %v9670_v39 = vpack.c.bf16 %v592_v34, %v586_v33  ;;  %v1291_v34 = vld [vmem:[%s17520_s5 + $0x280] sm:$0xff] }
  0x86   : > { %9769 = vmatprep.subr.bf16.mxu0 %v9768_v40  ;;  %v585_v40 = vld [vmem:[%s17518_s3 + $0x430] sm:$0xff]  ;;  %v9868_v44 = vpack.c.bf16 %v1244_v36, %v1238_v35  ;;  %v1212_v35 = vld [vmem:[%s17520_s5 + $0x8] sm:$0xff]  ;;  %v1218_v36 = vld [vmem:[%s17520_s5 + $0x38] sm:$0xff] }
  0x88   : > { %9653 = vmatpush1.bf16.msra.mxu1 %v9652_v47  ;;  %1110 = vmatmul.mubr.f32.vlgmr.msra.gmra.mrb[8].mxu0 %v12544_v30  ;;  %v1250_v47 = vld [vmem:[%s17520_s5 + $0x138] sm:$0xff] }
  0x89   : > { %9771 = vmatpush1.bf16.msra.mxu0 %v9770_v48  ;;  %9655 = vmatprep.subr.bf16.mxu1 %v9654_v49  ;;  %v1256_v48 = vld [vmem:[%s17520_s5 + $0x168] sm:$0xff]  ;;  %v9672_v49 = vpack.c.bf16 %v591_v41, %v585_v40  ;;  %v9886_v40 = vpack.c.bf16 %v1291_v34, %v1285_v32  ;;  %v9782_v41 = vpack.c.bf16 %v1218_v36, %v1212_v35  ;;  %v1278_v35 = vld [vmem:[%s17520_s5 + $0x218] sm:$0xff] }
  0x8a   : > { %9773 = vmatprep.subr.bf16.mxu0 %v9772_v54  ;;  %1115 = vmatprep.mubr.f32.mxu0 %v12572_v43  ;;  %v603_v54 = vld [vmem:[%s17518_s3 + $0x4c0] sm:$0xff]  ;;  %v1272_v34 = vld [vmem:[%s17520_s5 + $0x1e8] sm:$0xff]  ;;  %v1358_v36 = vld [vmem:[%s17520_s5 + $0x498] sm:$0xff] }
  0x8c   : > { %9657 = vmatpush1.bf16.msra.mxu1 %v9656_v61  ;;  %1116 = vmatmul.mubr.f32.gmra.mrb[10].mxu0 %v12594_v55  ;;  %v1268_v61 = vld [vmem:[%s17520_s5 + $0x1c8] sm:$0xff] }
  0x8d   : > { %9775 = vmatpush1.bf16.msra.mxu0 %v9774_v62  ;;  %9659 = vmatprep.subr.bf16.mxu1 %v9658_v63  ;;  %v9676_v62 = vpack.c.bf16 %v603_v54, %v597_v53  ;;  %v12864_v63 = vld [vmem:[%s12846_s20 + $0x8] sm:$0xff]  ;;  %v9876_v6 = vpack.c.bf16 %v1268_v61, %v1262_v60  ;;  %v1242_v61 = vld [vmem:[%s17520_s5 + $0xf8] sm:$0xff] }
  0x8e   : > { %9778 = vmatprep.subr.msk.bf16.mxu0 %vm12081_vm2, %v9776_v4  ;;  %1186 = vmatprep.mubr.f32.mxu0 %v11972_v0  ;;  %v615_v4 = vld [vmem:[%s17518_s3 + $0x520] sm:$0xff]  ;;  %v1236_v60 = vld [vmem:[%s17520_s5 + $0xc8] sm:$0xff] }
  0x90   : > { %9661 = vmatpush1.bf16.msra.mxu1 %v9660_v11  ;;  %v1274_v11 = vld [vmem:[%s17520_s5 + $0x1f8] sm:$0xff] }
  0x91   : > { %9781 = vmatpush1.bf16.msk.msra.mxu0 %vm12081_vm2, %v9779_v12  ;;  %9663 = vmatprep.subr.bf16.mxu1 %v9662_v13  ;;  %v1280_v12 = vld [vmem:[%s17520_s5 + $0x228] sm:$0xff]  ;;  %v9680_v13 = vpack.c.bf16 %v615_v4, %v609_v3  ;;  %v9894_v3 = vpack.c.bf16 %v1315_v59, %v1309_v57  ;;  %v9790_v4 = vpack.c.bf16 %v1242_v61, %v1236_v60  ;;  %v1302_v60 = vld [vmem:[%s17520_s5 + $0x2d8] sm:$0xff] }
  0x92   : > { %9861 = vmatprep.subr.bf16.mxu0 %v9860_v17  ;;  %v627_v17 = vld [vmem:[%s17518_s3 + $0x580] sm:$0xff]  ;;  %v9880_v19 = vpack.c.bf16 %v1280_v12, %v1274_v11  ;;  %v1334_v11 = vld [vmem:[%s17520_s5 + $0x3d8] sm:$0xff]  ;;  %v1340_v12 = vld [vmem:[%s17520_s5 + $0x408] sm:$0xff] }
  0x93   : > { %v9900_v18 = vpack.c.bf16 %v1340_v12, %v1334_v11  ;;  %v1296_v59 = vld [vmem:[%s17520_s5 + $0x2a8] sm:$0xff]  ;;  %v1382_v61 = vld [vmem:[%s17520_s5 + $0x558] sm:$0xff] }
  0x94   : > { %9665 = vmatpush1.bf16.msra.mxu1 %v9664_v23  ;;  %8932 = vmatmul.mubr.msk.f32.vlgmr.msra.gmra.mrb[8].mxu0 %vm711_vm3, %v12201_v52  ;;  %v1243_v52 = vld [vmem:[%s17520_s5 + $0x100] sm:$0xff]  ;;  %v1286_v23 = vld [vmem:[%s17520_s5 + $0x258] sm:$0xff]  ;;  %v1400_v11 = vld [vmem:[%s17520_s5 + $0x5e8] sm:$0xff] }
  0x95   : > { %9863 = vmatpush1.bf16.msra.mxu0 %v9862_v24  ;;  %9667 = vmatprep.subr.bf16.mxu1 %v9666_v25  ;;  %v9870_v50 = vpack.c.bf16 %v1243_v52, %v1237_v42  ;;  %v1292_v24 = vld [vmem:[%s17520_s5 + $0x288] sm:$0xff]  ;;  %v9684_v25 = vpack.c.bf16 %v627_v17, %v621_v16  ;;  %v1211_v42 = vld [vmem:[%s17520_s5] sm:$0xff]  ;;  %v1297_v52 = vld [vmem:[%s17520_s5 + $0x2b0] sm:$0xff] }
  0x96   : > { %9865 = vmatprep.subr.bf16.mxu0 %v9864_v31  ;;  %1192 = vmatprep.mubr.f32.mxu0 %v11972_v0  ;;  %v639_v31 = vld [vmem:[%s17518_s3 + $0x5e0] sm:$0xff]  ;;  %v9884_v33 = vpack.c.bf16 %v1292_v24, %v1286_v23  ;;  %v9890_v53 = vpack.c.bf16 %v1303_v46, %v1297_v52  ;;  %v1253_v17 = vld [vmem:[%s17520_s5 + $0x150] sm:$0xff]  ;;  %v1352_v23 = vld [vmem:[%s17520_s5 + $0x468] sm:$0xff] }
  0x97   : > { %v1247_v16 = vld [vmem:[%s17520_s5 + $0x120] sm:$0xff]  ;;  %v9904_v32 = vpack.c.bf16 %v1352_v23, %v1346_v22  ;;  %v1284_v46 = vld [vmem:[%s17520_s5 + $0x248] sm:$0xff] }
  0x98   : > { %9669 = vmatpush1.bf16.msra.mxu1 %v9668_v37  ;;  %8933 = vmatmul.mubr.msk.f32.gmra.mrb[10].mxu0 %vm711_vm3, %v12241_v8  ;;  %v9872_v8 = vpack.c.bf16 %v1256_v48, %v1250_v47  ;;  %v1298_v37 = vld [vmem:[%s17520_s5 + $0x2b8] sm:$0xff]  ;;  %v1224_v47 = vld [vmem:[%s17520_s5 + $0x68] sm:$0xff]  ;;  %v9796_v24 = vpack.c.bf16 %v1253_v17, %v1247_v16  ;;  %v1313_v16 = vld [vmem:[%s17520_s5 + $0x330] sm:$0xff] }
  0x99   : > { %9867 = vmatpush1.bf16.msra.mxu0 %v9866_v38  ;;  %9671 = vmatprep.subr.bf16.mxu1 %v9670_v39  ;;  %v1304_v38 = vld [vmem:[%s17520_s5 + $0x2e8] sm:$0xff]  ;;  %v9688_v39 = vpack.c.bf16 %v639_v31, %v633_v29  ;;  %v1230_v48 = vld [vmem:[%s17520_s5 + $0x98] sm:$0xff]  ;;  %v1265_v29 = vld [vmem:[%s17520_s5 + $0x1b0] sm:$0xff] }
  0x9a   : > { %9869 = vmatprep.subr.bf16.mxu0 %v9868_v44  ;;  %1681 = vmatprep.mubr.f32.mxu0 %v12864_v63  ;;  %v1217_v44 = vld [vmem:[%s17520_s5 + $0x30] sm:$0xff]  ;;  %v9888_v45 = vpack.c.bf16 %v1304_v38, %v1298_v37  ;;  %v9786_v54 = vpack.c.bf16 %v1230_v48, %v1224_v47  ;;  %v1364_v37 = vld [vmem:[%s17520_s5 + $0x4c8] sm:$0xff]  ;;  %v1290_v47 = vld [vmem:[%s17520_s5 + $0x278] sm:$0xff] }
  0x9b   : > { %v1345_v31 = vld [vmem:[%s17520_s5 + $0x430] sm:$0xff]  ;;  %v9908_v52 = vpack.c.bf16 %v1364_v37, %v1358_v36  ;;  %v1370_v48 = vld [vmem:[%s17520_s5 + $0x4f8] sm:$0xff]  ;;  %v1412_v22 = vld [vmem:[%s17520_s5 + $0x648] sm:$0xff] }
  0x9c   : > { %9673 = vmatpush1.bf16.msra.mxu1 %v9672_v49  ;;  %v1310_v49 = vld [vmem:[%s17520_s5 + $0x318] sm:$0xff]  ;;  %v1393_v17 = vld [vmem:[%s17520_s5 + $0x5b0] sm:$0xff]  ;;  %v1424_v36 = vld [vmem:[%s17520_s5 + $0x6a8] sm:$0xff] }
  0x9d   : > { %9871 = vmatpush1.bf16.msra.mxu0 %v9870_v50  ;;  %9675 = vmatprep.subr.bf16.mxu1 %v9674_v51  ;;  %v1316_v50 = vld [vmem:[%s17520_s5 + $0x348] sm:$0xff]  ;;  %v9784_v51 = vpack.c.bf16 %v1217_v44, %v1211_v42  ;;  %v1277_v42 = vld [vmem:[%s17520_s5 + $0x210] sm:$0xff] }
  0x9e   : > { %9873 = vmatprep.subr.bf16.mxu0 %v9872_v8  ;;  %v1229_v8 = vld [vmem:[%s17520_s5 + $0x90] sm:$0xff]  ;;  %v9892_v58 = vpack.c.bf16 %v1316_v50, %v1310_v49  ;;  %v1376_v49 = vld [vmem:[%s17520_s5 + $0x528] sm:$0xff] }
  0x9f   : > { %v1357_v44 = vld [vmem:[%s17520_s5 + $0x490] sm:$0xff]  ;;  %v9912_v57 = vpack.c.bf16 %v1376_v49, %v1370_v48  ;;  %v13205_v48 = vld [vmem:[%s12846_s20 + $0x20] sm:$0x3]  ;;  %v1430_v49 = vld [vmem:[%s17520_s5 + $0x6d8] sm:$0xff] }
  0xa0   : > { %9677 = vmatpush1.bf16.msra.mxu1 %v9676_v62  ;;  %v1322_v62 = vld [vmem:[%s17520_s5 + $0x378] sm:$0xff] }
  0xa1   : > { %9875 = vmatpush1.bf16.msra.mxu0 %v9874_v2  ;;  %9679 = vmatprep.subr.bf16.mxu1 %v9678_v28  ;;  %v1328_v2 = vld [vmem:[%s17520_s5 + $0x3a8] sm:$0xff]  ;;  %v9788_v28 = vpack.c.bf16 %v1229_v8, %v1223_v56  ;;  %v1289_v56 = vld [vmem:[%s17520_s5 + $0x270] sm:$0xff] }
  0xa2   : > { %9877 = vmatprep.subr.bf16.mxu0 %v9876_v6  ;;  %v1321_v6 = vld [vmem:[%s17520_s5 + $0x370] sm:$0xff]  ;;  %v9896_v7 = vpack.c.bf16 %v1328_v2, %v1322_v62  ;;  %v1388_v62 = vld [vmem:[%s17520_s5 + $0x588] sm:$0xff] }
  0xa3   : > { %v1369_v8 = vld [vmem:[%s17520_s5 + $0x4f0] sm:$0xff] }
  0xa4   : > { %9681 = vmatpush1.bf16.msra.mxu1 %v9680_v13 }
  0xa5   : > { %9879 = vmatpush1.bf16.msra.mxu0 %v9878_v14  ;;  %9683 = vmatprep.subr.bf16.mxu1 %v9682_v15  ;;  %v9794_v15 = vpack.c.bf16 %v1254_v10, %v1248_v9  ;;  %v1314_v9 = vld [vmem:[%s17520_s5 + $0x338] sm:$0xff] }
  0xa6   : > { %9881 = vmatprep.subr.bf16.mxu0 %v9880_v19  ;;  %v1339_v19 = vld [vmem:[%s17520_s5 + $0x400] sm:$0xff]  ;;  %v1394_v10 = vld [vmem:[%s17520_s5 + $0x5b8] sm:$0xff] }
  0xa8   : > { %9685 = vmatpush1.bf16.msra.mxu1 %v9684_v25 }
  0xa9   : > { %9883 = vmatpush1.bf16.msra.mxu0 %v9882_v26  ;;  %9687 = vmatprep.subr.bf16.mxu1 %v9686_v27  ;;  %v9798_v26 = vpack.c.bf16 %v1266_v21, %v1260_v20  ;;  %v1259_v27 = vld [vmem:[%s17520_s5 + $0x180] sm:$0xff]  ;;  %v1326_v20 = vld [vmem:[%s17520_s5 + $0x398] sm:$0xff] }
  0xaa   : > { %9885 = vmatprep.subr.bf16.mxu0 %v9884_v33  ;;  %v1351_v33 = vld [vmem:[%s17520_s5 + $0x460] sm:$0xff]  ;;  %v9800_v38 = vpack.c.bf16 %v1265_v29, %v1259_v27  ;;  %v1406_v21 = vld [vmem:[%s17520_s5 + $0x618] sm:$0xff]  ;;  %v1325_v27 = vld [vmem:[%s17520_s5 + $0x390] sm:$0xff] }
  0xab   : > { %v1405_v29 = vld [vmem:[%s17520_s5 + $0x610] sm:$0xff] }
  0xac   : > { %9689 = vmatpush1.bf16.msra.mxu1 %v9688_v39  ;;  %v9906_v39 = vpack.c.bf16 %v1351_v33, %v1345_v31  ;;  %v9924_v31 = vpack.c.bf16 %v1412_v22, %v1406_v21  ;;  %v1332_v33 = vld [vmem:[%s17520_s5 + $0x3c8] sm:$0xff]  ;;  %v1955_v21 = vld [vmem:[#allocation6 + $0x90] sm:$0xff] }
  0xad   : > { %9887 = vmatpush1.bf16.msra.mxu0 %v9886_v40  ;;  %9783 = vmatprep.subr.bf16.mxu1 %v9782_v41  ;;  %v9802_v40 = vpack.c.bf16 %v1278_v35, %v1272_v34  ;;  %v1271_v41 = vld [vmem:[%s17520_s5 + $0x1e0] sm:$0xff]  ;;  %v1338_v34 = vld [vmem:[%s17520_s5 + $0x3f8] sm:$0xff]  ;;  %v1380_v22 = vld [vmem:[%s17520_s5 + $0x548] sm:$0xff] }
  0xae   : > { %9889 = vmatprep.subr.bf16.mxu0 %v9888_v45  ;;  %v1363_v45 = vld [vmem:[%s17520_s5 + $0x4c0] sm:$0xff]  ;;  %v9804_v50 = vpack.c.bf16 %v1277_v42, %v1271_v41  ;;  %v1418_v35 = vld [vmem:[%s17520_s5 + $0x678] sm:$0xff]  ;;  %v1337_v42 = vld [vmem:[%s17520_s5 + $0x3f0] sm:$0xff] }
  0xaf   : > { %956 = vmatmul.mubr.f32.vlgmr.msra.gmra.mrb[4].mxu1 %v12544_v30  ;;  %v1235_v30 = vld [vmem:[%s17520_s5 + $0xc0] sm:$0xff] }
  0xb0   : > { %9785 = vmatpush1.bf16.msra.mxu1 %v9784_v51  ;;  %961 = vmatprep.mubr.f32.mxu1 %v12572_v43  ;;  %v1327_v43 = vld [vmem:[%s17520_s5 + $0x3a0] sm:$0xff]  ;;  %v9792_v13 = vpack.c.bf16 %v1241_v5, %v1235_v30  ;;  %v9910_v51 = vpack.c.bf16 %v1363_v45, %v1357_v44  ;;  %v1301_v30 = vld [vmem:[%s17520_s5 + $0x2d0] sm:$0xff] }
  0xb1   : > { %9891 = vmatpush1.bf16.msra.mxu0 %v9890_v53  ;;  %9787 = vmatprep.subr.bf16.mxu1 %v9786_v54  ;;  %v9898_v14 = vpack.c.bf16 %v1327_v43, %v1321_v6  ;;  %v9806_v53 = vpack.c.bf16 %v1290_v47, %v1284_v46  ;;  %v1283_v54 = vld [vmem:[%s17520_s5 + $0x240] sm:$0xff]  ;;  %v1381_v5 = vld [vmem:[%s17520_s5 + $0x550] sm:$0xff]  ;;  %v9916_v6 = vpack.c.bf16 %v1388_v62, %v1382_v61  ;;  %v1308_v43 = vld [vmem:[%s17520_s5 + $0x308] sm:$0xff] }
  0xb2   : > { %9893 = vmatprep.subr.bf16.mxu0 %v9892_v58  ;;  %v1375_v58 = vld [vmem:[%s17520_s5 + $0x520] sm:$0xff]  ;;  %v9808_v2 = vpack.c.bf16 %v1289_v56, %v1283_v54  ;;  %v1417_v44 = vld [vmem:[%s17520_s5 + $0x670] sm:$0xff]  ;;  %v1344_v46 = vld [vmem:[%s17520_s5 + $0x428] sm:$0xff] }
  0xb3   : > { %962 = vmatmul.mubr.f32.gmra.mrb[6].mxu1 %v12594_v55  ;;  %v1333_v55 = vld [vmem:[%s17520_s5 + $0x3d0] sm:$0xff]  ;;  %v1331_v41 = vld [vmem:[%s17520_s5 + $0x3c0] sm:$0xff]  ;;  %v1350_v47 = vld [vmem:[%s17520_s5 + $0x458] sm:$0xff] }
  0xb4   : > { %9789 = vmatpush1.bf16.msra.mxu1 %v9788_v28  ;;  %1527 = vmatprep.mubr.f32.mxu1 %v12864_v63  ;;  %v9902_v25 = vpack.c.bf16 %v1339_v19, %v1333_v55  ;;  %v9914_v28 = vpack.c.bf16 %v1375_v58, %v1369_v8  ;;  %v9920_v55 = vpack.c.bf16 %v1400_v11, %v1394_v10  ;;  %v1320_v19 = vld [vmem:[%s17520_s5 + $0x368] sm:$0xff]  ;;  %v1423_v45 = vld [vmem:[%s17520_s5 + $0x6a0] sm:$0xff]  ;;  %v1349_v8 = vld [vmem:[%s17520_s5 + $0x450] sm:$0xff] }
  0xb5   : > { %9895 = vmatpush1.bf16.msra.mxu0 %v9894_v3  ;;  %9791 = vmatprep.subr.bf16.mxu1 %v9790_v4  ;;  %v9810_v3 = vpack.c.bf16 %v1302_v60, %v1296_v59  ;;  %v1295_v4 = vld [vmem:[%s17520_s5 + $0x2a0] sm:$0xff]  ;;  %v9930_v54 = vpack.c.bf16 %v1423_v45, %v1417_v44  ;;  %v9826_v56 = vpack.c.bf16 %v1350_v47, %v1344_v46  ;;  %v1429_v58 = vld [vmem:[%s17520_s5 + $0x6d0] sm:$0xff]  ;;  %v1356_v61 = vld [vmem:[%s17520_s5 + $0x488] sm:$0xff] }
  0xb6   : > { %9897 = vmatprep.subr.bf16.mxu0 %v9896_v7  ;;  %v1387_v7 = vld [vmem:[%s17520_s5 + $0x580] sm:$0xff]  ;;  %v9812_v12 = vpack.c.bf16 %v1301_v30, %v1295_v4  ;;  %v1362_v62 = vld [vmem:[%s17520_s5 + $0x4b8] sm:$0xff]  ;;  %v1368_v10 = vld [vmem:[%s17520_s5 + $0x4e8] sm:$0xff] }
  0xb7   : > { %v1435_v60 = vld [vmem:[%s17520_s5 + $0x700] sm:$0xf]  ;;  %v9830_v30 = vpack.c.bf16 %v1362_v62, %v1356_v61  ;;  %v1374_v11 = vld [vmem:[%s17520_s5 + $0x518] sm:$0xff]  ;;  %v1397_v47 = vld [vmem:[%s17520_s5 + $0x5d0] sm:$0xff] }
  0xb8   : > { %9793 = vmatpush1.bf16.msra.mxu1 %v9792_v13  ;;  %v9918_v13 = vpack.c.bf16 %v1387_v7, %v1381_v5  ;;  %v9935_v4 = vpack.c.bf16 %v1435_v60, %v1429_v58  ;;  %v1355_v5 = vld [vmem:[%s17520_s5 + $0x480] sm:$0xff]  ;;  %v1409_v62 = vld [vmem:[%s17520_s5 + $0x630] sm:$0xff] }
  0xb9   : > { %9899 = vmatpush1.bf16.msra.mxu0 %v9898_v14  ;;  %9795 = vmatprep.subr.bf16.mxu1 %v9794_v15  ;;  %v9814_v14 = vpack.c.bf16 %v1314_v9, %v1308_v43  ;;  %v1307_v15 = vld [vmem:[%s17520_s5 + $0x300] sm:$0xff]  ;;  %v1943_v9 = vld [vmem:[#allocation6 + $0x30] sm:$0xff] }
  0xba   : > { %9901 = vmatprep.subr.bf16.mxu0 %v9900_v18  ;;  %v1399_v18 = vld [vmem:[%s17520_s5 + $0x5e0] sm:$0xff]  ;;  %v9816_v23 = vpack.c.bf16 %v1313_v16, %v1307_v15  ;;  %v13253_v15 = vld [vmem:[%s12846_s20 + $0x10] sm:$0xff] }
  0xbb   : > { %v1937_v7 = vld [vmem:[#allocation6] sm:$0xff] }
  0xbc   : > { %9797 = vmatpush1.bf16.msra.mxu1 %v9796_v24  ;;  %v9922_v24 = vpack.c.bf16 %v1399_v18, %v1393_v17  ;;  %v10018_v16 = vpack.c.bf16 %v1943_v9, %v1937_v7  ;;  %v9834_v17 = vpack.c.bf16 %v1374_v11, %v1368_v10  ;;  %v1373_v18 = vld [vmem:[%s17520_s5 + $0x510] sm:$0xff]  ;;  %v1391_v46 = vld [vmem:[%s17520_s5 + $0x5a0] sm:$0xff] }
  0xbd   : > { %9903 = vmatpush1.bf16.msra.mxu0 %v9902_v25  ;;  %9799 = vmatprep.subr.bf16.mxu1 %v9798_v26  ;;  %v9818_v25 = vpack.c.bf16 %v1326_v20, %v1320_v19  ;;  %v1319_v26 = vld [vmem:[%s17520_s5 + $0x360] sm:$0xff]  ;;  %v9844_v58 = vpack.c.bf16 %v1397_v47, %v1391_v46  ;;  %v1421_v11 = vld [vmem:[%s17520_s5 + $0x690] sm:$0xff]  ;;  %v2034_v46 = vld [vmem:[#allocation6 + $0x308] sm:$0xff] }
  0xbe   : > { %9905 = vmatprep.subr.bf16.mxu0 %v9904_v32  ;;  %v1411_v32 = vld [vmem:[%s17520_s5 + $0x640] sm:$0xff]  ;;  %v9820_v37 = vpack.c.bf16 %v1325_v27, %v1319_v26  ;;  %v2040_v47 = vld [vmem:[#allocation6 + $0x338] sm:$0xff] }
  0xbf   : > { %v1949_v19 = vld [vmem:[#allocation6 + $0x60] sm:$0xff] }
  0xc0   : > { %9801 = vmatpush1.bf16.msra.mxu1 %v9800_v38  ;;  %v13184_v38 = vld [vmem:[%s12846_s20] sm:$0xff] }
  0xc1   : > { %9907 = vmatpush1.bf16.msra.mxu0 %v9906_v39  ;;  %9803 = vmatprep.subr.bf16.mxu1 %v9802_v40  ;;  %v9926_v39 = vpack.c.bf16 %v1411_v32, %v1405_v29  ;;  %v9822_v40 = vpack.c.bf16 %v1338_v34, %v1332_v33  ;;  %v1379_v27 = vld [vmem:[%s17520_s5 + $0x540] sm:$0xff]  ;;  %v10022_v29 = vpack.c.bf16 %v1955_v21, %v1949_v19  ;;  %v1385_v32 = vld [vmem:[%s17520_s5 + $0x570] sm:$0xff] }
  0xc2   : > { %9909 = vmatprep.subr.bf16.mxu0 %v9908_v52  ;;  %v9928_v52 = vpack.c.bf16 %v1424_v36, %v1418_v35  ;;  %v1961_v33 = vld [vmem:[#allocation6 + $0xc0] sm:$0xff]  ;;  %v1967_v34 = vld [vmem:[#allocation6 + $0xf0] sm:$0xff]  ;;  %v1392_v36 = vld [vmem:[%s17520_s5 + $0x5a8] sm:$0xff]  ;;  %v9840_v44 = vpack.c.bf16 %v1385_v32, %v1379_v27 }
  0xc3   : > { %v1403_v61 = vld [vmem:[%s17520_s5 + $0x600] sm:$0xff]  ;;  %v1216_v27 = vld [vmem:[%s17520_s5 + $0x28] sm:$0xff]  ;;  %v2028_v32 = vld [vmem:[#allocation6 + $0x2d8] sm:$0xff] }
  0xc4   : > { %9805 = vmatpush1.bf16.msra.mxu1 %v9804_v50  ;;  %v1436_v50 = vld [vmem:[%s17520_s5 + $0x708] sm:$0xf]  ;;  %v9848_v7 = vpack.c.bf16 %v1409_v62, %v1403_v61  ;;  %v1415_v10 = vld [vmem:[%s17520_s5 + $0x660] sm:$0xff]  ;;  %v2052_v62 = vld [vmem:[#allocation6 + $0x398] sm:$0xff] }
  0xc5   : > { %9911 = vmatpush1.bf16.msra.mxu0 %v9910_v51  ;;  %9807 = vmatprep.subr.bf16.mxu1 %v9806_v53  ;;  %v9824_v51 = vpack.c.bf16 %v1337_v42, %v1331_v41  ;;  %v1343_v53 = vld [vmem:[%s17520_s5 + $0x420] sm:$0xff]  ;;  %v9932_v59 = vpack.c.bf16 %v1436_v50, %v1430_v49  ;;  %v13291_v41 = vld [vmem:[%s12846_s20 + $0x28] sm:$0x3]  ;;  %v9852_v19 = vpack.c.bf16 %v1421_v11, %v1415_v10  ;;  %v2064_v11 = vld [vmem:[#allocation6 + $0x3f8] sm:$0xff] }
  0xc6   : > { %9913 = vmatprep.subr.bf16.mxu0 %v9912_v57  ;;  %v13221_v57 = vld [vmem:[%s12846_s20 + $0x18] sm:$0x3]  ;;  %v13294_v42 = vld [vmem:[%s13278_s30 + $0x8] sm:$0xff]  ;;  %v1973_v49 = vld [vmem:[#allocation6 + $0x120] sm:$0xff] }
  0xc7   : > { %v2046_v61 = vld [vmem:[#allocation6 + $0x368] sm:$0xff] }
  0xc8   : > { %9809 = vmatpush1.bf16.msra.mxu1 %v9808_v2  ;;  %v1938_v2 = vld [vmem:[#allocation6 + $0x8] sm:$0xff] }
  0xc9   : > { %9915 = vmatpush1.bf16.msra.mxu0 %v9914_v28  ;;  %9811 = vmatprep.subr.bf16.mxu1 %v9810_v3  ;;  %v1944_v28 = vld [vmem:[#allocation6 + $0x38] sm:$0xff]  ;;  %v9828_v3 = vpack.c.bf16 %v1349_v8, %v1343_v53  ;;  %v1404_v53 = vld [vmem:[%s17520_s5 + $0x608] sm:$0xff] }
  0xca   : > { %9917 = vmatprep.subr.bf16.mxu0 %v9916_v6  ;;  %v1361_v6 = vld [vmem:[%s17520_s5 + $0x4b0] sm:$0xff]  ;;  %v10016_v43 = vpack.c.bf16 %v1944_v28, %v1938_v2  ;;  %v1992_v8 = vld [vmem:[#allocation6 + $0x1b8] sm:$0xff]  ;;  %v1985_v2 = vld [vmem:[#allocation6 + $0x180] sm:$0xff] }
  0xcb   : > { %v2058_v10 = vld [vmem:[#allocation6 + $0x3c8] sm:$0xff] }
  0xcc   : > { %9813 = vmatpush1.bf16.msra.mxu1 %v9812_v12  ;;  %v1950_v12 = vld [vmem:[#allocation6 + $0x68] sm:$0xff] }
  0xcd   : > { %9919 = vmatpush1.bf16.msra.mxu0 %v9918_v13  ;;  %9815 = vmatprep.subr.bf16.mxu1 %v9814_v14  ;;  %v1956_v13 = vld [vmem:[#allocation6 + $0x98] sm:$0xff]  ;;  %v9832_v14 = vpack.c.bf16 %v1361_v6, %v1355_v5  ;;  %v1998_v5 = vld [vmem:[#allocation6 + $0x1e8] sm:$0xff] }
  0xce   : > { %9921 = vmatprep.subr.bf16.mxu0 %v9920_v55  ;;  %v1367_v55 = vld [vmem:[%s17520_s5 + $0x4e0] sm:$0xff]  ;;  %v10020_v20 = vpack.c.bf16 %v1956_v13, %v1950_v12  ;;  %v2004_v6 = vld [vmem:[#allocation6 + $0x218] sm:$0xff] }
  0xcf   : > { %v9836_v26 = vpack.c.bf16 %v1373_v18, %v1367_v55  ;;  %v1997_v12 = vld [vmem:[#allocation6 + $0x1e0] sm:$0xff]  ;;  %v10036_v13 = vpack.c.bf16 %v2004_v6, %v1998_v5  ;;  %v2010_v55 = vld [vmem:[#allocation6 + $0x248] sm:$0xff]  ;;  %v2016_v18 = vld [vmem:[#allocation6 + $0x278] sm:$0xff]  ;;  %v10052_v6 = vpack.c.bf16 %v2052_v62, %v2046_v61 }
  0xd0   : > { %9817 = vmatpush1.bf16.msra.mxu1 %v9816_v23  ;;  %v1386_v23 = vld [vmem:[%s17520_s5 + $0x578] sm:$0xff]  ;;  %v2045_v5 = vld [vmem:[#allocation6 + $0x360] sm:$0xff]  ;;  %v2099_v62 = vld [vmem:[#allocation6 + $0x510] sm:$0xff] }
  0xd1   : > { %9923 = vmatpush1.bf16.msra.mxu0 %v9922_v24  ;;  %9819 = vmatprep.subr.bf16.mxu1 %v9818_v25  ;;  %v1962_v24 = vld [vmem:[#allocation6 + $0xc8] sm:$0xff]  ;;  %v1968_v25 = vld [vmem:[#allocation6 + $0xf8] sm:$0xff] }
  0xd2   : > { %9925 = vmatprep.subr.bf16.mxu0 %v9924_v31  ;;  %v9838_v31 = vpack.c.bf16 %v1386_v23, %v1380_v22  ;;  %v10024_v35 = vpack.c.bf16 %v1968_v25, %v1962_v24  ;;  %v1427_v22 = vld [vmem:[%s17520_s5 + $0x6c0] sm:$0xff]  ;;  %v1433_v23 = vld [vmem:[%s17520_s5 + $0x6f0] sm:$0xf]  ;;  %v10040_v25 = vpack.c.bf16 %v2016_v18, %v2010_v55  ;;  %v10056_v18 = vpack.c.bf16 %v2064_v11, %v2058_v10 }
  0xd3   : > { %v2009_v24 = vld [vmem:[#allocation6 + $0x240] sm:$0xff]  ;;  %v1305_v10 = vld [vmem:[%s17520_s5 + $0x2f0] sm:$0xff] }
  0xd4   : > { %9821 = vmatpush1.bf16.msra.mxu1 %v9820_v37  ;;  %1682 = vmatmul.mubr.f32.vlgmr.msra.gmra.mrb[12].mxu0 %v13184_v38  ;;  %v1398_v37 = vld [vmem:[%s17520_s5 + $0x5d8] sm:$0xff]  ;;  %v2057_v55 = vld [vmem:[#allocation6 + $0x3c0] sm:$0xff] }
  0xd5   : > { %9927 = vmatpush1.bf16.msra.mxu0 %v9926_v39  ;;  %9823 = vmatprep.subr.bf16.mxu1 %v9822_v40  ;;  %v1974_v39 = vld [vmem:[#allocation6 + $0x128] sm:$0xff]  ;;  %v1980_v40 = vld [vmem:[#allocation6 + $0x158] sm:$0xff]  ;;  %v9842_v45 = vpack.c.bf16 %v1398_v37, %v1392_v36  ;;  %v1215_v36 = vld [vmem:[%s17520_s5 + $0x20] sm:$0xff] }
  0xd6   : > { %9929 = vmatprep.subr.bf16.mxu0 %v9928_v52  ;;  %1687 = vmatprep.mubr.f32.mxu0 %v13205_v48  ;;  %v10026_v52 = vpack.c.bf16 %v1967_v34, %v1961_v33  ;;  %v10028_v50 = vpack.c.bf16 %v1980_v40, %v1974_v39  ;;  %v9857_v33 = vpack.c.bf16 %v1433_v23, %v1427_v22  ;;  %v1221_v37 = vld [vmem:[%s17520_s5 + $0x50] sm:$0xff]  ;;  %v2021_v39 = vld [vmem:[#allocation6 + $0x2a0] sm:$0xff]  ;;  %v2076_v22 = vld [vmem:[#allocation6 + $0x458] sm:$0xff] }
  0xd7   : > { %v2105_v11 = vld [vmem:[#allocation6 + $0x540] sm:$0xff] }
  0xd8   : > { %9825 = vmatpush1.bf16.msra.mxu1 %v9824_v51  ;;  %1688 = vmatmul.mubr.f32.gmra.mrb[14].mxu0 %v13221_v57  ;;  %v1979_v51 = vld [vmem:[#allocation6 + $0x150] sm:$0xff] }
  0xd9   : > { %9931 = vmatpush1.bf16.msra.mxu0 %v9930_v54  ;;  %9827 = vmatprep.subr.bf16.mxu1 %v9826_v56  ;;  %v1410_v54 = vld [vmem:[%s17520_s5 + $0x638] sm:$0xff]  ;;  %v1986_v56 = vld [vmem:[#allocation6 + $0x188] sm:$0xff] }
  0xda   : > { %9934 = vmatprep.subr.msk.bf16.mxu0 %vm12081_vm2, %v9932_v59  ;;  %1758 = vmatprep.mubr.f32.mxu0 %v11972_v0  ;;  %v10030_v59 = vpack.c.bf16 %v1979_v51, %v1973_v49  ;;  %v9846_v60 = vpack.c.bf16 %v1410_v54, %v1404_v53  ;;  %v10032_v28 = vpack.c.bf16 %v1992_v8, %v1986_v56  ;;  %v1227_v53 = vld [vmem:[%s17520_s5 + $0x80] sm:$0xff]  ;;  %v1233_v54 = vld [vmem:[%s17520_s5 + $0xb0] sm:$0xff] }
  0xdb   : > { %v9940_v49 = vpack.c.bf16 %v1221_v37, %v1215_v36  ;;  %v2033_v56 = vld [vmem:[#allocation6 + $0x300] sm:$0xff]  ;;  %v10048_v8 = vpack.c.bf16 %v2040_v47, %v2034_v46  ;;  %v2088_v36 = vld [vmem:[#allocation6 + $0x4b8] sm:$0xff]  ;;  %v2087_v47 = vld [vmem:[#allocation6 + $0x4b0] sm:$0xff] }
  0xdc   : > { %9829 = vmatpush1.bf16.msra.mxu1 %v9828_v3  ;;  %v1991_v3 = vld [vmem:[#allocation6 + $0x1b0] sm:$0xff] }
  0xdd   : > { %9937 = vmatpush1.bf16.msk.msra.mxu0 %vm12081_vm2, %v9935_v4  ;;  %9831 = vmatprep.subr.bf16.mxu1 %v9830_v30  ;;  %v1416_v4 = vld [vmem:[%s17520_s5 + $0x668] sm:$0xff]  ;;  %v1422_v30 = vld [vmem:[%s17520_s5 + $0x698] sm:$0xff] }
  0xde   : > { %10017 = vmatprep.subr.bf16.mxu0 %v10016_v43  ;;  %v10034_v43 = vpack.c.bf16 %v1991_v3, %v1985_v2  ;;  %v9850_v9 = vpack.c.bf16 %v1422_v30, %v1416_v4  ;;  %v9944_v2 = vpack.c.bf16 %v1233_v54, %v1227_v53  ;;  %v1239_v4 = vld [vmem:[%s17520_s5 + $0xe0] sm:$0xff]  ;;  %v1245_v30 = vld [vmem:[%s17520_s5 + $0x110] sm:$0xff]  ;;  %v2100_v53 = vld [vmem:[#allocation6 + $0x518] sm:$0xff] }
  0xe0   : > { %9833 = vmatpush1.bf16.msra.mxu1 %v9832_v14  ;;  %8940 = vmatmul.mubr.msk.f32.vlgmr.msra.gmra.mrb[12].mxu0 %vm711_vm3, %v13253_v15  ;;  %v2003_v14 = vld [vmem:[#allocation6 + $0x210] sm:$0xff] }
  0xe1   : > { %10019 = vmatpush1.bf16.msra.mxu0 %v10018_v16  ;;  %9835 = vmatprep.subr.bf16.mxu1 %v9834_v17  ;;  %v1428_v16 = vld [vmem:[%s17520_s5 + $0x6c8] sm:$0xff]  ;;  %v1434_v17 = vld [vmem:[%s17520_s5 + $0x6f8] sm:$0xf] }
  0xe2   : > { %10021 = vmatprep.subr.bf16.mxu0 %v10020_v20  ;;  %1764 = vmatprep.mubr.f32.mxu0 %v11972_v0  ;;  %v10038_v20 = vpack.c.bf16 %v2003_v14, %v1997_v12  ;;  %v9854_v21 = vpack.c.bf16 %v1434_v17, %v1428_v16  ;;  %v9948_v12 = vpack.c.bf16 %v1245_v30, %v1239_v4  ;;  %v1251_v16 = vld [vmem:[%s17520_s5 + $0x140] sm:$0xff]  ;;  %v1257_v17 = vld [vmem:[%s17520_s5 + $0x170] sm:$0xff]  ;;  %v2112_v4 = vld [vmem:[#allocation6 + $0x578] sm:$0xff] }
  0xe3   : > { %v9952_v23 = vpack.c.bf16 %v1257_v17, %v1251_v16  ;;  %v1318_v16 = vld [vmem:[%s17520_s5 + $0x358] sm:$0xff]  ;;  %v2118_v17 = vld [vmem:[#allocation6 + $0x5a8] sm:$0xff] }
  0xe4   : > { %9837 = vmatpush1.bf16.msra.mxu1 %v9836_v26  ;;  %8941 = vmatmul.mubr.msk.f32.gmra.mrb[14].mxu0 %vm711_vm3, %v13291_v41  ;;  %v2015_v26 = vld [vmem:[#allocation6 + $0x270] sm:$0xff] }
  0xe5   : > { %10023 = vmatpush1.bf16.msra.mxu0 %v10022_v29  ;;  %9839 = vmatprep.subr.bf16.mxu1 %v9838_v31  ;;  %v1222_v29 = vld [vmem:[%s17520_s5 + $0x58] sm:$0xff]  ;;  %v2022_v31 = vld [vmem:[#allocation6 + $0x2a8] sm:$0xff]  ;;  %v10042_v34 = vpack.c.bf16 %v2015_v26, %v2009_v24  ;;  %v1263_v26 = vld [vmem:[%s17520_s5 + $0x1a0] sm:$0xff] }
  0xe6   : > { %10025 = vmatprep.subr.bf16.mxu0 %v10024_v35  ;;  %2285 = vmatprep.mubr.f32.mxu0 %v13294_v42  ;;  %v9938_v35 = vpack.c.bf16 %v1222_v29, %v1216_v27  ;;  %v10044_v40 = vpack.c.bf16 %v2028_v32, %v2022_v31  ;;  %v1269_v27 = vld [vmem:[%s17520_s5 + $0x1d0] sm:$0xff]  ;;  %v2069_v29 = vld [vmem:[#allocation6 + $0x420] sm:$0xff] }
  0xe7   : > { %v2075_v32 = vld [vmem:[#allocation6 + $0x450] sm:$0xff]  ;;  %v9956_v37 = vpack.c.bf16 %v1269_v27, %v1263_v26  ;;  %v1324_v27 = vld [vmem:[%s17520_s5 + $0x388] sm:$0xff] }
  0xe8   : > { %9841 = vmatpush1.bf16.msra.mxu1 %v9840_v44  ;;  %v2027_v44 = vld [vmem:[#allocation6 + $0x2d0] sm:$0xff] }
  0xe9   : > { %10027 = vmatpush1.bf16.msra.mxu0 %v10026_v52  ;;  %9843 = vmatprep.subr.bf16.mxu1 %v9842_v45  ;;  %v1228_v52 = vld [vmem:[%s17520_s5 + $0x88] sm:$0xff]  ;;  %v1234_v45 = vld [vmem:[%s17520_s5 + $0xb8] sm:$0xff]  ;;  %v2123_v26 = vld [vmem:[#allocation6 + $0x5d0] sm:$0xff] }
  0xea   : > { %10029 = vmatprep.subr.bf16.mxu0 %v10028_v50  ;;  %v10046_v50 = vpack.c.bf16 %v2027_v44, %v2021_v39  ;;  %v9942_v51 = vpack.c.bf16 %v1234_v45, %v1228_v52  ;;  %v10062_v39 = vpack.c.bf16 %v2075_v32, %v2069_v29  ;;  %v1275_v44 = vld [vmem:[%s17520_s5 + $0x200] sm:$0xff]  ;;  %v1281_v52 = vld [vmem:[%s17520_s5 + $0x230] sm:$0xff]  ;;  %v1330_v29 = vld [vmem:[%s17520_s5 + $0x3b8] sm:$0xff] }
  0xeb   : > { %v2081_v45 = vld [vmem:[#allocation6 + $0x480] sm:$0xff]  ;;  %v9960_v54 = vpack.c.bf16 %v1281_v52, %v1275_v44  ;;  %v2136_v32 = vld [vmem:[#allocation6 + $0x638] sm:$0xff]  ;;  %v2135_v44 = vld [vmem:[#allocation6 + $0x630] sm:$0xff] }
  0xec   : > { %9845 = vmatpush1.bf16.msra.mxu1 %v9844_v58  ;;  %v2039_v58 = vld [vmem:[#allocation6 + $0x330] sm:$0xff]  ;;  %v1336_v52 = vld [vmem:[%s17520_s5 + $0x3e8] sm:$0xff] }
  0xed   : > { %10031 = vmatpush1.bf16.msra.mxu0 %v10030_v59  ;;  %9847 = vmatprep.subr.bf16.mxu1 %v9846_v60  ;;  %v1240_v59 = vld [vmem:[%s17520_s5 + $0xe8] sm:$0xff]  ;;  %v1246_v60 = vld [vmem:[%s17520_s5 + $0x118] sm:$0xff] }
  0xee   : > { %10033 = vmatprep.subr.bf16.mxu0 %v10032_v28  ;;  %v10050_v28 = vpack.c.bf16 %v2039_v58, %v2033_v56  ;;  %v9946_v3 = vpack.c.bf16 %v1246_v60, %v1240_v59  ;;  %v10066_v56 = vpack.c.bf16 %v2087_v47, %v2081_v45  ;;  %v1287_v58 = vld [vmem:[%s17520_s5 + $0x260] sm:$0xff]  ;;  %v1293_v59 = vld [vmem:[%s17520_s5 + $0x290] sm:$0xff]  ;;  %v1342_v45 = vld [vmem:[%s17520_s5 + $0x418] sm:$0xff] }
  0xef   : > { %1528 = vmatmul.mubr.f32.vlgmr.msra.gmra.mrb[8].mxu1 %v13184_v38  ;;  %v2093_v60 = vld [vmem:[#allocation6 + $0x4e0] sm:$0xff]  ;;  %v2148_v47 = vld [vmem:[#allocation6 + $0x698] sm:$0xff] }
  0xf0   : > { %9849 = vmatpush1.bf16.msra.mxu1 %v9848_v7  ;;  %1533 = vmatprep.mubr.f32.mxu1 %v13205_v48  ;;  %v2051_v7 = vld [vmem:[#allocation6 + $0x390] sm:$0xff] }
  0xf1   : > { %10035 = vmatpush1.bf16.msra.mxu0 %v10034_v43  ;;  %9851 = vmatprep.subr.bf16.mxu1 %v9850_v9  ;;  %v1252_v43 = vld [vmem:[%s17520_s5 + $0x148] sm:$0xff]  ;;  %v1258_v9 = vld [vmem:[%s17520_s5 + $0x178] sm:$0xff] }
  0xf2   : > { %10037 = vmatprep.subr.bf16.mxu0 %v10036_v13  ;;  %v10054_v13 = vpack.c.bf16 %v2051_v7, %v2045_v5  ;;  %v9950_v14 = vpack.c.bf16 %v1258_v9, %v1252_v43  ;;  %v9964_v5 = vpack.c.bf16 %v1293_v59, %v1287_v58  ;;  %v10070_v7 = vpack.c.bf16 %v2099_v62, %v2093_v60  ;;  %v1299_v9 = vld [vmem:[%s17520_s5 + $0x2c0] sm:$0xff]  ;;  %v1341_v58 = vld [vmem:[%s17520_s5 + $0x410] sm:$0xff]  ;;  %v1348_v62 = vld [vmem:[%s17520_s5 + $0x448] sm:$0xff] }
  0xf3   : > { %1534 = vmatmul.mubr.f32.gmra.mrb[10].mxu1 %v13221_v57  ;;  %v2141_v59 = vld [vmem:[#allocation6 + $0x660] sm:$0xff] }
  0xf4   : > { %9853 = vmatpush1.bf16.msra.mxu1 %v9852_v19  ;;  %1604 = vmatprep.mubr.f32.mxu1 %v11972_v0  ;;  %v2063_v19 = vld [vmem:[#allocation6 + $0x3f0] sm:$0xff] }
  0xf5   : > { %10039 = vmatpush1.bf16.msra.mxu0 %v10038_v20  ;;  %9856 = vmatprep.subr.msk.bf16.mxu1 %vm12081_vm2, %v9854_v21  ;;  %v1270_v20 = vld [vmem:[%s17520_s5 + $0x1d8] sm:$0xff]  ;;  %v2070_v21 = vld [vmem:[#allocation6 + $0x428] sm:$0xff]  ;;  %v10058_v24 = vpack.c.bf16 %v2063_v19, %v2057_v55  ;;  %v9968_v19 = vpack.c.bf16 %v1305_v10, %v1299_v9 }
  0xf6   : > { %10041 = vmatprep.subr.bf16.mxu0 %v10040_v25  ;;  %v10060_v31 = vpack.c.bf16 %v2076_v22, %v2070_v21  ;;  %v2124_v55 = vld [vmem:[#allocation6 + $0x5d8] sm:$0xff]  ;;  %v1311_v22 = vld [vmem:[%s17520_s5 + $0x320] sm:$0xff] }
  0xf8   : > { %9859 = vmatpush1.bf16.msk.msra.mxu1 %vm12081_vm2, %v9857_v33  ;;  %v1276_v33 = vld [vmem:[%s17520_s5 + $0x208] sm:$0xff] }
  0xf9   : > { %10043 = vmatpush1.bf16.msra.mxu0 %v10042_v34  ;;  %9939 = vmatprep.subr.bf16.mxu1 %v9938_v35  ;;  %v1282_v34 = vld [vmem:[%s17520_s5 + $0x238] sm:$0xff]  ;;  %v2082_v35 = vld [vmem:[#allocation6 + $0x488] sm:$0xff] }
  0xfa   : > { %10045 = vmatprep.subr.bf16.mxu0 %v10044_v40  ;;  %v9958_v40 = vpack.c.bf16 %v1282_v34, %v1276_v33  ;;  %v10064_v46 = vpack.c.bf16 %v2088_v36, %v2082_v35  ;;  %v9974_v35 = vpack.c.bf16 %v1330_v29, %v1324_v27  ;;  %v1323_v36 = vld [vmem:[%s17520_s5 + $0x380] sm:$0xff]  ;;  %v13551_v29 = vld [vmem:[%s13278_s30 + $0x10] sm:$0xff] }
  0xfb   : > { %8936 = vmatmul.mubr.msk.f32.vlgmr.msra.gmra.mrb[8].mxu1 %vm711_vm3, %v13253_v15 }
  0xfc   : > { %9941 = vmatpush1.bf16.msra.mxu1 %v9940_v49  ;;  %1610 = vmatprep.mubr.f32.mxu1 %v11972_v0  ;;  %v1288_v49 = vld [vmem:[%s17520_s5 + $0x268] sm:$0xff] }
  0xfd   : > { %10047 = vmatpush1.bf16.msra.mxu0 %v10046_v50  ;;  %9943 = vmatprep.subr.bf16.mxu1 %v9942_v51  ;;  %v1294_v50 = vld [vmem:[%s17520_s5 + $0x298] sm:$0xff]  ;;  %v2094_v51 = vld [vmem:[#allocation6 + $0x4e8] sm:$0xff] }
  0xfe   : > { %10049 = vmatprep.subr.bf16.mxu0 %v10048_v8  ;;  %v9962_v8 = vpack.c.bf16 %v1294_v50, %v1288_v49  ;;  %v10068_v61 = vpack.c.bf16 %v2100_v53, %v2094_v51  ;;  %v13492_v51 = vld [vmem:[%s13278_s30] sm:$0xff] }
  0xff   : > { %8937 = vmatmul.mubr.msk.f32.gmra.mrb[10].mxu1 %vm711_vm3, %v13291_v41 }
 0x100   : > { %9945 = vmatpush1.bf16.msra.mxu1 %v9944_v2  ;;  %1835 = vmatprep.mubr.f32.mxu1 %v12864_v63  ;;  %v1264_v63 = vld [vmem:[%s17520_s5 + $0x1a8] sm:$0xff] }
 0x101   : > { %10051 = vmatpush1.bf16.msra.mxu0 %v10050_v28  ;;  %9947 = vmatprep.subr.bf16.mxu1 %v9946_v3  ;;  %v9954_v25 = vpack.c.bf16 %v1270_v20, %v1264_v63  ;;  %v1300_v2 = vld [vmem:[%s17520_s5 + $0x2c8] sm:$0xff]  ;;  %v1306_v28 = vld [vmem:[%s17520_s5 + $0x2f8] sm:$0xff] }
 0x102   : > { %10053 = vmatprep.subr.bf16.mxu0 %v10052_v6  ;;  %v2106_v3 = vld [vmem:[#allocation6 + $0x548] sm:$0xff]  ;;  %v9966_v43 = vpack.c.bf16 %v1306_v28, %v1300_v2  ;;  %v1354_v2 = vld [vmem:[%s17520_s5 + $0x478] sm:$0xff]  ;;  %v13509_v28 = vld [vmem:[%s13278_s30 + $0x20] sm:$0x3] }
 0x104   : > { %9949 = vmatpush1.bf16.msra.mxu1 %v9948_v12  ;;  %v10072_v12 = vpack.c.bf16 %v2112_v4, %v2106_v3  ;;  %v2154_v3 = vld [vmem:[#allocation6 + $0x6c8] sm:$0xff]  ;;  %v2160_v4 = vld [vmem:[#allocation6 + $0x6f8] sm:$0xf] }
 0x105   : > { %10055 = vmatpush1.bf16.msra.mxu0 %v10054_v13  ;;  %9951 = vmatprep.subr.bf16.mxu1 %v9950_v14  ;;  %v2111_v13 = vld [vmem:[#allocation6 + $0x570] sm:$0xff]  ;;  %v1312_v14 = vld [vmem:[%s17520_s5 + $0x328] sm:$0xff] }
 0x106   : > { %10057 = vmatprep.subr.bf16.mxu0 %v10056_v18  ;;  %v10074_v20 = vpack.c.bf16 %v2111_v13, %v2105_v11  ;;  %v9970_v21 = vpack.c.bf16 %v1318_v16, %v1312_v14  ;;  %v9982_v11 = vpack.c.bf16 %v1354_v2, %v1348_v62  ;;  %v1353_v13 = vld [vmem:[%s17520_s5 + $0x470] sm:$0xff]  ;;  %v2153_v14 = vld [vmem:[#allocation6 + $0x6c0] sm:$0xff]  ;;  %v10088_v16 = vpack.c.bf16 %v2160_v4, %v2154_v3  ;;  %v1420_v2 = vld [vmem:[%s17520_s5 + $0x688] sm:$0xff] }
 0x107   : > { %v1413_v62 = vld [vmem:[%s17520_s5 + $0x650] sm:$0xff]  ;;  %v1426_v3 = vld [vmem:[%s17520_s5 + $0x6b8] sm:$0xff] }
 0x108   : > { %9953 = vmatpush1.bf16.msra.mxu1 %v9952_v23  ;;  %v1317_v23 = vld [vmem:[%s17520_s5 + $0x350] sm:$0xff] }
 0x109   : > { %10059 = vmatpush1.bf16.msra.mxu0 %v10058_v24  ;;  %9955 = vmatprep.subr.bf16.mxu1 %v9954_v25  ;;  %v2117_v24 = vld [vmem:[#allocation6 + $0x5a0] sm:$0xff]  ;;  %v10076_v25 = vpack.c.bf16 %v2124_v55, %v2118_v17  ;;  %v9972_v33 = vpack.c.bf16 %v1317_v23, %v1311_v22  ;;  %v2159_v17 = vld [vmem:[#allocation6 + $0x6f0] sm:$0xf]  ;;  %v1360_v55 = vld [vmem:[%s17520_s5 + $0x4a8] sm:$0xff] }
 0x10a   : > { %10061 = vmatprep.subr.bf16.mxu0 %v10060_v31  ;;  %v2130_v31 = vld [vmem:[#allocation6 + $0x608] sm:$0xff]  ;;  %v10078_v34 = vpack.c.bf16 %v2123_v26, %v2117_v24  ;;  %v1359_v23 = vld [vmem:[%s17520_s5 + $0x4a0] sm:$0xff]  ;;  %v1365_v24 = vld [vmem:[%s17520_s5 + $0x4d0] sm:$0xff] }
 0x10b   : > { %v1378_v26 = vld [vmem:[%s17520_s5 + $0x538] sm:$0xff]  ;;  %v9988_v27 = vpack.c.bf16 %v1365_v24, %v1359_v23  ;;  %v1946_v23 = vld [vmem:[#allocation6 + $0x48] sm:$0xff] }
 0x10c   : > { %9957 = vmatpush1.bf16.msra.mxu1 %v9956_v37  ;;  %v1329_v37 = vld [vmem:[%s17520_s5 + $0x3b0] sm:$0xff] }
 0x10d   : > { %10063 = vmatpush1.bf16.msra.mxu0 %v10062_v39  ;;  %9959 = vmatprep.subr.bf16.mxu1 %v9958_v40  ;;  %v2129_v39 = vld [vmem:[#allocation6 + $0x600] sm:$0xff]  ;;  %v10080_v40 = vpack.c.bf16 %v2136_v32, %v2130_v31  ;;  %v9976_v50 = vpack.c.bf16 %v1329_v37, %v1323_v36  ;;  %v13569_v37 = vld [vmem:[%s13278_s30 + $0x28] sm:$0x3] }
 0x10e   : > { %10065 = vmatprep.subr.bf16.mxu0 %v10064_v46  ;;  %v2142_v46 = vld [vmem:[#allocation6 + $0x668] sm:$0xff]  ;;  %v1371_v32 = vld [vmem:[%s17520_s5 + $0x500] sm:$0xff] }
 0x10f   : > { %v13445_v30 = vpop.f32.mrb[0].mxu0  ;;  %v10084_v60 = vpack.c.bf16 %v2148_v47, %v2142_v46 }
 0x110   : > { %9961 = vmatpush1.bf16.msra.mxu1 %v9960_v54  ;;  %v13447_v6 = vpop.f32.mrb[1].mxu0  ;;  %v10082_v54 = vpack.c.bf16 %v2135_v44, %v2129_v39  ;;  %v1389_v44 = vld [vmem:[%s17520_s5 + $0x590] sm:$0xff] }
 0x111   : > { %10067 = vmatpush1.bf16.msra.mxu0 %v10066_v56  ;;  %9963 = vmatprep.subr.bf16.mxu1 %v9962_v8  ;;  %v9978_v56 = vpack.c.bf16 %v1342_v45, %v1336_v52  ;;  %v1335_v8 = vld [vmem:[%s17520_s5 + $0x3e0] sm:$0xff]  ;;  %v1396_v52 = vld [vmem:[%s17520_s5 + $0x5c8] sm:$0xff]  ;;  %v1402_v45 = vld [vmem:[%s17520_s5 + $0x5f8] sm:$0xff] }
 0x112   : > { %10069 = vmatprep.subr.bf16.mxu0 %v10068_v61  ;;  %v2147_v61 = vld [vmem:[#allocation6 + $0x690] sm:$0xff]  ;;  %v9998_v47 = vpack.c.bf16 %v1402_v45, %v1396_v52  ;;  %v1957_v45 = vld [vmem:[#allocation6 + $0xa0] sm:$0xff] }
 0x113   : > { %v13461_v18 = vpop.f32.mrb[2].mxu0  ;;  %v10086_v10 = vpack.c.bf16 %v2147_v61, %v2141_v59  ;;  %v1407_v61 = vld [vmem:[%s17520_s5 + $0x620] sm:$0xff]  ;;  %v1951_v52 = vld [vmem:[#allocation6 + $0x70] sm:$0xff] }
 0x114   : > { %9965 = vmatpush1.bf16.msra.mxu1 %v9964_v5  ;;  %v13463_v63 = vpop.f32.mrb[3].mxu0 }
 0x115   : > { %10071 = vmatpush1.bf16.msra.mxu0 %v10070_v7  ;;  %9967 = vmatprep.subr.bf16.mxu1 %v9966_v43  ;;  %v9980_v7 = vpack.c.bf16 %v1341_v58, %v1335_v8  ;;  %v13515_v43 = vld [vmem:[%s13278_s30 + $0x18] sm:$0x3]  ;;  %v681_v58 = vlaneseq }
 0x116   : > { %10073 = vmatprep.subr.bf16.mxu0 %v10072_v12  ;;  %v1347_v12 = vld [vmem:[%s17520_s5 + $0x440] sm:$0xff]  ;;  %v1414_v8 = vld [vmem:[%s17520_s5 + $0x658] sm:$0xff] }
 0x117   : > { %v13610_v4 = vshrl.u32 %v681_v58, 7  ;;  %v10100_v58 = vpack.c.bf16 %v1957_v45, %v1951_v52  ;;  %v2035_v45 = vld [vmem:[#allocation6 + $0x310] sm:$0xff] }
 0x118   : > { %9969 = vmatpush1.bf16.msra.mxu1 %v9968_v19  ;;  %v1366_v19 = vld [vmem:[%s17520_s5 + $0x4d8] sm:$0xff] }
 0x119   : > { %10075 = vmatpush1.bf16.msra.mxu0 %v10074_v20  ;;  %9971 = vmatprep.subr.bf16.mxu1 %v9970_v21  ;;  %v9984_v20 = vpack.c.bf16 %v1353_v13, %v1347_v12  ;;  %v10091_v21 = vpack.c.bf16 %v2159_v17, %v2153_v14  ;;  %v9986_v22 = vpack.c.bf16 %v1366_v19, %v1360_v55  ;;  %v1425_v12 = vld [vmem:[%s17520_s5 + $0x6b0] sm:$0xff]  ;;  %v1432_v13 = vld [vmem:[%s17520_s5 + $0x6e8] sm:$0xff]  ;;  %v1438_v14 = vld [vmem:[%s17520_s5 + $0x718] sm:$0xf]  ;;  %v13634_v19 = vsub.s32 1, %v13610_v4 }
 0x11a   : > { %10077 = vmatprep.subr.bf16.mxu0 %v10076_v25  ;;  %v1372_v25 = vld [vmem:[%s17520_s5 + $0x508] sm:$0xff]  ;;  %v13631_v55 = vld [vmem:[%s17519_s4] sm:$0x3f] }
 0x11b   : > { %v13489_v49 = vpop.f32.mrb[4].mxu0  ;;  %v9990_v31 = vpack.c.bf16 %v1378_v26, %v1372_v25 }
 0x11c   : > { %9973 = vmatpush1.bf16.msra.mxu1 %v9972_v33  ;;  %v13494_v53 = vpop.f32.mrb[5].mxu0  ;;  %v1377_v33 = vld [vmem:[%s17520_s5 + $0x530] sm:$0xff] }
 0x11d   : > { %10079 = vmatpush1.bf16.msra.mxu0 %v10078_v34  ;;  %9975 = vmatprep.subr.bf16.mxu1 %v9974_v35  ;;  %v1384_v34 = vld [vmem:[%s17520_s5 + $0x568] sm:$0xff]  ;;  %v1390_v35 = vld [vmem:[%s17520_s5 + $0x598] sm:$0xff]  ;;  %v9992_v36 = vpack.c.bf16 %v1377_v33, %v1371_v32 }
 0x11e   : > { %10081 = vmatprep.subr.bf16.mxu0 %v10080_v40  ;;  %v9994_v39 = vpack.c.bf16 %v1390_v35, %v1384_v34  ;;  %v1383_v40 = vld [vmem:[%s17520_s5 + $0x560] sm:$0xff]  ;;  %v1952_v33 = vld [vmem:[#allocation6 + $0x78] sm:$0xff]  ;;  %v1958_v34 = vld [vmem:[#allocation6 + $0xa8] sm:$0xff] }
 0x11f   : > { %v13511_v5 = vpop.f32.mrb[6].mxu0  ;;  %v9996_v46 = vpack.c.bf16 %v1389_v44, %v1383_v40  ;;  %v10098_v44 = vpack.c.bf16 %v1958_v34, %v1952_v33 }
 0x120   : > { %9977 = vmatpush1.bf16.msra.mxu1 %v9976_v50  ;;  %2286 = vmatmul.mubr.f32.vlgmr.msra.gmra.mrb[16].mxu0 %v13492_v51  ;;  %v13517_v9 = vpop.f32.mrb[7].mxu0  ;;  %v1395_v50 = vld [vmem:[%s17520_s5 + $0x5c0] sm:$0xff] }
 0x121   : > { %10083 = vmatpush1.bf16.msra.mxu0 %v10082_v54  ;;  %9979 = vmatprep.subr.bf16.mxu1 %v9978_v56  ;;  %v1401_v54 = vld [vmem:[%s17520_s5 + $0x5f0] sm:$0xff]  ;;  %v1408_v56 = vld [vmem:[%s17520_s5 + $0x628] sm:$0xff] }
 0x122   : > { %10085 = vmatprep.subr.bf16.mxu0 %v10084_v60  ;;  %2291 = vmatprep.mubr.f32.mxu0 %v13509_v28  ;;  %v10000_v59 = vpack.c.bf16 %v1401_v54, %v1395_v50  ;;  %v10002_v60 = vpack.c.bf16 %v1414_v8, %v1408_v56  ;;  %v1970_v50 = vld [vmem:[#allocation6 + $0x108] sm:$0xff] }
 0x124   : > { %9981 = vmatpush1.bf16.msra.mxu1 %v9980_v7  ;;  %2292 = vmatmul.mubr.f32.gmra.mrb[18].mxu0 %v13515_v43  ;;  %v10004_v7 = vpack.c.bf16 %v1413_v62, %v1407_v61  ;;  %v1969_v61 = vld [vmem:[#allocation6 + $0x100] sm:$0xff]  ;;  %v1976_v62 = vld [vmem:[#allocation6 + $0x138] sm:$0xff] }
 0x125   : > { %10087 = vmatpush1.bf16.msra.mxu0 %v10086_v10  ;;  %9983 = vmatprep.subr.bf16.mxu1 %v9982_v11  ;;  %v10006_v10 = vpack.c.bf16 %v1426_v3, %v1420_v2  ;;  %v1419_v11 = vld [vmem:[%s17520_s5 + $0x680] sm:$0xff]  ;;  %v1982_v2 = vld [vmem:[#allocation6 + $0x168] sm:$0xff] }
 0x126   : > { %10090 = vmatprep.subr.msk.bf16.mxu0 %vm12081_vm2, %v10088_v16  ;;  %2362 = vmatprep.mubr.f32.mxu0 %v11972_v0  ;;  %v13626_v16 = vsub.s32 0, %v13610_v4  ;;  %v10008_v17 = vpack.c.bf16 %v1425_v12, %v1419_v11  ;;  %v1981_v11 = vld [vmem:[#allocation6 + $0x160] sm:$0xff]  ;;  %v1988_v12 = vld [vmem:[#allocation6 + $0x198] sm:$0xff] }
 0x128   : > { %9985 = vmatpush1.bf16.msra.mxu1 %v9984_v20  ;;  %v10010_v20 = vpack.c.bf16 %v1438_v14, %v1432_v13  ;;  %v684_v24 = vrot.slane %v13631_v55, %v13626_v16  ;;  %v1994_v13 = vld [vmem:[#allocation6 + $0x1c8] sm:$0xff] }
 0x129   : > { %10093 = vmatpush1.bf16.msk.msra.mxu0 %vm12081_vm2, %v10091_v21  ;;  %9987 = vmatprep.subr.bf16.mxu1 %v9986_v22  ;;  %v1437_v21 = vld [vmem:[%s17520_s5 + $0x710] sm:$0xf]  ;;  %v1940_v22 = vld [vmem:[#allocation6 + $0x18] sm:$0xff]  ;;  %v10110_v14 = vpack.c.bf16 %v1994_v13, %v1988_v12  ;;  %v2065_v12 = vld [vmem:[#allocation6 + $0x400] sm:$0xff] }
 0x12a   : > { %v10094_v26 = vpack.c.bf16 %v1946_v23, %v1940_v22  ;;  %v1999_v22 = vld [vmem:[#allocation6 + $0x1f0] sm:$0xff]  ;;  %v2012_v23 = vld [vmem:[#allocation6 + $0x258] sm:$0xff] }
 0x12c   : > { %8948 = vmatmul.mubr.msk.f32.vlgmr.msra.gmra.mrb[16].mxu0 %vm711_vm3, %v13551_v29  ;;  %9989 = vmatpush1.bf16.msra.mxu1 %v9988_v27  ;;  %v1939_v27 = vld [vmem:[#allocation6 + $0x10] sm:$0xff] }
 0x12d   : > { %2368 = vmatprep.mubr.f32.mxu0 %v11972_v0  ;;  %9991 = vmatprep.subr.bf16.mxu1 %v9990_v31  ;;  %v1945_v31 = vld [vmem:[#allocation6 + $0x40] sm:$0xff] }
 0x130   : > { %8949 = vmatmul.mubr.msk.f32.gmra.mrb[18].mxu0 %vm711_vm3, %v13569_v37  ;;  %9993 = vmatpush1.bf16.msra.mxu1 %v9992_v36 }
 0x131   : > { %9995 = vmatprep.subr.bf16.mxu1 %v9994_v39  ;;  %2593 = vmatprep.mubr.f32.mxu0 %v13294_v42 }
 0x134   : > { %9997 = vmatpush1.bf16.msra.mxu1 %v9996_v46 }
 0x135   : > { %9999 = vmatprep.subr.bf16.mxu1 %v9998_v47  ;;  %v1964_v47 = vld [vmem:[#allocation6 + $0xd8] sm:$0xff] }
 0x138   : > { %10001 = vmatpush1.bf16.msra.mxu1 %v10000_v59 }
 0x139   : > { %10003 = vmatprep.subr.bf16.mxu1 %v10002_v60  ;;  %v1963_v60 = vld [vmem:[#allocation6 + $0xd0] sm:$0xff] }
 0x13b   : > { %1836 = vmatmul.mubr.f32.vlgmr.msra.gmra.mrb[12].mxu1 %v13184_v38  ;;  %v1431_v38 = vld [vmem:[%s17520_s5 + $0x6e0] sm:$0xff] }
 0x13c   : > { %10005 = vmatpush1.bf16.msra.mxu1 %v10004_v7  ;;  %1841 = vmatprep.mubr.f32.mxu1 %v13205_v48  ;;  %v688_v48 = vrot.slane %v13631_v55, %v13634_v19  ;;  %v10013_v25 = vpack.c.bf16 %v1437_v21, %v1431_v38  ;;  %v10106_v7 = vpack.c.bf16 %v1982_v2, %v1976_v62  ;;  %v2006_v38 = vld [vmem:[#allocation6 + $0x228] sm:$0xff] }
 0x13d   : > { %10007 = vmatprep.subr.bf16.mxu1 %v10006_v10  ;;  %v1975_v10 = vld [vmem:[#allocation6 + $0x130] sm:$0xff] }
 0x13f   : > { %1842 = vmatmul.mubr.f32.gmra.mrb[14].mxu1 %v13221_v57  ;;  %v10096_v57 = vpack.c.bf16 %v1945_v31, %v1939_v27  ;;  %v2017_v27 = vld [vmem:[#allocation6 + $0x280] sm:$0xff]  ;;  %v2024_v31 = vld [vmem:[#allocation6 + $0x2b8] sm:$0xff] }
 0x140   : > { %10009 = vmatpush1.bf16.msra.mxu1 %v10008_v17  ;;  %1912 = vmatprep.mubr.f32.mxu1 %v11972_v0  ;;  %v1993_v17 = vld [vmem:[#allocation6 + $0x1c0] sm:$0xff] }
 0x141   : > { %10012 = vmatprep.subr.msk.bf16.mxu1 %vm12081_vm2, %v10010_v20  ;;  %v2000_v20 = vld [vmem:[#allocation6 + $0x1f8] sm:$0xff] }
 0x142   : > { %v803_v32 = vpop.f32.mrb[0].mxu1  ;;  %v10114_v21 = vpack.c.bf16 %v2006_v38, %v2000_v20 }
 0x143   : > { %v804_v35 = vadd.f32 %v803_v32, %v684_v24  ;;  %v805_v36 = vpop.f32.mrb[1].mxu1  ;;  %v2030_v32 = vld [vmem:[#allocation6 + $0x2e8] sm:$0xff] }
 0x144   : > { %v806_v39 = vadd.f32 %v805_v36, %v688_v48  ;;  %10015 = vmatpush1.bf16.msk.msra.mxu1 %vm12081_vm2, %v10013_v25  ;;  %v10122_v34 = vpack.c.bf16 %v2030_v32, %v2024_v31  ;;  %v2029_v36 = vld [vmem:[#allocation6 + $0x2e0] sm:$0xff]  ;;  %v2096_v32 = vld [vmem:[#allocation6 + $0x4f8] sm:$0xff] }
 0x145   : > { %v13654_v40 = vadd.f32 %v13445_v30, %v804_v35  ;;  %10095 = vmatprep.subr.bf16.mxu1 %v10094_v26  ;;  %v10102_v30 = vpack.c.bf16 %v1970_v50, %v1964_v47  ;;  %v2011_v26 = vld [vmem:[#allocation6 + $0x250] sm:$0xff]  ;;  %v2041_v47 = vld [vmem:[#allocation6 + $0x340] sm:$0xff]  ;;  %v2048_v50 = vld [vmem:[#allocation6 + $0x378] sm:$0xff] }
 0x146   : > { %v13657_v46 = vadd.f32 %v13447_v6, %v806_v39  ;;  %v809_v54 = vpop.f32.mrb[2].mxu1  ;;  %v10120_v33 = vpack.c.bf16 %v2017_v27, %v2011_v26  ;;  %v2023_v35 = vld [vmem:[#allocation6 + $0x2b0] sm:$0xff]  ;;  %v2036_v39 = vld [vmem:[#allocation6 + $0x318] sm:$0xff]  ;;  %v2089_v31 = vld [vmem:[#allocation6 + $0x4c0] sm:$0xff] }
 0x147   : > { %8944 = vmatmul.mubr.msk.f32.vlgmr.msra.gmra.mrb[12].mxu1 %vm711_vm3, %v13253_v15  ;;  %v810_v56 = vadd.f32 %v809_v54, %v684_v24  ;;  %v811_v8 = vpop.f32.mrb[3].mxu1  ;;  %v10104_v15 = vpack.c.bf16 %v1969_v61, %v1963_v60  ;;  %v2018_v24 = vld [vmem:[#allocation6 + $0x288] sm:$0xff]  ;;  %v13671_v60 = vsub.s32 5, %v13610_v4  ;;  %v2060_v61 = vld [vmem:[#allocation6 + $0x3d8] sm:$0xff]  ;;  %v2083_v27 = vld [vmem:[#allocation6 + $0x490] sm:$0xff] }
 0x148   : > { %10097 = vmatpush1.bf16.msra.mxu1 %v10096_v57  ;;  %v812_v59 = vadd.f32 %v811_v8, %v688_v48  ;;  %1918 = vmatprep.mubr.f32.mxu1 %v11972_v0  ;;  %v10118_v25 = vpack.c.bf16 %v2018_v24, %v2012_v23  ;;  %v2042_v57 = vld [vmem:[#allocation6 + $0x348] sm:$0xff]  ;;  %v2084_v24 = vld [vmem:[#allocation6 + $0x498] sm:$0xff] }
 0x149   : > { %10099 = vmatprep.subr.bf16.mxu1 %v10098_v44  ;;  %v887_v6 = vadd.f32 %v13461_v18, %v810_v56  ;;  %v10108_v18 = vpack.c.bf16 %v1981_v11, %v1975_v10  ;;  %v10124_v44 = vpack.c.bf16 %v2029_v36, %v2023_v35  ;;  %v10126_v52 = vpack.c.bf16 %v2042_v57, %v2036_v39  ;;  %v2054_v54 = vld [vmem:[#allocation6 + $0x3a8] sm:$0xff]  ;;  %v2059_v11 = vld [vmem:[#allocation6 + $0x3d0] sm:$0xff]  ;;  %v2101_v39 = vld [vmem:[#allocation6 + $0x520] sm:$0xff] }
 0x14a   : > { %v889_v3 = vadd.f32 %v13463_v63, %v812_v59  ;;  %v1987_v63 = vld [vmem:[#allocation6 + $0x190] sm:$0xff]  ;;  %v10128_v56 = vpack.c.bf16 %v2041_v47, %v2035_v45  ;;  %v10130_v8 = vpack.c.bf16 %v2054_v54, %v2048_v50  ;;  %v2053_v59 = vld [vmem:[#allocation6 + $0x3a0] sm:$0xff]  ;;  %v10136_v20 = vpack.c.bf16 %v2065_v12, %v2059_v11  ;;  %v2108_v57 = vld [vmem:[#allocation6 + $0x558] sm:$0xff] }
 0x14b   : > { %1205 = vst [vmem:[#allocation2 + $0x30] sm:$0xf] %v887_v6  ;;  %8945 = vmatmul.mubr.msk.f32.gmra.mrb[14].mxu1 %vm711_vm3, %v13291_v41  ;;  %v10112_v41 = vpack.c.bf16 %v1993_v17, %v1987_v63  ;;  %v2066_v6 = vld [vmem:[#allocation6 + $0x408] sm:$0xff]  ;;  %v2095_v36 = vld [vmem:[#allocation6 + $0x4f0] sm:$0xff]  ;;  %v2113_v50 = vld [vmem:[#allocation6 + $0x580] sm:$0xff] }
 0x14c   : > { %10101 = vmatpush1.bf16.msra.mxu1 %v10100_v58  ;;  %1206 = vst [vmem:[#allocation2 + $0x38] sm:$0xf] %v889_v3  ;;  %2439 = vmatprep.mubr.f32.mxu1 %v13294_v42  ;;  %v2005_v42 = vld [vmem:[#allocation6 + $0x220] sm:$0xff]  ;;  %v2047_v58 = vld [vmem:[#allocation6 + $0x370] sm:$0xff]  ;;  %v704_v3 = vrot.slane %v13631_v55, %v13671_v60  ;;  %v10134_v10 = vpack.c.bf16 %v2066_v6, %v2060_v61  ;;  %v2078_v63 = vld [vmem:[#allocation6 + $0x468] sm:$0xff] }
 0x14d   : > { %10103 = vmatprep.subr.bf16.mxu1 %v10102_v30  ;;  %v10116_v48 = vpack.c.bf16 %v2005_v42, %v1999_v22  ;;  %v13668_v30 = vsub.s32 4, %v13610_v4  ;;  %v2071_v22 = vld [vmem:[#allocation6 + $0x430] sm:$0xff]  ;;  %v2077_v42 = vld [vmem:[#allocation6 + $0x460] sm:$0xff]  ;;  %v2120_v54 = vld [vmem:[#allocation6 + $0x5b8] sm:$0xff] }
 0x14e   : > { %v2107_v47 = vld [vmem:[#allocation6 + $0x550] sm:$0xff] }
 0x14f   : > { %v700_v62 = vrot.slane %v13631_v55, %v13668_v30  ;;  %v2119_v6 = vld [vmem:[#allocation6 + $0x5b0] sm:$0xff] }
 0x150   : > { %10105 = vmatpush1.bf16.msra.mxu1 %v10104_v15  ;;  %v10132_v15 = vpack.c.bf16 %v2053_v59, %v2047_v58  ;;  %v10152_v58 = vpack.c.bf16 %v2113_v50, %v2107_v47  ;;  %v13685_v59 = vsub.s32 3, %v13610_v4  ;;  %v2131_v12 = vld [vmem:[#allocation6 + $0x610] sm:$0xff] }
 0x151   : > { %10107 = vmatprep.subr.bf16.mxu1 %v10106_v7 }
 0x154   : > { %10109 = vmatpush1.bf16.msra.mxu1 %v10108_v18 }
 0x155   : > { %10111 = vmatprep.subr.bf16.mxu1 %v10110_v14  ;;  %v2072_v14 = vld [vmem:[#allocation6 + $0x438] sm:$0xff] }
 0x158   : > { %10113 = vmatpush1.bf16.msra.mxu1 %v10112_v41 }
 0x159   : > { %10115 = vmatprep.subr.bf16.mxu1 %v10114_v21  ;;  %v10138_v21 = vpack.c.bf16 %v2078_v63, %v2072_v14  ;;  %v2137_v14 = vld [vmem:[#allocation6 + $0x640] sm:$0xff]  ;;  %v2144_v63 = vld [vmem:[#allocation6 + $0x678] sm:$0xff] }
 0x15c   : > { %10117 = vmatpush1.bf16.msra.mxu1 %v10116_v48  ;;  %v2090_v48 = vld [vmem:[#allocation6 + $0x4c8] sm:$0xff] }
 0x15d   : > { %10119 = vmatprep.subr.bf16.mxu1 %v10118_v25  ;;  %v10140_v25 = vpack.c.bf16 %v2077_v42, %v2071_v22  ;;  %v10142_v26 = vpack.c.bf16 %v2090_v48, %v2084_v24  ;;  %v2156_v48 = vld [vmem:[#allocation6 + $0x6d8] sm:$0xff] }
 0x160   : > { %10121 = vmatpush1.bf16.msra.mxu1 %v10120_v33  ;;  %v2102_v33 = vld [vmem:[#allocation6 + $0x528] sm:$0xff] }
 0x161   : > { %10123 = vmatprep.subr.bf16.mxu1 %v10122_v34  ;;  %v10144_v34 = vpack.c.bf16 %v2089_v31, %v2083_v27  ;;  %v10146_v35 = vpack.c.bf16 %v2102_v33, %v2096_v32 }
 0x164   : > { %10125 = vmatpush1.bf16.msra.mxu1 %v10124_v44  ;;  %v2114_v44 = vld [vmem:[#allocation6 + $0x588] sm:$0xff] }
 0x165   : > { %10127 = vmatprep.subr.bf16.mxu1 %v10126_v52  ;;  %v10148_v52 = vpack.c.bf16 %v2101_v39, %v2095_v36  ;;  %v10150_v45 = vpack.c.bf16 %v2114_v44, %v2108_v57 }
 0x167   : > { %v1188_v2 = vpop.f32.mrb[8].mxu0 }
 0x168   : > { %10129 = vmatpush1.bf16.msra.mxu1 %v10128_v56  ;;  %v1190_v7 = vpop.f32.mrb[9].mxu0  ;;  %v13677_v13 = vadd.f32 %v1188_v2, %v700_v62  ;;  %v2126_v56 = vld [vmem:[#allocation6 + $0x5e8] sm:$0xff]  ;;  %v2132_v2 = vld [vmem:[#allocation6 + $0x618] sm:$0xff] }
 0x169   : > { %10131 = vmatprep.subr.bf16.mxu1 %v10130_v8  ;;  %v13679_v18 = vadd.f32 %v1190_v7, %v704_v3  ;;  %v13682_v8 = vsub.s32 2, %v13610_v4  ;;  %v10154_v61 = vpack.c.bf16 %v2126_v56, %v2120_v54  ;;  %v696_v7 = vrot.slane %v13631_v55, %v13685_v59 }
 0x16b   : > { %v1194_v17 = vpop.f32.mrb[10].mxu0 }
 0x16c   : > { %10133 = vmatpush1.bf16.msra.mxu1 %v10132_v15  ;;  %v11666_v38 = vadd.f32 %v1194_v17, %v700_v62  ;;  %v1196_v41 = vpop.f32.mrb[11].mxu0  ;;  %v2125_v62 = vld [vmem:[#allocation6 + $0x5e0] sm:$0xff]  ;;  %v692_v15 = vrot.slane %v13631_v55, %v13682_v8  ;;  %v2150_v17 = vld [vmem:[#allocation6 + $0x6a8] sm:$0xff] }
 0x16d   : > { %10135 = vmatprep.subr.bf16.mxu1 %v10134_v10  ;;  %v11667_v23 = vadd.f32 %v1196_v41, %v704_v3  ;;  %v2138_v3 = vld [vmem:[#allocation6 + $0x648] sm:$0xff]  ;;  %v10156_v10 = vpack.c.bf16 %v2125_v62, %v2119_v6  ;;  %v10162_v42 = vpack.c.bf16 %v2150_v17, %v2144_v63  ;;  %v2149_v55 = vld [vmem:[#allocation6 + $0x6a0] sm:$0xff] }
 0x16e   : > { %1209 = vst [vmem:[#allocation2 + $0x50] sm:$0xf] %v11666_v38  ;;  %v10158_v11 = vpack.c.bf16 %v2138_v3, %v2132_v2 }
 0x16f   : > { %1210 = vst [vmem:[#allocation2 + $0x58] sm:$0xf] %v11667_v23  ;;  %v2143_v23 = vld [vmem:[#allocation6 + $0x670] sm:$0xff] }
 0x170   : > { %10137 = vmatpush1.bf16.msra.mxu1 %v10136_v20  ;;  %v10164_v32 = vpack.c.bf16 %v2149_v55, %v2143_v23 }
 0x171   : > { %10139 = vmatprep.subr.bf16.mxu1 %v10138_v21  ;;  %v10160_v21 = vpack.c.bf16 %v2137_v14, %v2131_v12 }
 0x174   : > { %10141 = vmatpush1.bf16.msra.mxu1 %v10140_v25  ;;  %v2162_v25 = vld [vmem:[#allocation6 + $0x708] sm:$0xf] }
 0x175   : > { %10143 = vmatprep.subr.bf16.mxu1 %v10142_v26  ;;  %v10166_v33 = vpack.c.bf16 %v2162_v25, %v2156_v48 }
 0x178   : > { %10145 = vmatpush1.bf16.msra.mxu1 %v10144_v34  ;;  %v2155_v34 = vld [vmem:[#allocation6 + $0x6d0] sm:$0xff] }
 0x179   : > { %10147 = vmatprep.subr.bf16.mxu1 %v10146_v35  ;;  %v2161_v35 = vld [vmem:[#allocation6 + $0x700] sm:$0xf] }
 0x17c   : > { %10149 = vmatpush1.bf16.msra.mxu1 %v10148_v52 }
 0x17d   : > { %10151 = vmatprep.subr.bf16.mxu1 %v10150_v45 }
 0x180   : > { %10153 = vmatpush1.bf16.msra.mxu1 %v10152_v58 }
 0x181   : > { %10155 = vmatprep.subr.bf16.mxu1 %v10154_v61 }
 0x182   : > { %v957_v4 = vpop.f32.mrb[4].mxu1 }
 0x183   : > { %v958_v20 = vadd.f32 %v957_v4, %v692_v15  ;;  %v959_v38 = vpop.f32.mrb[5].mxu1 }
 0x184   : > { %v960_v41 = vadd.f32 %v959_v38, %v696_v7  ;;  %10157 = vmatpush1.bf16.msra.mxu1 %v10156_v10 }
 0x185   : > { %v13692_v22 = vadd.f32 %v13489_v49, %v958_v20  ;;  %10159 = vmatprep.subr.bf16.mxu1 %v10158_v11 }
 0x186   : > { %v13695_v24 = vadd.f32 %v13494_v53, %v960_v41  ;;  %v963_v26 = vpop.f32.mrb[6].mxu1 }
 0x187   : > { %2440 = vmatmul.mubr.f32.vlgmr.msra.gmra.mrb[16].mxu1 %v13492_v51  ;;  %v964_v27 = vadd.f32 %v963_v26, %v692_v15  ;;  %v965_v31 = vpop.f32.mrb[7].mxu1  ;;  %v10169_v51 = vpack.c.bf16 %v2161_v35, %v2155_v34 }
 0x188   : > { %10161 = vmatpush1.bf16.msra.mxu1 %v10160_v21  ;;  %2445 = vmatprep.mubr.f32.mxu1 %v13509_v28  ;;  %v966_v49 = vadd.f32 %v965_v31, %v696_v7 }
 0x189   : > { %10163 = vmatprep.subr.bf16.mxu1 %v10162_v42  ;;  %v1041_v36 = vadd.f32 %v13511_v5, %v964_v27 }
 0x18a   : > { %v1043_v53 = vadd.f32 %v13517_v9, %v966_v49 }
 0x18b   : > { %2446 = vmatmul.mubr.f32.gmra.mrb[18].mxu1 %v13515_v43  ;;  %1207 = vst [vmem:[#allocation2 + $0x40] sm:$0xf] %v1041_v36 }
 0x18c   : > { %10165 = vmatpush1.bf16.msra.mxu1 %v10164_v32  ;;  %2516 = vmatprep.mubr.f32.mxu1 %v11972_v0  ;;  %1208 = vst [vmem:[#allocation2 + $0x48] sm:$0xf] %v1043_v53 }
 0x18d   : > { %10168 = vmatprep.subr.msk.bf16.mxu1 %vm12081_vm2, %v10166_v33 }
 0x190   : > { %10171 = vmatpush1.bf16.msk.msra.mxu1 %vm12081_vm2, %v10169_v51 }
 0x193   : > { %8952 = vmatmul.mubr.msk.f32.vlgmr.msra.gmra.mrb[16].mxu1 %vm711_vm3, %v13551_v29 }
 0x194   : > { %2522 = vmatprep.mubr.f32.mxu1 %v11972_v0 }
 0x197   : > { %8953 = vmatmul.mubr.msk.f32.gmra.mrb[18].mxu1 %vm711_vm3, %v13569_v37  ;;  %v2696_v37 = vld [vmem:[#allocation2 + $0x30] sm:$0xf] }
 0x198   : > { %9384 = vmatprep.mubr.f32.mxu1 %v13654_v40  ;;  %v13720_v40 = vld [vmem:[%s17522_s7] sm:$0x3f] }
 0x199   : > { %v2174_v50 = vrot.slane %v13720_v40, %v13634_v19  ;;  %v2170_v54 = vrot.slane %v13720_v40, %v13626_v16  ;;  %v2178_v20 = vrot.slane %v13720_v40, %v13682_v8  ;;  %v2182_v41 = vrot.slane %v13720_v40, %v13685_v59 }
 0x1b3   : > { %v13713_v28 = vpop.f32.mrb[12].mxu0 }
 0x1b4   : > { %v13715_v5 = vpop.f32.mrb[13].mxu0 }
 0x1b7   : > { %v1766_v43 = vpop.f32.mrb[14].mxu0 }
 0x1b8   : > { %1933 = vst [vmem:[#allocation3 + $0x40] sm:$0x3] %v1766_v43  ;;  %v1768_v9 = vpop.f32.mrb[15].mxu0 }
 0x1b9   : > { %1934 = vst [vmem:[#allocation3 + $0x48] sm:$0x3] %v1768_v9 }
 0x1ce   : > { %v1606_v39 = vpop.f32.mrb[8].mxu1 }
 0x1cf   : > { %v1608_v57 = vpop.f32.mrb[9].mxu1 }
 0x1d2   : > { %v1612_v44 = vpop.f32.mrb[10].mxu1 }
 0x1d3   : > { %1931 = vst [vmem:[#allocation3 + $0x30] sm:$0x3] %v1612_v44  ;;  %v1614_v29 = vpop.f32.mrb[11].mxu1  ;;  %v3083_v44 = vld [vmem:[#allocation3 + $0x40] sm:$0x3] }
 0x1d4   : > { %1932 = vst [vmem:[#allocation3 + $0x38] sm:$0x3] %v1614_v29  ;;  %v2890_v29 = vld [vmem:[#allocation2 + $0x38] sm:$0xf] }
 0x1da   : > { %v2698_v52 = vld [vmem:[#allocation3 + $0x30] sm:$0x3] }
 0x1db   : > { %v10250_v45 = vpack.c.bf16 %v2698_v52, %v1606_v39  ;;  %v2892_v15 = vld [vmem:[#allocation3 + $0x38] sm:$0x3]  ;;  %v10270_v52 = vpack.c.bf16 %v3083_v44, %v13713_v28 }
 0x1dc   : > { %v10260_v10 = vpack.c.bf16 %v2892_v15, %v1608_v57  ;;  %v1984_v44 = vld [vmem:[#allocation6 + $0x178] sm:$0xff] }
 0x1dd   : > { %10251 = vmatprep.subr.bf16.mxu1 %v10250_v45 }
 0x1de   : > { %10253 = vmatpush3.bf16.xpose.msra.mxu1 %v10250_v45 }
 0x1e5   : > { %9385 = vmatmul.mubr.f32.vlgmr.msra.gmra.mrb[20].mxu1 %v2696_v37 }
 0x1ff   : > { %v2364_v47 = vpop.f32.mrb[16].mxu0 }
 0x200   : > { %v2366_v56 = vpop.f32.mrb[17].mxu0  ;;  %v11668_v62 = vadd.f32 %v2364_v47, %v2170_v54 }
 0x201   : > { %v11669_v58 = vadd.f32 %v2366_v56, %v2174_v50 }
 0x203   : > { %v2370_v61 = vpop.f32.mrb[18].mxu0 }
 0x204   : > { %v11670_v6 = vadd.f32 %v2370_v61, %v2170_v54  ;;  %v2372_v63 = vpop.f32.mrb[19].mxu0 }
 0x205   : > { %v11671_v17 = vadd.f32 %v2372_v63, %v2174_v50 }
 0x206   : > { %2689 = vst [vmem:[#allocation4 + $0x30] sm:$0x3] %v11670_v6 }
 0x207   : > { %2690 = vst [vmem:[#allocation4 + $0x38] sm:$0x3] %v11671_v17 }
 0x20d   : > { %v2700_v2 = vld [vmem:[#allocation4 + $0x30] sm:$0x3] }
 0x20e   : > { %v10254_v7 = vpack.c.bf16 %v2700_v2, %v11668_v62  ;;  %v2894_v9 = vld [vmem:[#allocation4 + $0x38] sm:$0x3] }
 0x20f   : > { %v10264_v57 = vpack.c.bf16 %v2894_v9, %v11669_v58  ;;  %v1971_v9 = vld [vmem:[#allocation6 + $0x110] sm:$0xff] }
 0x210   : > { %10256 = vmatprep.subr.msk.bf16.mxu1 %vm13727_vm5, %v10254_v7 }
 0x211   : > { %10259 = vmatpush3.bf16.msk.msra.mxu1 %vm13727_vm5, %v10254_v7 }
 0x212   : > { %10261 = vmatprep.subr.bf16.mxu1 %v10260_v10 }
 0x21a   : > { %v13735_v11 = vpop.f32.mrb[12].mxu1 }
 0x21b   : > { %v13737_v12 = vpop.f32.mrb[13].mxu1 }
 0x21e   : > { %v1920_v14 = vpop.f32.mrb[14].mxu1 }
 0x21f   : > { %1935 = vst [vmem:[#allocation3 + $0x50] sm:$0x3] %v1920_v14  ;;  %v1922_v4 = vpop.f32.mrb[15].mxu1  ;;  %v3274_v14 = vld [vmem:[#allocation3 + $0x48] sm:$0x3] }
 0x220   : > { %1936 = vst [vmem:[#allocation3 + $0x58] sm:$0x3] %v1922_v4  ;;  %v3081_v4 = vld [vmem:[#allocation2 + $0x40] sm:$0xf]  ;;  %v13779_v63 = vpack.c.bf16 %v3274_v14, %v13715_v5 }
 0x221   : > { %v2001_v14 = vld [vmem:[#allocation6 + $0x200] sm:$0xff] }
 0x266   : > { %v2518_v38 = vpop.f32.mrb[16].mxu1 }
 0x267   : > { %v11672_v21 = vadd.f32 %v2518_v38, %v2178_v20  ;;  %v2520_v42 = vpop.f32.mrb[17].mxu1 }
 0x268   : > { %v13743_v23 = vadd.f32 %v2520_v42, %v2182_v41  ;;  %v1948_v42 = vld [vmem:[#allocation6 + $0x58] sm:$0xff] }
 0x26a   : > { %v2524_v55 = vpop.f32.mrb[18].mxu1 }
 0x26b   : > { %v11674_v48 = vadd.f32 %v2524_v55, %v2178_v20  ;;  %v2526_v25 = vpop.f32.mrb[19].mxu1  ;;  %v1941_v55 = vld [vmem:[#allocation6 + $0x20] sm:$0xff] }
 0x26c   : > { %v11675_v26 = vadd.f32 %v2526_v25, %v2182_v41  ;;  %v1947_v25 = vld [vmem:[#allocation6 + $0x50] sm:$0xff] }
 0x26d   : > { %2691 = vst [vmem:[#allocation4 + $0x40] sm:$0x3] %v11674_v48 }
 0x26e   : > { %2692 = vst [vmem:[#allocation4 + $0x48] sm:$0x3] %v11675_v26  ;;  %v1954_v26 = vld [vmem:[#allocation6 + $0x88] sm:$0xff] }
 0x274   : > { %v3085_v15 = vld [vmem:[#allocation4 + $0x40] sm:$0x3] }
 0x2b8   : > { %v9386_v27 = vpop.f32.mrb[20].mxu1 }
 0x2b9   : > { %v2767_v31 = vpop.f32.mrb[21].mxu1  ;;  %v2781_v49 = vsel %vm2780_vm7, %v9386_v27, -inf }
 0x2ba   : > { %v2777_v32 = vsel %vm2776_vm6, %v2767_v31, -inf }
 0x2bb   : > { %2778 = vmax.xlane.f32.xlu0 %v2777_v32 }
 0x2bf   : > { %2782 = vmax.xlane.f32.xlu0 %v2781_v49  ;;  %v1953_v49 = vld [vmem:[#allocation6 + $0x80] sm:$0xff] }
 0x348   : > { %v2779_v33 = vpop.xlane.xlu0 %2778 }
 0x349   : > { %v2784_v34 = vsub.f32 %v2767_v31, %v2779_v33  ;;  %v10174_v31 = vpack.c.bf16 %v1947_v25, %v1941_v55  ;;  %v1959_v33 = vld [vmem:[#allocation6 + $0xb0] sm:$0xff]  ;;  %v2013_v55 = vld [vmem:[#allocation6 + $0x260] sm:$0xff]  ;;  %v2026_v25 = vld [vmem:[#allocation6 + $0x2c8] sm:$0xff] }
 0x34b   : > { %v2786_v35 = vmul.f32 1.442695, %v2784_v34  ;;  %v1966_v34 = vld [vmem:[#allocation6 + $0xe8] sm:$0xff] }
 0x34c   : > { %v2783_v36 = vpop.xlane.xlu0 %2782 }
 0x34d   : > { %11816 = vpow2.f32 %v2786_v35  ;;  %v2785_v53 = vsub.f32 %v9386_v27, %v2783_v36  ;;  %v1960_v27 = vld [vmem:[#allocation6 + $0xb8] sm:$0xff]  ;;  %v10178_v36 = vpack.c.bf16 %v1959_v33, %v1953_v49  ;;  %v2031_v49 = vld [vmem:[#allocation6 + $0x2f0] sm:$0xff]  ;;  %v2038_v33 = vld [vmem:[#allocation6 + $0x328] sm:$0xff] }
 0x34e   : > { %v10176_v32 = vpack.c.bf16 %v1960_v27, %v1954_v26  ;;  %v1972_v35 = vld [vmem:[#allocation6 + $0x118] sm:$0xff] }
 0x34f   : > { %v2788_v51 = vmul.f32 1.442695, %v2785_v53  ;;  %v10180_v53 = vpack.c.bf16 %v1972_v35, %v1966_v34  ;;  %v2032_v26 = vld [vmem:[#allocation6 + $0x2f8] sm:$0xff] }
 0x350   : > { %v2044_v34 = vld [vmem:[#allocation6 + $0x358] sm:$0xff] }
 0x351   : > { %11818 = vpow2.f32 %v2788_v51  ;;  %v1965_v51 = vld [vmem:[#allocation6 + $0xe0] sm:$0xff] }
 0x357   : > { %v13747_v43 = vpop.eup %11816 }
 0x358   : > { %9391 = vmatprep.mubr.msk.f32.mxu1 %vm2776_vm6, %v13747_v43 }
 0x35b   : > { %v13751_v39 = vpop.eup %11818 }
 0x35c   : > { %9392 = vmatmul.mubr.msk.f32.vlgmr.msra.gmra.mrb[22].mxu1 %vm2776_vm6, %v13751_v39 }
 0x35d   : > { %10263 = vmatpush3.bf16.xpose.msra.mxu1 %v10260_v10  ;;  %9398 = vmatprep.mubr.f32.mxu1 %v13657_v46  ;;  %v10274_v10 = vpack.c.bf16 %v3085_v15, %v11672_v21  ;;  %v1942_v21 = vld [vmem:[#allocation6 + $0x28] sm:$0xff] }
 0x35e   : > { %10266 = vmatprep.subr.msk.bf16.mxu1 %vm13727_vm5, %v10264_v57  ;;  %v10172_v48 = vpack.c.bf16 %v1948_v42, %v1942_v21 }
 0x360   : > { %10173 = vmatprep.subr.bf16.mxu0 %v10172_v48  ;;  %v2019_v48 = vld [vmem:[#allocation6 + $0x290] sm:$0xff] }
 0x361   : > { %10175 = vmatpush1.bf16.msra.mxu0 %v10174_v31  ;;  %v10198_v27 = vpack.c.bf16 %v2019_v48, %v2013_v55  ;;  %v10200_v31 = vpack.c.bf16 %v2032_v26, %v2026_v25  ;;  %v2091_v55 = vld [vmem:[#allocation6 + $0x4d0] sm:$0xff]  ;;  %v2098_v48 = vld [vmem:[#allocation6 + $0x508] sm:$0xff]  ;;  %v2104_v25 = vld [vmem:[#allocation6 + $0x538] sm:$0xff] }
 0x362   : > { %10177 = vmatprep.subr.bf16.mxu0 %v10176_v32  ;;  %v2025_v32 = vld [vmem:[#allocation6 + $0x2c0] sm:$0xff] }
 0x363   : > { %v10202_v35 = vpack.c.bf16 %v2031_v49, %v2025_v32  ;;  %v2103_v32 = vld [vmem:[#allocation6 + $0x530] sm:$0xff]  ;;  %v2110_v49 = vld [vmem:[#allocation6 + $0x568] sm:$0xff] }
 0x364   : > { %9399 = vmatmul.mubr.f32.vlgmr.msra.gmra.mrb[24].mxu1 %v2890_v29  ;;  %v10182_v29 = vpack.c.bf16 %v1971_v9, %v1965_v51  ;;  %v2043_v51 = vld [vmem:[#allocation6 + $0x350] sm:$0xff]  ;;  %v2050_v9 = vld [vmem:[#allocation6 + $0x388] sm:$0xff] }
 0x365   : > { %10269 = vmatpush3.bf16.msk.msra.mxu1 %vm13727_vm5, %v10264_v57  ;;  %v1978_v57 = vld [vmem:[#allocation6 + $0x148] sm:$0xff]  ;;  %10179 = vmatpush1.bf16.msra.mxu0 %v10178_v36  ;;  %v10204_v36 = vpack.c.bf16 %v2044_v34, %v2038_v33  ;;  %v2116_v33 = vld [vmem:[#allocation6 + $0x598] sm:$0xff] }
 0x366   : > { %10271 = vmatprep.subr.bf16.mxu1 %v10270_v52  ;;  %10181 = vmatprep.subr.bf16.mxu0 %v10180_v53  ;;  %v2037_v53 = vld [vmem:[#allocation6 + $0x320] sm:$0xff] }
 0x369   : > { %10183 = vmatpush1.bf16.msra.mxu0 %v10182_v29 }
 0x42f   : > { %v13761_v45 = vpop.f32.mrb[22].mxu1 }
 0x430   : > { %v13763_v37 = vpop.f32.mrb[23].mxu1 }
 0x437   : > { %v9400_v47 = vpop.f32.mrb[24].mxu1 }
 0x438   : > { %v2961_v50 = vpop.f32.mrb[25].mxu1  ;;  %v2973_v54 = vsel %vm2780_vm7, %v9400_v47, -inf }
 0x439   : > { %v2970_v46 = vsel %vm2776_vm6, %v2961_v50, -inf }
 0x43a   : > { %2971 = vmax.xlane.f32.xlu1 %v2970_v46  ;;  %v1990_v46 = vld [vmem:[#allocation6 + $0x1a8] sm:$0xff] }
 0x43e   : > { %2974 = vmax.xlane.f32.xlu1 %v2973_v54  ;;  %v1996_v54 = vld [vmem:[#allocation6 + $0x1d8] sm:$0xff] }
 0x4c7   : > { %v2972_v56 = vpop.xlane.xlu1 %2971 }
 0x4c8   : > { %v2976_v58 = vsub.f32 %v2961_v50, %v2972_v56  ;;  %v1983_v50 = vld [vmem:[#allocation6 + $0x170] sm:$0xff] }
 0x4ca   : > { %v2978_v61 = vmul.f32 1.442695, %v2976_v58  ;;  %v10188_v58 = vpack.c.bf16 %v1996_v54, %v1990_v46  ;;  %v2068_v46 = vld [vmem:[#allocation6 + $0x418] sm:$0xff] }
 0x4cb   : > { %v2975_v28 = vpop.xlane.xlu1 %2974 }
 0x4cc   : > { %11820 = vpow2.f32 %v2978_v61  ;;  %v2977_v6 = vsub.f32 %v9400_v47, %v2975_v28  ;;  %v1977_v47 = vld [vmem:[#allocation6 + $0x140] sm:$0xff]  ;;  %v1995_v28 = vld [vmem:[#allocation6 + $0x1d0] sm:$0xff] }
 0x4cd   : > { %v10186_v56 = vpack.c.bf16 %v1983_v50, %v1977_v47  ;;  %v1989_v61 = vld [vmem:[#allocation6 + $0x1a0] sm:$0xff]  ;;  %v2055_v47 = vld [vmem:[#allocation6 + $0x3b0] sm:$0xff]  ;;  %v2062_v50 = vld [vmem:[#allocation6 + $0x3e8] sm:$0xff] }
 0x4ce   : > { %v2980_v62 = vmul.f32 1.442695, %v2977_v6  ;;  %v2002_v6 = vld [vmem:[#allocation6 + $0x208] sm:$0xff]  ;;  %v10190_v15 = vpack.c.bf16 %v1995_v28, %v1989_v61  ;;  %v2067_v61 = vld [vmem:[#allocation6 + $0x410] sm:$0xff] }
 0x4cf   : > { %v2074_v28 = vld [vmem:[#allocation6 + $0x448] sm:$0xff] }
 0x4d0   : > { %11822 = vpow2.f32 %v2980_v62  ;;  %v2008_v62 = vld [vmem:[#allocation6 + $0x238] sm:$0xff] }
 0x4d6   : > { %v13767_v2 = vpop.eup %11820 }
 0x4d7   : > { %9405 = vmatprep.mubr.msk.f32.mxu1 %vm2776_vm6, %v13767_v2 }
 0x4da   : > { %v13771_v7 = vpop.eup %11822 }
 0x4db   : > { %9406 = vmatmul.mubr.msk.f32.vlgmr.msra.gmra.mrb[26].mxu1 %vm2776_vm6, %v13771_v7 }
 0x4dc   : > { %10273 = vmatpush3.bf16.xpose.msra.mxu1 %v10270_v52  ;;  %9412 = vmatprep.mubr.f32.mxu1 %v13692_v22  ;;  %v10184_v52 = vpack.c.bf16 %v1984_v44, %v1978_v57  ;;  %v2056_v57 = vld [vmem:[#allocation6 + $0x3b8] sm:$0xff]  ;;  %v10206_v44 = vpack.c.bf16 %v2043_v51, %v2037_v53  ;;  %v2115_v53 = vld [vmem:[#allocation6 + $0x590] sm:$0xff]  ;;  %v2122_v51 = vld [vmem:[#allocation6 + $0x5c8] sm:$0xff] }
 0x4dd   : > { %10276 = vmatprep.subr.msk.bf16.mxu1 %vm13727_vm5, %v10274_v10  ;;  %v10208_v29 = vpack.c.bf16 %v2056_v57, %v2050_v9  ;;  %v2128_v9 = vld [vmem:[#allocation6 + $0x5f8] sm:$0xff] }
 0x4de   : > { %10185 = vmatprep.subr.bf16.mxu0 %v10184_v52  ;;  %v2049_v52 = vld [vmem:[#allocation6 + $0x380] sm:$0xff] }
 0x4df   : > { %10187 = vmatpush1.bf16.msra.mxu0 %v10186_v56  ;;  %v10210_v54 = vpack.c.bf16 %v2055_v47, %v2049_v52  ;;  %v10212_v56 = vpack.c.bf16 %v2068_v46, %v2062_v50  ;;  %v2127_v52 = vld [vmem:[#allocation6 + $0x5f0] sm:$0xff]  ;;  %v2134_v47 = vld [vmem:[#allocation6 + $0x628] sm:$0xff]  ;;  %v2140_v50 = vld [vmem:[#allocation6 + $0x658] sm:$0xff] }
 0x4e0   : > { %10189 = vmatprep.subr.bf16.mxu0 %v10188_v58  ;;  %v2061_v58 = vld [vmem:[#allocation6 + $0x3e0] sm:$0xff] }
 0x4e3   : > { %9413 = vmatmul.mubr.f32.vlgmr.msra.gmra.mrb[28].mxu1 %v3081_v4  ;;  %v2007_v4 = vld [vmem:[#allocation6 + $0x230] sm:$0xff]  ;;  %10191 = vmatpush1.bf16.msra.mxu0 %v10190_v15 }
 0x4e4   : > { %10279 = vmatpush3.bf16.msk.msra.mxu1 %vm13727_vm5, %v10274_v10  ;;  %v10192_v10 = vpack.c.bf16 %v2008_v62, %v2002_v6  ;;  %v10194_v21 = vpack.c.bf16 %v2007_v4, %v2001_v14  ;;  %v2080_v6 = vld [vmem:[#allocation6 + $0x478] sm:$0xff]  ;;  %v10214_v62 = vpack.c.bf16 %v2067_v61, %v2061_v58  ;;  %v2079_v14 = vld [vmem:[#allocation6 + $0x470] sm:$0xff]  ;;  %v2086_v4 = vld [vmem:[#allocation6 + $0x4a8] sm:$0xff] }
 0x4e5   : > { %10281 = vmatprep.subr.bf16.mxu1 %v13779_v63  ;;  %v10216_v15 = vpack.c.bf16 %v2080_v6, %v2074_v28  ;;  %v2139_v58 = vld [vmem:[#allocation6 + $0x650] sm:$0xff]  ;;  %v2146_v61 = vld [vmem:[#allocation6 + $0x688] sm:$0xff]  ;;  %v2152_v28 = vld [vmem:[#allocation6 + $0x6b8] sm:$0xff] }
 0x4e6   : > { %10193 = vmatprep.subr.bf16.mxu0 %v10192_v10  ;;  %v2073_v10 = vld [vmem:[#allocation6 + $0x440] sm:$0xff] }
 0x4e7   : > { %10195 = vmatpush1.bf16.msra.mxu0 %v10194_v21 }
 0x5ae   : > { %v13784_v17 = vpop.f32.mrb[26].mxu1 }
 0x5af   : > { %v13786_v20 = vpop.f32.mrb[27].mxu1 }
 0x5b6   : > { %v13788_v38 = vpop.f32.mrb[28].mxu1 }
 0x5b7   : > { %v13790_v22 = vpop.f32.mrb[29].mxu1  ;;  %v3164_v41 = vsel %vm2780_vm7, %v13788_v38, -inf }
 0x5b8   : > { %3165 = vmax.xlane.f32.xlu1 %v3164_v41  ;;  %v3161_v5 = vsel %vm2776_vm6, %v13790_v22, -inf  ;;  %v2014_v41 = vld [vmem:[#allocation6 + $0x268] sm:$0xff] }
 0x5b9   : > { %3162 = vmax.xlane.f32.xlu0 %v3161_v5  ;;  %v2020_v5 = vld [vmem:[#allocation6 + $0x298] sm:$0xff] }
 0x5ba   : > { %v10196_v42 = vpack.c.bf16 %v2020_v5, %v2014_v41  ;;  %v2092_v41 = vld [vmem:[#allocation6 + $0x4d8] sm:$0xff]  ;;  %v10218_v5 = vpack.c.bf16 %v2079_v14, %v2073_v10  ;;  %v2151_v10 = vld [vmem:[#allocation6 + $0x6b0] sm:$0xff]  ;;  %v2158_v14 = vld [vmem:[#allocation6 + $0x6e8] sm:$0xff] }
 0x5bb   : > { %v10220_v21 = vpack.c.bf16 %v2092_v41, %v2086_v4  ;;  %v2164_v4 = vld [vmem:[#allocation6 + $0x718] sm:$0xf]  ;;  %v11912_v41 = vld [vmem:[%s13278_s30] sm:$0xff] }
 0x5bc   : > { %10197 = vmatprep.subr.bf16.mxu0 %v10196_v42  ;;  %v2085_v42 = vld [vmem:[#allocation6 + $0x4a0] sm:$0xff] }
 0x5bd   : > { %10199 = vmatpush1.bf16.msra.mxu0 %v10198_v27  ;;  %v10222_v26 = vpack.c.bf16 %v2091_v55, %v2085_v42  ;;  %v10224_v27 = vpack.c.bf16 %v2104_v25, %v2098_v48  ;;  %v10244_v42 = vpack.c.bf16 %v2164_v4, %v2158_v14  ;;  %v2157_v55 = vld [vmem:[#allocation6 + $0x6e0] sm:$0xff]  ;;  %v2163_v48 = vld [vmem:[#allocation6 + $0x710] sm:$0xf]  ;;  %v11914_v25 = vld [vmem:[%s13278_s30 + $0x18] sm:$0x3] }
 0x5be   : > { %10201 = vmatprep.subr.bf16.mxu0 %v10200_v31  ;;  %v2097_v31 = vld [vmem:[#allocation6 + $0x500] sm:$0xff] }
 0x5bf   : > { %v10226_v34 = vpack.c.bf16 %v2103_v32, %v2097_v31  ;;  %v11916_v31 = vld [vmem:[%s13278_s30 + $0x28] sm:$0x3] }
 0x5c1   : > { %10203 = vmatpush1.bf16.msra.mxu0 %v10202_v35  ;;  %v10228_v35 = vpack.c.bf16 %v2116_v33, %v2110_v49 }
 0x5c2   : > { %10205 = vmatprep.subr.bf16.mxu0 %v10204_v36  ;;  %v2109_v36 = vld [vmem:[#allocation6 + $0x560] sm:$0xff] }
 0x5c3   : > { %v10230_v57 = vpack.c.bf16 %v2115_v53, %v2109_v36  ;;  %v3276_v53 = vld [vmem:[#allocation4 + $0x48] sm:$0x3] }
 0x5c5   : > { %10207 = vmatpush1.bf16.msra.mxu0 %v10206_v44  ;;  %v10232_v44 = vpack.c.bf16 %v2128_v9, %v2122_v51 }
 0x5c6   : > { %10209 = vmatprep.subr.bf16.mxu0 %v10208_v29  ;;  %v2121_v29 = vld [vmem:[#allocation6 + $0x5c0] sm:$0xff] }
 0x5c7   : > { %v10234_v46 = vpack.c.bf16 %v2127_v52, %v2121_v29 }
 0x5c9   : > { %10211 = vmatpush1.bf16.msra.mxu0 %v10210_v54  ;;  %v10236_v54 = vpack.c.bf16 %v2140_v50, %v2134_v47  ;;  %v2186_v50 = vrot.slane %v13720_v40, %v13668_v30 }
 0x5ca   : > { %10213 = vmatprep.subr.bf16.mxu0 %v10212_v56  ;;  %v2133_v56 = vld [vmem:[#allocation6 + $0x620] sm:$0xff] }
 0x5cb   : > { %v10238_v6 = vpack.c.bf16 %v2139_v58, %v2133_v56 }
 0x5cd   : > { %10215 = vmatpush1.bf16.msra.mxu0 %v10214_v62  ;;  %v10240_v62 = vpack.c.bf16 %v2152_v28, %v2146_v61 }
 0x5ce   : > { %10217 = vmatprep.subr.bf16.mxu0 %v10216_v15  ;;  %v2145_v15 = vld [vmem:[#allocation6 + $0x680] sm:$0xff] }
 0x5d1   : > { %10219 = vmatpush1.bf16.msra.mxu0 %v10218_v5  ;;  %v10242_v5 = vpack.c.bf16 %v2151_v10, %v2145_v15 }
 0x5d2   : > { %10221 = vmatprep.subr.bf16.mxu0 %v10220_v21  ;;  %v11913_v21 = vld [vmem:[%s13278_s30 + $0x20] sm:$0x3] }
 0x5d5   : > { %10223 = vmatpush1.bf16.msra.mxu0 %v10222_v26  ;;  %v10247_v26 = vpack.c.bf16 %v2163_v48, %v2157_v55  ;;  %v2190_v48 = vrot.slane %v13720_v40, %v13671_v60 }
 0x5d6   : > { %10225 = vmatprep.subr.bf16.mxu0 %v10224_v27  ;;  %v11915_v27 = vld [vmem:[%s13278_s30 + $0x10] sm:$0xff] }
 0x5d9   : > { %10227 = vmatpush1.bf16.msra.mxu0 %v10226_v34 }
 0x5da   : > { %10229 = vmatprep.subr.bf16.mxu0 %v10228_v35 }
 0x5dd   : > { %10231 = vmatpush1.bf16.msra.mxu0 %v10230_v57  ;;  %v3272_v57 = vld [vmem:[#allocation2 + $0x48] sm:$0xf] }
 0x5de   : > { %10233 = vmatprep.subr.bf16.mxu0 %v10232_v44 }
 0x5e1   : > { %10235 = vmatpush1.bf16.msra.mxu0 %v10234_v46 }
 0x5e2   : > { %10237 = vmatprep.subr.bf16.mxu0 %v10236_v54 }
 0x5e4   : > { %2594 = vmatmul.mubr.f32.vlgmr.msra.gmra.mrb[20].mxu0 %v11912_v41 }
 0x5e5   : > { %10239 = vmatpush1.bf16.msra.mxu0 %v10238_v6  ;;  %2599 = vmatprep.mubr.f32.mxu0 %v11913_v21  ;;  %v3656_v21 = vld [vmem:[#allocation3 + $0x58] sm:$0x3] }
 0x5e6   : > { %10241 = vmatprep.subr.bf16.mxu0 %v10240_v62  ;;  %v10300_v55 = vpack.c.bf16 %v3656_v21, %v13737_v12 }
 0x5e8   : > { %2600 = vmatmul.mubr.f32.gmra.mrb[22].mxu0 %v11914_v25 }
 0x5e9   : > { %10243 = vmatpush1.bf16.msra.mxu0 %v10242_v5  ;;  %2670 = vmatprep.mubr.f32.mxu0 %v11972_v0 }
 0x5ea   : > { %10246 = vmatprep.subr.msk.bf16.mxu0 %vm12081_vm2, %v10244_v42  ;;  %v3463_v42 = vld [vmem:[#allocation2 + $0x50] sm:$0xf] }
 0x5ed   : > { %10249 = vmatpush1.bf16.msk.msra.mxu0 %vm12081_vm2, %v10247_v26 }
 0x5f0   : > { %8956 = vmatmul.mubr.msk.f32.vlgmr.msra.gmra.mrb[20].mxu0 %vm711_vm3, %v11915_v27 }
 0x5f1   : > { %2676 = vmatprep.mubr.f32.mxu0 %v11972_v0 }
 0x5f4   : > { %8957 = vmatmul.mubr.msk.f32.gmra.mrb[22].mxu0 %vm711_vm3, %v11916_v31 }
 0x645   : > { %v3166_v32 = vpop.xlane.xlu1 %3165 }
 0x646   : > { %v3168_v49 = vsub.f32 %v13788_v38, %v3166_v32  ;;  %v3163_v33 = vpop.xlane.xlu0 %3162  ;;  %v10284_v38 = vpack.c.bf16 %v3276_v53, %v13743_v23 }
 0x647   : > { %v3167_v34 = vsub.f32 %v13790_v22, %v3163_v33  ;;  %v3465_v22 = vld [vmem:[#allocation3 + $0x50] sm:$0x3] }
 0x648   : > { %v3171_v35 = vmul.f32 1.442695, %v3168_v49  ;;  %v10290_v44 = vpack.c.bf16 %v3465_v22, %v13735_v11 }
 0x649   : > { %v3169_v36 = vmul.f32 1.442695, %v3167_v34 }
 0x64b   : > { %11824 = vpow2.f32 %v3169_v36 }
 0x64c   : > { %11826 = vpow2.f32 %v3171_v35 }
 0x655   : > { %v13811_v51 = vpop.eup %11824 }
 0x656   : > { %v13813_v9 = vpop.eup %11826  ;;  %9419 = vmatprep.mubr.msk.f32.mxu1 %vm2776_vm6, %v13811_v51 }
 0x657   : > { %9420 = vmatmul.mubr.msk.f32.vlgmr.msra.gmra.mrb[30].mxu1 %vm2776_vm6, %v13813_v9 }
 0x658   : > { %10283 = vmatpush3.bf16.xpose.msra.mxu1 %v13779_v63  ;;  %9426 = vmatprep.mubr.f32.mxu1 %v13695_v24 }
 0x659   : > { %10286 = vmatprep.subr.msk.bf16.mxu1 %vm13727_vm5, %v10284_v38 }
 0x65f   : > { %9427 = vmatmul.mubr.f32.vlgmr.msra.gmra.mrb[32].mxu1 %v3272_v57 }
 0x660   : > { %10289 = vmatpush3.bf16.msk.msra.mxu1 %vm13727_vm5, %v10284_v38 }
 0x661   : > { %10291 = vmatprep.subr.bf16.mxu1 %v10290_v44 }
 0x6c3   : > { %v2672_v11 = vpop.f32.mrb[20].mxu0 }
 0x6c4   : > { %v2674_v46 = vpop.f32.mrb[21].mxu0  ;;  %v11676_v54 = vadd.f32 %v2672_v11, %v2186_v50  ;;  %v3861_v11 = vld [vmem:[%s17523_s8 + $0x28] sm:$0xff] }
 0x6c5   : > { %v11677_v38 = vadd.f32 %v2674_v46, %v2190_v48  ;;  %v3912_v46 = vld [vmem:[%s17523_s8 + $0x1c0] sm:$0xff] }
 0x6c7   : > { %v2678_v56 = vpop.f32.mrb[22].mxu0 }
 0x6c8   : > { %v11678_v58 = vadd.f32 %v2678_v56, %v2186_v50  ;;  %v2680_v25 = vpop.f32.mrb[23].mxu0 }
 0x6c9   : > { %v11679_v26 = vadd.f32 %v2680_v25, %v2190_v48  ;;  %v3918_v48 = vld [vmem:[%s17523_s8 + $0x1f0] sm:$0xff]  ;;  %v3921_v25 = vld [vmem:[%s17523_s8 + $0x208] sm:$0xff] }
 0x6ca   : > { %2693 = vst [vmem:[#allocation4 + $0x50] sm:$0x3] %v11678_v58 }
 0x6cb   : > { %2694 = vst [vmem:[#allocation4 + $0x58] sm:$0x3] %v11679_v26  ;;  %v10510_v26 = vpack.c.bf16 %v3921_v25, %v3918_v48  ;;  %v3857_v48 = vld [vmem:[%s17523_s8 + $0x8] sm:$0xff]  ;;  %v3860_v25 = vld [vmem:[%s17523_s8 + $0x20] sm:$0xff] }
 0x6d1   : > { %v3467_v14 = vld [vmem:[#allocation4 + $0x50] sm:$0x3] }
 0x6d2   : > { %v10294_v41 = vpack.c.bf16 %v3467_v14, %v11676_v54  ;;  %v3658_v22 = vld [vmem:[#allocation4 + $0x58] sm:$0x3] }
 0x6d3   : > { %v3915_v54 = vld [vmem:[%s17523_s8 + $0x1d8] sm:$0xff] }
 0x6d4   : > { %v10506_v58 = vpack.c.bf16 %v3915_v54, %v3912_v46  ;;  %v3942_v54 = vld [vmem:[%s17523_s8 + $0x2b0] sm:$0xff] }
 0x72a   : > { %v13827_v29 = vpop.f32.mrb[30].mxu1 }
 0x72b   : > { %v13829_v52 = vpop.f32.mrb[31].mxu1 }
 0x732   : > { %v9428_v23 = vpop.f32.mrb[32].mxu1 }
 0x733   : > { %v3343_v63 = vpop.f32.mrb[33].mxu1  ;;  %v3355_v24 = vsel %vm2780_vm7, %v9428_v23, -inf }
 0x734   : > { %3356 = vmax.xlane.f32.xlu1 %v3355_v24  ;;  %v3352_v47 = vsel %vm2776_vm6, %v3343_v63, -inf  ;;  %v3906_v24 = vld [vmem:[%s17523_s8 + $0x190] sm:$0xff] }
 0x735   : > { %3353 = vmax.xlane.f32.xlu0 %v3352_v47  ;;  %v3909_v47 = vld [vmem:[%s17523_s8 + $0x1a8] sm:$0xff] }
 0x736   : > { %v10502_v50 = vpack.c.bf16 %v3909_v47, %v3906_v24  ;;  %v3939_v47 = vld [vmem:[%s17523_s8 + $0x298] sm:$0xff] }
 0x738   : > { %10503 = vmatprep.subr.bf16.mxu0 %v10502_v50  ;;  %v3888_v50 = vld [vmem:[%s17523_s8 + $0x100] sm:$0xff] }
 0x7c1   : > { %v3357_v61 = vpop.xlane.xlu1 %3356 }
 0x7c2   : > { %v3359_v28 = vsub.f32 %v9428_v23, %v3357_v61  ;;  %v3354_v6 = vpop.xlane.xlu0 %3353  ;;  %v10304_v23 = vpack.c.bf16 %v3658_v22, %v11677_v38  ;;  %v3864_v61 = vld [vmem:[%s17523_s8 + $0x40] sm:$0xff] }
 0x7c3   : > { %v3358_v62 = vsub.f32 %v3343_v63, %v3354_v6  ;;  %v3654_v63 = vld [vmem:[#allocation2 + $0x58] sm:$0xf] }
 0x7c4   : > { %v3362_v15 = vmul.f32 1.442695, %v3359_v28  ;;  %v3867_v28 = vld [vmem:[%s17523_s8 + $0x58] sm:$0xff] }
 0x7c5   : > { %v3360_v10 = vmul.f32 1.442695, %v3358_v62  ;;  %v10508_v6 = vpack.c.bf16 %v3867_v28, %v3864_v61  ;;  %v3894_v61 = vld [vmem:[%s17523_s8 + $0x130] sm:$0xff]  ;;  %v3897_v28 = vld [vmem:[%s17523_s8 + $0x148] sm:$0xff] }
 0x7c7   : > { %11828 = vpow2.f32 %v3360_v10 }
 0x7c8   : > { %11830 = vpow2.f32 %v3362_v15 }
 0x7d1   : > { %v13835_v4 = vpop.eup %11828 }
 0x7d2   : > { %v13837_v5 = vpop.eup %11830  ;;  %9433 = vmatprep.mubr.msk.f32.mxu1 %vm2776_vm6, %v13835_v4 }
 0x7d3   : > { %9434 = vmatmul.mubr.msk.f32.vlgmr.msra.gmra.mrb[34].mxu1 %vm2776_vm6, %v13837_v5  ;;  %v3367_v38 = vsel %vm2780_vm7, %v13837_v5, 0.0  ;;  %v3936_v5 = vld [vmem:[%s17523_s8 + $0x280] sm:$0xff] }
 0x7d4   : > { %10293 = vmatpush3.bf16.xpose.msra.mxu1 %v10290_v44  ;;  %9440 = vmatprep.mubr.f32.mxu1 %v13677_v13 }
 0x7d5   : > { %10296 = vmatprep.subr.msk.bf16.mxu1 %vm13727_vm5, %v10294_v41 }
 0x7db   : > { %9441 = vmatmul.mubr.f32.vlgmr.msra.gmra.mrb[36].mxu1 %v3463_v42  ;;  %v2790_v42 = vsel %vm2776_vm6, %v13747_v43, 0.0  ;;  %v3873_v43 = vld [vmem:[%s17523_s8 + $0x88] sm:$0xff] }
 0x7dc   : > { %10299 = vmatpush3.bf16.msk.msra.mxu1 %vm13727_vm5, %v10294_v41 }
 0x7dd   : > { %10301 = vmatprep.subr.bf16.mxu1 %v10300_v55 }
 0x8a6   : > { %v13851_v27 = vpop.f32.mrb[34].mxu1 }
 0x8a7   : > { %v13853_v13 = vpop.f32.mrb[35].mxu1 }
 0x8ae   : > { %v9442_v31 = vpop.f32.mrb[36].mxu1 }
 0x8af   : > { %v3534_v32 = vpop.f32.mrb[37].mxu1  ;;  %v3546_v49 = vsel %vm2780_vm7, %v9442_v31, -inf }
 0x8b0   : > { %3547 = vmax.xlane.f32.xlu1 %v3546_v49  ;;  %v3543_v12 = vsel %vm2776_vm6, %v3534_v32, -inf  ;;  %v2985_v49 = vsel %vm2780_vm7, %v13771_v7, 0.0  ;;  %v3876_v7 = vld [vmem:[%s17523_s8 + $0xa0] sm:$0xff] }
 0x8b1   : > { %3544 = vmax.xlane.f32.xlu0 %v3543_v12  ;;  %v3173_v12 = vsel %vm2776_vm6, %v13811_v51, 0.0  ;;  %v3879_v51 = vld [vmem:[%s17523_s8 + $0xb8] sm:$0xff] }
 0x93d   : > { %v3548_v33 = vpop.xlane.xlu1 %3547 }
 0x93e   : > { %v3550_v34 = vsub.f32 %v9442_v31, %v3548_v33  ;;  %v3545_v35 = vpop.xlane.xlu0 %3544  ;;  %v3870_v31 = vld [vmem:[%s17523_s8 + $0x70] sm:$0xff]  ;;  %v3924_v33 = vld [vmem:[%s17523_s8 + $0x220] sm:$0xff] }
 0x93f   : > { %v3549_v36 = vsub.f32 %v3534_v32, %v3545_v35  ;;  %v10512_v32 = vpack.c.bf16 %v3873_v43, %v3870_v31  ;;  %v10310_v31 = vpack.c.bf16 %v3860_v25, %v3857_v48  ;;  %v4002_v43 = vld [vmem:[%s17523_s8 + $0x490] sm:$0xff]  ;;  %v3960_v48 = vld [vmem:[%s17523_s8 + $0x340] sm:$0xff] }
 0x940   : > { %v3553_v40 = vmul.f32 1.442695, %v3550_v34  ;;  %v3927_v34 = vld [vmem:[%s17523_s8 + $0x238] sm:$0xff] }
 0x941   : > { %v3551_v53 = vmul.f32 1.442695, %v3549_v36  ;;  %v10514_v35 = vpack.c.bf16 %v3927_v34, %v3924_v33  ;;  %v10516_v36 = vpack.c.bf16 %v3879_v51, %v3876_v7 }
 0x943   : > { %11832 = vpow2.f32 %v3551_v53  ;;  %v3933_v53 = vld [vmem:[%s17523_s8 + $0x268] sm:$0xff] }
 0x944   : > { %11834 = vpow2.f32 %v3553_v40  ;;  %v3176_v40 = vsel %vm2780_vm7, %v13813_v9, 0.0  ;;  %v3885_v9 = vld [vmem:[%s17523_s8 + $0xe8] sm:$0xff] }
 0x94d   : > { %v13857_v57 = vpop.eup %11832 }
 0x94e   : > { %v13859_v44 = vpop.eup %11834  ;;  %9447 = vmatprep.mubr.msk.f32.mxu1 %vm2776_vm6, %v13857_v57  ;;  %v3555_v24 = vsel %vm2776_vm6, %v13857_v57, 0.0 }
 0x94f   : > { %9448 = vmatmul.mubr.msk.f32.vlgmr.msra.gmra.mrb[38].mxu1 %vm2776_vm6, %v13859_v44  ;;  %v3558_v46 = vsel %vm2780_vm7, %v13859_v44, 0.0  ;;  %v10528_v44 = vpack.c.bf16 %v3897_v28, %v3894_v61  ;;  %v3872_v61 = vld [vmem:[%s17523_s8 + $0x80] sm:$0xff]  ;;  %v4011_v28 = vld [vmem:[%s17523_s8 + $0x4d8] sm:$0xff] }
 0x950   : > { %10303 = vmatpush3.bf16.xpose.msra.mxu1 %v10300_v55  ;;  %9454 = vmatprep.mubr.f32.mxu1 %v13679_v18  ;;  %v3858_v18 = vld [vmem:[%s17523_s8 + $0x10] sm:$0xff]  ;;  %v2982_v55 = vsel %vm2776_vm6, %v13767_v2, 0.0  ;;  %v2793_v2 = vsel %vm2780_vm7, %v13751_v39, 0.0  ;;  %v3364_v39 = vsel %vm2776_vm6, %v13835_v4, 0.0 }
 0x951   : > { %10306 = vmatprep.subr.msk.bf16.mxu1 %vm13727_vm5, %v10304_v23  ;;  %v10504_v56 = vpack.c.bf16 %v3861_v11, %v3858_v18  ;;  %v3930_v4 = vld [vmem:[%s17523_s8 + $0x250] sm:$0xff]  ;;  %v10522_v18 = vpack.c.bf16 %v3939_v47, %v3936_v5  ;;  %v3891_v11 = vld [vmem:[%s17523_s8 + $0x118] sm:$0xff] }
 0x952   : > { %v10518_v22 = vpack.c.bf16 %v3933_v53, %v3930_v4  ;;  %v10524_v57 = vpack.c.bf16 %v3891_v11, %v3888_v50  ;;  %v3862_v50 = vld [vmem:[%s17523_s8 + $0x30] sm:$0xff]  ;;  %v3865_v11 = vld [vmem:[%s17523_s8 + $0x48] sm:$0xff] }
 0x953   : > { %10505 = vmatpush3.bf16.msra.mxu0 %v10504_v56  ;;  %v3945_v56 = vld [vmem:[%s17523_s8 + $0x2c8] sm:$0xff] }
 0x954   : > { %10507 = vmatprep.subr.bf16.mxu0 %v10506_v58  ;;  %v10526_v58 = vpack.c.bf16 %v3945_v56, %v3942_v54 }
 0x957   : > { %9455 = vmatmul.mubr.f32.vlgmr.msra.gmra.mrb[40].mxu1 %v3654_v63  ;;  %10509 = vmatpush3.bf16.msra.mxu0 %v10508_v6  ;;  %v3948_v6 = vld [vmem:[%s17523_s8 + $0x2e0] sm:$0xff] }
 0x958   : > { %10309 = vmatpush3.bf16.msk.msra.mxu1 %vm13727_vm5, %v10304_v23  ;;  %10511 = vmatprep.subr.bf16.mxu0 %v10510_v26  ;;  %v3882_v23 = vld [vmem:[%s17523_s8 + $0xd0] sm:$0xff] }
 0x959   : > { %v10520_v63 = vpack.c.bf16 %v3885_v9, %v3882_v23  ;;  %10311 = vmatprep.subr.bf16.mxu1 %v10310_v31 }
 0x95b   : > { %10513 = vmatpush3.bf16.msra.mxu0 %v10512_v32 }
 0x95c   : > { %10515 = vmatprep.subr.bf16.mxu0 %v10514_v35 }
 0x95f   : > { %10517 = vmatpush3.bf16.msra.mxu0 %v10516_v36 }
 0x960   : > { %10519 = vmatprep.subr.bf16.mxu0 %v10518_v22  ;;  %v3866_v22 = vld [vmem:[%s17523_s8 + $0x50] sm:$0xff] }
 0x963   : > { %10521 = vmatpush3.bf16.msra.mxu0 %v10520_v63  ;;  %v3954_v63 = vld [vmem:[%s17523_s8 + $0x310] sm:$0xff] }
 0x964   : > { %10523 = vmatprep.subr.bf16.mxu0 %v10522_v18 }
 0x967   : > { %10525 = vmatpush3.bf16.msra.mxu0 %v10524_v57  ;;  %v4008_v57 = vld [vmem:[%s17523_s8 + $0x4c0] sm:$0xff] }
 0x968   : > { %10527 = vmatprep.subr.bf16.mxu0 %v10526_v58  ;;  %v3869_v58 = vld [vmem:[%s17523_s8 + $0x68] sm:$0xff] }
 0x96b   : > { %10529 = vmatpush3.bf16.msra.mxu0 %v10528_v44 }
 0xa22   : > { %v13894_v62 = vpop.f32.mrb[38].mxu1 }
 0xa23   : > { %v13896_v15 = vpop.f32.mrb[39].mxu1 }
 0xa2a   : > { %v13898_v10 = vpop.f32.mrb[40].mxu1 }
 0xa2b   : > { %v13900_v14 = vpop.f32.mrb[41].mxu1  ;;  %v3737_v41 = vsel %vm2780_vm7, %v13898_v10, -inf }
 0xa2c   : > { %3738 = vmax.xlane.f32.xlu1 %v3737_v41  ;;  %v3734_v21 = vsel %vm2776_vm6, %v13900_v14, -inf  ;;  %v3951_v41 = vld [vmem:[%s17523_s8 + $0x2f8] sm:$0xff] }
 0xa2d   : > { %3735 = vmax.xlane.f32.xlu0 %v3734_v21  ;;  %v10530_v21 = vpack.c.bf16 %v3951_v41, %v3948_v6 }
 0xa2f   : > { %10531 = vmatprep.subr.bf16.mxu0 %v10530_v21  ;;  %v10316_v21 = vpack.c.bf16 %v3865_v11, %v3862_v50  ;;  %v3880_v11 = vld [vmem:[%s17523_s8 + $0xc0] sm:$0xff] }
 0xa30   : > { %2791 = vadd.xlane.f32.xlu1 %v2790_v42  ;;  %v3900_v42 = vld [vmem:[%s17523_s8 + $0x160] sm:$0xff] }
 0xa31   : > { %2983 = vadd.xlane.f32.xlu0 %v2982_v55  ;;  %v3903_v55 = vld [vmem:[%s17523_s8 + $0x178] sm:$0xff] }
 0xa32   : > { %v10532_v26 = vpack.c.bf16 %v3903_v55, %v3900_v42  ;;  %v3868_v42 = vld [vmem:[%s17523_s8 + $0x60] sm:$0xff] }
 0xa34   : > { %2794 = vadd.xlane.f32.xlu1 %v2793_v2  ;;  %10533 = vmatpush3.bf16.msra.mxu0 %v10532_v26  ;;  %v4005_v2 = vld [vmem:[%s17523_s8 + $0x4a8] sm:$0xff] }
 0xa35   : > { %2986 = vadd.xlane.f32.xlu0 %v2985_v49  ;;  %v10534_v32 = vpack.c.bf16 %v4005_v2, %v4002_v43  ;;  %v3871_v2 = vld [vmem:[%s17523_s8 + $0x78] sm:$0xff] }
 0xa37   : > { %10535 = vmatprep.subr.bf16.mxu0 %v10534_v32  ;;  %v10538_v32 = vpack.c.bf16 %v4011_v28, %v4008_v57  ;;  %v3883_v57 = vld [vmem:[%s17523_s8 + $0xd8] sm:$0xff]  ;;  %v3972_v28 = vld [vmem:[%s17523_s8 + $0x3a0] sm:$0xff] }
 0xa38   : > { %3174 = vadd.xlane.f32.xlu1 %v3173_v12 }
 0xa39   : > { %3365 = vadd.xlane.f32.xlu0 %v3364_v39 }
 0xa3c   : > { %3177 = vadd.xlane.f32.xlu1 %v3176_v40 }
 0xa3d   : > { %3368 = vadd.xlane.f32.xlu0 %v3367_v38  ;;  %v3863_v38 = vld [vmem:[%s17523_s8 + $0x38] sm:$0xff] }
 0xa3e   : > { %v10314_v18 = vpack.c.bf16 %v3866_v22, %v3863_v38  ;;  %v3966_v22 = vld [vmem:[%s17523_s8 + $0x370] sm:$0xff] }
 0xa40   : > { %3556 = vadd.xlane.f32.xlu1 %v3555_v24  ;;  %v3957_v24 = vld [vmem:[%s17523_s8 + $0x328] sm:$0xff] }
 0xa41   : > { %v10536_v55 = vpack.c.bf16 %v3957_v24, %v3954_v63  ;;  %v4020_v24 = vld [vmem:[%s17523_s8 + $0x520] sm:$0xff] }
 0xa44   : > { %3559 = vadd.xlane.f32.xlu1 %v3558_v46 }
 0xab9   : > { %v3739_v49 = vpop.xlane.xlu1 %3738 }
 0xaba   : > { %v3741_v12 = vsub.f32 %v13898_v10, %v3739_v49  ;;  %v3736_v33 = vpop.xlane.xlu0 %3735  ;;  %v3856_v10 = vld [vmem:[%s17523_s8] sm:$0xff]  ;;  %v3963_v49 = vld [vmem:[%s17523_s8 + $0x358] sm:$0xff] }
 0xabb   : > { %v3740_v34 = vsub.f32 %v13900_v14, %v3736_v33  ;;  %v3859_v14 = vld [vmem:[%s17523_s8 + $0x18] sm:$0xff] }
 0xabc   : > { %v3744_v39 = vmul.f32 1.442695, %v3741_v12  ;;  %v10312_v9 = vpack.c.bf16 %v3859_v14, %v3856_v10  ;;  %v4014_v12 = vld [vmem:[%s17523_s8 + $0x4f0] sm:$0xff]  ;;  %v3875_v33 = vld [vmem:[%s17523_s8 + $0x98] sm:$0xff]  ;;  %v3881_v14 = vld [vmem:[%s17523_s8 + $0xc8] sm:$0xff] }
 0xabd   : > { %v3742_v35 = vmul.f32 1.442695, %v3740_v34  ;;  %v2792_v7 = vpop.xlane.xlu1 %2791  ;;  %v3878_v34 = vld [vmem:[%s17523_s8 + $0xb0] sm:$0xff] }
 0xabe   : > { %11836 = vpow2.f32 %v3744_v39  ;;  %v2984_v51 = vpop.xlane.xlu0 %2983  ;;  %v4017_v39 = vld [vmem:[%s17523_s8 + $0x508] sm:$0xff] }
 0xabf   : > { %11838 = vpow2.f32 %v3742_v35  ;;  %v10540_v35 = vpack.c.bf16 %v3963_v49, %v3960_v48  ;;  %v10542_v10 = vpack.c.bf16 %v4017_v39, %v4014_v12  ;;  %v3981_v49 = vld [vmem:[%s17523_s8 + $0x3e8] sm:$0xff] }
 0xac0   : > { %11840 = vrcp.f32 %v2792_v7 }
 0xac1   : > { %11842 = vrcp.f32 %v2984_v51  ;;  %v2795_v36 = vpop.xlane.xlu1 %2794  ;;  %v10322_v51 = vpack.c.bf16 %v3878_v34, %v3875_v33  ;;  %v4035_v33 = vld [vmem:[%s17523_s8 + $0x598] sm:$0xff] }
 0xac2   : > { %11844 = vrcp.f32 %v2795_v36  ;;  %v2987_v40 = vpop.xlane.xlu0 %2986  ;;  %v3874_v36 = vld [vmem:[%s17523_s8 + $0x90] sm:$0xff] }
 0xac3   : > { %11846 = vrcp.f32 %v2987_v40  ;;  %v3877_v40 = vld [vmem:[%s17523_s8 + $0xa8] sm:$0xff] }
 0xac4   : > { %v10324_v63 = vpack.c.bf16 %v3877_v40, %v3874_v36  ;;  %v3984_v40 = vld [vmem:[%s17523_s8 + $0x400] sm:$0xff] }
 0xac5   : > { %v14012_v4 = vpop.xlane.xlu1 %3174 }
 0xac6   : > { %v3366_v53 = vpop.xlane.xlu0 %3365 }
 0xac7   : > { %11848 = vrcp.f32 %v3366_v53  ;;  %v3884_v53 = vld [vmem:[%s17523_s8 + $0xe0] sm:$0xff] }
 0xac8   : > { %v11837_v23 = vpop.eup %11836  ;;  %v10326_v50 = vpack.c.bf16 %v3884_v53, %v3881_v14  ;;  %v4038_v53 = vld [vmem:[%s17523_s8 + $0x5b0] sm:$0xff] }
 0xac9   : > { %v11839_v5 = vpop.eup %11838  ;;  %v3178_v47 = vpop.xlane.xlu1 %3177 }
 0xaca   : > { %v11841_v46 = vpop.eup %11840  ;;  %11850 = vrcp.f32 %v3178_v47  ;;  %9461 = vmatprep.mubr.msk.f32.mxu1 %vm2776_vm6, %v11839_v5  ;;  %v3369_v54 = vpop.xlane.xlu0 %3368  ;;  %v3746_v56 = vsel %vm2776_vm6, %v11839_v5, 0.0  ;;  %v4023_v5 = vld [vmem:[%s17523_s8 + $0x538] sm:$0xff] }
 0xacb   : > { %v11843_v44 = vpop.eup %11842  ;;  %11852 = vrcp.f32 %v3369_v54  ;;  %9462 = vmatmul.mubr.msk.f32.vlgmr.msra.gmra.mrb[42].mxu1 %vm2776_vm6, %v11837_v23  ;;  %3747 = vadd.xlane.f32.xlu0 %v3746_v56  ;;  %v14061_v26 = vmul.f32 %v11841_v46, %v13763_v37  ;;  %v3887_v56 = vld [vmem:[%s17523_s8 + $0xf8] sm:$0xff] }
 0xacc   : > { %v11845_v6 = vpop.eup %11844  ;;  %v3076_v41 = vmul.f32 %v11843_v44, %v13786_v20  ;;  %10313 = vmatpush1.bf16.msra.mxu1 %v10312_v9  ;;  %v10318_v20 = vpack.c.bf16 %v3872_v61, %v3869_v58  ;;  %v10546_v61 = vpack.c.bf16 %v4023_v5, %v4020_v24  ;;  %v3905_v24 = vld [vmem:[%s17523_s8 + $0x188] sm:$0xff]  ;;  %v3908_v5 = vld [vmem:[%s17523_s8 + $0x1a0] sm:$0xff] }
 0xacd   : > { %v11847_v25 = vpop.eup %11846  ;;  %v2886_v31 = vmul.f32 %v11845_v6, %v13761_v45  ;;  %v3557_v43 = vpop.xlane.xlu1 %3556  ;;  %10315 = vmatprep.subr.bf16.mxu1 %v10314_v18  ;;  %v3749_v45 = vsel %vm2780_vm7, %v11837_v23, 0.0  ;;  %v3969_v23 = vld [vmem:[%s17523_s8 + $0x388] sm:$0xff] }
 0xace   : > { %v3077_v37 = vmul.f32 %v11847_v25, %v13784_v17  ;;  %11854 = vrcp.f32 %v3557_v43  ;;  %4225 = vmatprep.mubr.f32.mxu1 %v3076_v41  ;;  %4456 = vmatprep.mubr.f32.mxu0 %v3076_v41  ;;  %v10320_v17 = vpack.c.bf16 %v3871_v2, %v3868_v42  ;;  %v10544_v54 = vpack.c.bf16 %v3969_v23, %v3966_v22  ;;  %v4026_v42 = vld [vmem:[%s17523_s8 + $0x550] sm:$0xff] }
 0xacf   : > { %2888 = vst [vmem:[#allocation5 + $0x30] sm:$0xf] %v2886_v31  ;;  %3750 = vadd.xlane.f32.xlu0 %v3749_v45  ;;  %4457 = vmatmul.mubr.f32.vlgmr.msra.gmra.mrb[24].mxu0 %v14061_v26  ;;  %v3886_v25 = vld [vmem:[%s17523_s8 + $0xf0] sm:$0xff]  ;;  %v3889_v31 = vld [vmem:[%s17523_s8 + $0x108] sm:$0xff]  ;;  %v4032_v45 = vld [vmem:[%s17523_s8 + $0x580] sm:$0xff] }
 0xad0   : > { %3079 = vst [vmem:[#allocation5 + $0x38] sm:$0xf] %v3077_v37  ;;  %10317 = vmatpush1.bf16.msra.mxu1 %v10316_v21  ;;  %10537 = vmatpush3.bf16.msra.mxu0 %v10536_v55  ;;  %v10328_v21 = vpack.c.bf16 %v3883_v57, %v3880_v11  ;;  %v4029_v55 = vld [vmem:[%s17523_s8 + $0x568] sm:$0xff]  ;;  %v10332_v37 = vpack.c.bf16 %v3889_v31, %v3886_v25  ;;  %v3898_v23 = vld [vmem:[%s17523_s8 + $0x150] sm:$0xff]  ;;  %v4044_v11 = vld [vmem:[%s17523_s8 + $0x5e0] sm:$0xff] }
 0xad1   : > { %v3560_v7 = vpop.xlane.xlu1 %3559  ;;  %10319 = vmatprep.subr.bf16.mxu1 %v10318_v20  ;;  %10539 = vmatprep.subr.bf16.mxu0 %v10538_v32  ;;  %v11849_v38 = vpop.eup %11848  ;;  %v3896_v20 = vld [vmem:[%s17523_s8 + $0x140] sm:$0xff]  ;;  %v10550_v2 = vpack.c.bf16 %v4029_v55, %v4026_v42  ;;  %v3978_v32 = vld [vmem:[%s17523_s8 + $0x3d0] sm:$0xff]  ;;  %v10554_v36 = vpack.c.bf16 %v4035_v33, %v4032_v45  ;;  %v4047_v57 = vld [vmem:[%s17523_s8 + $0x5f8] sm:$0xff] }
 0xad2   : > { %11856 = vrcp.f32 %v3560_v7  ;;  %v14132_v6 = vmul.f32 %v11849_v38, %v13853_v13  ;;  %v10552_v7 = vpack.c.bf16 %v3981_v49, %v3978_v32  ;;  %v4041_v38 = vld [vmem:[%s17523_s8 + $0x5c8] sm:$0xff]  ;;  %v3910_v55 = vld [vmem:[%s17523_s8 + $0x1b0] sm:$0xff] }
 0xad3   : > { %11858 = vrcp.f32 %v14012_v4  ;;  %v3993_v4 = vld [vmem:[%s17523_s8 + $0x448] sm:$0xff]  ;;  %v4098_v25 = vld [vmem:[%s17523_s8 + $0x790] sm:$0xff] }
 0xad4   : > { %v11851_v9 = vpop.eup %11850  ;;  %10321 = vmatpush1.bf16.msra.mxu1 %v10320_v17  ;;  %10541 = vmatpush3.bf16.msra.mxu0 %v10540_v35  ;;  %v3892_v17 = vld [vmem:[%s17523_s8 + $0x120] sm:$0xff]  ;;  %v3895_v35 = vld [vmem:[%s17523_s8 + $0x138] sm:$0xff]  ;;  %v4101_v31 = vld [vmem:[%s17523_s8 + $0x7a8] sm:$0xff] }
 0xad5   : > { %v11853_v47 = vpop.eup %11852  ;;  %v3268_v18 = vmul.f32 %v11851_v9, %v13827_v29  ;;  %10323 = vmatprep.subr.bf16.mxu1 %v10322_v51  ;;  %10543 = vmatprep.subr.bf16.mxu0 %v10542_v10  ;;  %v3890_v29 = vld [vmem:[%s17523_s8 + $0x110] sm:$0xff]  ;;  %v3899_v51 = vld [vmem:[%s17523_s8 + $0x158] sm:$0xff]  ;;  %v10336_v14 = vpack.c.bf16 %v3895_v35, %v3892_v17  ;;  %v3901_v9 = vld [vmem:[%s17523_s8 + $0x168] sm:$0xff] }
 0xad6   : > { %v3459_v46 = vmul.f32 %v11853_v47, %v13851_v27  ;;  %v3975_v27 = vld [vmem:[%s17523_s8 + $0x3b8] sm:$0xff]  ;;  %v14135_v41 = vld [vmem:[#allocation5 + $0x30] sm:$0xf]  ;;  %v10330_v13 = vpack.c.bf16 %v3890_v29, %v3887_v56  ;;  %v10558_v47 = vpack.c.bf16 %v4041_v38, %v4038_v53  ;;  %v4053_v45 = vld [vmem:[%s17523_s8 + $0x628] sm:$0xff] }
 0xad7   : > { %3270 = vst [vmem:[#allocation5 + $0x40] sm:$0xf] %v3268_v18  ;;  %v14123_v58 = vld [vmem:[#allocation5 + $0x38] sm:$0xf]  ;;  %v10548_v43 = vpack.c.bf16 %v3975_v27, %v3972_v28  ;;  %v3990_v18 = vld [vmem:[%s17523_s8 + $0x430] sm:$0xff]  ;;  %v10562_v27 = vpack.c.bf16 %v4047_v57, %v4044_v11  ;;  %v4056_v53 = vld [vmem:[%s17523_s8 + $0x640] sm:$0xff] }
 0xad8   : > { %v11855_v44 = vpop.eup %11854  ;;  %3461 = vst [vmem:[#allocation5 + $0x48] sm:$0xf] %v3459_v46  ;;  %10325 = vmatpush1.bf16.msra.mxu1 %v10324_v63  ;;  %4461 = vmatprep.mubr.f32.mxu0 %v14123_v58  ;;  %v3987_v10 = vld [vmem:[%s17523_s8 + $0x418] sm:$0xff]  ;;  %v10342_v46 = vpack.c.bf16 %v3908_v5, %v3905_v24  ;;  %v10560_v29 = vpack.c.bf16 %v3993_v4, %v3990_v18  ;;  %v3914_v28 = vld [vmem:[%s17523_s8 + $0x1d0] sm:$0xff]  ;;  %v3932_v24 = vld [vmem:[%s17523_s8 + $0x260] sm:$0xff] }
 0xad9   : > { %v3649_v48 = vmul.f32 %v11855_v44, %v13896_v15  ;;  %4462 = vmatmul.mubr.f32.gmra.mrb[26].mxu0 %v14135_v41  ;;  %10327 = vmatprep.subr.bf16.mxu1 %v10326_v50  ;;  %v3893_v15 = vld [vmem:[%s17523_s8 + $0x128] sm:$0xff]  ;;  %v10556_v63 = vpack.c.bf16 %v3987_v10, %v3984_v40  ;;  %v10340_v50 = vpack.c.bf16 %v3901_v9, %v3898_v23  ;;  %v3907_v56 = vld [vmem:[%s17523_s8 + $0x198] sm:$0xff]  ;;  %v3996_v44 = vld [vmem:[%s17523_s8 + $0x460] sm:$0xff] }
 0xada   : > { %4531 = vmatprep.mubr.f32.mxu0 %v14132_v6  ;;  %10545 = vmatpush3.bf16.msra.mxu0 %v10544_v54  ;;  %v10334_v39 = vpack.c.bf16 %v3896_v20, %v3893_v15  ;;  %v3904_v54 = vld [vmem:[%s17523_s8 + $0x180] sm:$0xff]  ;;  %v3917_v15 = vld [vmem:[%s17523_s8 + $0x1e8] sm:$0xff]  ;;  %v4107_v17 = vld [vmem:[%s17523_s8 + $0x7d8] sm:$0xff] }
 0xadb   : > { %3651 = vst [vmem:[#allocation5 + $0x20] sm:$0xff] %v3649_v48  ;;  %10547 = vmatprep.subr.bf16.mxu0 %v10546_v61  ;;  %v3911_v61 = vld [vmem:[%s17523_s8 + $0x1b8] sm:$0xff]  ;;  %v10344_v42 = vpack.c.bf16 %v3907_v56, %v3904_v54  ;;  %v3920_v20 = vld [vmem:[%s17523_s8 + $0x200] sm:$0xff]  ;;  %v4110_v23 = vld [vmem:[%s17523_s8 + $0x7f0] sm:$0xff] }
 0xadc   : > { %v11857_v12 = vpop.eup %11856  ;;  %10329 = vmatpush1.bf16.msra.mxu1 %v10328_v21  ;;  %v3999_v21 = vld [vmem:[%s17523_s8 + $0x478] sm:$0xff]  ;;  %v10346_v48 = vpack.c.bf16 %v3914_v28, %v3911_v61  ;;  %v10350_v33 = vpack.c.bf16 %v3920_v20, %v3917_v15  ;;  %v4113_v9 = vld [vmem:[%s17523_s8 + $0x808] sm:$0xff]  ;;  %v4062_v11 = vld [vmem:[%s17523_s8 + $0x670] sm:$0xff] }
 0xadd   : > { %v3650_v34 = vmul.f32 %v11857_v12, %v13894_v62  ;;  %10331 = vmatprep.subr.bf16.mxu1 %v10330_v13  ;;  %v3902_v62 = vld [vmem:[%s17523_s8 + $0x170] sm:$0xff]  ;;  %v3913_v13 = vld [vmem:[%s17523_s8 + $0x1c8] sm:$0xff]  ;;  %v11859_v32 = vpop.eup %11858  ;;  %v3916_v12 = vld [vmem:[%s17523_s8 + $0x1e0] sm:$0xff]  ;;  %v10574_v18 = vpack.c.bf16 %v4113_v9, %v4110_v23 }
 0xade   : > { %10549 = vmatpush3.bf16.msra.mxu0 %v10548_v43  ;;  %v10338_v22 = vpack.c.bf16 %v3902_v62, %v3899_v51  ;;  %v10564_v43 = vpack.c.bf16 %v3999_v21, %v3996_v44  ;;  %v10348_v49 = vpack.c.bf16 %v3913_v13, %v3910_v55  ;;  %v3923_v35 = vld [vmem:[%s17523_s8 + $0x218] sm:$0xff]  ;;  %v14281_v62 = vmul.f32 %v11859_v32, %v13829_v52  ;;  %v4065_v57 = vld [vmem:[%s17523_s8 + $0x688] sm:$0xff]  ;;  %v4116_v56 = vld [vmem:[%s17523_s8 + $0x820] sm:$0xff] }
 0xadf   : > { %3652 = vst [vmem:[#allocation5 + $0x50] sm:$0xf] %v3650_v34  ;;  %10551 = vmatprep.subr.bf16.mxu0 %v10550_v2  ;;  %v10566_v2 = vpack.c.bf16 %v4101_v31, %v4098_v25  ;;  %v3919_v34 = vld [vmem:[%s17523_s8 + $0x1f8] sm:$0xff]  ;;  %v14296_v38 = vld [vmem:[#allocation5 + $0x48] sm:$0xf]  ;;  %v3938_v28 = vld [vmem:[%s17523_s8 + $0x290] sm:$0xff] }
 0xae0   : > { %10333 = vmatpush1.bf16.msra.mxu1 %v10332_v37  ;;  %v4050_v37 = vld [vmem:[%s17523_s8 + $0x610] sm:$0xff]  ;;  %v10352_v10 = vpack.c.bf16 %v3919_v34, %v3916_v12  ;;  %v4059_v52 = vld [vmem:[%s17523_s8 + $0x658] sm:$0xff]  ;;  %v4068_v55 = vld [vmem:[%s17523_s8 + $0x6a0] sm:$0xff] }
 0xae1   : > { %10335 = vmatprep.subr.bf16.mxu1 %v10334_v39  ;;  %v4104_v39 = vld [vmem:[%s17523_s8 + $0x7c0] sm:$0xff]  ;;  %v10568_v51 = vpack.c.bf16 %v4053_v45, %v4050_v37  ;;  %v10572_v5 = vpack.c.bf16 %v4059_v52, %v4056_v53  ;;  %v3931_v54 = vld [vmem:[%s17523_s8 + $0x258] sm:$0xff]  ;;  %v3937_v25 = vld [vmem:[%s17523_s8 + $0x288] sm:$0xff] }
 0xae2   : > { %10553 = vmatpush3.bf16.msra.mxu0 %v10552_v7  ;;  %v3926_v7 = vld [vmem:[%s17523_s8 + $0x230] sm:$0xff]  ;;  %v10570_v40 = vpack.c.bf16 %v4107_v17, %v4104_v39  ;;  %v3935_v61 = vld [vmem:[%s17523_s8 + $0x278] sm:$0xff]  ;;  %v3941_v15 = vld [vmem:[%s17523_s8 + $0x2a8] sm:$0xff] }
 0xae3   : > { %10555 = vmatprep.subr.bf16.mxu0 %v10554_v36  ;;  %v3922_v36 = vld [vmem:[%s17523_s8 + $0x210] sm:$0xff]  ;;  %v10362_v13 = vpack.c.bf16 %v3938_v28, %v3935_v61  ;;  %v3944_v20 = vld [vmem:[%s17523_s8 + $0x2c0] sm:$0xff]  ;;  %v4077_v37 = vld [vmem:[%s17523_s8 + $0x6e8] sm:$0xff] }
 0xae4   : > { %10337 = vmatpush1.bf16.msra.mxu1 %v10336_v14  ;;  %v3925_v14 = vld [vmem:[%s17523_s8 + $0x228] sm:$0xff]  ;;  %v4122_v31 = vld [vmem:[%s17523_s8 + $0x850] sm:$0xff]  ;;  %v10366_v45 = vpack.c.bf16 %v3944_v20, %v3941_v15  ;;  %v3943_v34 = vld [vmem:[%s17523_s8 + $0x2b8] sm:$0xff] }
 0xae5   : > { %10339 = vmatprep.subr.bf16.mxu1 %v10338_v22  ;;  %v10354_v22 = vpack.c.bf16 %v3926_v7, %v3923_v35  ;;  %v10356_v4 = vpack.c.bf16 %v3925_v14, %v3922_v36  ;;  %v4074_v12 = vld [vmem:[%s17523_s8 + $0x6d0] sm:$0xff]  ;;  %v3947_v39 = vld [vmem:[%s17523_s8 + $0x2d8] sm:$0xff]  ;;  %v3956_v14 = vld [vmem:[%s17523_s8 + $0x320] sm:$0xff] }
 0xae6   : > { %10557 = vmatpush3.bf16.msra.mxu0 %v10556_v63  ;;  %v3929_v63 = vld [vmem:[%s17523_s8 + $0x248] sm:$0xff]  ;;  %v3950_v17 = vld [vmem:[%s17523_s8 + $0x2f0] sm:$0xff]  ;;  %v10584_v35 = vpack.c.bf16 %v4077_v37, %v4074_v12  ;;  %v3955_v23 = vld [vmem:[%s17523_s8 + $0x318] sm:$0xff] }
 0xae7   : > { %10559 = vmatprep.subr.bf16.mxu0 %v10558_v47  ;;  %v3928_v47 = vld [vmem:[%s17523_s8 + $0x240] sm:$0xff]  ;;  %v3946_v36 = vld [vmem:[%s17523_s8 + $0x2d0] sm:$0xff]  ;;  %v3959_v9 = vld [vmem:[%s17523_s8 + $0x338] sm:$0xff] }
 0xae8   : > { %10341 = vmatpush1.bf16.msra.mxu1 %v10340_v50  ;;  %v14314_v50 = vld [vmem:[#allocation5 + $0x40] sm:$0xf]  ;;  %v10360_v21 = vpack.c.bf16 %v3931_v54, %v3928_v47  ;;  %v3958_v47 = vld [vmem:[%s17523_s8 + $0x330] sm:$0xff]  ;;  %v3985_v20 = vld [vmem:[%s17523_s8 + $0x408] sm:$0xff] }
 0xae9   : > { %10343 = vmatprep.subr.bf16.mxu1 %v10342_v46  ;;  %v10358_v46 = vpack.c.bf16 %v3932_v24, %v3929_v63  ;;  %v3962_v63 = vld [vmem:[%s17523_s8 + $0x350] sm:$0xff]  ;;  %v3964_v54 = vld [vmem:[%s17523_s8 + $0x360] sm:$0xff] }
 0xaea   : > { %10561 = vmatpush3.bf16.msra.mxu0 %v10560_v29  ;;  %v4119_v29 = vld [vmem:[%s17523_s8 + $0x838] sm:$0xff]  ;;  %v3970_v28 = vld [vmem:[%s17523_s8 + $0x390] sm:$0xff]  ;;  %v4080_v37 = vld [vmem:[%s17523_s8 + $0x700] sm:$0xff] }
 0xaeb   : > { %10563 = vmatprep.subr.bf16.mxu0 %v10562_v27  ;;  %v10576_v27 = vpack.c.bf16 %v4065_v57, %v4062_v11  ;;  %v10578_v44 = vpack.c.bf16 %v4119_v29, %v4116_v56  ;;  %v3968_v11 = vld [vmem:[%s17523_s8 + $0x380] sm:$0xff]  ;;  %v3967_v56 = vld [vmem:[%s17523_s8 + $0x378] sm:$0xff] }
 0xaec   : > { %10345 = vmatpush1.bf16.msra.mxu1 %v10344_v42  ;;  %v3934_v42 = vld [vmem:[%s17523_s8 + $0x270] sm:$0xff]  ;;  %v3971_v29 = vld [vmem:[%s17523_s8 + $0x398] sm:$0xff] }
 0xaed   : > { %10347 = vmatprep.subr.bf16.mxu1 %v10346_v48  ;;  %v4071_v48 = vld [vmem:[%s17523_s8 + $0x6b8] sm:$0xff] }
 0xaee   : > { %10565 = vmatpush3.bf16.msra.mxu0 %v10564_v43  ;;  %v4125_v43 = vld [vmem:[%s17523_s8 + $0x868] sm:$0xff] }
 0xaef   : > { %10567 = vmatprep.subr.bf16.mxu0 %v10566_v2  ;;  %v10580_v2 = vpack.c.bf16 %v4071_v48, %v4068_v55  ;;  %v10582_v32 = vpack.c.bf16 %v4125_v43, %v4122_v31  ;;  %v3979_v55 = vld [vmem:[%s17523_s8 + $0x3d8] sm:$0xff]  ;;  %v3982_v31 = vld [vmem:[%s17523_s8 + $0x3f0] sm:$0xff]  ;;  %v4128_v43 = vld [vmem:[%s17523_s8 + $0x880] sm:$0xff] }
 0xaf0   : > { %10349 = vmatpush1.bf16.msra.mxu1 %v10348_v49  ;;  %v10364_v49 = vpack.c.bf16 %v3937_v25, %v3934_v42  ;;  %v3976_v42 = vld [vmem:[%s17523_s8 + $0x3c0] sm:$0xff]  ;;  %v3983_v48 = vld [vmem:[%s17523_s8 + $0x3f8] sm:$0xff] }
 0xaf1   : > { %10351 = vmatprep.subr.bf16.mxu1 %v10350_v33  ;;  %4532 = vmatmul.mubr.f32.vlgmr.msra.gmra.mrb[28].mxu0 %v14281_v62  ;;  %v3940_v33 = vld [vmem:[%s17523_s8 + $0x2a0] sm:$0xff]  ;;  %v10392_v25 = vpack.c.bf16 %v3979_v55, %v3976_v42  ;;  %v4009_v42 = vld [vmem:[%s17523_s8 + $0x4c8] sm:$0xff] }
 0xaf2   : > { %4536 = vmatprep.mubr.f32.mxu0 %v14296_v38  ;;  %10569 = vmatpush3.bf16.msra.mxu0 %v10568_v51  ;;  %v10368_v7 = vpack.c.bf16 %v3943_v34, %v3940_v33  ;;  %v10370_v51 = vpack.c.bf16 %v3950_v17, %v3947_v39  ;;  %v10396_v34 = vpack.c.bf16 %v3985_v20, %v3982_v31  ;;  %v3988_v39 = vld [vmem:[%s17523_s8 + $0x420] sm:$0xff]  ;;  %v4134_v17 = vld [vmem:[%s17523_s8 + $0x8b0] sm:$0xff]  ;;  %v4013_v55 = vld [vmem:[%s17523_s8 + $0x4e8] sm:$0xff] }
 0xaf3   : > { %10571 = vmatprep.subr.bf16.mxu0 %v10570_v40  ;;  %v3949_v40 = vld [vmem:[%s17523_s8 + $0x2e8] sm:$0xff]  ;;  %v4012_v31 = vld [vmem:[%s17523_s8 + $0x4e0] sm:$0xff]  ;;  %v4022_v20 = vld [vmem:[%s17523_s8 + $0x530] sm:$0xff] }
 0xaf4   : > { %10353 = vmatpush1.bf16.msra.mxu1 %v10352_v10  ;;  %v3953_v10 = vld [vmem:[%s17523_s8 + $0x308] sm:$0xff]  ;;  %v10372_v53 = vpack.c.bf16 %v3949_v40, %v3946_v36  ;;  %v3998_v40 = vld [vmem:[%s17523_s8 + $0x470] sm:$0xff] }
 0xaf5   : > { %10355 = vmatprep.subr.bf16.mxu1 %v10354_v22  ;;  %4537 = vmatmul.mubr.f32.gmra.mrb[30].mxu0 %v14314_v50  ;;  %v10374_v52 = vpack.c.bf16 %v3956_v14, %v3953_v10  ;;  %v3952_v22 = vld [vmem:[%s17523_s8 + $0x300] sm:$0xff]  ;;  %v4137_v36 = vld [vmem:[%s17523_s8 + $0x8c8] sm:$0xff]  ;;  %v4086_v14 = vld [vmem:[%s17523_s8 + $0x730] sm:$0xff] }
 0xaf6   : > { %10573 = vmatpush3.bf16.msra.mxu0 %v10572_v5  ;;  %v10376_v24 = vpack.c.bf16 %v3955_v23, %v3952_v22  ;;  %v10378_v5 = vpack.c.bf16 %v3962_v63, %v3959_v9  ;;  %v10590_v10 = vpack.c.bf16 %v4137_v36, %v4134_v17  ;;  %v3994_v23 = vld [vmem:[%s17523_s8 + $0x450] sm:$0xff]  ;;  %v4140_v9 = vld [vmem:[%s17523_s8 + $0x8e0] sm:$0xff]  ;;  %v4027_v17 = vld [vmem:[%s17523_s8 + $0x558] sm:$0xff] }
 0xaf7   : > { %10575 = vmatprep.subr.bf16.mxu0 %v10574_v18  ;;  %v3961_v18 = vld [vmem:[%s17523_s8 + $0x348] sm:$0xff] }
 0xaf8   : > { %10357 = vmatpush1.bf16.msra.mxu1 %v10356_v4  ;;  %v3965_v4 = vld [vmem:[%s17523_s8 + $0x368] sm:$0xff]  ;;  %v10380_v57 = vpack.c.bf16 %v3961_v18, %v3958_v47  ;;  %v4143_v47 = vld [vmem:[%s17523_s8 + $0x8f8] sm:$0xff]  ;;  %v4004_v18 = vld [vmem:[%s17523_s8 + $0x4a0] sm:$0xff] }
 0xaf9   : > { %10359 = vmatprep.subr.bf16.mxu1 %v10358_v46  ;;  %v10382_v46 = vpack.c.bf16 %v3968_v11, %v3965_v4  ;;  %v10594_v4 = vpack.c.bf16 %v4143_v47, %v4140_v9  ;;  %v4092_v11 = vld [vmem:[%s17523_s8 + $0x760] sm:$0xff]  ;;  %v4039_v9 = vld [vmem:[%s17523_s8 + $0x5b8] sm:$0xff] }
 0xafa   : > { %10577 = vmatpush3.bf16.msra.mxu0 %v10576_v27  ;;  %v3973_v27 = vld [vmem:[%s17523_s8 + $0x3a8] sm:$0xff] }
 0xafb   : > { %10579 = vmatprep.subr.bf16.mxu0 %v10578_v44  ;;  %v3977_v44 = vld [vmem:[%s17523_s8 + $0x3c8] sm:$0xff] }
 0xafc   : > { %10361 = vmatpush1.bf16.msra.mxu1 %v10360_v21 }
 0xafd   : > { %10363 = vmatprep.subr.bf16.mxu1 %v10362_v13  ;;  %v3986_v13 = vld [vmem:[%s17523_s8 + $0x410] sm:$0xff] }
 0xafe   : > { %10581 = vmatpush3.bf16.msra.mxu0 %v10580_v2  ;;  %v10394_v15 = vpack.c.bf16 %v3986_v13, %v3983_v48  ;;  %v3989_v2 = vld [vmem:[%s17523_s8 + $0x428] sm:$0xff]  ;;  %v4016_v48 = vld [vmem:[%s17523_s8 + $0x500] sm:$0xff] }
 0xaff   : > { %10583 = vmatprep.subr.bf16.mxu0 %v10582_v32  ;;  %v4131_v32 = vld [vmem:[%s17523_s8 + $0x898] sm:$0xff] }
 0xb00   : > { %10365 = vmatpush1.bf16.msra.mxu1 %v10364_v49  ;;  %v3992_v49 = vld [vmem:[%s17523_s8 + $0x440] sm:$0xff]  ;;  %v10586_v12 = vpack.c.bf16 %v4131_v32, %v4128_v43  ;;  %v4015_v43 = vld [vmem:[%s17523_s8 + $0x4f8] sm:$0xff] }
 0xb01   : > { %10367 = vmatprep.subr.bf16.mxu1 %v10366_v45  ;;  %v4083_v45 = vld [vmem:[%s17523_s8 + $0x718] sm:$0xff] }
 0xb02   : > { %10585 = vmatpush3.bf16.msra.mxu0 %v10584_v35  ;;  %v10588_v33 = vpack.c.bf16 %v4083_v45, %v4080_v37  ;;  %v10398_v35 = vpack.c.bf16 %v3992_v49, %v3989_v2  ;;  %v10416_v2 = vpack.c.bf16 %v4015_v43, %v4012_v31  ;;  %v4018_v49 = vld [vmem:[%s17523_s8 + $0x510] sm:$0xff]  ;;  %v4025_v37 = vld [vmem:[%s17523_s8 + $0x548] sm:$0xff]  ;;  %v4028_v45 = vld [vmem:[%s17523_s8 + $0x560] sm:$0xff] }
 0xb03   : > { %10587 = vmatprep.subr.bf16.mxu0 %v10586_v12  ;;  %v4021_v12 = vld [vmem:[%s17523_s8 + $0x528] sm:$0xff]  ;;  %v4066_v31 = vld [vmem:[%s17523_s8 + $0x690] sm:$0xff] }
 0xb04   : > { %10369 = vmatpush1.bf16.msra.mxu1 %v10368_v7  ;;  %v3991_v7 = vld [vmem:[%s17523_s8 + $0x438] sm:$0xff]  ;;  %v4069_v43 = vld [vmem:[%s17523_s8 + $0x6a8] sm:$0xff] }
 0xb05   : > { %10371 = vmatprep.subr.bf16.mxu1 %v10370_v51  ;;  %v3995_v51 = vld [vmem:[%s17523_s8 + $0x458] sm:$0xff]  ;;  %v10400_v22 = vpack.c.bf16 %v3991_v7, %v3988_v39  ;;  %v4024_v39 = vld [vmem:[%s17523_s8 + $0x540] sm:$0xff]  ;;  %v4034_v7 = vld [vmem:[%s17523_s8 + $0x590] sm:$0xff] }
 0xb06   : > { %10589 = vmatpush3.bf16.msra.mxu0 %v10588_v33  ;;  %v10402_v63 = vpack.c.bf16 %v3998_v40, %v3995_v51  ;;  %v10420_v33 = vpack.c.bf16 %v4021_v12, %v4018_v49  ;;  %v10424_v51 = vpack.c.bf16 %v4027_v17, %v4024_v39  ;;  %v4030_v40 = vld [vmem:[%s17523_s8 + $0x570] sm:$0xff]  ;;  %v4075_v49 = vld [vmem:[%s17523_s8 + $0x6d8] sm:$0xff]  ;;  %v4081_v39 = vld [vmem:[%s17523_s8 + $0x708] sm:$0xff] }
 0xb07   : > { %10591 = vmatprep.subr.bf16.mxu0 %v10590_v10  ;;  %v4033_v10 = vld [vmem:[%s17523_s8 + $0x588] sm:$0xff]  ;;  %v4079_v12 = vld [vmem:[%s17523_s8 + $0x6f8] sm:$0xff] }
 0xb08   : > { %10373 = vmatpush1.bf16.msra.mxu1 %v10372_v53  ;;  %v4089_v53 = vld [vmem:[%s17523_s8 + $0x748] sm:$0xff] }
 0xb09   : > { %10375 = vmatprep.subr.bf16.mxu1 %v10374_v52  ;;  %v10592_v52 = vpack.c.bf16 %v4089_v53, %v4086_v14  ;;  %v4037_v14 = vld [vmem:[%s17523_s8 + $0x5a8] sm:$0xff]  ;;  %v4040_v53 = vld [vmem:[%s17523_s8 + $0x5c0] sm:$0xff] }
 0xb0a   : > { %v4085_v17 = vld [vmem:[%s17523_s8 + $0x728] sm:$0xff] }
 0xb0b   : > { %4226 = vmatmul.mubr.f32.vlgmr.msra.gmra.mrb[44].mxu1 %v14061_v26  ;;  %v3974_v26 = vld [vmem:[%s17523_s8 + $0x3b0] sm:$0xff]  ;;  %10593 = vmatpush3.bf16.msra.mxu0 %v10592_v52  ;;  %v10428_v52 = vpack.c.bf16 %v4033_v10, %v4030_v40  ;;  %v4087_v40 = vld [vmem:[%s17523_s8 + $0x738] sm:$0xff] }
 0xb0c   : > { %4231 = vmatprep.mubr.f32.mxu1 %v14123_v58  ;;  %10377 = vmatpush1.bf16.msra.mxu1 %v10376_v24  ;;  %v10384_v58 = vpack.c.bf16 %v3967_v56, %v3964_v54  ;;  %v10386_v61 = vpack.c.bf16 %v3974_v26, %v3971_v29  ;;  %v3997_v24 = vld [vmem:[%s17523_s8 + $0x468] sm:$0xff]  ;;  %v4652_v29 = vld [vmem:[%s17518_s3 + $0x38] sm:$0xff] }
 0xb0d   : > { %10379 = vmatprep.subr.bf16.mxu1 %v10378_v5  ;;  %v4001_v5 = vld [vmem:[%s17523_s8 + $0x488] sm:$0xff]  ;;  %v10404_v54 = vpack.c.bf16 %v3997_v24, %v3994_v23  ;;  %10595 = vmatprep.subr.bf16.mxu0 %v10594_v4  ;;  %v4036_v23 = vld [vmem:[%s17523_s8 + $0x5a0] sm:$0xff]  ;;  %v4046_v24 = vld [vmem:[%s17523_s8 + $0x5f0] sm:$0xff] }
 0xb0e   : > { %v4646_v56 = vld [vmem:[%s17518_s3 + $0x8] sm:$0xff]  ;;  %v10406_v26 = vpack.c.bf16 %v4004_v18, %v4001_v5  ;;  %v10432_v5 = vpack.c.bf16 %v4039_v9, %v4036_v23  ;;  %v4042_v18 = vld [vmem:[%s17523_s8 + $0x5d0] sm:$0xff]  ;;  %v4091_v10 = vld [vmem:[%s17523_s8 + $0x758] sm:$0xff] }
 0xb0f   : > { %4232 = vmatmul.mubr.f32.gmra.mrb[46].mxu1 %v14135_v41  ;;  %v3980_v41 = vld [vmem:[%s17523_s8 + $0x3e0] sm:$0xff]  ;;  %v4045_v4 = vld [vmem:[%s17523_s8 + $0x5e8] sm:$0xff] }
 0xb10   : > { %10381 = vmatpush1.bf16.msra.mxu1 %v10380_v57  ;;  %4302 = vmatprep.mubr.f32.mxu1 %v14132_v6  ;;  %v10388_v6 = vpack.c.bf16 %v3973_v27, %v3970_v28  ;;  %v10390_v21 = vpack.c.bf16 %v3980_v41, %v3977_v44  ;;  %v4095_v57 = vld [vmem:[%s17523_s8 + $0x778] sm:$0xff]  ;;  %v10598_v28 = vpack.c.bf16 %v4652_v29, %v4646_v56  ;;  %v4010_v44 = vld [vmem:[%s17523_s8 + $0x4d0] sm:$0xff]  ;;  %v4048_v56 = vld [vmem:[%s17523_s8 + $0x600] sm:$0xff] }
 0xb11   : > { %10383 = vmatprep.subr.bf16.mxu1 %v10382_v46  ;;  %v10596_v46 = vpack.c.bf16 %v4095_v57, %v4092_v11  ;;  %v4007_v27 = vld [vmem:[%s17523_s8 + $0x4b8] sm:$0xff]  ;;  %v4049_v11 = vld [vmem:[%s17523_s8 + $0x608] sm:$0xff]  ;;  %v4052_v57 = vld [vmem:[%s17523_s8 + $0x620] sm:$0xff] }
 0xb12   : > { %v4051_v29 = vld [vmem:[%s17523_s8 + $0x618] sm:$0xff]  ;;  %v4093_v23 = vld [vmem:[%s17523_s8 + $0x768] sm:$0xff] }
 0xb13   : > { %10597 = vmatpush3.bf16.msra.mxu0 %v10596_v46  ;;  %v10436_v46 = vpack.c.bf16 %v4045_v4, %v4042_v18  ;;  %v4097_v9 = vld [vmem:[%s17523_s8 + $0x788] sm:$0xff]  ;;  %v4099_v18 = vld [vmem:[%s17523_s8 + $0x798] sm:$0xff] }
 0xb14   : > { %10385 = vmatpush1.bf16.msra.mxu1 %v10384_v58  ;;  %v4000_v58 = vld [vmem:[%s17523_s8 + $0x480] sm:$0xff]  ;;  %10599 = vmatprep.subr.bf16.mxu0 %v10598_v28  ;;  %v4103_v4 = vld [vmem:[%s17523_s8 + $0x7b8] sm:$0xff] }
 0xb15   : > { %10387 = vmatprep.subr.bf16.mxu1 %v10386_v61  ;;  %v4003_v61 = vld [vmem:[%s17523_s8 + $0x498] sm:$0xff] }
 0xb16   : > { %v10408_v41 = vpack.c.bf16 %v4003_v61, %v4000_v58  ;;  %v4058_v58 = vld [vmem:[%s17523_s8 + $0x650] sm:$0xff]  ;;  %v10440_v61 = vpack.c.bf16 %v4051_v29, %v4048_v56  ;;  %v4105_v56 = vld [vmem:[%s17523_s8 + $0x7c8] sm:$0xff] }
 0xb17   : > { %v4109_v29 = vld [vmem:[%s17523_s8 + $0x7e8] sm:$0xff] }
 0xb18   : > { %10389 = vmatpush1.bf16.msra.mxu1 %v10388_v6  ;;  %v10410_v6 = vpack.c.bf16 %v4010_v44, %v4007_v27  ;;  %v4054_v27 = vld [vmem:[%s17523_s8 + $0x630] sm:$0xff]  ;;  %v4057_v44 = vld [vmem:[%s17523_s8 + $0x648] sm:$0xff] }
 0xb19   : > { %10391 = vmatprep.subr.bf16.mxu1 %v10390_v21  ;;  %v4006_v21 = vld [vmem:[%s17523_s8 + $0x4b0] sm:$0xff] }
 0xb1a   : > { %v10412_v13 = vpack.c.bf16 %v4009_v42, %v4006_v21  ;;  %v10444_v21 = vpack.c.bf16 %v4057_v44, %v4054_v27  ;;  %v4111_v27 = vld [vmem:[%s17523_s8 + $0x7f8] sm:$0xff] }
 0xb1b   : > { %v4115_v44 = vld [vmem:[%s17523_s8 + $0x818] sm:$0xff] }
 0xb1c   : > { %10393 = vmatpush1.bf16.msra.mxu1 %v10392_v25  ;;  %v10414_v25 = vpack.c.bf16 %v4016_v48, %v4013_v55  ;;  %v4060_v55 = vld [vmem:[%s17523_s8 + $0x660] sm:$0xff]  ;;  %v4063_v48 = vld [vmem:[%s17523_s8 + $0x678] sm:$0xff] }
 0xb1d   : > { %10395 = vmatprep.subr.bf16.mxu1 %v10394_v15  ;;  %v4019_v15 = vld [vmem:[%s17523_s8 + $0x518] sm:$0xff] }
 0xb1e   : > { %v10418_v32 = vpack.c.bf16 %v4022_v20, %v4019_v15  ;;  %v4073_v15 = vld [vmem:[%s17523_s8 + $0x6c8] sm:$0xff]  ;;  %v10452_v20 = vpack.c.bf16 %v4069_v43, %v4066_v31  ;;  %v4123_v31 = vld [vmem:[%s17523_s8 + $0x858] sm:$0xff] }
 0xb1f   : > { %v4127_v43 = vld [vmem:[%s17523_s8 + $0x878] sm:$0xff] }
 0xb20   : > { %10397 = vmatpush1.bf16.msra.mxu1 %v10396_v34  ;;  %v10422_v34 = vpack.c.bf16 %v4028_v45, %v4025_v37  ;;  %v4082_v37 = vld [vmem:[%s17523_s8 + $0x710] sm:$0xff] }
 0xb21   : > { %10399 = vmatprep.subr.bf16.mxu1 %v10398_v35  ;;  %v4031_v35 = vld [vmem:[%s17523_s8 + $0x578] sm:$0xff] }
 0xb22   : > { %v10426_v36 = vpack.c.bf16 %v4034_v7, %v4031_v35  ;;  %v4088_v35 = vld [vmem:[%s17523_s8 + $0x740] sm:$0xff] }
 0xb24   : > { %10401 = vmatpush1.bf16.msra.mxu1 %v10400_v22  ;;  %v10430_v22 = vpack.c.bf16 %v4040_v53, %v4037_v14  ;;  %v4094_v14 = vld [vmem:[%s17523_s8 + $0x770] sm:$0xff] }
 0xb25   : > { %10403 = vmatprep.subr.bf16.mxu1 %v10402_v63  ;;  %v4043_v63 = vld [vmem:[%s17523_s8 + $0x5d8] sm:$0xff] }
 0xb26   : > { %v10434_v47 = vpack.c.bf16 %v4046_v24, %v4043_v63  ;;  %v4100_v63 = vld [vmem:[%s17523_s8 + $0x7a0] sm:$0xff] }
 0xb28   : > { %10405 = vmatpush1.bf16.msra.mxu1 %v10404_v54  ;;  %v10438_v54 = vpack.c.bf16 %v4052_v57, %v4049_v11  ;;  %v4106_v11 = vld [vmem:[%s17523_s8 + $0x7d0] sm:$0xff] }
 0xb29   : > { %10407 = vmatprep.subr.bf16.mxu1 %v10406_v26  ;;  %v4055_v26 = vld [vmem:[%s17523_s8 + $0x638] sm:$0xff] }
 0xb2a   : > { %v10442_v28 = vpack.c.bf16 %v4058_v58, %v4055_v26  ;;  %v4112_v26 = vld [vmem:[%s17523_s8 + $0x800] sm:$0xff] }
 0xb2c   : > { %10409 = vmatpush1.bf16.msra.mxu1 %v10408_v41  ;;  %v4061_v41 = vld [vmem:[%s17523_s8 + $0x668] sm:$0xff] }
 0xb2d   : > { %10411 = vmatprep.subr.bf16.mxu1 %v10410_v6  ;;  %v4064_v6 = vld [vmem:[%s17523_s8 + $0x680] sm:$0xff] }
 0xb2e   : > { %v10446_v42 = vpack.c.bf16 %v4064_v6, %v4061_v41  ;;  %v4118_v41 = vld [vmem:[%s17523_s8 + $0x830] sm:$0xff] }
 0xb30   : > { %10413 = vmatpush1.bf16.msra.mxu1 %v10412_v13  ;;  %v4067_v13 = vld [vmem:[%s17523_s8 + $0x698] sm:$0xff] }
 0xb31   : > { %10415 = vmatprep.subr.bf16.mxu1 %v10414_v25 }
 0xb34   : > { %10417 = vmatpush1.bf16.msra.mxu1 %v10416_v2 }
 0xb35   : > { %10419 = vmatprep.subr.bf16.mxu1 %v10418_v32  ;;  %v4072_v32 = vld [vmem:[%s17523_s8 + $0x6c0] sm:$0xff] }
 0xb36   : > { %v10456_v45 = vpack.c.bf16 %v4075_v49, %v4072_v32  ;;  %v4129_v32 = vld [vmem:[%s17523_s8 + $0x888] sm:$0xff] }
 0xb37   : > { %v4133_v49 = vld [vmem:[%s17523_s8 + $0x8a8] sm:$0xff] }
 0xb38   : > { %10421 = vmatpush1.bf16.msra.mxu1 %v10420_v33  ;;  %v10458_v33 = vpack.c.bf16 %v4082_v37, %v4079_v12  ;;  %v4136_v12 = vld [vmem:[%s17523_s8 + $0x8c0] sm:$0xff] }
 0xb39   : > { %10423 = vmatprep.subr.bf16.mxu1 %v10422_v34  ;;  %v4078_v34 = vld [vmem:[%s17523_s8 + $0x6f0] sm:$0xff] }
 0xb3a   : > { %v10460_v7 = vpack.c.bf16 %v4081_v39, %v4078_v34  ;;  %v4135_v34 = vld [vmem:[%s17523_s8 + $0x8b8] sm:$0xff] }
 0xb3b   : > { %v4139_v39 = vld [vmem:[%s17523_s8 + $0x8d8] sm:$0xff] }
 0xb3c   : > { %10425 = vmatpush1.bf16.msra.mxu1 %v10424_v51  ;;  %v10462_v51 = vpack.c.bf16 %v4088_v35, %v4085_v17  ;;  %v4142_v17 = vld [vmem:[%s17523_s8 + $0x8f0] sm:$0xff] }
 0xb3d   : > { %10427 = vmatprep.subr.bf16.mxu1 %v10426_v36  ;;  %v4084_v36 = vld [vmem:[%s17523_s8 + $0x720] sm:$0xff] }
 0xb3e   : > { %v10464_v53 = vpack.c.bf16 %v4087_v40, %v4084_v36  ;;  %v4141_v36 = vld [vmem:[%s17523_s8 + $0x8e8] sm:$0xff] }
 0xb3f   : > { %v4650_v40 = vld [vmem:[%s17518_s3 + $0x28] sm:$0xff] }
 0xb40   : > { %10429 = vmatpush1.bf16.msra.mxu1 %v10428_v52  ;;  %v10466_v52 = vpack.c.bf16 %v4094_v14, %v4091_v10  ;;  %v4656_v10 = vld [vmem:[%s17518_s3 + $0x58] sm:$0xff] }
 0xb41   : > { %10431 = vmatprep.subr.bf16.mxu1 %v10430_v22  ;;  %v4090_v22 = vld [vmem:[%s17523_s8 + $0x750] sm:$0xff] }
 0xb42   : > { %v10468_v24 = vpack.c.bf16 %v4093_v23, %v4090_v22  ;;  %v4645_v23 = vld [vmem:[%s17518_s3] sm:$0xff] }
 0xb44   : > { %10433 = vmatpush1.bf16.msra.mxu1 %v10432_v5  ;;  %v10470_v5 = vpack.c.bf16 %v4100_v63, %v4097_v9  ;;  %v4651_v9 = vld [vmem:[%s17518_s3 + $0x30] sm:$0xff]  ;;  %v4649_v63 = vld [vmem:[%s17518_s3 + $0x20] sm:$0xff] }
 0xb45   : > { %10435 = vmatprep.subr.bf16.mxu1 %v10434_v47  ;;  %v4096_v47 = vld [vmem:[%s17523_s8 + $0x780] sm:$0xff] }
 0xb46   : > { %v10472_v57 = vpack.c.bf16 %v4099_v18, %v4096_v47 }
 0xb48   : > { %10437 = vmatpush1.bf16.msra.mxu1 %v10436_v46  ;;  %v10474_v46 = vpack.c.bf16 %v4106_v11, %v4103_v4  ;;  %v4664_v4 = vld [vmem:[%s17518_s3 + $0x98] sm:$0xff]  ;;  %v4662_v11 = vld [vmem:[%s17518_s3 + $0x88] sm:$0xff] }
 0xb49   : > { %10439 = vmatprep.subr.bf16.mxu1 %v10438_v54  ;;  %v4102_v54 = vld [vmem:[%s17523_s8 + $0x7b0] sm:$0xff] }
 0xb4a   : > { %v10476_v58 = vpack.c.bf16 %v4105_v56, %v4102_v54 }
 0xb4b   : > { %4303 = vmatmul.mubr.f32.vlgmr.msra.gmra.mrb[44].mxu1 %v14281_v62  ;;  %v4070_v62 = vld [vmem:[%s17523_s8 + $0x6b0] sm:$0xff] }
 0xb4c   : > { %4308 = vmatprep.mubr.f32.mxu1 %v14296_v38  ;;  %10441 = vmatpush1.bf16.msra.mxu1 %v10440_v61  ;;  %v10448_v38 = vpack.c.bf16 %v4063_v48, %v4060_v55  ;;  %v10450_v25 = vpack.c.bf16 %v4070_v62, %v4067_v13  ;;  %v10478_v61 = vpack.c.bf16 %v4112_v26, %v4109_v29  ;;  %v4117_v55 = vld [vmem:[%s17523_s8 + $0x828] sm:$0xff]  ;;  %v4124_v13 = vld [vmem:[%s17523_s8 + $0x860] sm:$0xff] }
 0xb4d   : > { %10443 = vmatprep.subr.bf16.mxu1 %v10442_v28  ;;  %v4108_v28 = vld [vmem:[%s17523_s8 + $0x7e0] sm:$0xff]  ;;  %v4121_v48 = vld [vmem:[%s17523_s8 + $0x848] sm:$0xff]  ;;  %v10600_v26 = vpack.c.bf16 %v4651_v9, %v4645_v23  ;;  %v4704_v23 = vld [vmem:[%s17518_s3 + $0x1d8] sm:$0xff] }
 0xb4e   : > { %v10480_v6 = vpack.c.bf16 %v4111_v27, %v4108_v28  ;;  %v14924_v9 = vld [vmem:[%s12181_s22 + $0x38] sm:$0xff] }
 0xb4f   : > { %4309 = vmatmul.mubr.f32.gmra.mrb[46].mxu1 %v14314_v50  ;;  %v4076_v50 = vld [vmem:[%s17523_s8 + $0x6e0] sm:$0xff] }
 0xb50   : > { %10445 = vmatpush1.bf16.msra.mxu1 %v10444_v21  ;;  %v10454_v2 = vpack.c.bf16 %v4076_v50, %v4073_v15  ;;  %v10482_v21 = vpack.c.bf16 %v4118_v41, %v4115_v44  ;;  %v4130_v15 = vld [vmem:[%s17523_s8 + $0x890] sm:$0xff]  ;;  %v4661_v41 = vld [vmem:[%s17518_s3 + $0x80] sm:$0xff] }
 0xb51   : > { %10447 = vmatprep.subr.bf16.mxu1 %v10446_v42  ;;  %v4114_v42 = vld [vmem:[%s17523_s8 + $0x810] sm:$0xff] }
 0xb52   : > { %v10484_v62 = vpack.c.bf16 %v4117_v55, %v4114_v42  ;;  %v4663_v44 = vld [vmem:[%s17518_s3 + $0x90] sm:$0xff]  ;;  %v3848_v42 = vld [vmem:[#allocation5 + $0x20] sm:$0xff] }
 0xb54   : > { %10449 = vmatpush1.bf16.msra.mxu1 %v10448_v38  ;;  %v10486_v38 = vpack.c.bf16 %v4124_v13, %v4121_v48  ;;  %v4670_v48 = vld [vmem:[%s17518_s3 + $0xc8] sm:$0xff]  ;;  %v4676_v13 = vld [vmem:[%s17518_s3 + $0xf8] sm:$0xff] }
 0xb55   : > { %10451 = vmatprep.subr.bf16.mxu1 %v10450_v25  ;;  %v4120_v25 = vld [vmem:[%s17523_s8 + $0x840] sm:$0xff] }
 0xb56   : > { %v10488_v50 = vpack.c.bf16 %v4123_v31, %v4120_v25 }
 0xb58   : > { %10453 = vmatpush1.bf16.msra.mxu1 %v10452_v20  ;;  %v10490_v20 = vpack.c.bf16 %v4130_v15, %v4127_v43  ;;  %v4680_v43 = vld [vmem:[%s17518_s3 + $0x118] sm:$0xff]  ;;  %v4669_v15 = vld [vmem:[%s17518_s3 + $0xc0] sm:$0xff] }
 0xb59   : > { %10455 = vmatprep.subr.bf16.mxu1 %v10454_v2  ;;  %v4126_v2 = vld [vmem:[%s17523_s8 + $0x870] sm:$0xff] }
 0xb5a   : > { %v10492_v37 = vpack.c.bf16 %v4129_v32, %v4126_v2  ;;  %v4679_v2 = vld [vmem:[%s17518_s3 + $0x110] sm:$0xff]  ;;  %v4682_v32 = vld [vmem:[%s17518_s3 + $0x128] sm:$0xff] }
 0xb5c   : > { %10457 = vmatpush1.bf16.msra.mxu1 %v10456_v45  ;;  %v10494_v45 = vpack.c.bf16 %v4136_v12, %v4133_v49  ;;  %v4688_v49 = vld [vmem:[%s17518_s3 + $0x158] sm:$0xff]  ;;  %v4686_v12 = vld [vmem:[%s17518_s3 + $0x148] sm:$0xff] }
 0xb5d   : > { %10459 = vmatprep.subr.bf16.mxu1 %v10458_v33  ;;  %v4132_v33 = vld [vmem:[%s17523_s8 + $0x8a0] sm:$0xff] }
 0xb5e   : > { %v10496_v35 = vpack.c.bf16 %v4135_v34, %v4132_v33  ;;  %v10606_v33 = vpack.c.bf16 %v4676_v13, %v4670_v48  ;;  %v4718_v48 = vld [vmem:[%s17518_s3 + $0x248] sm:$0xff]  ;;  %v4724_v13 = vld [vmem:[%s17518_s3 + $0x278] sm:$0xff] }
 0xb60   : > { %10461 = vmatpush1.bf16.msra.mxu1 %v10460_v7  ;;  %v10498_v7 = vpack.c.bf16 %v4142_v17, %v4139_v39 }
 0xb61   : > { %10463 = vmatprep.subr.bf16.mxu1 %v10462_v51  ;;  %v4138_v51 = vld [vmem:[%s17523_s8 + $0x8d0] sm:$0xff] }
 0xb62   : > { %v10500_v14 = vpack.c.bf16 %v4141_v36, %v4138_v51  ;;  %v4687_v51 = vld [vmem:[%s17518_s3 + $0x150] sm:$0xff]  ;;  %v10610_v36 = vpack.c.bf16 %v4688_v49, %v4682_v32  ;;  %v4721_v32 = vld [vmem:[%s17518_s3 + $0x260] sm:$0xff] }
 0xb63   : > { %v4727_v49 = vld [vmem:[%s17518_s3 + $0x290] sm:$0xff] }
 0xb64   : > { %10465 = vmatpush1.bf16.msra.mxu1 %v10464_v53  ;;  %v10754_v53 = vpack.c.bf16 %v4656_v10, %v4650_v40  ;;  %v4685_v10 = vld [vmem:[%s17518_s3 + $0x140] sm:$0xff] }
 0xb65   : > { %10467 = vmatprep.subr.bf16.mxu1 %v10466_v52  ;;  %v3748_v52 = vpop.xlane.xlu0 %3747 }
 0xb68   : > { %10469 = vmatpush1.bf16.msra.mxu1 %v10468_v24  ;;  %v4655_v24 = vld [vmem:[%s17518_s3 + $0x50] sm:$0xff] }
 0xb69   : > { %10471 = vmatprep.subr.bf16.mxu1 %v10470_v5  ;;  %v3751_v22 = vpop.xlane.xlu0 %3750  ;;  %v4658_v5 = vld [vmem:[%s17518_s3 + $0x68] sm:$0xff] }
 0xb6a   : > { %11860 = vrcp.f32 %v3751_v22  ;;  %v10602_v28 = vpack.c.bf16 %v4664_v4, %v4658_v5  ;;  %v4698_v22 = vld [vmem:[%s17518_s3 + $0x1a8] sm:$0xff] }
 0xb6b   : > { %11862 = vrcp.f32 %v3748_v52  ;;  %v4700_v52 = vld [vmem:[%s17518_s3 + $0x1b8] sm:$0xff] }
 0xb6c   : > { %10473 = vmatpush1.bf16.msra.mxu1 %v10472_v57  ;;  %v4668_v57 = vld [vmem:[%s17518_s3 + $0xb8] sm:$0xff] }
 0xb6d   : > { %10475 = vmatprep.subr.bf16.mxu1 %v10474_v46  ;;  %v10758_v27 = vpack.c.bf16 %v4668_v57, %v4662_v11  ;;  %v10770_v57 = vpack.c.bf16 %v4704_v23, %v4698_v22 }
 0xb70   : > { %10477 = vmatpush1.bf16.msra.mxu1 %v10476_v58  ;;  %v10756_v58 = vpack.c.bf16 %v4655_v24, %v4649_v63 }
 0xb71   : > { %10479 = vmatprep.subr.bf16.mxu1 %v10478_v61  ;;  %v4657_v61 = vld [vmem:[%s17518_s3 + $0x60] sm:$0xff] }
 0xb72   : > { %v10604_v25 = vpack.c.bf16 %v4663_v44, %v4657_v61  ;;  %v4716_v61 = vld [vmem:[%s17518_s3 + $0x238] sm:$0xff]  ;;  %v4705_v44 = vld [vmem:[%s17518_s3 + $0x1e0] sm:$0xff] }
 0xb74   : > { %10481 = vmatpush1.bf16.msra.mxu1 %v10480_v6  ;;  %v11861_v47 = vpop.eup %11860  ;;  %v4667_v6 = vld [vmem:[%s17518_s3 + $0xb0] sm:$0xff] }
 0xb75   : > { %10483 = vmatprep.subr.bf16.mxu1 %v10482_v21  ;;  %v11863_v46 = vpop.eup %11862  ;;  %v10760_v31 = vpack.c.bf16 %v4667_v6, %v4661_v41  ;;  %v4711_v41 = vld [vmem:[%s17518_s3 + $0x210] sm:$0xff] }
 0xb78   : > { %10485 = vmatpush1.bf16.msra.mxu1 %v10484_v62  ;;  %v4674_v62 = vld [vmem:[%s17518_s3 + $0xe8] sm:$0xff] }
 0xb79   : > { %10487 = vmatprep.subr.bf16.mxu1 %v10486_v38  ;;  %v10762_v34 = vpack.c.bf16 %v4680_v43, %v4674_v62  ;;  %v4722_v62 = vld [vmem:[%s17518_s3 + $0x268] sm:$0xff] }
 0xb7c   : > { %10489 = vmatpush1.bf16.msra.mxu1 %v10488_v50  ;;  %v4675_v50 = vld [vmem:[%s17518_s3 + $0xf0] sm:$0xff] }
 0xb7d   : > { %10491 = vmatprep.subr.bf16.mxu1 %v10490_v20  ;;  %v4673_v20 = vld [vmem:[%s17518_s3 + $0xe0] sm:$0xff]  ;;  %v10608_v17 = vpack.c.bf16 %v4675_v50, %v4669_v15  ;;  %v4723_v50 = vld [vmem:[%s17518_s3 + $0x270] sm:$0xff] }
 0xb7e   : > { %v4717_v15 = vld [vmem:[%s17518_s3 + $0x240] sm:$0xff] }
 0xb80   : > { %10493 = vmatpush1.bf16.msra.mxu1 %v10492_v37  ;;  %v4692_v37 = vld [vmem:[%s17518_s3 + $0x178] sm:$0xff] }
 0xb81   : > { %10495 = vmatprep.subr.bf16.mxu1 %v10494_v45  ;;  %v3854_v45 = vld [vmem:[#allocation5 + $0x50] sm:$0xf]  ;;  %v10766_v40 = vpack.c.bf16 %v4692_v37, %v4686_v12  ;;  %v4730_v12 = vld [vmem:[%s17518_s3 + $0x2a8] sm:$0xff]  ;;  %v4736_v37 = vld [vmem:[%s17518_s3 + $0x2d8] sm:$0xff] }
 0xb84   : > { %10497 = vmatpush1.bf16.msra.mxu1 %v10496_v35  ;;  %v10764_v35 = vpack.c.bf16 %v4679_v2, %v4673_v20  ;;  %v10622_v20 = vpack.c.bf16 %v4724_v13, %v4718_v48  ;;  %v4770_v48 = vld [vmem:[%s17518_s3 + $0x3e8] sm:$0xff]  ;;  %v4776_v13 = vld [vmem:[%s17518_s3 + $0x418] sm:$0xff] }
 0xb85   : > { %10499 = vmatprep.subr.bf16.mxu1 %v10498_v7  ;;  %v4681_v7 = vld [vmem:[%s17518_s3 + $0x120] sm:$0xff] }
 0xb86   : > { %v10612_v24 = vpack.c.bf16 %v4687_v51, %v4681_v7  ;;  %v10626_v7 = vpack.c.bf16 %v4736_v37, %v4730_v12  ;;  %v4778_v12 = vld [vmem:[%s17518_s3 + $0x428] sm:$0xff] }
 0xb88   : > { %10501 = vmatpush1.bf16.msra.mxu1 %v10500_v14  ;;  %v4691_v14 = vld [vmem:[%s17518_s3 + $0x170] sm:$0xff] }
 0xb89   : > { %10755 = vmatprep.subr.bf16.mxu1 %v10754_v53  ;;  %v4694_v53 = vld [vmem:[%s17518_s3 + $0x188] sm:$0xff]  ;;  %v10768_v5 = vpack.c.bf16 %v4691_v14, %v4685_v10  ;;  %v4748_v14 = vld [vmem:[%s17518_s3 + $0x338] sm:$0xff] }
 0xb8a   : > { %v10614_v11 = vpack.c.bf16 %v4700_v52, %v4694_v53  ;;  %v4742_v10 = vld [vmem:[%s17518_s3 + $0x308] sm:$0xff]  ;;  %v4752_v52 = vld [vmem:[%s17518_s3 + $0x358] sm:$0xff] }
 0xb8b   : > { %v4746_v53 = vld [vmem:[%s17518_s3 + $0x328] sm:$0xff] }
 0xb9e   : > { %v9463_v18 = vpop.f32.mrb[42].mxu1 }
 0xb9f   : > { %v3841_v54 = vmul.f32 %v11861_v47, %v9463_v18  ;;  %v3831_v56 = vpop.f32.mrb[43].mxu1  ;;  %v4693_v47 = vld [vmem:[%s17518_s3 + $0x180] sm:$0xff]  ;;  %v4699_v18 = vld [vmem:[%s17518_s3 + $0x1b0] sm:$0xff] }
 0xba0   : > { %v3840_v29 = vmul.f32 %v11863_v46, %v3831_v56  ;;  %v4697_v46 = vld [vmem:[%s17518_s3 + $0x1a0] sm:$0xff]  ;;  %v4706_v56 = vld [vmem:[%s17518_s3 + $0x1e8] sm:$0xff] }
 0xba1   : > { %3843 = vst [vmem:[#allocation5 + $0x58] sm:$0xf] %v3841_v54  ;;  %v4703_v54 = vld [vmem:[%s17518_s3 + $0x1d0] sm:$0xff] }
 0xba2   : > { %v9136_v21 = vpop.f32.mrb[24].mxu0  ;;  %4379 = vmatprep.mubr.f32.mxu1 %v3840_v29  ;;  %4606 = vmatprep.mubr.f32.mxu0 %v3840_v29 }
 0xba3   : > { %v9137_v55 = vpop.f32.mrb[25].mxu0  ;;  %4380 = vmatmul.mubr.f32.vlgmr.msra.gmra.mrb[44].mxu1 %v3848_v42  ;;  %4607 = vmatmul.mubr.f32.vlgmr.msra.gmra.mrb[32].mxu0 %v3848_v42  ;;  %v4709_v42 = vld [vmem:[%s17518_s3 + $0x200] sm:$0xff] }
 0xba4   : > { %v14870_v38 = vadd.f32 %v9137_v55, %v9136_v21  ;;  %10601 = vmatpush1.bf16.msra.mxu0 %v10600_v26  ;;  %10757 = vmatpush1.bf16.msra.mxu1 %v10756_v58  ;;  %v4712_v26 = vld [vmem:[%s17518_s3 + $0x218] sm:$0xff]  ;;  %v4710_v58 = vld [vmem:[%s17518_s3 + $0x208] sm:$0xff]  ;;  %v4715_v55 = vld [vmem:[%s17518_s3 + $0x230] sm:$0xff] }
 0xba5   : > { %10603 = vmatprep.subr.bf16.mxu0 %v10602_v28  ;;  %10759 = vmatprep.subr.bf16.mxu1 %v10758_v27  ;;  %v10616_v28 = vpack.c.bf16 %v4699_v18, %v4693_v47  ;;  %v10772_v27 = vpack.c.bf16 %v4703_v54, %v4697_v46  ;;  %v10618_v6 = vpack.c.bf16 %v4712_v26, %v4706_v56  ;;  %v4745_v18 = vld [vmem:[%s17518_s3 + $0x320] sm:$0xff]  ;;  %v4758_v46 = vld [vmem:[%s17518_s3 + $0x388] sm:$0xff]  ;;  %v4764_v54 = vld [vmem:[%s17518_s3 + $0x3b8] sm:$0xff] }
 0xba6   : > { %v10774_v21 = vpack.c.bf16 %v4716_v61, %v4710_v58  ;;  %v10776_v43 = vpack.c.bf16 %v4715_v55, %v4709_v42  ;;  %v10786_v47 = vpack.c.bf16 %v4752_v52, %v4746_v53  ;;  %v4144_v56 = vld [vmem:[%s17524_s9] sm:$0x7]  ;;  %v4772_v55 = vld [vmem:[%s17518_s3 + $0x3f8] sm:$0xff]  ;;  %v4787_v52 = vld [vmem:[%s17518_s3 + $0x470] sm:$0xff] }
 0xba7   : > { %v4753_v61 = vld [vmem:[%s17518_s3 + $0x360] sm:$0xff]  ;;  %v4157_v42 = vrot.slane %v4144_v56, %v13682_v8 }
 0xba8   : > { %v3855_v39 = vld [vmem:[#allocation5 + $0x58] sm:$0xf]  ;;  %10605 = vmatpush1.bf16.msra.mxu0 %v10604_v25  ;;  %10761 = vmatpush1.bf16.msra.mxu1 %v10760_v31  ;;  %v10620_v31 = vpack.c.bf16 %v4711_v41, %v4705_v44  ;;  %v10790_v44 = vpack.c.bf16 %v4764_v54, %v4758_v46  ;;  %v4757_v41 = vld [vmem:[%s17518_s3 + $0x380] sm:$0xff] }
 0xba9   : > { %4385 = vmatprep.mubr.f32.mxu1 %v3855_v39  ;;  %4611 = vmatprep.mubr.f32.mxu0 %v3855_v39  ;;  %v4728_v25 = vld [vmem:[%s17518_s3 + $0x298] sm:$0xff]  ;;  %v10780_v39 = vpack.c.bf16 %v4727_v49, %v4721_v32  ;;  %v4769_v32 = vld [vmem:[%s17518_s3 + $0x3e0] sm:$0xff]  ;;  %v4775_v49 = vld [vmem:[%s17518_s3 + $0x410] sm:$0xff]  ;;  %v4459_v37 = vadd.f32 %v14870_v38, %v4157_v42 }
 0xbaa   : > { %4386 = vmatmul.mubr.f32.gmra.mrb[46].mxu1 %v3854_v45  ;;  %4612 = vmatmul.mubr.f32.gmra.mrb[34].mxu0 %v3854_v45  ;;  %v10778_v2 = vpack.c.bf16 %v4728_v25, %v4722_v62  ;;  %v4734_v45 = vld [vmem:[%s17518_s3 + $0x2c8] sm:$0xff]  ;;  %v10796_v38 = vpack.c.bf16 %v4775_v49, %v4769_v32  ;;  %v4781_v53 = vld [vmem:[%s17518_s3 + $0x440] sm:$0xff] }
 0xbab   : > { %10607 = vmatprep.subr.bf16.mxu0 %v10606_v33  ;;  %10763 = vmatprep.subr.bf16.mxu1 %v10762_v34  ;;  %v4740_v33 = vld [vmem:[%s17518_s3 + $0x2f8] sm:$0xff]  ;;  %v10624_v34 = vpack.c.bf16 %v4723_v50, %v4717_v15  ;;  %v4771_v15 = vld [vmem:[%s17518_s3 + $0x3f0] sm:$0xff]  ;;  %v4793_v56 = vld [vmem:[%s17518_s3 + $0x4a0] sm:$0xff] }
 0xbac   : > { %v9139_v63 = vpop.f32.mrb[26].mxu0  ;;  %10609 = vmatpush1.bf16.msra.mxu0 %v10608_v17  ;;  %10765 = vmatpush1.bf16.msra.mxu1 %v10764_v35  ;;  %v4729_v17 = vld [vmem:[%s17518_s3 + $0x2a0] sm:$0xff]  ;;  %v4735_v35 = vld [vmem:[%s17518_s3 + $0x2d0] sm:$0xff]  ;;  %v10782_v51 = vpack.c.bf16 %v4740_v33, %v4734_v45  ;;  %v4784_v33 = vld [vmem:[%s17518_s3 + $0x458] sm:$0xff] }
 0xbad   : > { %v9140_v4 = vpop.f32.mrb[27].mxu0  ;;  %10611 = vmatprep.subr.bf16.mxu0 %v10610_v36  ;;  %10767 = vmatprep.subr.bf16.mxu1 %v10766_v40  ;;  %v4733_v36 = vld [vmem:[%s17518_s3 + $0x2c0] sm:$0xff]  ;;  %v4739_v40 = vld [vmem:[%s17518_s3 + $0x2f0] sm:$0xff]  ;;  %v10628_v22 = vpack.c.bf16 %v4735_v35, %v4729_v17 }
 0xbae   : > { %v14941_v29 = vadd.f32 %v9140_v4, %v9139_v63  ;;  %4993 = vmatprep.mubr.f32.mxu0 %v14924_v9  ;;  %5301 = vmatprep.mubr.f32.mxu1 %v14924_v9  ;;  %v10784_v23 = vpack.c.bf16 %v4739_v40, %v4733_v36  ;;  %v4741_v63 = vld [vmem:[%s17518_s3 + $0x300] sm:$0xff]  ;;  %v4751_v4 = vld [vmem:[%s17518_s3 + $0x350] sm:$0xff] }
 0xbaf   : > { %v10788_v58 = vpack.c.bf16 %v4751_v4, %v4745_v18  ;;  %v4783_v36 = vld [vmem:[%s17518_s3 + $0x450] sm:$0xff] }
 0xbb0   : > { %10613 = vmatpush1.bf16.msra.mxu0 %v10612_v24  ;;  %10769 = vmatpush1.bf16.msra.mxu1 %v10768_v5  ;;  %v4747_v24 = vld [vmem:[%s17518_s3 + $0x330] sm:$0xff]  ;;  %v10630_v5 = vpack.c.bf16 %v4748_v14, %v4742_v10  ;;  %v10642_v10 = vpack.c.bf16 %v4784_v33, %v4778_v12  ;;  %v4817_v12 = vld [vmem:[%s17518_s3 + $0x560] sm:$0xff]  ;;  %v4832_v33 = vld [vmem:[%s17518_s3 + $0x5d8] sm:$0xff] }
 0xbb1   : > { %10615 = vmatprep.subr.bf16.mxu0 %v10614_v11  ;;  %10771 = vmatprep.subr.bf16.mxu1 %v10770_v57  ;;  %v4754_v11 = vld [vmem:[%s17518_s3 + $0x368] sm:$0xff]  ;;  %v4760_v57 = vld [vmem:[%s17518_s3 + $0x398] sm:$0xff]  ;;  %v10632_v26 = vpack.c.bf16 %v4747_v24, %v4741_v63 }
 0xbb2   : > { %v4796_v24 = vld [vmem:[%s17518_s3 + $0x4b8] sm:$0xff] }
 0xbb4   : > { %10617 = vmatpush1.bf16.msra.mxu0 %v10616_v28  ;;  %10773 = vmatpush1.bf16.msra.mxu1 %v10772_v27  ;;  %v4759_v28 = vld [vmem:[%s17518_s3 + $0x390] sm:$0xff]  ;;  %v10634_v27 = vpack.c.bf16 %v4760_v57, %v4754_v11  ;;  %v10800_v11 = vpack.c.bf16 %v4787_v52, %v4781_v53  ;;  %v4838_v53 = vld [vmem:[%s17518_s3 + $0x608] sm:$0xff]  ;;  %v4844_v52 = vld [vmem:[%s17518_s3 + $0x638] sm:$0xff] }
 0xbb5   : > { %10619 = vmatprep.subr.bf16.mxu0 %v10618_v6  ;;  %10775 = vmatprep.subr.bf16.mxu1 %v10774_v21  ;;  %v4763_v6 = vld [vmem:[%s17518_s3 + $0x3b0] sm:$0xff]  ;;  %v4766_v21 = vld [vmem:[%s17518_s3 + $0x3c8] sm:$0xff]  ;;  %v10636_v25 = vpack.c.bf16 %v4759_v28, %v4753_v61  ;;  %v4808_v61 = vld [vmem:[%s17518_s3 + $0x518] sm:$0xff] }
 0xbb6   : > { %v4795_v57 = vld [vmem:[%s17518_s3 + $0x4b0] sm:$0xff]  ;;  %v4806_v28 = vld [vmem:[%s17518_s3 + $0x508] sm:$0xff] }
 0xbb8   : > { %10621 = vmatpush1.bf16.msra.mxu0 %v10620_v31  ;;  %10777 = vmatpush1.bf16.msra.mxu1 %v10776_v43  ;;  %v10792_v31 = vpack.c.bf16 %v4763_v6, %v4757_v41  ;;  %v4765_v43 = vld [vmem:[%s17518_s3 + $0x3c0] sm:$0xff] }
 0xbb9   : > { %10623 = vmatprep.subr.bf16.mxu0 %v10622_v20  ;;  %10779 = vmatprep.subr.bf16.mxu1 %v10778_v2  ;;  %v10638_v20 = vpack.c.bf16 %v4772_v55, %v4766_v21  ;;  %v10794_v2 = vpack.c.bf16 %v4776_v13, %v4770_v48  ;;  %v4801_v6 = vld [vmem:[%s17518_s3 + $0x4e0] sm:$0xff]  ;;  %v4807_v21 = vld [vmem:[%s17518_s3 + $0x510] sm:$0xff] }
 0xbba   : > { %v4805_v48 = vld [vmem:[%s17518_s3 + $0x500] sm:$0xff]  ;;  %v4811_v13 = vld [vmem:[%s17518_s3 + $0x530] sm:$0xff] }
 0xbbc   : > { %10625 = vmatpush1.bf16.msra.mxu0 %v10624_v34  ;;  %10781 = vmatpush1.bf16.msra.mxu1 %v10780_v39  ;;  %v4782_v34 = vld [vmem:[%s17518_s3 + $0x448] sm:$0xff]  ;;  %v4788_v39 = vld [vmem:[%s17518_s3 + $0x478] sm:$0xff] }
 0xbbd   : > { %10627 = vmatprep.subr.bf16.mxu0 %v10626_v7  ;;  %10783 = vmatprep.subr.bf16.mxu1 %v10782_v51  ;;  %v10640_v7 = vpack.c.bf16 %v4771_v15, %v4765_v43  ;;  %v4777_v51 = vld [vmem:[%s17518_s3 + $0x420] sm:$0xff]  ;;  %v10798_v14 = vpack.c.bf16 %v4788_v39, %v4782_v34  ;;  %v4824_v43 = vld [vmem:[%s17518_s3 + $0x598] sm:$0xff]  ;;  %v10652_v15 = vpack.c.bf16 %v4807_v21, %v4801_v6  ;;  %v4830_v34 = vld [vmem:[%s17518_s3 + $0x5c8] sm:$0xff] }
 0xbbe   : > { %v10644_v4 = vpack.c.bf16 %v4783_v36, %v4777_v51  ;;  %v4836_v39 = vld [vmem:[%s17518_s3 + $0x5f8] sm:$0xff]  ;;  %v4831_v51 = vld [vmem:[%s17518_s3 + $0x5d0] sm:$0xff]  ;;  %v4853_v21 = vld [vmem:[%s17518_s3 + $0x680] sm:$0xff] }
 0xbc0   : > { %10629 = vmatpush1.bf16.msra.mxu0 %v10628_v22  ;;  %10785 = vmatpush1.bf16.msra.mxu1 %v10784_v23  ;;  %v4790_v22 = vld [vmem:[%s17518_s3 + $0x488] sm:$0xff]  ;;  %v4464_v23 = vadd.f32 %v14941_v29, %v4157_v42  ;;  %v4789_v29 = vld [vmem:[%s17518_s3 + $0x480] sm:$0xff] }
 0xbc1   : > { %10631 = vmatprep.subr.bf16.mxu0 %v10630_v5  ;;  %10787 = vmatprep.subr.bf16.mxu1 %v10786_v47  ;;  %v4794_v5 = vld [vmem:[%s17518_s3 + $0x4a8] sm:$0xff]  ;;  %v4800_v47 = vld [vmem:[%s17518_s3 + $0x4d8] sm:$0xff]  ;;  %v10646_v46 = vpack.c.bf16 %v4796_v24, %v4790_v22 }
 0xbc2   : > { %v10802_v54 = vpack.c.bf16 %v4800_v47, %v4794_v5  ;;  %v4842_v22 = vld [vmem:[%s17518_s3 + $0x628] sm:$0xff]  ;;  %v4837_v5 = vld [vmem:[%s17518_s3 + $0x600] sm:$0xff]  ;;  %v4843_v47 = vld [vmem:[%s17518_s3 + $0x630] sm:$0xff] }
 0xbc4   : > { %v9174_v62 = vpop.f32.mrb[28].mxu0  ;;  %10633 = vmatpush1.bf16.msra.mxu0 %v10632_v26  ;;  %10789 = vmatpush1.bf16.msra.mxu1 %v10788_v58  ;;  %v4799_v26 = vld [vmem:[%s17518_s3 + $0x4d0] sm:$0xff]  ;;  %v4802_v58 = vld [vmem:[%s17518_s3 + $0x4e8] sm:$0xff] }
 0xbc5   : > { %v9175_v50 = vpop.f32.mrb[29].mxu0  ;;  %10635 = vmatprep.subr.bf16.mxu0 %v10634_v27  ;;  %10791 = vmatprep.subr.bf16.mxu1 %v10790_v44  ;;  %v4812_v27 = vld [vmem:[%s17518_s3 + $0x538] sm:$0xff]  ;;  %v10648_v44 = vpack.c.bf16 %v4795_v57, %v4789_v29  ;;  %v10804_v41 = vpack.c.bf16 %v4799_v26, %v4793_v56  ;;  %v10650_v42 = vpack.c.bf16 %v4808_v61, %v4802_v58  ;;  %v4841_v29 = vld [vmem:[%s17518_s3 + $0x620] sm:$0xff]  ;;  %v4847_v57 = vld [vmem:[%s17518_s3 + $0x650] sm:$0xff] }
 0xbc6   : > { %v9176_v45 = vadd.f32 %v9175_v50, %v9174_v62  ;;  %v10806_v55 = vpack.c.bf16 %v4812_v27, %v4806_v28  ;;  %v4814_v62 = vld [vmem:[%s17518_s3 + $0x548] sm:$0xff]  ;;  %v10808_v50 = vpack.c.bf16 %v4811_v13, %v4805_v48  ;;  %v4860_v26 = vld [vmem:[%s17518_s3 + $0x6b8] sm:$0xff]  ;;  %v15253_v58 = vld [vmem:[%s12181_s22 + $0x30] sm:$0xff]  ;;  %v10664_v61 = vpack.c.bf16 %v4843_v47, %v4837_v5 }
 0xbc7   : > { %v4854_v56 = vld [vmem:[%s17518_s3 + $0x688] sm:$0xff]  ;;  %v10820_v28 = vpack.c.bf16 %v4847_v57, %v4841_v29  ;;  %v4849_v27 = vld [vmem:[%s17518_s3 + $0x660] sm:$0xff]  ;;  %v4868_v48 = vld [vmem:[%s17518_s3 + $0x6f8] sm:$0xf] }
 0xbc8   : > { %v15103_v17 = vadd.f32 %v9176_v45, %v4459_v37  ;;  %v9177_v35 = vpop.f32.mrb[30].mxu0  ;;  %10637 = vmatpush1.bf16.msra.mxu0 %v10636_v25  ;;  %10793 = vmatpush1.bf16.msra.mxu1 %v10792_v31  ;;  %v4820_v25 = vld [vmem:[%s17518_s3 + $0x578] sm:$0xff]  ;;  %v4818_v31 = vld [vmem:[%s17518_s3 + $0x568] sm:$0xff]  ;;  %v4823_v37 = vld [vmem:[%s17518_s3 + $0x590] sm:$0xff]  ;;  %v10822_v6 = vpack.c.bf16 %v4860_v26, %v4854_v56 }
 0xbc9   : > { %v9178_v40 = vpop.f32.mrb[31].mxu0  ;;  %10639 = vmatprep.subr.bf16.mxu0 %v10638_v20  ;;  %10795 = vmatprep.subr.bf16.mxu1 %v10794_v2  ;;  %v4813_v20 = vld [vmem:[%s17518_s3 + $0x540] sm:$0xff]  ;;  %v4819_v2 = vld [vmem:[%s17518_s3 + $0x570] sm:$0xff]  ;;  %v10654_v32 = vpack.c.bf16 %v4820_v25, %v4814_v62  ;;  %v10810_v49 = vpack.c.bf16 %v4824_v43, %v4818_v31  ;;  %v4826_v45 = vld [vmem:[%s17518_s3 + $0x5a8] sm:$0xff] }
 0xbca   : > { %v9179_v63 = vadd.f32 %v9178_v40, %v9177_v35  ;;  %v10656_v35 = vpack.c.bf16 %v4819_v2, %v4813_v20  ;;  %v10658_v36 = vpack.c.bf16 %v4832_v33, %v4826_v45  ;;  %v10814_v40 = vpack.c.bf16 %v4836_v39, %v4830_v34  ;;  %v4866_v13 = vld [vmem:[%s17518_s3 + $0x6e8] sm:$0xff]  ;;  %v4872_v62 = vld [vmem:[%s17518_s3 + $0x718] sm:$0xf]  ;;  %v15282_v25 = vld [vmem:[%s12181_s22 + $0x50] sm:$0xf] }
 0xbcb   : > { %v4867_v20 = vld [vmem:[%s17518_s3 + $0x6f0] sm:$0xf]  ;;  %v4654_v45 = vld [vmem:[%s17518_s3 + $0x48] sm:$0xff]  ;;  %v5406_v33 = vld [vmem:[%s17520_s5 + $0x18] sm:$0xff] }
 0xbcc   : > { %v15130_v18 = vadd.f32 %v9179_v63, %v4464_v23  ;;  %10641 = vmatpush1.bf16.msra.mxu0 %v10640_v7  ;;  %10797 = vmatpush1.bf16.msra.mxu1 %v10796_v38  ;;  %v10812_v7 = vpack.c.bf16 %v4823_v37, %v4817_v12  ;;  %v4825_v38 = vld [vmem:[%s17518_s3 + $0x5a0] sm:$0xff]  ;;  %v4848_v23 = vld [vmem:[%s17518_s3 + $0x658] sm:$0xff]  ;;  %v4871_v12 = vld [vmem:[%s17518_s3 + $0x710] sm:$0xf] }
 0xbcd   : > { %10643 = vmatprep.subr.bf16.mxu0 %v10642_v10  ;;  %10799 = vmatprep.subr.bf16.mxu1 %v10798_v14  ;;  %v4829_v10 = vld [vmem:[%s17518_s3 + $0x5c0] sm:$0xff]  ;;  %v4835_v14 = vld [vmem:[%s17518_s3 + $0x5f0] sm:$0xff]  ;;  %v10660_v63 = vpack.c.bf16 %v4831_v51, %v4825_v38  ;;  %v4648_v37 = vld [vmem:[%s17518_s3 + $0x18] sm:$0xff] }
 0xbce   : > { %v10816_v24 = vpack.c.bf16 %v4835_v14, %v4829_v10  ;;  %v5412_v34 = vld [vmem:[%s17520_s5 + $0x48] sm:$0xff]  ;;  %v10676_v38 = vpack.c.bf16 %v4654_v45, %v4648_v37  ;;  %v5411_v10 = vld [vmem:[%s17520_s5 + $0x40] sm:$0xff]  ;;  %v4660_v14 = vld [vmem:[%s17518_s3 + $0x78] sm:$0xff] }
 0xbcf   : > { %v10910_v51 = vpack.c.bf16 %v5412_v34, %v5406_v33  ;;  %v4659_v5 = vld [vmem:[%s17518_s3 + $0x70] sm:$0xff]  ;;  %v4665_v47 = vld [vmem:[%s17518_s3 + $0xa0] sm:$0xff]  ;;  %v4672_v57 = vld [vmem:[%s17518_s3 + $0xd8] sm:$0xff] }
 0xbd0   : > { %10645 = vmatpush1.bf16.msra.mxu0 %v10644_v4  ;;  %10801 = vmatpush1.bf16.msra.mxu1 %v10800_v11  ;;  %v10662_v4 = vpack.c.bf16 %v4844_v52, %v4838_v53  ;;  %v10818_v11 = vpack.c.bf16 %v4848_v23, %v4842_v22  ;;  %v4666_v53 = vld [vmem:[%s17518_s3 + $0xa8] sm:$0xff]  ;;  %v5418_v52 = vld [vmem:[%s17520_s5 + $0x78] sm:$0xff]  ;;  %v15350_v23 = vld [vmem:[%s12181_s22 + $0x40] sm:$0xff] }
 0xbd1   : > { %10647 = vmatprep.subr.bf16.mxu0 %v10646_v46  ;;  %10803 = vmatprep.subr.bf16.mxu1 %v10802_v54  ;;  %v4850_v46 = vld [vmem:[%s17518_s3 + $0x668] sm:$0xff]  ;;  %v4856_v54 = vld [vmem:[%s17518_s3 + $0x698] sm:$0xff]  ;;  %v5423_v29 = vld [vmem:[%s17520_s5 + $0xa0] sm:$0xff] }
 0xbd2   : > { %v5424_v22 = vld [vmem:[%s17520_s5 + $0xa8] sm:$0xff]  ;;  %v5430_v56 = vld [vmem:[%s17520_s5 + $0xd8] sm:$0xff]  ;;  %v5441_v37 = vld [vmem:[%s17520_s5 + $0x130] sm:$0xff] }
 0xbd3   : > { %v5436_v26 = vld [vmem:[%s17520_s5 + $0x108] sm:$0xff]  ;;  %v5447_v45 = vld [vmem:[%s17520_s5 + $0x160] sm:$0xff]  ;;  %v4696_v33 = vld [vmem:[%s17518_s3 + $0x198] sm:$0xff] }
 0xbd4   : > { %10649 = vmatpush1.bf16.msra.mxu0 %v10648_v44  ;;  %10805 = vmatpush1.bf16.msra.mxu1 %v10804_v41  ;;  %v4855_v44 = vld [vmem:[%s17518_s3 + $0x690] sm:$0xff]  ;;  %v10666_v41 = vpack.c.bf16 %v4856_v54, %v4850_v46  ;;  %v10914_v46 = vpack.c.bf16 %v5424_v22, %v5418_v52  ;;  %v4678_v54 = vld [vmem:[%s17518_s3 + $0x108] sm:$0xff]  ;;  %v5466_v22 = vld [vmem:[%s17520_s5 + $0x1f8] sm:$0xff] }
 0xbd5   : > { %10651 = vmatprep.subr.bf16.mxu0 %v10650_v42  ;;  %10807 = vmatprep.subr.bf16.mxu1 %v10806_v55  ;;  %v4859_v42 = vld [vmem:[%s17518_s3 + $0x6b0] sm:$0xff]  ;;  %v4862_v55 = vld [vmem:[%s17518_s3 + $0x6c8] sm:$0xff]  ;;  %v10668_v31 = vpack.c.bf16 %v4855_v44, %v4849_v27 }
 0xbd6   : > { %v10824_v43 = vpack.c.bf16 %v4859_v42, %v4853_v21  ;;  %v10670_v2 = vpack.c.bf16 %v4868_v48, %v4862_v55  ;;  %v4671_v44 = vld [vmem:[%s17518_s3 + $0xd0] sm:$0xff]  ;;  %v10918_v21 = vpack.c.bf16 %v5436_v26, %v5430_v56  ;;  %v5435_v55 = vld [vmem:[%s17520_s5 + $0x100] sm:$0xff]  ;;  %v4684_v48 = vld [vmem:[%s17518_s3 + $0x138] sm:$0xff] }
 0xbd7   : > { %v5429_v42 = vld [vmem:[%s17520_s5 + $0xd0] sm:$0xff]  ;;  %v4702_v34 = vld [vmem:[%s17518_s3 + $0x1c8] sm:$0xff]  ;;  %v5478_v26 = vld [vmem:[%s17520_s5 + $0x258] sm:$0xff] }
 0xbd8   : > { %10653 = vmatpush1.bf16.msra.mxu0 %v10652_v15  ;;  %10809 = vmatpush1.bf16.msra.mxu1 %v10808_v50  ;;  %v15285_v15 = vld [vmem:[%s12181_s22 + $0x48] sm:$0xf]  ;;  %v4861_v50 = vld [vmem:[%s17518_s3 + $0x6c0] sm:$0xff] }
 0xbd9   : > { %10655 = vmatprep.subr.bf16.mxu0 %v10654_v32  ;;  %10811 = vmatprep.subr.bf16.mxu1 %v10810_v49  ;;  %v10826_v32 = vpack.c.bf16 %v4872_v62, %v4866_v13  ;;  %v4865_v49 = vld [vmem:[%s17518_s3 + $0x6e0] sm:$0xff]  ;;  %v10673_v39 = vpack.c.bf16 %v4867_v20, %v4861_v50  ;;  %v4690_v13 = vld [vmem:[%s17518_s3 + $0x168] sm:$0xff]  ;;  %v5442_v62 = vld [vmem:[%s17520_s5 + $0x138] sm:$0xff]  ;;  %v10920_v20 = vpack.c.bf16 %v5435_v55, %v5429_v42 }
 0xbda   : > { %v4714_v52 = vld [vmem:[%s17518_s3 + $0x228] sm:$0xff]  ;;  %v5477_v55 = vld [vmem:[%s17520_s5 + $0x250] sm:$0xff] }
 0xbdb   : > { %v4726_v56 = vld [vmem:[%s17518_s3 + $0x288] sm:$0xff] }
 0xbdc   : > { %10657 = vmatpush1.bf16.msra.mxu0 %v10656_v35  ;;  %10813 = vmatpush1.bf16.msra.mxu1 %v10812_v7  ;;  %v10829_v35 = vpack.c.bf16 %v4871_v12, %v4865_v49  ;;  %v4647_v7 = vld [vmem:[%s17518_s3 + $0x10] sm:$0xff]  ;;  %v10688_v49 = vpack.c.bf16 %v4690_v13, %v4684_v48  ;;  %v5483_v48 = vld [vmem:[%s17520_s5 + $0x280] sm:$0xff]  ;;  %v4732_v13 = vld [vmem:[%s17518_s3 + $0x2b8] sm:$0xff] }
 0xbdd   : > { %10659 = vmatprep.subr.bf16.mxu0 %v10658_v36  ;;  %10815 = vmatprep.subr.bf16.mxu1 %v10814_v40  ;;  %v4653_v36 = vld [vmem:[%s17518_s3 + $0x40] sm:$0xff]  ;;  %v5405_v40 = vld [vmem:[%s17520_s5 + $0x10] sm:$0xff] }
 0xbe0   : > { %10661 = vmatpush1.bf16.msra.mxu0 %v10660_v63  ;;  %10817 = vmatpush1.bf16.msra.mxu1 %v10816_v24  ;;  %v10678_v63 = vpack.c.bf16 %v4653_v36, %v4647_v7  ;;  %v10912_v24 = vpack.c.bf16 %v5411_v10, %v5405_v40  ;;  %v4701_v36 = vld [vmem:[%s17518_s3 + $0x1c0] sm:$0xff]  ;;  %v10692_v40 = vpack.c.bf16 %v4702_v34, %v4696_v33  ;;  %v4744_v34 = vld [vmem:[%s17518_s3 + $0x318] sm:$0xff] }
 0xbe1   : > { %10663 = vmatprep.subr.bf16.mxu0 %v10662_v4  ;;  %10819 = vmatprep.subr.bf16.mxu1 %v10818_v11  ;;  %v10680_v4 = vpack.c.bf16 %v4666_v53, %v4660_v14  ;;  %v5417_v11 = vld [vmem:[%s17520_s5 + $0x70] sm:$0xff]  ;;  %v5459_v14 = vld [vmem:[%s17520_s5 + $0x1c0] sm:$0xff]  ;;  %v4708_v53 = vld [vmem:[%s17518_s3 + $0x1f8] sm:$0xff] }
 0xbe2   : > { %v10916_v27 = vpack.c.bf16 %v5423_v29, %v5417_v11  ;;  %v10696_v11 = vpack.c.bf16 %v4714_v52, %v4708_v53  ;;  %v5495_v33 = vld [vmem:[%s17520_s5 + $0x2e0] sm:$0xff]  ;;  %v4756_v52 = vld [vmem:[%s17518_s3 + $0x378] sm:$0xff] }
 0xbe3   : > { %4994 = vmatmul.mubr.f32.vlgmr.msra.gmra.mrb[36].mxu0 %v15253_v58  ;;  %5302 = vmatmul.mubr.f32.vlgmr.msra.gmra.mrb[48].mxu1 %v15253_v58  ;;  %v5507_v53 = vld [vmem:[%s17520_s5 + $0x340] sm:$0xff] }
 0xbe4   : > { %10665 = vmatpush1.bf16.msra.mxu0 %v10664_v61  ;;  %10821 = vmatpush1.bf16.msra.mxu1 %v10820_v28  ;;  %v15381_v61 = vld [vmem:[%s12181_s22 + $0x58] sm:$0xf]  ;;  %v10682_v28 = vpack.c.bf16 %v4665_v47, %v4659_v5  ;;  %v4707_v47 = vld [vmem:[%s17518_s3 + $0x1f0] sm:$0xff] }
 0xbe5   : > { %10667 = vmatprep.subr.bf16.mxu0 %v10666_v41  ;;  %10823 = vmatprep.subr.bf16.mxu1 %v10822_v6  ;;  %v4677_v41 = vld [vmem:[%s17518_s3 + $0x100] sm:$0xff]  ;;  %v10684_v6 = vpack.c.bf16 %v4678_v54, %v4672_v57  ;;  %v5465_v57 = vld [vmem:[%s17520_s5 + $0x1f0] sm:$0xff]  ;;  %v4720_v54 = vld [vmem:[%s17518_s3 + $0x258] sm:$0xff] }
 0xbe6   : > { %4999 = vmatprep.mubr.f32.mxu0 %v15282_v25  ;;  %5307 = vmatprep.mubr.f32.mxu1 %v15282_v25  ;;  %v10686_v50 = vpack.c.bf16 %v4677_v41, %v4671_v44  ;;  %v4719_v41 = vld [vmem:[%s17518_s3 + $0x250] sm:$0xff] }
 0xbe7   : > { %5000 = vmatmul.mubr.f32.gmra.mrb[38].mxu0 %v15285_v15  ;;  %5308 = vmatmul.mubr.f32.gmra.mrb[50].mxu1 %v15285_v15 }
 0xbe8   : > { %10669 = vmatpush1.bf16.msra.mxu0 %v10668_v31  ;;  %10825 = vmatpush1.bf16.msra.mxu1 %v10824_v43  ;;  %v5448_v31 = vld [vmem:[%s17520_s5 + $0x168] sm:$0xff]  ;;  %v15414_v43 = vld [vmem:[%s12846_s20 + $0x38] sm:$0xff] }
 0xbe9   : > { %10672 = vmatprep.subr.msk.bf16.mxu0 %vm12081_vm2, %v10670_v2  ;;  %10828 = vmatprep.subr.msk.bf16.mxu1 %vm12081_vm2, %v10826_v32  ;;  %v4683_v2 = vld [vmem:[%s17518_s3 + $0x130] sm:$0xff]  ;;  %v4689_v32 = vld [vmem:[%s17518_s3 + $0x160] sm:$0xff]  ;;  %v10922_v12 = vpack.c.bf16 %v5448_v31, %v5442_v62  ;;  %v4738_v62 = vld [vmem:[%s17518_s3 + $0x2e8] sm:$0xff] }
 0xbea   : > { %5070 = vmatprep.mubr.f32.mxu0 %v11972_v0  ;;  %5378 = vmatprep.mubr.f32.mxu1 %v11972_v0  ;;  %v10690_v7 = vpack.c.bf16 %v4689_v32, %v4683_v2  ;;  %v5490_v31 = vld [vmem:[%s17520_s5 + $0x2b8] sm:$0xff]  ;;  %v10936_v2 = vpack.c.bf16 %v5483_v48, %v5477_v55  ;;  %v4731_v32 = vld [vmem:[%s17518_s3 + $0x2b0] sm:$0xff] }
 0xbeb   : > { %v5525_v48 = vld [vmem:[%s17520_s5 + $0x3d0] sm:$0xff] }
 0xbec   : > { %10675 = vmatpush1.bf16.msk.msra.mxu0 %vm12081_vm2, %v10673_v39  ;;  %10831 = vmatpush1.bf16.msk.msra.mxu1 %vm12081_vm2, %v10829_v35  ;;  %v5454_v39 = vld [vmem:[%s17520_s5 + $0x198] sm:$0xff]  ;;  %v5460_v35 = vld [vmem:[%s17520_s5 + $0x1c8] sm:$0xff] }
 0xbed   : > { %10677 = vmatprep.subr.bf16.mxu0 %v10676_v38  ;;  %10911 = vmatprep.subr.bf16.mxu1 %v10910_v51  ;;  %v10924_v38 = vpack.c.bf16 %v5447_v45, %v5441_v37  ;;  %v4695_v51 = vld [vmem:[%s17518_s3 + $0x190] sm:$0xff]  ;;  %v10926_v10 = vpack.c.bf16 %v5460_v35, %v5454_v39  ;;  %v4750_v39 = vld [vmem:[%s17518_s3 + $0x348] sm:$0xff]  ;;  %v5502_v35 = vld [vmem:[%s17520_s5 + $0x318] sm:$0xff] }
 0xbee   : > { %v5489_v45 = vld [vmem:[%s17520_s5 + $0x2b0] sm:$0xff] }
 0xbef   : > { %8996 = vmatmul.mubr.msk.f32.vlgmr.msra.gmra.mrb[36].mxu0 %vm711_vm3, %v15350_v23  ;;  %9004 = vmatmul.mubr.msk.f32.vlgmr.msra.gmra.mrb[48].mxu1 %vm711_vm3, %v15350_v23 }
 0xbf0   : > { %10679 = vmatpush1.bf16.msra.mxu0 %v10678_v63  ;;  %10913 = vmatpush1.bf16.msra.mxu1 %v10912_v24  ;;  %v5472_v63 = vld [vmem:[%s17520_s5 + $0x228] sm:$0xff]  ;;  %v10694_v24 = vpack.c.bf16 %v4701_v36, %v4695_v51  ;;  %v10940_v51 = vpack.c.bf16 %v5495_v33, %v5489_v45  ;;  %v4743_v36 = vld [vmem:[%s17518_s3 + $0x310] sm:$0xff] }
 0xbf1   : > { %5076 = vmatprep.mubr.f32.mxu0 %v11972_v0  ;;  %10681 = vmatprep.subr.bf16.mxu0 %v10680_v4  ;;  %v4713_v4 = vld [vmem:[%s17518_s3 + $0x220] sm:$0xff]  ;;  %v10930_v29 = vpack.c.bf16 %v5472_v63, %v5466_v22  ;;  %v4762_v22 = vld [vmem:[%s17518_s3 + $0x3a8] sm:$0xff]  ;;  %v5514_v63 = vld [vmem:[%s17520_s5 + $0x378] sm:$0xff] }
 0xbf2   : > { %10915 = vmatprep.subr.bf16.mxu1 %v10914_v46  ;;  %5384 = vmatprep.mubr.f32.mxu1 %v11972_v0  ;;  %v5471_v46 = vld [vmem:[%s17520_s5 + $0x220] sm:$0xff]  ;;  %v5537_v33 = vld [vmem:[%s17520_s5 + $0x430] sm:$0xff] }
 0xbf3   : > { %8997 = vmatmul.mubr.msk.f32.gmra.mrb[38].mxu0 %vm711_vm3, %v15381_v61  ;;  %9005 = vmatmul.mubr.msk.f32.gmra.mrb[50].mxu1 %vm711_vm3, %v15381_v61  ;;  %v10932_v44 = vpack.c.bf16 %v5471_v46, %v5465_v57  ;;  %v5513_v46 = vld [vmem:[%s17520_s5 + $0x370] sm:$0xff] }
 0xbf4   : > { %10683 = vmatpush1.bf16.msra.mxu0 %v10682_v28  ;;  %10917 = vmatpush1.bf16.msra.mxu1 %v10916_v27  ;;  %v5484_v28 = vld [vmem:[%s17520_s5 + $0x288] sm:$0xff]  ;;  %v10698_v27 = vpack.c.bf16 %v4713_v4, %v4707_v47  ;;  %v4755_v4 = vld [vmem:[%s17518_s3 + $0x370] sm:$0xff] }
 0xbf5   : > { %10685 = vmatprep.subr.bf16.mxu0 %v10684_v6  ;;  %10919 = vmatprep.subr.bf16.mxu1 %v10918_v21  ;;  %v4725_v6 = vld [vmem:[%s17518_s3 + $0x280] sm:$0xff]  ;;  %v10700_v21 = vpack.c.bf16 %v4726_v56, %v4720_v54  ;;  %v10934_v42 = vpack.c.bf16 %v5484_v28, %v5478_v26  ;;  %v4768_v56 = vld [vmem:[%s17518_s3 + $0x3d8] sm:$0xff]  ;;  %v4774_v26 = vld [vmem:[%s17518_s3 + $0x408] sm:$0xff] }
 0xbf6   : > { %5147 = vmatprep.mubr.f32.mxu0 %v14924_v9  ;;  %5873 = vmatprep.mubr.f32.mxu1 %v15414_v43  ;;  %v5453_v9 = vld [vmem:[%s17520_s5 + $0x190] sm:$0xff]  ;;  %v5519_v54 = vld [vmem:[%s17520_s5 + $0x3a0] sm:$0xff]  ;;  %v5526_v28 = vld [vmem:[%s17520_s5 + $0x3d8] sm:$0xff] }
 0xbf7   : > { %v10928_v5 = vpack.c.bf16 %v5459_v14, %v5453_v9  ;;  %v5501_v14 = vld [vmem:[%s17520_s5 + $0x310] sm:$0xff] }
 0xbf8   : > { %10687 = vmatpush1.bf16.msra.mxu0 %v10686_v50  ;;  %10921 = vmatpush1.bf16.msra.mxu1 %v10920_v20  ;;  %v5496_v50 = vld [vmem:[%s17520_s5 + $0x2e8] sm:$0xff]  ;;  %v10702_v20 = vpack.c.bf16 %v4725_v6, %v4719_v41  ;;  %v10944_v47 = vpack.c.bf16 %v5507_v53, %v5501_v14  ;;  %v10948_v41 = vpack.c.bf16 %v5519_v54, %v5513_v46  ;;  %v4767_v6 = vld [vmem:[%s17518_s3 + $0x3d0] sm:$0xff] }
 0xbf9   : > { %10689 = vmatprep.subr.bf16.mxu0 %v10688_v49  ;;  %10923 = vmatprep.subr.bf16.mxu1 %v10922_v12  ;;  %v4737_v49 = vld [vmem:[%s17518_s3 + $0x2e0] sm:$0xff]  ;;  %v10704_v12 = vpack.c.bf16 %v4738_v62, %v4732_v13  ;;  %v10938_v37 = vpack.c.bf16 %v5496_v50, %v5490_v31  ;;  %v4780_v62 = vld [vmem:[%s17518_s3 + $0x438] sm:$0xff]  ;;  %v4786_v31 = vld [vmem:[%s17518_s3 + $0x468] sm:$0xff] }
 0xbfa   : > { %v5531_v13 = vld [vmem:[%s17520_s5 + $0x400] sm:$0xff]  ;;  %v5538_v50 = vld [vmem:[%s17520_s5 + $0x438] sm:$0xff]  ;;  %v5549_v53 = vld [vmem:[%s17520_s5 + $0x490] sm:$0xff] }
 0xbfb   : > { %v5561_v54 = vld [vmem:[%s17520_s5 + $0x4f0] sm:$0xff] }
 0xbfc   : > { %10691 = vmatpush1.bf16.msra.mxu0 %v10690_v7  ;;  %10925 = vmatpush1.bf16.msra.mxu1 %v10924_v38  ;;  %v5508_v7 = vld [vmem:[%s17520_s5 + $0x348] sm:$0xff]  ;;  %v10706_v38 = vpack.c.bf16 %v4737_v49, %v4731_v32  ;;  %v10952_v32 = vpack.c.bf16 %v5531_v13, %v5525_v48  ;;  %v4779_v49 = vld [vmem:[%s17518_s3 + $0x430] sm:$0xff] }
 0xbfd   : > { %10693 = vmatprep.subr.bf16.mxu0 %v10692_v40  ;;  %10927 = vmatprep.subr.bf16.mxu1 %v10926_v10  ;;  %v4749_v40 = vld [vmem:[%s17518_s3 + $0x340] sm:$0xff]  ;;  %v10708_v10 = vpack.c.bf16 %v4750_v39, %v4744_v34  ;;  %v10942_v9 = vpack.c.bf16 %v5508_v7, %v5502_v35  ;;  %v4792_v39 = vld [vmem:[%s17518_s3 + $0x498] sm:$0xff]  ;;  %v4798_v35 = vld [vmem:[%s17518_s3 + $0x4c8] sm:$0xff] }
 0xbfe   : > { %v5543_v34 = vld [vmem:[%s17520_s5 + $0x460] sm:$0xff]  ;;  %v5550_v7 = vld [vmem:[%s17520_s5 + $0x498] sm:$0xff]  ;;  %v5573_v13 = vld [vmem:[%s17520_s5 + $0x550] sm:$0xff] }
 0xc00   : > { %10695 = vmatpush1.bf16.msra.mxu0 %v10694_v24  ;;  %10929 = vmatpush1.bf16.msra.mxu1 %v10928_v5  ;;  %v5520_v24 = vld [vmem:[%s17520_s5 + $0x3a8] sm:$0xff]  ;;  %v10710_v5 = vpack.c.bf16 %v4749_v40, %v4743_v36  ;;  %v10956_v36 = vpack.c.bf16 %v5543_v34, %v5537_v33  ;;  %v4791_v40 = vld [vmem:[%s17518_s3 + $0x490] sm:$0xff] }
 0xc01   : > { %10697 = vmatprep.subr.bf16.mxu0 %v10696_v11  ;;  %10931 = vmatprep.subr.bf16.mxu1 %v10930_v29  ;;  %v4761_v11 = vld [vmem:[%s17518_s3 + $0x3a0] sm:$0xff]  ;;  %v10712_v29 = vpack.c.bf16 %v4762_v22, %v4756_v52  ;;  %v10946_v57 = vpack.c.bf16 %v5520_v24, %v5514_v63  ;;  %v4804_v22 = vld [vmem:[%s17518_s3 + $0x4f8] sm:$0xff]  ;;  %v4810_v63 = vld [vmem:[%s17518_s3 + $0x528] sm:$0xff] }
 0xc02   : > { %v5555_v52 = vld [vmem:[%s17520_s5 + $0x4c0] sm:$0xff]  ;;  %v5562_v24 = vld [vmem:[%s17520_s5 + $0x4f8] sm:$0xff]  ;;  %v5585_v34 = vld [vmem:[%s17520_s5 + $0x5b0] sm:$0xff] }
 0xc04   : > { %10699 = vmatpush1.bf16.msra.mxu0 %v10698_v27  ;;  %10933 = vmatpush1.bf16.msra.mxu1 %v10932_v44  ;;  %v5532_v27 = vld [vmem:[%s17520_s5 + $0x408] sm:$0xff]  ;;  %v10714_v44 = vpack.c.bf16 %v4761_v11, %v4755_v4  ;;  %v10960_v4 = vpack.c.bf16 %v5555_v52, %v5549_v53  ;;  %v4803_v11 = vld [vmem:[%s17518_s3 + $0x4f0] sm:$0xff] }
 0xc05   : > { %10701 = vmatprep.subr.bf16.mxu0 %v10700_v21  ;;  %10935 = vmatprep.subr.bf16.mxu1 %v10934_v42  ;;  %v4773_v21 = vld [vmem:[%s17518_s3 + $0x400] sm:$0xff]  ;;  %v10716_v42 = vpack.c.bf16 %v4774_v26, %v4768_v56  ;;  %v10950_v55 = vpack.c.bf16 %v5532_v27, %v5526_v28  ;;  %v4816_v26 = vld [vmem:[%s17518_s3 + $0x558] sm:$0xff]  ;;  %v4822_v28 = vld [vmem:[%s17518_s3 + $0x588] sm:$0xff] }
 0xc06   : > { %v5567_v56 = vld [vmem:[%s17520_s5 + $0x520] sm:$0xff]  ;;  %v5574_v27 = vld [vmem:[%s17520_s5 + $0x558] sm:$0xff]  ;;  %v5597_v52 = vld [vmem:[%s17520_s5 + $0x610] sm:$0xff] }
 0xc08   : > { %10703 = vmatpush1.bf16.msra.mxu0 %v10702_v20  ;;  %10937 = vmatpush1.bf16.msra.mxu1 %v10936_v2  ;;  %v5544_v20 = vld [vmem:[%s17520_s5 + $0x468] sm:$0xff]  ;;  %v10718_v2 = vpack.c.bf16 %v4773_v21, %v4767_v6  ;;  %v10964_v6 = vpack.c.bf16 %v5567_v56, %v5561_v54  ;;  %v4815_v21 = vld [vmem:[%s17518_s3 + $0x550] sm:$0xff] }
 0xc09   : > { %10705 = vmatprep.subr.bf16.mxu0 %v10704_v12  ;;  %10939 = vmatprep.subr.bf16.mxu1 %v10938_v37  ;;  %v4785_v12 = vld [vmem:[%s17518_s3 + $0x460] sm:$0xff]  ;;  %v10720_v37 = vpack.c.bf16 %v4786_v31, %v4780_v62  ;;  %v10954_v45 = vpack.c.bf16 %v5544_v20, %v5538_v50  ;;  %v4828_v31 = vld [vmem:[%s17518_s3 + $0x5b8] sm:$0xff]  ;;  %v4834_v50 = vld [vmem:[%s17518_s3 + $0x5e8] sm:$0xff] }
 0xc0a   : > { %v5579_v62 = vld [vmem:[%s17520_s5 + $0x580] sm:$0xff]  ;;  %v5586_v20 = vld [vmem:[%s17520_s5 + $0x5b8] sm:$0xff] }
 0xc0c   : > { %10707 = vmatpush1.bf16.msra.mxu0 %v10706_v38  ;;  %10941 = vmatpush1.bf16.msra.mxu1 %v10940_v51  ;;  %v5556_v38 = vld [vmem:[%s17520_s5 + $0x4c8] sm:$0xff]  ;;  %v10722_v51 = vpack.c.bf16 %v4785_v12, %v4779_v49  ;;  %v10968_v49 = vpack.c.bf16 %v5579_v62, %v5573_v13  ;;  %v4827_v12 = vld [vmem:[%s17518_s3 + $0x5b0] sm:$0xff]  ;;  %v4869_v62 = vld [vmem:[%s17518_s3 + $0x700] sm:$0xf] }
 0xc0d   : > { %10709 = vmatprep.subr.bf16.mxu0 %v10708_v10  ;;  %10943 = vmatprep.subr.bf16.mxu1 %v10942_v9  ;;  %v4797_v10 = vld [vmem:[%s17518_s3 + $0x4c0] sm:$0xff]  ;;  %v10724_v9 = vpack.c.bf16 %v4798_v35, %v4792_v39  ;;  %v10958_v14 = vpack.c.bf16 %v5556_v38, %v5550_v7  ;;  %v4840_v35 = vld [vmem:[%s17518_s3 + $0x618] sm:$0xff]  ;;  %v4846_v7 = vld [vmem:[%s17518_s3 + $0x648] sm:$0xff] }
 0xc0e   : > { %v5591_v39 = vld [vmem:[%s17520_s5 + $0x5e0] sm:$0xff]  ;;  %v5598_v38 = vld [vmem:[%s17520_s5 + $0x618] sm:$0xff]  ;;  %v4863_v13 = vld [vmem:[%s17518_s3 + $0x6d0] sm:$0xff] }
 0xc10   : > { %10711 = vmatpush1.bf16.msra.mxu0 %v10710_v5  ;;  %10945 = vmatpush1.bf16.msra.mxu1 %v10944_v47  ;;  %v5568_v5 = vld [vmem:[%s17520_s5 + $0x528] sm:$0xff]  ;;  %v10726_v47 = vpack.c.bf16 %v4797_v10, %v4791_v40  ;;  %v10972_v40 = vpack.c.bf16 %v5591_v39, %v5585_v34  ;;  %v4839_v10 = vld [vmem:[%s17518_s3 + $0x610] sm:$0xff] }
 0xc11   : > { %10713 = vmatprep.subr.bf16.mxu0 %v10712_v29  ;;  %10947 = vmatprep.subr.bf16.mxu1 %v10946_v57  ;;  %v4809_v29 = vld [vmem:[%s17518_s3 + $0x520] sm:$0xff]  ;;  %v10728_v57 = vpack.c.bf16 %v4810_v63, %v4804_v22  ;;  %v10962_v46 = vpack.c.bf16 %v5568_v5, %v5562_v24  ;;  %v4852_v63 = vld [vmem:[%s17518_s3 + $0x678] sm:$0xff]  ;;  %v4858_v24 = vld [vmem:[%s17518_s3 + $0x6a8] sm:$0xff] }
 0xc12   : > { %v5603_v22 = vld [vmem:[%s17520_s5 + $0x640] sm:$0xff]  ;;  %v5610_v5 = vld [vmem:[%s17520_s5 + $0x678] sm:$0xff]  ;;  %v10744_v54 = vpack.c.bf16 %v4858_v24, %v4852_v63  ;;  %v5416_v39 = vld [vmem:[%s17520_s5 + $0x68] sm:$0xff] }
 0xc13   : > { %v5434_v63 = vld [vmem:[%s17520_s5 + $0xf8] sm:$0xff]  ;;  %v6141_v24 = vld [vmem:[#allocation6 + $0x60] sm:$0xff] }
 0xc14   : > { %10715 = vmatpush1.bf16.msra.mxu0 %v10714_v44  ;;  %10949 = vmatpush1.bf16.msra.mxu1 %v10948_v41  ;;  %v5580_v44 = vld [vmem:[%s17520_s5 + $0x588] sm:$0xff]  ;;  %v10730_v41 = vpack.c.bf16 %v4809_v29, %v4803_v11  ;;  %v15755_v11 = vld [vmem:[%s12846_s20 + $0x30] sm:$0xff]  ;;  %v10976_v29 = vpack.c.bf16 %v5603_v22, %v5597_v52 }
 0xc15   : > { %10717 = vmatprep.subr.bf16.mxu0 %v10716_v42  ;;  %10951 = vmatprep.subr.bf16.mxu1 %v10950_v55  ;;  %v4821_v42 = vld [vmem:[%s17518_s3 + $0x580] sm:$0xff]  ;;  %v10732_v55 = vpack.c.bf16 %v4822_v28, %v4816_v26  ;;  %v10966_v48 = vpack.c.bf16 %v5580_v44, %v5574_v27  ;;  %v5609_v26 = vld [vmem:[%s17520_s5 + $0x670] sm:$0xff]  ;;  %v4864_v27 = vld [vmem:[%s17518_s3 + $0x6d8] sm:$0xff] }
 0xc16   : > { %v5615_v28 = vld [vmem:[%s17520_s5 + $0x6a0] sm:$0xff]  ;;  %v4870_v44 = vld [vmem:[%s17518_s3 + $0x708] sm:$0xf] }
 0xc17   : > { %v5428_v22 = vld [vmem:[%s17520_s5 + $0xc8] sm:$0xff] }
 0xc18   : > { %10719 = vmatpush1.bf16.msra.mxu0 %v10718_v2  ;;  %10953 = vmatpush1.bf16.msra.mxu1 %v10952_v32  ;;  %v5592_v2 = vld [vmem:[%s17520_s5 + $0x5e8] sm:$0xff]  ;;  %v10734_v32 = vpack.c.bf16 %v4821_v42, %v4815_v21  ;;  %v15784_v21 = vld [vmem:[%s12846_s20 + $0x50] sm:$0x3] }
 0xc19   : > { %10721 = vmatprep.subr.bf16.mxu0 %v10720_v37  ;;  %10955 = vmatprep.subr.bf16.mxu1 %v10954_v45  ;;  %v4833_v37 = vld [vmem:[%s17518_s3 + $0x5e0] sm:$0xff]  ;;  %v10736_v45 = vpack.c.bf16 %v4834_v50, %v4828_v31  ;;  %v10970_v33 = vpack.c.bf16 %v5592_v2, %v5586_v20  ;;  %v5621_v50 = vld [vmem:[%s17520_s5 + $0x6d0] sm:$0xff]  ;;  %v5404_v2 = vld [vmem:[%s17520_s5 + $0x8] sm:$0xff] }
 0xc1a   : > { %v5627_v20 = vld [vmem:[%s17520_s5 + $0x700] sm:$0xf] }
 0xc1c   : > { %10723 = vmatpush1.bf16.msra.mxu0 %v10722_v51  ;;  %10957 = vmatpush1.bf16.msra.mxu1 %v10956_v36  ;;  %v5604_v51 = vld [vmem:[%s17520_s5 + $0x648] sm:$0xff]  ;;  %v10738_v36 = vpack.c.bf16 %v4833_v37, %v4827_v12  ;;  %v6136_v12 = vld [vmem:[#allocation6 + $0x38] sm:$0xff]  ;;  %v10751_v37 = vpack.c.bf16 %v4869_v62, %v4863_v13 }
 0xc1d   : > { %10725 = vmatprep.subr.bf16.mxu0 %v10724_v9  ;;  %10959 = vmatprep.subr.bf16.mxu1 %v10958_v14  ;;  %v4845_v9 = vld [vmem:[%s17518_s3 + $0x640] sm:$0xff]  ;;  %v10740_v14 = vpack.c.bf16 %v4846_v7, %v4840_v35  ;;  %v10974_v53 = vpack.c.bf16 %v5604_v51, %v5598_v38  ;;  %v5422_v35 = vld [vmem:[%s17520_s5 + $0x98] sm:$0xff]  ;;  %v6135_v38 = vld [vmem:[#allocation6 + $0x30] sm:$0xff] }
 0xc1e   : > { %v6129_v7 = vld [vmem:[#allocation6] sm:$0xff]  ;;  %v6166_v13 = vld [vmem:[#allocation6 + $0x128] sm:$0xff]  ;;  %v6172_v62 = vld [vmem:[#allocation6 + $0x158] sm:$0xff] }
 0xc1f   : > { %v15834_v51 = vld [vmem:[%s12846_s20 + $0x40] sm:$0xff]  ;;  %v11068_v52 = vpack.c.bf16 %v6135_v38, %v6129_v7 }
 0xc20   : > { %10727 = vmatpush1.bf16.msra.mxu0 %v10726_v47  ;;  %10961 = vmatpush1.bf16.msra.mxu1 %v10960_v4  ;;  %v5616_v47 = vld [vmem:[%s17520_s5 + $0x6a8] sm:$0xff]  ;;  %v10742_v4 = vpack.c.bf16 %v4845_v9, %v4839_v10  ;;  %v10836_v10 = vpack.c.bf16 %v5422_v35, %v5416_v39  ;;  %v5421_v9 = vld [vmem:[%s17520_s5 + $0x90] sm:$0xff]  ;;  %v5470_v35 = vld [vmem:[%s17520_s5 + $0x218] sm:$0xff] }
 0xc21   : > { %10729 = vmatprep.subr.bf16.mxu0 %v10728_v57  ;;  %10963 = vmatprep.subr.bf16.mxu1 %v10962_v46  ;;  %v4851_v57 = vld [vmem:[%s17518_s3 + $0x670] sm:$0xff]  ;;  %v4857_v46 = vld [vmem:[%s17518_s3 + $0x6a0] sm:$0xff]  ;;  %v10978_v56 = vpack.c.bf16 %v5616_v47, %v5610_v5  ;;  %v15854_v47 = vld [vmem:[%s12846_s20 + $0x58] sm:$0x3] }
 0xc22   : > { %v10746_v42 = vpack.c.bf16 %v4857_v46, %v4851_v57  ;;  %v6147_v5 = vld [vmem:[#allocation6 + $0x90] sm:$0xff]  ;;  %v6154_v57 = vld [vmem:[#allocation6 + $0xc8] sm:$0xff]  ;;  %v6160_v46 = vld [vmem:[#allocation6 + $0xf8] sm:$0xff] }
 0xc23   : > { %v5464_v39 = vld [vmem:[%s17520_s5 + $0x1e8] sm:$0xff]  ;;  %v6177_v38 = vld [vmem:[#allocation6 + $0x180] sm:$0xff] }
 0xc24   : > { %10731 = vmatpush1.bf16.msra.mxu0 %v10730_v41  ;;  %10965 = vmatpush1.bf16.msra.mxu1 %v10964_v6  ;;  %v5622_v41 = vld [vmem:[%s17520_s5 + $0x6d8] sm:$0xff]  ;;  %v5628_v6 = vld [vmem:[%s17520_s5 + $0x708] sm:$0xf] }
 0xc25   : > { %10733 = vmatprep.subr.bf16.mxu0 %v10732_v55  ;;  %10967 = vmatprep.subr.bf16.mxu1 %v10966_v48  ;;  %v10980_v55 = vpack.c.bf16 %v5615_v28, %v5609_v26  ;;  %v15787_v48 = vld [vmem:[%s12846_s20 + $0x48] sm:$0x3]  ;;  %v10982_v31 = vpack.c.bf16 %v5628_v6, %v5622_v41  ;;  %v11072_v26 = vpack.c.bf16 %v6147_v5, %v6141_v24  ;;  %v6153_v41 = vld [vmem:[#allocation6 + $0xc0] sm:$0xff]  ;;  %v6159_v6 = vld [vmem:[#allocation6 + $0xf0] sm:$0xff] }
 0xc26   : > { %v5440_v28 = vld [vmem:[%s17520_s5 + $0x128] sm:$0xff]  ;;  %v5482_v24 = vld [vmem:[%s17520_s5 + $0x278] sm:$0xff] }
 0xc28   : > { %10735 = vmatpush1.bf16.msra.mxu0 %v10734_v32  ;;  %10969 = vmatpush1.bf16.msra.mxu1 %v10968_v49  ;;  %v5410_v32 = vld [vmem:[%s17520_s5 + $0x38] sm:$0xff]  ;;  %v6130_v49 = vld [vmem:[#allocation6 + $0x8] sm:$0xff] }
 0xc29   : > { %10737 = vmatprep.subr.bf16.mxu0 %v10736_v45  ;;  %10971 = vmatprep.subr.bf16.mxu1 %v10970_v33  ;;  %v10985_v45 = vpack.c.bf16 %v5627_v20, %v5621_v50  ;;  %v5403_v33 = vld [vmem:[%s17520_s5] sm:$0xff]  ;;  %v11066_v34 = vpack.c.bf16 %v6136_v12, %v6130_v49  ;;  %v11076_v50 = vpack.c.bf16 %v6159_v6, %v6153_v41  ;;  %v5452_v20 = vld [vmem:[%s17520_s5 + $0x188] sm:$0xff]  ;;  %v6171_v12 = vld [vmem:[#allocation6 + $0x150] sm:$0xff] }
 0xc2a   : > { %v6165_v49 = vld [vmem:[#allocation6 + $0x120] sm:$0xff] }
 0xc2b   : > { %v6201_v6 = vld [vmem:[#allocation6 + $0x240] sm:$0xff] }
 0xc2c   : > { %10739 = vmatpush1.bf16.msra.mxu0 %v10738_v36  ;;  %10973 = vmatpush1.bf16.msra.mxu1 %v10972_v40  ;;  %v5415_v40 = vld [vmem:[%s17520_s5 + $0x60] sm:$0xff] }
 0xc2d   : > { %10741 = vmatprep.subr.bf16.mxu0 %v10740_v14  ;;  %10975 = vmatprep.subr.bf16.mxu1 %v10974_v53  ;;  %v6142_v14 = vld [vmem:[#allocation6 + $0x68] sm:$0xff]  ;;  %v6148_v53 = vld [vmem:[#allocation6 + $0x98] sm:$0xff] }
 0xc2f   : > { %5148 = vmatmul.mubr.f32.vlgmr.msra.gmra.mrb[40].mxu0 %v15253_v58  ;;  %5874 = vmatmul.mubr.f32.vlgmr.msra.gmra.mrb[52].mxu1 %v15755_v11  ;;  %v10748_v58 = vpack.c.bf16 %v4870_v44, %v4864_v27  ;;  %v5446_v27 = vld [vmem:[%s17520_s5 + $0x158] sm:$0xff]  ;;  %v11074_v44 = vpack.c.bf16 %v6160_v46, %v6154_v57  ;;  %v6202_v46 = vld [vmem:[#allocation6 + $0x248] sm:$0xff] }
 0xc30   : > { %10743 = vmatpush1.bf16.msra.mxu0 %v10742_v4  ;;  %10977 = vmatpush1.bf16.msra.mxu1 %v10976_v29  ;;  %v10838_v4 = vpack.c.bf16 %v5421_v9, %v5415_v40  ;;  %v11070_v29 = vpack.c.bf16 %v6148_v53, %v6142_v14  ;;  %v6196_v9 = vld [vmem:[#allocation6 + $0x218] sm:$0xff]  ;;  %v10852_v14 = vpack.c.bf16 %v5470_v35, %v5464_v39  ;;  %v5463_v53 = vld [vmem:[%s17520_s5 + $0x1e0] sm:$0xff]  ;;  %v5512_v35 = vld [vmem:[%s17520_s5 + $0x368] sm:$0xff] }
 0xc31   : > { %10745 = vmatprep.subr.bf16.mxu0 %v10744_v54  ;;  %10979 = vmatprep.subr.bf16.mxu1 %v10978_v56  ;;  %v10840_v54 = vpack.c.bf16 %v5434_v63, %v5428_v22  ;;  %v5433_v56 = vld [vmem:[%s17520_s5 + $0xf0] sm:$0xff]  ;;  %v5476_v63 = vld [vmem:[%s17520_s5 + $0x248] sm:$0xff] }
 0xc32   : > { %5153 = vmatprep.mubr.f32.mxu0 %v15282_v25  ;;  %5879 = vmatprep.mubr.f32.mxu1 %v15784_v21  ;;  %v10832_v25 = vpack.c.bf16 %v5410_v32, %v5404_v2  ;;  %v5458_v2 = vld [vmem:[%s17520_s5 + $0x1b8] sm:$0xff]  ;;  %v11078_v32 = vpack.c.bf16 %v6172_v62, %v6166_v13  ;;  %v6214_v62 = vld [vmem:[#allocation6 + $0x2a8] sm:$0xff] }
 0xc33   : > { %5154 = vmatmul.mubr.f32.gmra.mrb[42].mxu0 %v15285_v15  ;;  %5880 = vmatmul.mubr.f32.gmra.mrb[54].mxu1 %v15787_v48  ;;  %v5409_v15 = vld [vmem:[%s17520_s5 + $0x30] sm:$0xff] }
 0xc34   : > { %10747 = vmatpush1.bf16.msra.mxu0 %v10746_v42  ;;  %10981 = vmatpush1.bf16.msra.mxu1 %v10980_v55  ;;  %v10834_v36 = vpack.c.bf16 %v5409_v15, %v5403_v33  ;;  %v15874_v42 = vld [vmem:[%s13278_s30 + $0x38] sm:$0xff]  ;;  %v5451_v33 = vld [vmem:[%s17520_s5 + $0x180] sm:$0xff]  ;;  %v5457_v15 = vld [vmem:[%s17520_s5 + $0x1b0] sm:$0xff] }
 0xc35   : > { %10750 = vmatprep.subr.msk.bf16.mxu0 %vm12081_vm2, %v10748_v58  ;;  %10984 = vmatprep.subr.msk.bf16.mxu1 %vm12081_vm2, %v10982_v31  ;;  %v10844_v58 = vpack.c.bf16 %v5446_v27, %v5440_v28  ;;  %v5439_v31 = vld [vmem:[%s17520_s5 + $0x120] sm:$0xff]  ;;  %v10850_v40 = vpack.c.bf16 %v5457_v15, %v5451_v33  ;;  %v5488_v27 = vld [vmem:[%s17520_s5 + $0x2a8] sm:$0xff] }
 0xc36   : > { %5224 = vmatprep.mubr.f32.mxu0 %v11972_v0  ;;  %5950 = vmatprep.mubr.f32.mxu1 %v11972_v0  ;;  %v5499_v15 = vld [vmem:[%s17520_s5 + $0x300] sm:$0xff] }
 0xc38   : > { %10753 = vmatpush1.bf16.msk.msra.mxu0 %vm12081_vm2, %v10751_v37  ;;  %10987 = vmatpush1.bf16.msk.msra.mxu1 %vm12081_vm2, %v10985_v45  ;;  %v6178_v45 = vld [vmem:[#allocation6 + $0x188] sm:$0xff] }
 0xc39   : > { %10833 = vmatprep.subr.bf16.mxu0 %v10832_v25  ;;  %11067 = vmatprep.subr.bf16.mxu1 %v11066_v34  ;;  %v10848_v25 = vpack.c.bf16 %v5458_v2, %v5452_v20  ;;  %v11080_v34 = vpack.c.bf16 %v6171_v12, %v6165_v49  ;;  %v5500_v2 = vld [vmem:[%s17520_s5 + $0x308] sm:$0xff]  ;;  %v6213_v12 = vld [vmem:[#allocation6 + $0x2a0] sm:$0xff] }
 0xc3b   : > { %9000 = vmatmul.mubr.msk.f32.vlgmr.msra.gmra.mrb[40].mxu0 %vm711_vm3, %v15350_v23  ;;  %9012 = vmatmul.mubr.msk.f32.vlgmr.msra.gmra.mrb[52].mxu1 %vm711_vm3, %v15834_v51  ;;  %v5427_v23 = vld [vmem:[%s17520_s5 + $0xc0] sm:$0xff] }
 0xc3c   : > { %10835 = vmatpush1.bf16.msra.mxu0 %v10834_v36  ;;  %5230 = vmatprep.mubr.f32.mxu0 %v11972_v0  ;;  %v10842_v55 = vpack.c.bf16 %v5433_v56, %v5427_v23  ;;  %v6183_v36 = vld [vmem:[#allocation6 + $0x1b0] sm:$0xff]  ;;  %v10856_v23 = vpack.c.bf16 %v5482_v24, %v5476_v63  ;;  %v5475_v56 = vld [vmem:[%s17520_s5 + $0x240] sm:$0xff]  ;;  %v5524_v24 = vld [vmem:[%s17520_s5 + $0x3c8] sm:$0xff] }
 0xc3d   : > { %5956 = vmatprep.mubr.f32.mxu1 %v11972_v0  ;;  %10837 = vmatprep.subr.bf16.mxu0 %v10836_v10  ;;  %v6190_v10 = vld [vmem:[#allocation6 + $0x1e8] sm:$0xff]  ;;  %v11084_v22 = vpack.c.bf16 %v6183_v36, %v6177_v38  ;;  %v6225_v36 = vld [vmem:[#allocation6 + $0x300] sm:$0xff] }
 0xc3e   : > { %11069 = vmatpush1.bf16.msra.mxu1 %v11068_v52  ;;  %v5469_v52 = vld [vmem:[%s17520_s5 + $0x210] sm:$0xff]  ;;  %v11086_v5 = vpack.c.bf16 %v6196_v9, %v6190_v10  ;;  %v6238_v9 = vld [vmem:[#allocation6 + $0x368] sm:$0xff] }
 0xc3f   : > { %9001 = vmatmul.mubr.msk.f32.gmra.mrb[42].mxu0 %vm711_vm3, %v15381_v61  ;;  %9013 = vmatmul.mubr.msk.f32.gmra.mrb[54].mxu1 %vm711_vm3, %v15854_v47  ;;  %v5445_v61 = vld [vmem:[%s17520_s5 + $0x150] sm:$0xff]  ;;  %v10854_v57 = vpack.c.bf16 %v5469_v52, %v5463_v53  ;;  %v5511_v52 = vld [vmem:[%s17520_s5 + $0x360] sm:$0xff] }
 0xc40   : > { %10839 = vmatpush1.bf16.msra.mxu0 %v10838_v4  ;;  %11071 = vmatprep.subr.bf16.mxu1 %v11070_v29  ;;  %v10846_v37 = vpack.c.bf16 %v5445_v61, %v5439_v31  ;;  %v6189_v4 = vld [vmem:[#allocation6 + $0x1e0] sm:$0xff]  ;;  %v6195_v29 = vld [vmem:[#allocation6 + $0x210] sm:$0xff] }
 0xc41   : > { %10841 = vmatprep.subr.bf16.mxu0 %v10840_v54  ;;  %5719 = vmatprep.mubr.f32.mxu0 %v15414_v43  ;;  %v6184_v43 = vld [vmem:[#allocation6 + $0x1b8] sm:$0xff]  ;;  %v11088_v28 = vpack.c.bf16 %v6195_v29, %v6189_v4  ;;  %v5487_v61 = vld [vmem:[%s17520_s5 + $0x2a0] sm:$0xff] }
 0xc42   : > { %11073 = vmatpush1.bf16.msra.mxu1 %v11072_v26  ;;  %6477 = vmatprep.mubr.f32.mxu1 %v15874_v42  ;;  %v11082_v7 = vpack.c.bf16 %v6184_v43, %v6178_v45  ;;  %v6208_v54 = vld [vmem:[#allocation6 + $0x278] sm:$0xff]  ;;  %v5481_v26 = vld [vmem:[%s17520_s5 + $0x270] sm:$0xff]  ;;  %v6226_v43 = vld [vmem:[#allocation6 + $0x308] sm:$0xff] }
 0xc43   : > { %11075 = vmatprep.subr.bf16.mxu1 %v11074_v44  ;;  %v5494_v44 = vld [vmem:[%s17520_s5 + $0x2d8] sm:$0xff]  ;;  %v11090_v41 = vpack.c.bf16 %v6208_v54, %v6202_v46  ;;  %v10858_v13 = vpack.c.bf16 %v5481_v26, %v5475_v56  ;;  %v6237_v29 = vld [vmem:[#allocation6 + $0x360] sm:$0xff]  ;;  %v6250_v54 = vld [vmem:[#allocation6 + $0x3c8] sm:$0xff] }
 0xc44   : > { %10843 = vmatpush1.bf16.msra.mxu0 %v10842_v55  ;;  %v6207_v55 = vld [vmem:[#allocation6 + $0x270] sm:$0xff]  ;;  %v10860_v31 = vpack.c.bf16 %v5494_v44, %v5488_v27  ;;  %v5523_v26 = vld [vmem:[%s17520_s5 + $0x3c0] sm:$0xff]  ;;  %v5536_v44 = vld [vmem:[%s17520_s5 + $0x428] sm:$0xff] }
 0xc45   : > { %10845 = vmatprep.subr.bf16.mxu0 %v10844_v58  ;;  %v6220_v58 = vld [vmem:[#allocation6 + $0x2d8] sm:$0xff]  ;;  %v11092_v20 = vpack.c.bf16 %v6207_v55, %v6201_v6  ;;  %v6249_v55 = vld [vmem:[#allocation6 + $0x3c0] sm:$0xff] }
 0xc46   : > { %11077 = vmatpush1.bf16.msra.mxu1 %v11076_v50  ;;  %v5493_v50 = vld [vmem:[%s17520_s5 + $0x2d0] sm:$0xff]  ;;  %v11094_v49 = vpack.c.bf16 %v6220_v58, %v6214_v62  ;;  %v6262_v58 = vld [vmem:[#allocation6 + $0x428] sm:$0xff] }
 0xc47   : > { %11079 = vmatprep.subr.bf16.mxu1 %v11078_v32  ;;  %v5506_v32 = vld [vmem:[%s17520_s5 + $0x338] sm:$0xff]  ;;  %v10862_v45 = vpack.c.bf16 %v5493_v50, %v5487_v61  ;;  %v5535_v50 = vld [vmem:[%s17520_s5 + $0x420] sm:$0xff] }
 0xc48   : > { %10847 = vmatpush1.bf16.msra.mxu0 %v10846_v37  ;;  %v6219_v37 = vld [vmem:[#allocation6 + $0x2d0] sm:$0xff]  ;;  %v10864_v33 = vpack.c.bf16 %v5506_v32, %v5500_v2  ;;  %v5548_v32 = vld [vmem:[%s17520_s5 + $0x488] sm:$0xff] }
 0xc49   : > { %10849 = vmatprep.subr.bf16.mxu0 %v10848_v25  ;;  %v6232_v25 = vld [vmem:[#allocation6 + $0x338] sm:$0xff]  ;;  %v11096_v39 = vpack.c.bf16 %v6219_v37, %v6213_v12  ;;  %v6261_v37 = vld [vmem:[#allocation6 + $0x420] sm:$0xff] }
 0xc4a   : > { %11081 = vmatpush1.bf16.msra.mxu1 %v11080_v34  ;;  %v5505_v34 = vld [vmem:[%s17520_s5 + $0x330] sm:$0xff]  ;;  %v11098_v38 = vpack.c.bf16 %v6232_v25, %v6226_v43  ;;  %v6274_v25 = vld [vmem:[#allocation6 + $0x488] sm:$0xff] }
 0xc4b   : > { %11083 = vmatprep.subr.bf16.mxu1 %v11082_v7  ;;  %v5518_v7 = vld [vmem:[%s17520_s5 + $0x398] sm:$0xff]  ;;  %v10866_v10 = vpack.c.bf16 %v5505_v34, %v5499_v15  ;;  %v5547_v34 = vld [vmem:[%s17520_s5 + $0x480] sm:$0xff] }
 0xc4c   : > { %10851 = vmatpush1.bf16.msra.mxu0 %v10850_v40  ;;  %v6231_v40 = vld [vmem:[#allocation6 + $0x330] sm:$0xff]  ;;  %v10868_v53 = vpack.c.bf16 %v5518_v7, %v5512_v35  ;;  %v5560_v7 = vld [vmem:[%s17520_s5 + $0x4e8] sm:$0xff] }
 0xc4d   : > { %10853 = vmatprep.subr.bf16.mxu0 %v10852_v14  ;;  %v6244_v14 = vld [vmem:[#allocation6 + $0x398] sm:$0xff]  ;;  %v11100_v63 = vpack.c.bf16 %v6231_v40, %v6225_v36  ;;  %v6273_v40 = vld [vmem:[#allocation6 + $0x480] sm:$0xff] }
 0xc4e   : > { %11085 = vmatpush1.bf16.msra.mxu1 %v11084_v22  ;;  %v5517_v22 = vld [vmem:[%s17520_s5 + $0x390] sm:$0xff]  ;;  %v11102_v4 = vpack.c.bf16 %v6244_v14, %v6238_v9  ;;  %v6286_v14 = vld [vmem:[#allocation6 + $0x4e8] sm:$0xff] }
 0xc4f   : > { %11087 = vmatprep.subr.bf16.mxu1 %v11086_v5  ;;  %v5530_v5 = vld [vmem:[%s17520_s5 + $0x3f8] sm:$0xff]  ;;  %v10870_v46 = vpack.c.bf16 %v5517_v22, %v5511_v52  ;;  %v5559_v22 = vld [vmem:[%s17520_s5 + $0x4e0] sm:$0xff] }
 0xc50   : > { %10855 = vmatpush1.bf16.msra.mxu0 %v10854_v57  ;;  %v6243_v57 = vld [vmem:[#allocation6 + $0x390] sm:$0xff]  ;;  %v10872_v56 = vpack.c.bf16 %v5530_v5, %v5524_v24  ;;  %v5572_v5 = vld [vmem:[%s17520_s5 + $0x548] sm:$0xff] }
 0xc51   : > { %10857 = vmatprep.subr.bf16.mxu0 %v10856_v23  ;;  %v6256_v23 = vld [vmem:[#allocation6 + $0x3f8] sm:$0xff]  ;;  %v11104_v27 = vpack.c.bf16 %v6243_v57, %v6237_v29  ;;  %v6285_v57 = vld [vmem:[#allocation6 + $0x4e0] sm:$0xff] }
 0xc52   : > { %11089 = vmatpush1.bf16.msra.mxu1 %v11088_v28  ;;  %v5529_v28 = vld [vmem:[%s17520_s5 + $0x3f0] sm:$0xff]  ;;  %v11106_v6 = vpack.c.bf16 %v6256_v23, %v6250_v54  ;;  %v6298_v23 = vld [vmem:[#allocation6 + $0x548] sm:$0xff] }
 0xc53   : > { %11091 = vmatprep.subr.bf16.mxu1 %v11090_v41  ;;  %v5542_v41 = vld [vmem:[%s17520_s5 + $0x458] sm:$0xff]  ;;  %v10874_v62 = vpack.c.bf16 %v5529_v28, %v5523_v26  ;;  %v5571_v28 = vld [vmem:[%s17520_s5 + $0x540] sm:$0xff] }
 0xc54   : > { %10859 = vmatpush1.bf16.msra.mxu0 %v10858_v13  ;;  %v6255_v13 = vld [vmem:[#allocation6 + $0x3f0] sm:$0xff]  ;;  %v10876_v61 = vpack.c.bf16 %v5542_v41, %v5536_v44  ;;  %v5584_v41 = vld [vmem:[%s17520_s5 + $0x5a8] sm:$0xff] }
 0xc55   : > { %10861 = vmatprep.subr.bf16.mxu0 %v10860_v31  ;;  %v6268_v31 = vld [vmem:[#allocation6 + $0x458] sm:$0xff]  ;;  %v11108_v2 = vpack.c.bf16 %v6255_v13, %v6249_v55  ;;  %v6297_v13 = vld [vmem:[#allocation6 + $0x540] sm:$0xff] }
 0xc56   : > { %11093 = vmatpush1.bf16.msra.mxu1 %v11092_v20  ;;  %v5541_v20 = vld [vmem:[%s17520_s5 + $0x450] sm:$0xff]  ;;  %v11110_v12 = vpack.c.bf16 %v6268_v31, %v6262_v58  ;;  %v6310_v31 = vld [vmem:[#allocation6 + $0x5a8] sm:$0xff] }
 0xc57   : > { %11095 = vmatprep.subr.bf16.mxu1 %v11094_v49  ;;  %v5554_v49 = vld [vmem:[%s17520_s5 + $0x4b8] sm:$0xff]  ;;  %v10878_v43 = vpack.c.bf16 %v5541_v20, %v5535_v50  ;;  %v5583_v20 = vld [vmem:[%s17520_s5 + $0x5a0] sm:$0xff] }
 0xc58   : > { %10863 = vmatpush1.bf16.msra.mxu0 %v10862_v45  ;;  %v6267_v45 = vld [vmem:[#allocation6 + $0x450] sm:$0xff]  ;;  %v10880_v15 = vpack.c.bf16 %v5554_v49, %v5548_v32  ;;  %v5596_v49 = vld [vmem:[%s17520_s5 + $0x608] sm:$0xff] }
 0xc59   : > { %10865 = vmatprep.subr.bf16.mxu0 %v10864_v33  ;;  %v6280_v33 = vld [vmem:[#allocation6 + $0x4b8] sm:$0xff]  ;;  %v11112_v35 = vpack.c.bf16 %v6267_v45, %v6261_v37  ;;  %v11917_v37 = vld [vmem:[%s17524_s9] sm:$0x7] }
 0xc5a   : > { %11097 = vmatpush1.bf16.msra.mxu1 %v11096_v39  ;;  %v5553_v39 = vld [vmem:[%s17520_s5 + $0x4b0] sm:$0xff]  ;;  %v11114_v36 = vpack.c.bf16 %v6280_v33, %v6274_v25  ;;  %v16038_v45 = vrot.slane %v11917_v37, %v13626_v16  ;;  %v6309_v25 = vld [vmem:[#allocation6 + $0x5a0] sm:$0xff] }
 0xc5b   : > { %11099 = vmatprep.subr.bf16.mxu1 %v11098_v38  ;;  %v5566_v38 = vld [vmem:[%s17520_s5 + $0x518] sm:$0xff]  ;;  %v10882_v9 = vpack.c.bf16 %v5553_v39, %v5547_v34  ;;  %v6315_v33 = vld [vmem:[#allocation6 + $0x5d0] sm:$0xff]  ;;  %v6322_v39 = vld [vmem:[#allocation6 + $0x608] sm:$0xff] }
 0xc5c   : > { %10867 = vmatpush1.bf16.msra.mxu0 %v10866_v10  ;;  %v6279_v10 = vld [vmem:[#allocation6 + $0x4b0] sm:$0xff]  ;;  %v10884_v52 = vpack.c.bf16 %v5566_v38, %v5560_v7  ;;  %v5595_v38 = vld [vmem:[%s17520_s5 + $0x600] sm:$0xff] }
 0xc5d   : > { %10869 = vmatprep.subr.bf16.mxu0 %v10868_v53  ;;  %v6292_v53 = vld [vmem:[#allocation6 + $0x518] sm:$0xff]  ;;  %v11116_v24 = vpack.c.bf16 %v6279_v10, %v6273_v40 }
 0xc5e   : > { %11101 = vmatpush1.bf16.msra.mxu1 %v11100_v63  ;;  %v5565_v63 = vld [vmem:[%s17520_s5 + $0x510] sm:$0xff]  ;;  %v11118_v29 = vpack.c.bf16 %v6292_v53, %v6286_v14  ;;  %v5608_v14 = vld [vmem:[%s17520_s5 + $0x668] sm:$0xff]  ;;  %v5614_v53 = vld [vmem:[%s17520_s5 + $0x698] sm:$0xff] }
 0xc5f   : > { %11103 = vmatprep.subr.bf16.mxu1 %v11102_v4  ;;  %v5578_v4 = vld [vmem:[%s17520_s5 + $0x578] sm:$0xff]  ;;  %v10886_v54 = vpack.c.bf16 %v5565_v63, %v5559_v22 }
 0xc60   : > { %10871 = vmatpush1.bf16.msra.mxu0 %v10870_v46  ;;  %v6291_v46 = vld [vmem:[#allocation6 + $0x510] sm:$0xff]  ;;  %v10888_v26 = vpack.c.bf16 %v5578_v4, %v5572_v5  ;;  %v6321_v5 = vld [vmem:[#allocation6 + $0x600] sm:$0xff] }
 0xc61   : > { %10873 = vmatprep.subr.bf16.mxu0 %v10872_v56  ;;  %v6304_v56 = vld [vmem:[#allocation6 + $0x578] sm:$0xff]  ;;  %v11120_v44 = vpack.c.bf16 %v6291_v46, %v6285_v57  ;;  %v6327_v4 = vld [vmem:[#allocation6 + $0x630] sm:$0xff] }
 0xc62   : > { %11105 = vmatpush1.bf16.msra.mxu1 %v11104_v27  ;;  %v5577_v27 = vld [vmem:[%s17520_s5 + $0x570] sm:$0xff]  ;;  %v11122_v55 = vpack.c.bf16 %v6304_v56, %v6298_v23  ;;  %v6340_v23 = vld [vmem:[#allocation6 + $0x698] sm:$0xff]  ;;  %v10900_v56 = vpack.c.bf16 %v5614_v53, %v5608_v14 }
 0xc63   : > { %11107 = vmatprep.subr.bf16.mxu1 %v11106_v6  ;;  %v5590_v6 = vld [vmem:[%s17520_s5 + $0x5d8] sm:$0xff]  ;;  %v10890_v58 = vpack.c.bf16 %v5577_v27, %v5571_v28  ;;  %v5613_v28 = vld [vmem:[%s17520_s5 + $0x690] sm:$0xff] }
 0xc64   : > { %10875 = vmatpush1.bf16.msra.mxu0 %v10874_v62  ;;  %v6303_v62 = vld [vmem:[#allocation6 + $0x570] sm:$0xff]  ;;  %v10892_v50 = vpack.c.bf16 %v5590_v6, %v5584_v41  ;;  %v11132_v41 = vpack.c.bf16 %v6327_v4, %v6321_v5  ;;  %v5620_v6 = vld [vmem:[%s17520_s5 + $0x6c8] sm:$0xff] }
 0xc65   : > { %10877 = vmatprep.subr.bf16.mxu0 %v10876_v61  ;;  %v6316_v61 = vld [vmem:[#allocation6 + $0x5d8] sm:$0xff]  ;;  %v11124_v32 = vpack.c.bf16 %v6303_v62, %v6297_v13  ;;  %v6333_v62 = vld [vmem:[#allocation6 + $0x660] sm:$0xff]  ;;  %v5413_v14 = vld [vmem:[%s17520_s5 + $0x50] sm:$0xff] }
 0xc66   : > { %11109 = vmatpush1.bf16.msra.mxu1 %v11108_v2  ;;  %v5589_v2 = vld [vmem:[%s17520_s5 + $0x5d0] sm:$0xff]  ;;  %v6146_v4 = vld [vmem:[#allocation6 + $0x88] sm:$0xff] }
 0xc67   : > { %11111 = vmatprep.subr.bf16.mxu1 %v11110_v12  ;;  %v5602_v12 = vld [vmem:[%s17520_s5 + $0x638] sm:$0xff]  ;;  %v10894_v34 = vpack.c.bf16 %v5589_v2, %v5583_v20 }
 0xc68   : > { %10879 = vmatpush1.bf16.msra.mxu0 %v10878_v43  ;;  %v11126_v43 = vpack.c.bf16 %v6316_v61, %v6310_v31  ;;  %v10896_v7 = vpack.c.bf16 %v5602_v12, %v5596_v49  ;;  %v16083_v31 = vld [vmem:[%s13278_s30 + $0x50] sm:$0x3]  ;;  %v6346_v61 = vld [vmem:[#allocation6 + $0x6c8] sm:$0xff] }
 0xc69   : > { %10881 = vmatprep.subr.bf16.mxu0 %v10880_v15  ;;  %v16041_v15 = vrot.slane %v11917_v37, %v13634_v19  ;;  %v5625_v49 = vld [vmem:[%s17520_s5 + $0x6f0] sm:$0xf] }
 0xc6a   : > { %11113 = vmatpush1.bf16.msra.mxu1 %v11112_v35  ;;  %v6328_v35 = vld [vmem:[#allocation6 + $0x638] sm:$0xff] }
 0xc6b   : > { %11115 = vmatprep.subr.bf16.mxu1 %v11114_v36  ;;  %v5601_v36 = vld [vmem:[%s17520_s5 + $0x630] sm:$0xff] }
 0xc6c   : > { %10883 = vmatpush1.bf16.msra.mxu0 %v10882_v9  ;;  %v11128_v9 = vpack.c.bf16 %v6315_v33, %v6309_v25  ;;  %v10898_v46 = vpack.c.bf16 %v5601_v36, %v5595_v38  ;;  %v5408_v25 = vld [vmem:[%s17520_s5 + $0x28] sm:$0xff]  ;;  %v5414_v33 = vld [vmem:[%s17520_s5 + $0x58] sm:$0xff]  ;;  %v6351_v38 = vld [vmem:[#allocation6 + $0x6f0] sm:$0xf] }
 0xc6d   : > { %10885 = vmatprep.subr.bf16.mxu0 %v10884_v52 }
 0xc6e   : > { %11117 = vmatpush1.bf16.msra.mxu1 %v11116_v24  ;;  %v11130_v24 = vpack.c.bf16 %v6328_v35, %v6322_v39 }
 0xc6f   : > { %11119 = vmatprep.subr.bf16.mxu1 %v11118_v29 }
 0xc70   : > { %10887 = vmatpush1.bf16.msra.mxu0 %v10886_v54  ;;  %v6334_v54 = vld [vmem:[#allocation6 + $0x668] sm:$0xff] }
 0xc71   : > { %10889 = vmatprep.subr.bf16.mxu0 %v10888_v26  ;;  %v5607_v26 = vld [vmem:[%s17520_s5 + $0x660] sm:$0xff]  ;;  %v11134_v13 = vpack.c.bf16 %v6340_v23, %v6334_v54  ;;  %v5425_v54 = vld [vmem:[%s17520_s5 + $0xb0] sm:$0xff] }
 0xc72   : > { %11121 = vmatpush1.bf16.msra.mxu1 %v11120_v44  ;;  %v16073_v44 = vld [vmem:[%s13278_s30 + $0x30] sm:$0xff]  ;;  %v16143_v23 = vld [vmem:[%s13278_s30 + $0x40] sm:$0xff] }
 0xc73   : > { %11123 = vmatprep.subr.bf16.mxu1 %v11122_v55  ;;  %v5626_v55 = vld [vmem:[%s17520_s5 + $0x6f8] sm:$0xf] }
 0xc74   : > { %10891 = vmatpush1.bf16.msra.mxu0 %v10890_v58  ;;  %v6339_v58 = vld [vmem:[#allocation6 + $0x690] sm:$0xff] }
 0xc75   : > { %10893 = vmatprep.subr.bf16.mxu0 %v10892_v50  ;;  %v6352_v50 = vld [vmem:[#allocation6 + $0x6f8] sm:$0xf] }
 0xc76   : > { %v4381_v40 = vpop.f32.mrb[44].mxu1  ;;  %v9212_v10 = vpop.f32.mrb[32].mxu0  ;;  %11125 = vmatpush1.bf16.msra.mxu1 %v11124_v32  ;;  %v5619_v32 = vld [vmem:[%s17520_s5 + $0x6c0] sm:$0xff]  ;;  %v11138_v35 = vpack.c.bf16 %v6352_v50, %v6346_v61  ;;  %v16164_v61 = vld [vmem:[%s13278_s30 + $0x58] sm:$0x3]  ;;  %v5444_v50 = vld [vmem:[%s17520_s5 + $0x148] sm:$0xff] }
 0xc77   : > { %v11680_v52 = vadd.f32 %v4381_v40, %v16038_v45  ;;  %v4383_v22 = vpop.f32.mrb[45].mxu1  ;;  %v9213_v63 = vpop.f32.mrb[33].mxu0  ;;  %11127 = vmatprep.subr.bf16.mxu1 %v11126_v43  ;;  %v11136_v43 = vpack.c.bf16 %v6339_v58, %v6333_v62  ;;  %v10907_v36 = vpack.c.bf16 %v5625_v49, %v5619_v32  ;;  %v6134_v40 = vld [vmem:[#allocation6 + $0x28] sm:$0xff]  ;;  %v6164_v62 = vld [vmem:[#allocation6 + $0x118] sm:$0xff]  ;;  %v6157_v32 = vld [vmem:[#allocation6 + $0xe0] sm:$0xff] }
 0xc78   : > { %v11681_v29 = vadd.f32 %v4383_v22, %v16041_v15  ;;  %v9214_v57 = vadd.f32 %v9213_v63, %v9212_v10  ;;  %10895 = vmatpush1.bf16.msra.mxu0 %v10894_v34  ;;  %v16104_v34 = vld [vmem:[%s13278_s30 + $0x48] sm:$0x3]  ;;  %v6140_v10 = vld [vmem:[#allocation6 + $0x58] sm:$0xff]  ;;  %v6133_v63 = vld [vmem:[#allocation6 + $0x20] sm:$0xff] }
 0xc79   : > { %4617 = vst [vmem:[%s16053_s21] sm:$0xff] %v11680_v52  ;;  %10897 = vmatprep.subr.bf16.mxu0 %v10896_v7  ;;  %v6345_v7 = vld [vmem:[#allocation6 + $0x6c0] sm:$0xff]  ;;  %v5426_v52 = vld [vmem:[%s17520_s5 + $0xb8] sm:$0xff]  ;;  %v11222_v22 = vpack.c.bf16 %v6140_v10, %v6134_v40  ;;  %v6163_v49 = vld [vmem:[#allocation6 + $0x110] sm:$0xff] }
 0xc7a   : > { %4618 = vst [vmem:[%s16053_s21 + $0x8] sm:$0xff] %v11681_v29  ;;  %v4609_v27 = vadd.f32 %v9214_v57, %v15103_v17  ;;  %11129 = vmatpush1.bf16.msra.mxu1 %v11128_v9  ;;  %v10902_v17 = vpack.c.bf16 %v5613_v28, %v5607_v26  ;;  %v11141_v53 = vpack.c.bf16 %v6351_v38, %v6345_v7  ;;  %v6152_v29 = vld [vmem:[#allocation6 + $0xb8] sm:$0xff]  ;;  %v6169_v38 = vld [vmem:[#allocation6 + $0x140] sm:$0xff]  ;;  %v6182_v10 = vld [vmem:[#allocation6 + $0x1a8] sm:$0xff] }
 0xc7b   : > { %5720 = vmatmul.mubr.f32.vlgmr.msra.gmra.mrb[44].mxu0 %v15755_v11  ;;  %11131 = vmatprep.subr.bf16.mxu1 %v11130_v24  ;;  %v10904_v11 = vpack.c.bf16 %v5626_v55, %v5620_v6  ;;  %v6139_v24 = vld [vmem:[#allocation6 + $0x50] sm:$0xff]  ;;  %v5438_v26 = vld [vmem:[%s17520_s5 + $0x118] sm:$0xff] }
 0xc7c   : > { %4619 = vst.msk [vmem:[%s16053_s21 + $0x10] sm:$0xff] %vm711_vm3, %v4609_v27  ;;  %10899 = vmatpush1.bf16.msra.mxu0 %v10898_v46  ;;  %5725 = vmatprep.mubr.f32.mxu0 %v15784_v21  ;;  %v5419_v46 = vld [vmem:[%s17520_s5 + $0x80] sm:$0xff]  ;;  %v11224_v28 = vpack.c.bf16 %v6139_v24, %v6133_v63  ;;  %v11226_v27 = vpack.c.bf16 %v6152_v29, %v6146_v4  ;;  %v6151_v6 = vld [vmem:[#allocation6 + $0xb0] sm:$0xff]  ;;  %v6200_v4 = vld [vmem:[#allocation6 + $0x238] sm:$0xff] }
 0xc7d   : > { %v4387_v20 = vpop.f32.mrb[46].mxu1  ;;  %v9215_v2 = vpop.f32.mrb[34].mxu0  ;;  %10901 = vmatprep.subr.bf16.mxu0 %v10900_v56  ;;  %6478 = vmatmul.mubr.f32.vlgmr.msra.gmra.mrb[56].mxu1 %v16073_v44  ;;  %v5432_v56 = vld [vmem:[%s17520_s5 + $0xe8] sm:$0xff]  ;;  %v10994_v55 = vpack.c.bf16 %v5425_v54, %v5419_v46  ;;  %v6187_v63 = vld [vmem:[#allocation6 + $0x1d0] sm:$0xff] }
 0xc7e   : > { %v11682_v12 = vadd.f32 %v4387_v20, %v16038_v45  ;;  %v4389_v21 = vpop.f32.mrb[47].mxu1  ;;  %v9216_v37 = vpop.f32.mrb[35].mxu0  ;;  %11133 = vmatpush1.bf16.msra.mxu1 %v11132_v41  ;;  %6483 = vmatprep.mubr.f32.mxu1 %v16083_v31  ;;  %v6145_v41 = vld [vmem:[#allocation6 + $0x80] sm:$0xff]  ;;  %v10996_v58 = vpack.c.bf16 %v5438_v26, %v5432_v56  ;;  %v5450_v20 = vld [vmem:[%s17520_s5 + $0x178] sm:$0xff]  ;;  %v5473_v46 = vld [vmem:[%s17520_s5 + $0x230] sm:$0xff] }
 0xc7f   : > { %v11683_v45 = vadd.f32 %v4389_v21, %v16041_v15  ;;  %v9217_v39 = vadd.f32 %v9216_v37, %v9215_v2  ;;  %5726 = vmatmul.mubr.f32.gmra.mrb[46].mxu0 %v15787_v48  ;;  %11135 = vmatprep.subr.bf16.mxu1 %v11134_v13  ;;  %v10988_v48 = vpack.c.bf16 %v5414_v33, %v5408_v25  ;;  %v5407_v15 = vld [vmem:[%s17520_s5 + $0x20] sm:$0xff]  ;;  %v6158_v13 = vld [vmem:[#allocation6 + $0xe8] sm:$0xff]  ;;  %v11918_v21 = vld [vmem:[%s12846_s20 + $0x38] sm:$0xff] }
 0xc80   : > { %4620 = vst [vmem:[%s16053_s21 + $0x18] sm:$0xf] %v11682_v12  ;;  %10903 = vmatpush1.bf16.msra.mxu0 %v10902_v17  ;;  %5796 = vmatprep.mubr.f32.mxu0 %v11972_v0  ;;  %v10990_v5 = vpack.c.bf16 %v5413_v14, %v5407_v15  ;;  %v5437_v17 = vld [vmem:[%s17520_s5 + $0x110] sm:$0xff]  ;;  %v11228_v2 = vpack.c.bf16 %v6151_v6, %v6145_v41  ;;  %v6170_v37 = vld [vmem:[#allocation6 + $0x148] sm:$0xff]  ;;  %v5443_v33 = vld [vmem:[%s17520_s5 + $0x140] sm:$0xff] }
 0xc81   : > { %4621 = vst [vmem:[%s16053_s21 + $0x20] sm:$0xf] %v11683_v45  ;;  %v4614_v9 = vadd.f32 %v9217_v39, %v15130_v18  ;;  %10906 = vmatprep.subr.msk.bf16.mxu0 %vm12081_vm2, %v10904_v11  ;;  %6484 = vmatmul.mubr.f32.gmra.mrb[58].mxu1 %v16104_v34  ;;  %v5420_v18 = vld [vmem:[%s17520_s5 + $0x88] sm:$0xff]  ;;  %v11230_v11 = vpack.c.bf16 %v6164_v62, %v6158_v13  ;;  %v5462_v39 = vld [vmem:[%s17520_s5 + $0x1d8] sm:$0xff]  ;;  %v5455_v15 = vld [vmem:[%s17520_s5 + $0x1a0] sm:$0xff] }
 0xc82   : > { %11137 = vmatpush1.bf16.msra.mxu1 %v11136_v43  ;;  %6554 = vmatprep.mubr.f32.mxu1 %v11972_v0  ;;  %v10992_v57 = vpack.c.bf16 %v5426_v52, %v5420_v18  ;;  %v6176_v43 = vld [vmem:[#allocation6 + $0x178] sm:$0xff]  ;;  %v11000_v25 = vpack.c.bf16 %v5450_v20, %v5444_v50  ;;  %v5456_v45 = vld [vmem:[%s17520_s5 + $0x1a8] sm:$0xff]  ;;  %v5461_v14 = vld [vmem:[%s17520_s5 + $0x1d0] sm:$0xff] }
 0xc83   : > { %4623 = vst.msk [vmem:[%s16053_s21 + $0x28] sm:$0xf] %vm4622_vm8, %v4614_v9  ;;  %11140 = vmatprep.subr.msk.bf16.mxu1 %vm12081_vm2, %v11138_v35  ;;  %v11232_v35 = vpack.c.bf16 %v6163_v49, %v6157_v32  ;;  %v11234_v7 = vpack.c.bf16 %v6176_v43, %v6170_v37  ;;  %v6188_v9 = vld [vmem:[#allocation6 + $0x1d8] sm:$0xff]  ;;  %v11006_v24 = vpack.c.bf16 %v5461_v14, %v5455_v15  ;;  %v5480_v54 = vld [vmem:[%s17520_s5 + $0x268] sm:$0xff]  ;;  %v6199_v41 = vld [vmem:[#allocation6 + $0x230] sm:$0xff] }
 0xc84   : > { %10909 = vmatpush1.bf16.msk.msra.mxu0 %vm12081_vm2, %v10907_v36  ;;  %v6175_v36 = vld [vmem:[#allocation6 + $0x170] sm:$0xff]  ;;  %v11238_v52 = vpack.c.bf16 %v6188_v9, %v6182_v10  ;;  %v5486_v56 = vld [vmem:[%s17520_s5 + $0x298] sm:$0xff]  ;;  %v5491_v43 = vld [vmem:[%s17520_s5 + $0x2c0] sm:$0xff] }
 0xc85   : > { %10989 = vmatprep.subr.bf16.mxu0 %v10988_v48  ;;  %v11004_v48 = vpack.c.bf16 %v5462_v39, %v5456_v45  ;;  %v11236_v18 = vpack.c.bf16 %v6175_v36, %v6169_v38  ;;  %v6212_v13 = vld [vmem:[#allocation6 + $0x298] sm:$0xff]  ;;  %v11012_v62 = vpack.c.bf16 %v5486_v56, %v5480_v54  ;;  %v6211_v32 = vld [vmem:[#allocation6 + $0x290] sm:$0xff]  ;;  %v6230_v36 = vld [vmem:[#allocation6 + $0x328] sm:$0xff] }
 0xc86   : > { %11143 = vmatpush1.bf16.msk.msra.mxu1 %vm12081_vm2, %v11141_v53  ;;  %v5474_v53 = vld [vmem:[%s17520_s5 + $0x238] sm:$0xff]  ;;  %v5503_v9 = vld [vmem:[%s17520_s5 + $0x320] sm:$0xff]  ;;  %v5516_v15 = vld [vmem:[%s17520_s5 + $0x388] sm:$0xff] }
 0xc87   : > { %9008 = vmatmul.mubr.msk.f32.vlgmr.msra.gmra.mrb[44].mxu0 %vm711_vm3, %v15834_v51  ;;  %11223 = vmatprep.subr.bf16.mxu1 %v11222_v22  ;;  %v5431_v51 = vld [vmem:[%s17520_s5 + $0xe0] sm:$0xff]  ;;  %v5498_v50 = vld [vmem:[%s17520_s5 + $0x2f8] sm:$0xff] }
 0xc88   : > { %10991 = vmatpush1.bf16.msra.mxu0 %v10990_v5  ;;  %5802 = vmatprep.mubr.f32.mxu0 %v11972_v0  ;;  %v10998_v12 = vpack.c.bf16 %v5437_v17, %v5431_v51  ;;  %v6181_v22 = vld [vmem:[#allocation6 + $0x1a0] sm:$0xff]  ;;  %v6194_v5 = vld [vmem:[#allocation6 + $0x208] sm:$0xff]  ;;  %v5485_v51 = vld [vmem:[%s17520_s5 + $0x290] sm:$0xff] }
 0xc89   : > { %10993 = vmatprep.subr.bf16.mxu0 %v10992_v57  ;;  %9020 = vmatmul.mubr.msk.f32.vlgmr.msra.gmra.mrb[56].mxu1 %vm711_vm3, %v16143_v23  ;;  %v5467_v57 = vld [vmem:[%s17520_s5 + $0x200] sm:$0xff]  ;;  %v11240_v26 = vpack.c.bf16 %v6187_v63, %v6181_v22  ;;  %v5492_v17 = vld [vmem:[%s17520_s5 + $0x2c8] sm:$0xff]  ;;  %v5522_v14 = vld [vmem:[%s17520_s5 + $0x3b8] sm:$0xff] }
 0xc8a   : > { %6560 = vmatprep.mubr.f32.mxu1 %v11972_v0  ;;  %11225 = vmatpush1.bf16.msra.mxu1 %v11224_v28  ;;  %v11242_v28 = vpack.c.bf16 %v6200_v4, %v6194_v5  ;;  %v11010_v6 = vpack.c.bf16 %v5473_v46, %v5467_v57  ;;  %v11016_v37 = vpack.c.bf16 %v5498_v50, %v5492_v17  ;;  %v6242_v63 = vld [vmem:[#allocation6 + $0x388] sm:$0xff]  ;;  %v5515_v4 = vld [vmem:[%s17520_s5 + $0x380] sm:$0xff]  ;;  %v5534_v46 = vld [vmem:[%s17520_s5 + $0x418] sm:$0xff] }
 0xc8b   : > { %9009 = vmatmul.mubr.msk.f32.gmra.mrb[46].mxu0 %vm711_vm3, %v15854_v47  ;;  %11227 = vmatprep.subr.bf16.mxu1 %v11226_v27  ;;  %v5449_v47 = vld [vmem:[%s17520_s5 + $0x170] sm:$0xff]  ;;  %v6193_v27 = vld [vmem:[#allocation6 + $0x200] sm:$0xff]  ;;  %v11024_v5 = vpack.c.bf16 %v5522_v14, %v5516_v15  ;;  %v5528_v57 = vld [vmem:[%s17520_s5 + $0x3e8] sm:$0xff] }
 0xc8c   : > { %10995 = vmatpush1.bf16.msra.mxu0 %v10994_v55  ;;  %6027 = vmatprep.mubr.f32.mxu0 %v11918_v21  ;;  %v11002_v40 = vpack.c.bf16 %v5449_v47, %v5443_v33  ;;  %v6206_v55 = vld [vmem:[#allocation6 + $0x268] sm:$0xff]  ;;  %v11244_v20 = vpack.c.bf16 %v6199_v41, %v6193_v27  ;;  %v6224_v21 = vld [vmem:[#allocation6 + $0x2f8] sm:$0xff] }
 0xc8d   : > { %10997 = vmatprep.subr.bf16.mxu0 %v10996_v58  ;;  %9021 = vmatmul.mubr.msk.f32.gmra.mrb[58].mxu1 %vm711_vm3, %v16164_v61  ;;  %v5479_v58 = vld [vmem:[%s17520_s5 + $0x260] sm:$0xff]  ;;  %v5504_v33 = vld [vmem:[%s17520_s5 + $0x328] sm:$0xff]  ;;  %v5510_v47 = vld [vmem:[%s17520_s5 + $0x358] sm:$0xff] }
 0xc8e   : > { %11229 = vmatpush1.bf16.msra.mxu1 %v11228_v2  ;;  %6785 = vmatprep.mubr.f32.mxu1 %v15874_v42  ;;  %v5468_v42 = vld [vmem:[%s17520_s5 + $0x208] sm:$0xff]  ;;  %v11246_v2 = vpack.c.bf16 %v6212_v13, %v6206_v55  ;;  %v11014_v49 = vpack.c.bf16 %v5485_v51, %v5479_v58  ;;  %v11020_v10 = vpack.c.bf16 %v5510_v47, %v5504_v33  ;;  %v5527_v13 = vld [vmem:[%s17520_s5 + $0x3e0] sm:$0xff]  ;;  %v5546_v51 = vld [vmem:[%s17520_s5 + $0x478] sm:$0xff] }
 0xc8f   : > { %11231 = vmatprep.subr.bf16.mxu1 %v11230_v11  ;;  %v11008_v29 = vpack.c.bf16 %v5474_v53, %v5468_v42  ;;  %v6205_v11 = vld [vmem:[#allocation6 + $0x260] sm:$0xff]  ;;  %v6254_v41 = vld [vmem:[#allocation6 + $0x3e8] sm:$0xff]  ;;  %v11028_v55 = vpack.c.bf16 %v5534_v46, %v5528_v57 }
 0xc90   : > { %10999 = vmatpush1.bf16.msra.mxu0 %v10998_v12  ;;  %v6218_v12 = vld [vmem:[#allocation6 + $0x2c8] sm:$0xff]  ;;  %v11248_v45 = vpack.c.bf16 %v6211_v32, %v6205_v11 }
 0xc91   : > { %11001 = vmatprep.subr.bf16.mxu0 %v11000_v25  ;;  %v5497_v25 = vld [vmem:[%s17520_s5 + $0x2f0] sm:$0xff]  ;;  %v11250_v39 = vpack.c.bf16 %v6224_v21, %v6218_v12  ;;  %v5540_v58 = vld [vmem:[%s17520_s5 + $0x448] sm:$0xff]  ;;  %v5539_v21 = vld [vmem:[%s17520_s5 + $0x440] sm:$0xff] }
 0xc92   : > { %11233 = vmatpush1.bf16.msra.mxu1 %v11232_v35  ;;  %v6217_v35 = vld [vmem:[#allocation6 + $0x2c0] sm:$0xff]  ;;  %v11018_v38 = vpack.c.bf16 %v5497_v25, %v5491_v43  ;;  %v6266_v32 = vld [vmem:[#allocation6 + $0x448] sm:$0xff]  ;;  %v11032_v12 = vpack.c.bf16 %v5546_v51, %v5540_v58  ;;  %v5558_v25 = vld [vmem:[%s17520_s5 + $0x4d8] sm:$0xff] }
 0xc93   : > { %11235 = vmatprep.subr.bf16.mxu1 %v11234_v7  ;;  %v6223_v7 = vld [vmem:[#allocation6 + $0x2f0] sm:$0xff]  ;;  %v5552_v43 = vld [vmem:[%s17520_s5 + $0x4a8] sm:$0xff] }
 0xc94   : > { %11003 = vmatpush1.bf16.msra.mxu0 %v11002_v40  ;;  %v6236_v40 = vld [vmem:[#allocation6 + $0x358] sm:$0xff]  ;;  %v11252_v42 = vpack.c.bf16 %v6223_v7, %v6217_v35  ;;  %v6278_v7 = vld [vmem:[#allocation6 + $0x4a8] sm:$0xff] }
 0xc95   : > { %11005 = vmatprep.subr.bf16.mxu0 %v11004_v48  ;;  %v5509_v48 = vld [vmem:[%s17520_s5 + $0x350] sm:$0xff]  ;;  %v11254_v53 = vpack.c.bf16 %v6236_v40, %v6230_v36  ;;  %v11036_v36 = vpack.c.bf16 %v5558_v25, %v5552_v43  ;;  %v5551_v40 = vld [vmem:[%s17520_s5 + $0x4a0] sm:$0xff]  ;;  %v5606_v43 = vld [vmem:[%s17520_s5 + $0x658] sm:$0xff] }
 0xc96   : > { %11237 = vmatpush1.bf16.msra.mxu1 %v11236_v18  ;;  %v6229_v18 = vld [vmem:[#allocation6 + $0x320] sm:$0xff]  ;;  %v11022_v22 = vpack.c.bf16 %v5509_v48, %v5503_v9  ;;  %v5564_v9 = vld [vmem:[%s17520_s5 + $0x508] sm:$0xff]  ;;  %v5570_v48 = vld [vmem:[%s17520_s5 + $0x538] sm:$0xff] }
 0xc97   : > { %11239 = vmatprep.subr.bf16.mxu1 %v11238_v52  ;;  %v6235_v52 = vld [vmem:[#allocation6 + $0x350] sm:$0xff] }
 0xc98   : > { %11007 = vmatpush1.bf16.msra.mxu0 %v11006_v24  ;;  %v6248_v24 = vld [vmem:[#allocation6 + $0x3b8] sm:$0xff]  ;;  %v11256_v54 = vpack.c.bf16 %v6235_v52, %v6229_v18  ;;  %v6290_v52 = vld [vmem:[#allocation6 + $0x508] sm:$0xff] }
 0xc99   : > { %11009 = vmatprep.subr.bf16.mxu0 %v11008_v29  ;;  %v5521_v29 = vld [vmem:[%s17520_s5 + $0x3b0] sm:$0xff]  ;;  %v11258_v56 = vpack.c.bf16 %v6248_v24, %v6242_v63  ;;  %v11040_v63 = vpack.c.bf16 %v5570_v48, %v5564_v9  ;;  %v5563_v24 = vld [vmem:[%s17520_s5 + $0x500] sm:$0xff] }
 0xc9a   : > { %11241 = vmatpush1.bf16.msra.mxu1 %v11240_v26  ;;  %v6241_v26 = vld [vmem:[#allocation6 + $0x380] sm:$0xff]  ;;  %v11026_v27 = vpack.c.bf16 %v5521_v29, %v5515_v4  ;;  %v5576_v4 = vld [vmem:[%s17520_s5 + $0x568] sm:$0xff]  ;;  %v5582_v29 = vld [vmem:[%s17520_s5 + $0x598] sm:$0xff] }
 0xc9b   : > { %11243 = vmatprep.subr.bf16.mxu1 %v11242_v28  ;;  %v6247_v28 = vld [vmem:[#allocation6 + $0x3b0] sm:$0xff]  ;;  %v5599_v48 = vld [vmem:[%s17520_s5 + $0x620] sm:$0xff] }
 0xc9c   : > { %11011 = vmatpush1.bf16.msra.mxu0 %v11010_v6  ;;  %v6260_v6 = vld [vmem:[#allocation6 + $0x418] sm:$0xff]  ;;  %v11260_v17 = vpack.c.bf16 %v6247_v28, %v6241_v26  ;;  %v6302_v28 = vld [vmem:[#allocation6 + $0x568] sm:$0xff] }
 0xc9d   : > { %11013 = vmatprep.subr.bf16.mxu0 %v11012_v62  ;;  %v5533_v62 = vld [vmem:[%s17520_s5 + $0x410] sm:$0xff]  ;;  %v11262_v50 = vpack.c.bf16 %v6260_v6, %v6254_v41  ;;  %v11044_v41 = vpack.c.bf16 %v5582_v29, %v5576_v4  ;;  %v5575_v6 = vld [vmem:[%s17520_s5 + $0x560] sm:$0xff] }
 0xc9e   : > { %11245 = vmatpush1.bf16.msra.mxu1 %v11244_v20  ;;  %v6253_v20 = vld [vmem:[#allocation6 + $0x3e0] sm:$0xff]  ;;  %v11030_v11 = vpack.c.bf16 %v5533_v62, %v5527_v13  ;;  %v5588_v13 = vld [vmem:[%s17520_s5 + $0x5c8] sm:$0xff]  ;;  %v5594_v62 = vld [vmem:[%s17520_s5 + $0x5f8] sm:$0xff] }
 0xc9f   : > { %11247 = vmatprep.subr.bf16.mxu1 %v11246_v2  ;;  %v6259_v2 = vld [vmem:[#allocation6 + $0x410] sm:$0xff] }
 0xca0   : > { %11015 = vmatpush1.bf16.msra.mxu0 %v11014_v49  ;;  %v6272_v49 = vld [vmem:[#allocation6 + $0x478] sm:$0xff]  ;;  %v11264_v33 = vpack.c.bf16 %v6259_v2, %v6253_v20  ;;  %v16325_v2 = vld [vmem:[%s17519_s4] sm:$0x3f]  ;;  %v6331_v4 = vld [vmem:[#allocation6 + $0x650] sm:$0xff] }
 0xca1   : > { %11017 = vmatprep.subr.bf16.mxu0 %v11016_v37  ;;  %v5545_v37 = vld [vmem:[%s17520_s5 + $0x470] sm:$0xff]  ;;  %v11266_v47 = vpack.c.bf16 %v6272_v49, %v6266_v32  ;;  %v6320_v32 = vld [vmem:[#allocation6 + $0x5f8] sm:$0xff]  ;;  %v11048_v49 = vpack.c.bf16 %v5594_v62, %v5588_v13  ;;  %v5624_v13 = vld [vmem:[%s17520_s5 + $0x6e8] sm:$0xff] }
 0xca2   : > { %11249 = vmatpush1.bf16.msra.mxu1 %v11248_v45  ;;  %v6265_v45 = vld [vmem:[#allocation6 + $0x440] sm:$0xff]  ;;  %v11034_v35 = vpack.c.bf16 %v5545_v37, %v5539_v21  ;;  %v5593_v21 = vld [vmem:[%s17520_s5 + $0x5f0] sm:$0xff]  ;;  %v5600_v37 = vld [vmem:[%s17520_s5 + $0x628] sm:$0xff] }
 0xca3   : > { %11251 = vmatprep.subr.bf16.mxu1 %v11250_v39  ;;  %v6271_v39 = vld [vmem:[#allocation6 + $0x470] sm:$0xff]  ;;  %v11052_v9 = vpack.c.bf16 %v5606_v43, %v5600_v37  ;;  %v5630_v62 = vld [vmem:[%s17520_s5 + $0x718] sm:$0xf] }
 0xca4   : > { %11019 = vmatpush1.bf16.msra.mxu0 %v11018_v38  ;;  %v6284_v38 = vld [vmem:[#allocation6 + $0x4d8] sm:$0xff]  ;;  %v11268_v15 = vpack.c.bf16 %v6271_v39, %v6265_v45  ;;  %v6313_v45 = vld [vmem:[#allocation6 + $0x5c0] sm:$0xff]  ;;  %v6319_v39 = vld [vmem:[#allocation6 + $0x5f0] sm:$0xff] }
 0xca5   : > { %11021 = vmatprep.subr.bf16.mxu0 %v11020_v10  ;;  %v5557_v10 = vld [vmem:[%s17520_s5 + $0x4d0] sm:$0xff]  ;;  %v11270_v14 = vpack.c.bf16 %v6284_v38, %v6278_v7  ;;  %v4882_v7 = vrot.slane %v16325_v2, %v13634_v19 }
 0xca6   : > { %11253 = vmatpush1.bf16.msra.mxu1 %v11252_v42  ;;  %v6277_v42 = vld [vmem:[#allocation6 + $0x4a0] sm:$0xff]  ;;  %v11038_v18 = vpack.c.bf16 %v5557_v10, %v5551_v40  ;;  %v6332_v40 = vld [vmem:[#allocation6 + $0x658] sm:$0xff]  ;;  %v4898_v10 = vrot.slane %v16325_v2, %v13671_v60 }
 0xca7   : > { %11255 = vmatprep.subr.bf16.mxu1 %v11254_v53  ;;  %v6283_v53 = vld [vmem:[#allocation6 + $0x4d0] sm:$0xff] }
 0xca8   : > { %11023 = vmatpush1.bf16.msra.mxu0 %v11022_v22  ;;  %v6296_v22 = vld [vmem:[#allocation6 + $0x538] sm:$0xff]  ;;  %v11272_v57 = vpack.c.bf16 %v6283_v53, %v6277_v42  ;;  %v5612_v42 = vld [vmem:[%s17520_s5 + $0x688] sm:$0xff] }
 0xca9   : > { %11025 = vmatprep.subr.bf16.mxu0 %v11024_v5  ;;  %v5569_v5 = vld [vmem:[%s17520_s5 + $0x530] sm:$0xff]  ;;  %v11274_v46 = vpack.c.bf16 %v6296_v22, %v6290_v52  ;;  %v5618_v53 = vld [vmem:[%s17520_s5 + $0x6b8] sm:$0xff] }
 0xcaa   : > { %11257 = vmatpush1.bf16.msra.mxu1 %v11256_v54  ;;  %v6289_v54 = vld [vmem:[#allocation6 + $0x500] sm:$0xff]  ;;  %v11042_v26 = vpack.c.bf16 %v5569_v5, %v5563_v24 }
 0xcab   : > { %11259 = vmatprep.subr.bf16.mxu1 %v11258_v56  ;;  %v6295_v56 = vld [vmem:[#allocation6 + $0x530] sm:$0xff]  ;;  %v6325_v5 = vld [vmem:[#allocation6 + $0x620] sm:$0xff] }
 0xcac   : > { %11027 = vmatpush1.bf16.msra.mxu0 %v11026_v27  ;;  %v6308_v27 = vld [vmem:[#allocation6 + $0x598] sm:$0xff]  ;;  %v11276_v58 = vpack.c.bf16 %v6295_v56, %v6289_v54  ;;  %v6338_v56 = vld [vmem:[#allocation6 + $0x688] sm:$0xff] }
 0xcad   : > { %11029 = vmatprep.subr.bf16.mxu0 %v11028_v55  ;;  %v5581_v55 = vld [vmem:[%s17520_s5 + $0x590] sm:$0xff]  ;;  %v11278_v51 = vpack.c.bf16 %v6308_v27, %v6302_v28  ;;  %v11056_v27 = vpack.c.bf16 %v5618_v53, %v5612_v42  ;;  %v6137_v53 = vld [vmem:[#allocation6 + $0x40] sm:$0xff] }
 0xcae   : > { %11261 = vmatpush1.bf16.msra.mxu1 %v11260_v17  ;;  %v6301_v17 = vld [vmem:[#allocation6 + $0x560] sm:$0xff]  ;;  %v11046_v20 = vpack.c.bf16 %v5581_v55, %v5575_v6  ;;  %v5617_v6 = vld [vmem:[%s17520_s5 + $0x6b0] sm:$0xff] }
 0xcaf   : > { %11263 = vmatprep.subr.bf16.mxu1 %v11262_v50  ;;  %v6307_v50 = vld [vmem:[#allocation6 + $0x590] sm:$0xff] }
 0xcb0   : > { %11031 = vmatpush1.bf16.msra.mxu0 %v11030_v11  ;;  %v6314_v11 = vld [vmem:[#allocation6 + $0x5c8] sm:$0xff]  ;;  %v11280_v25 = vpack.c.bf16 %v6307_v50, %v6301_v17  ;;  %v6131_v42 = vld [vmem:[#allocation6 + $0x10] sm:$0xff] }
 0xcb1   : > { %11033 = vmatprep.subr.bf16.mxu0 %v11032_v12  ;;  %v5587_v12 = vld [vmem:[%s17520_s5 + $0x5c0] sm:$0xff] }
 0xcb2   : > { %11265 = vmatpush1.bf16.msra.mxu1 %v11264_v33  ;;  %v4878_v33 = vrot.slane %v16325_v2, %v13626_v16  ;;  %v11050_v38 = vpack.c.bf16 %v5593_v21, %v5587_v12 }
 0xcb3   : > { %11267 = vmatprep.subr.bf16.mxu1 %v11266_v47  ;;  %v11282_v47 = vpack.c.bf16 %v6320_v32, %v6314_v11  ;;  %v6337_v32 = vld [vmem:[#allocation6 + $0x680] sm:$0xff] }
 0xcb4   : > { %11035 = vmatpush1.bf16.msra.mxu0 %v11034_v35  ;;  %v4894_v35 = vrot.slane %v16325_v2, %v13668_v30 }
 0xcb5   : > { %11037 = vmatprep.subr.bf16.mxu0 %v11036_v36  ;;  %v6326_v36 = vld [vmem:[#allocation6 + $0x628] sm:$0xff] }
 0xcb6   : > { %11269 = vmatpush1.bf16.msra.mxu1 %v11268_v15  ;;  %v5605_v15 = vld [vmem:[%s17520_s5 + $0x650] sm:$0xff]  ;;  %v11286_v24 = vpack.c.bf16 %v6332_v40, %v6326_v36  ;;  %v6138_v36 = vld [vmem:[#allocation6 + $0x48] sm:$0xff] }
 0xcb7   : > { %11271 = vmatprep.subr.bf16.mxu1 %v11270_v14  ;;  %v11054_v54 = vpack.c.bf16 %v5605_v15, %v5599_v48  ;;  %v6349_v48 = vld [vmem:[#allocation6 + $0x6e0] sm:$0xff]  ;;  %v6355_v15 = vld [vmem:[#allocation6 + $0x710] sm:$0xf] }
 0xcb8   : > { %11039 = vmatpush1.bf16.msra.mxu0 %v11038_v18  ;;  %v11284_v18 = vpack.c.bf16 %v6319_v39, %v6313_v45  ;;  %v6350_v45 = vld [vmem:[#allocation6 + $0x6e8] sm:$0xff]  ;;  %v6356_v39 = vld [vmem:[#allocation6 + $0x718] sm:$0xf] }
 0xcb9   : > { %11041 = vmatprep.subr.bf16.mxu0 %v11040_v63 }
 0xcba   : > { %11273 = vmatpush1.bf16.msra.mxu1 %v11272_v57 }
 0xcbb   : > { %11275 = vmatprep.subr.bf16.mxu1 %v11274_v46 }
 0xcbc   : > { %11043 = vmatpush1.bf16.msra.mxu0 %v11042_v26  ;;  %v6344_v26 = vld [vmem:[#allocation6 + $0x6b8] sm:$0xff] }
 0xcbd   : > { %11045 = vmatprep.subr.bf16.mxu0 %v11044_v41  ;;  %v5611_v41 = vld [vmem:[%s17520_s5 + $0x680] sm:$0xff]  ;;  %v11290_v11 = vpack.c.bf16 %v6344_v26, %v6338_v56  ;;  %v6155_v26 = vld [vmem:[#allocation6 + $0xd0] sm:$0xff] }
 0xcbe   : > { %11277 = vmatpush1.bf16.msra.mxu1 %v11276_v58  ;;  %v11288_v58 = vpack.c.bf16 %v6331_v4, %v6325_v5  ;;  %v11058_v43 = vpack.c.bf16 %v5617_v6, %v5611_v41  ;;  %v6143_v5 = vld [vmem:[#allocation6 + $0x70] sm:$0xff]  ;;  %v6149_v4 = vld [vmem:[#allocation6 + $0xa0] sm:$0xff]  ;;  %v6168_v41 = vld [vmem:[#allocation6 + $0x138] sm:$0xff] }
 0xcbf   : > { %11279 = vmatprep.subr.bf16.mxu1 %v11278_v51  ;;  %v6174_v6 = vld [vmem:[#allocation6 + $0x168] sm:$0xff] }
 0xcc0   : > { %11047 = vmatpush1.bf16.msra.mxu0 %v11046_v20  ;;  %v11919_v20 = vld [vmem:[%s12846_s20 + $0x30] sm:$0xff] }
 0xcc1   : > { %11049 = vmatprep.subr.bf16.mxu0 %v11048_v49  ;;  %v6343_v49 = vld [vmem:[#allocation6 + $0x6b0] sm:$0xff] }
 0xcc2   : > { %v5072_v14 = vpop.f32.mrb[36].mxu0  ;;  %11281 = vmatpush1.bf16.msra.mxu1 %v11280_v25  ;;  %v5380_v52 = vpop.f32.mrb[48].mxu1  ;;  %v11920_v25 = vld [vmem:[%s12846_s20 + $0x50] sm:$0x3]  ;;  %v11292_v40 = vpack.c.bf16 %v6343_v49, %v6337_v32  ;;  %v6185_v49 = vld [vmem:[#allocation6 + $0x1c0] sm:$0xff] }
 0xcc3   : > { %v16359_v22 = vadd.f32 %v5072_v14, %v4878_v33  ;;  %v5074_v63 = vpop.f32.mrb[37].mxu0  ;;  %11283 = vmatprep.subr.bf16.mxu1 %v11282_v47  ;;  %v16361_v29 = vadd.f32 %v5380_v52, %v4894_v35  ;;  %v5382_v57 = vpop.f32.mrb[49].mxu1  ;;  %v11297_v52 = vpack.c.bf16 %v6355_v15, %v6349_v48  ;;  %v6179_v32 = vld [vmem:[#allocation6 + $0x190] sm:$0xff]  ;;  %v6221_v15 = vld [vmem:[#allocation6 + $0x2e0] sm:$0xff] }
 0xcc4   : > { %v11685_v46 = vadd.f32 %v5074_v63, %v4882_v7  ;;  %11051 = vmatpush1.bf16.msra.mxu0 %v11050_v38  ;;  %v16363_v28 = vadd.f32 %v5382_v57, %v4898_v10  ;;  %v5623_v38 = vld [vmem:[%s17520_s5 + $0x6e0] sm:$0xff]  ;;  %v11146_v63 = vpack.c.bf16 %v6137_v53, %v6131_v42  ;;  %v6156_v57 = vld [vmem:[#allocation6 + $0xd8] sm:$0xff]  ;;  %v6215_v48 = vld [vmem:[#allocation6 + $0x2b0] sm:$0xff] }
 0xcc5   : > { %11053 = vmatprep.subr.bf16.mxu0 %v11052_v9  ;;  %v11294_v9 = vpack.c.bf16 %v6356_v39, %v6350_v45  ;;  %v6204_v45 = vld [vmem:[#allocation6 + $0x258] sm:$0xff]  ;;  %v6210_v39 = vld [vmem:[#allocation6 + $0x288] sm:$0xff]  ;;  %v11174_v42 = vpack.c.bf16 %v6221_v15, %v6215_v48 }
 0xcc6   : > { %5392 = vst [vmem:[#allocation2 + $0x8] sm:$0xff] %v11685_v46  ;;  %v5078_v55 = vpop.f32.mrb[38].mxu0  ;;  %11285 = vmatpush1.bf16.msra.mxu1 %v11284_v18  ;;  %v5386_v51 = vpop.f32.mrb[50].mxu1  ;;  %v6150_v18 = vld [vmem:[#allocation6 + $0xa8] sm:$0xff]  ;;  %v11922_v46 = vld [vmem:[%s12846_s20 + $0x40] sm:$0xff]  ;;  %v6324_v48 = vld [vmem:[#allocation6 + $0x618] sm:$0xff] }
 0xcc7   : > { %v11686_v17 = vadd.f32 %v5078_v55, %v4878_v33  ;;  %v5080_v50 = vpop.f32.mrb[39].mxu0  ;;  %6028 = vmatmul.mubr.f32.vlgmr.msra.gmra.mrb[48].mxu0 %v11919_v20  ;;  %11287 = vmatprep.subr.bf16.mxu1 %v11286_v24  ;;  %v11694_v12 = vadd.f32 %v5386_v51, %v4894_v35  ;;  %v5388_v21 = vpop.f32.mrb[51].mxu1  ;;  %v11060_v33 = vpack.c.bf16 %v5630_v62, %v5624_v13  ;;  %v5629_v35 = vld [vmem:[%s17520_s5 + $0x710] sm:$0xf]  ;;  %v11923_v55 = vld [vmem:[%s12846_s20 + $0x58] sm:$0x3] }
 0xcc8   : > { %v11687_v37 = vadd.f32 %v5080_v50, %v4882_v7  ;;  %11055 = vmatpush1.bf16.msra.mxu0 %v11054_v54  ;;  %6033 = vmatprep.mubr.f32.mxu0 %v11920_v25  ;;  %v11695_v47 = vadd.f32 %v5388_v21, %v4898_v10  ;;  %v6132_v7 = vld [vmem:[#allocation6 + $0x18] sm:$0xff]  ;;  %v11921_v10 = vld [vmem:[%s12846_s20 + $0x48] sm:$0x3]  ;;  %v11063_v14 = vpack.c.bf16 %v5629_v35, %v5623_v38  ;;  %v6167_v51 = vld [vmem:[#allocation6 + $0x130] sm:$0xff] }
 0xcc9   : > { %5397 = vst [vmem:[#allocation2 + $0x30] sm:$0xf] %v11686_v17  ;;  %11057 = vmatprep.subr.bf16.mxu0 %v11056_v27  ;;  %6786 = vmatmul.mubr.f32.vlgmr.msra.gmra.mrb[60].mxu1 %v16073_v44  ;;  %5401 = vst [vmem:[#allocation2 + $0x50] sm:$0xf] %v11694_v12  ;;  %v11144_v44 = vpack.c.bf16 %v6138_v36, %v6132_v7  ;;  %v11150_v54 = vpack.c.bf16 %v6149_v4, %v6143_v5  ;;  %v6161_v27 = vld [vmem:[#allocation6 + $0x100] sm:$0xff]  ;;  %v11924_v62 = vld [vmem:[%s13278_s30 + $0x38] sm:$0xff] }
 0xcca   : > { %5398 = vst [vmem:[#allocation2 + $0x38] sm:$0xf] %v11687_v37  ;;  %11289 = vmatpush1.bf16.msra.mxu1 %v11288_v58  ;;  %5402 = vst [vmem:[#allocation2 + $0x58] sm:$0xf] %v11695_v47  ;;  %6791 = vmatprep.mubr.f32.mxu1 %v16083_v31  ;;  %v6144_v31 = vld [vmem:[#allocation6 + $0x78] sm:$0xff]  ;;  %v11154_v13 = vpack.c.bf16 %v6161_v27, %v6155_v26  ;;  %v11156_v58 = vpack.c.bf16 %v6174_v6, %v6168_v41  ;;  %v6173_v17 = vld [vmem:[#allocation6 + $0x160] sm:$0xff] }
 0xccb   : > { %6034 = vmatmul.mubr.f32.gmra.mrb[50].mxu0 %v11921_v10  ;;  %11291 = vmatprep.subr.bf16.mxu1 %v11290_v11  ;;  %v11148_v24 = vpack.c.bf16 %v6150_v18, %v6144_v31  ;;  %v6180_v50 = vld [vmem:[#allocation6 + $0x198] sm:$0xff]  ;;  %v11158_v20 = vpack.c.bf16 %v6173_v17, %v6167_v51  ;;  %v6198_v21 = vld [vmem:[#allocation6 + $0x228] sm:$0xff]  ;;  %v11162_v37 = vpack.c.bf16 %v6185_v49, %v6179_v32  ;;  %v6191_v25 = vld [vmem:[#allocation6 + $0x1f0] sm:$0xff] }
 0xccc   : > { %11059 = vmatpush1.bf16.msra.mxu0 %v11058_v43  ;;  %6104 = vmatprep.mubr.f32.mxu0 %v11972_v0  ;;  %v6192_v12 = vld [vmem:[#allocation6 + $0x1f8] sm:$0xff]  ;;  %v6197_v47 = vld [vmem:[#allocation6 + $0x220] sm:$0xff]  ;;  %v11168_v38 = vpack.c.bf16 %v6210_v39, %v6204_v45  ;;  %v6203_v35 = vld [vmem:[#allocation6 + $0x250] sm:$0xff] }
 0xccd   : > { %11062 = vmatprep.subr.msk.bf16.mxu0 %vm12081_vm2, %v11060_v33  ;;  %6792 = vmatmul.mubr.f32.gmra.mrb[62].mxu1 %v16104_v34  ;;  %v6162_v34 = vld [vmem:[#allocation6 + $0x108] sm:$0xff]  ;;  %v11164_v43 = vpack.c.bf16 %v6198_v21, %v6192_v12  ;;  %v11166_v33 = vpack.c.bf16 %v6197_v47, %v6191_v25  ;;  %v6209_v7 = vld [vmem:[#allocation6 + $0x280] sm:$0xff]  ;;  %v6216_v36 = vld [vmem:[#allocation6 + $0x2b8] sm:$0xff] }
 0xcce   : > { %11293 = vmatpush1.bf16.msra.mxu1 %v11292_v40  ;;  %6862 = vmatprep.mubr.f32.mxu1 %v11972_v0  ;;  %v11152_v56 = vpack.c.bf16 %v6162_v34, %v6156_v57  ;;  %v6222_v40 = vld [vmem:[#allocation6 + $0x2e8] sm:$0xff]  ;;  %v11170_v10 = vpack.c.bf16 %v6209_v7, %v6203_v35  ;;  %v6227_v31 = vld [vmem:[#allocation6 + $0x310] sm:$0xff]  ;;  %v6233_v18 = vld [vmem:[#allocation6 + $0x340] sm:$0xff] }
 0xccf   : > { %11296 = vmatprep.subr.msk.bf16.mxu1 %vm12081_vm2, %v11294_v9  ;;  %v11172_v9 = vpack.c.bf16 %v6222_v40, %v6216_v36  ;;  %v6239_v4 = vld [vmem:[#allocation6 + $0x370] sm:$0xff]  ;;  %v6245_v57 = vld [vmem:[#allocation6 + $0x3a0] sm:$0xff]  ;;  %v6252_v34 = vld [vmem:[#allocation6 + $0x3d8] sm:$0xff] }
 0xcd0   : > { %11065 = vmatpush1.bf16.msk.msra.mxu0 %vm12081_vm2, %v11063_v14  ;;  %v6228_v14 = vld [vmem:[#allocation6 + $0x318] sm:$0xff]  ;;  %v6251_v26 = vld [vmem:[#allocation6 + $0x3d0] sm:$0xff]  ;;  %v6257_v27 = vld [vmem:[#allocation6 + $0x400] sm:$0xff] }
 0xcd1   : > { %11145 = vmatprep.subr.bf16.mxu0 %v11144_v44  ;;  %v6234_v44 = vld [vmem:[#allocation6 + $0x348] sm:$0xff]  ;;  %v6264_v41 = vld [vmem:[#allocation6 + $0x438] sm:$0xff] }
 0xcd2   : > { %11299 = vmatpush1.bf16.msk.msra.mxu1 %vm12081_vm2, %v11297_v52  ;;  %v11176_v53 = vpack.c.bf16 %v6234_v44, %v6228_v14  ;;  %v6240_v52 = vld [vmem:[#allocation6 + $0x378] sm:$0xff]  ;;  %v6270_v6 = vld [vmem:[#allocation6 + $0x468] sm:$0xff]  ;;  %v4886_v14 = vrot.slane %v16325_v2, %v13682_v8  ;;  %v4890_v44 = vrot.slane %v16325_v2, %v13685_v59  ;;  %v6341_v2 = vld [vmem:[#allocation6 + $0x6a0] sm:$0xff] }
 0xcd3   : > { %9016 = vmatmul.mubr.msk.f32.vlgmr.msra.gmra.mrb[48].mxu0 %vm711_vm3, %v11922_v46  ;;  %v6258_v46 = vld [vmem:[#allocation6 + $0x408] sm:$0xff]  ;;  %v6276_v51 = vld [vmem:[#allocation6 + $0x498] sm:$0xff] }
 0xcd4   : > { %11147 = vmatpush1.bf16.msra.mxu0 %v11146_v63  ;;  %6110 = vmatprep.mubr.f32.mxu0 %v11972_v0  ;;  %v6246_v63 = vld [vmem:[#allocation6 + $0x3a8] sm:$0xff]  ;;  %v6288_v32 = vld [vmem:[#allocation6 + $0x4f8] sm:$0xff] }
 0xcd5   : > { %11149 = vmatprep.subr.bf16.mxu0 %v11148_v24  ;;  %9028 = vmatmul.mubr.msk.f32.vlgmr.msra.gmra.mrb[60].mxu1 %vm711_vm3, %v16143_v23  ;;  %v6186_v23 = vld [vmem:[#allocation6 + $0x1c8] sm:$0xff]  ;;  %v11178_v24 = vpack.c.bf16 %v6233_v18, %v6227_v31  ;;  %v11180_v5 = vpack.c.bf16 %v6246_v63, %v6240_v52  ;;  %v6300_v25 = vld [vmem:[#allocation6 + $0x558] sm:$0xff]  ;;  %v6323_v31 = vld [vmem:[#allocation6 + $0x610] sm:$0xff] }
 0xcd6   : > { %6868 = vmatprep.mubr.f32.mxu1 %v11972_v0  ;;  %v11160_v11 = vpack.c.bf16 %v6186_v23, %v6180_v50  ;;  %v6282_v17 = vld [vmem:[#allocation6 + $0x4c8] sm:$0xff]  ;;  %v6312_v35 = vld [vmem:[#allocation6 + $0x5b8] sm:$0xff]  ;;  %v6329_v18 = vld [vmem:[#allocation6 + $0x640] sm:$0xff] }
 0xcd7   : > { %9017 = vmatmul.mubr.msk.f32.gmra.mrb[50].mxu0 %vm711_vm3, %v11923_v55  ;;  %v11186_v55 = vpack.c.bf16 %v6257_v27, %v6251_v26  ;;  %v11192_v23 = vpack.c.bf16 %v6282_v17, %v6276_v51  ;;  %v6294_v49 = vld [vmem:[#allocation6 + $0x528] sm:$0xff]  ;;  %v6335_v26 = vld [vmem:[#allocation6 + $0x670] sm:$0xff] }
 0xcd8   : > { %11151 = vmatpush1.bf16.msra.mxu0 %v11150_v54  ;;  %6631 = vmatprep.mubr.f32.mxu0 %v11924_v62  ;;  %v11182_v54 = vpack.c.bf16 %v6245_v57, %v6239_v4  ;;  %v6263_v62 = vld [vmem:[#allocation6 + $0x430] sm:$0xff]  ;;  %v11196_v21 = vpack.c.bf16 %v6294_v49, %v6288_v32  ;;  %v6306_v47 = vld [vmem:[#allocation6 + $0x588] sm:$0xff]  ;;  %v6353_v32 = vld [vmem:[#allocation6 + $0x700] sm:$0xf] }
 0xcd9   : > { %11153 = vmatprep.subr.bf16.mxu0 %v11152_v56  ;;  %9029 = vmatmul.mubr.msk.f32.gmra.mrb[62].mxu1 %vm711_vm3, %v16164_v61  ;;  %v11184_v56 = vpack.c.bf16 %v6258_v46, %v6252_v34  ;;  %v11200_v39 = vpack.c.bf16 %v6306_v47, %v6300_v25  ;;  %v6318_v7 = vld [vmem:[#allocation6 + $0x5e8] sm:$0xff]  ;;  %v11928_v47 = vld [vmem:[%s13278_s30 + $0x40] sm:$0xff] }
 0xcda   : > { %v11204_v40 = vpack.c.bf16 %v6318_v7, %v6312_v35  ;;  %v6330_v15 = vld [vmem:[#allocation6 + $0x648] sm:$0xff] }
 0xcdb   : > { %v11927_v49 = vld [vmem:[%s13278_s30 + $0x48] sm:$0x3] }
 0xcdc   : > { %11155 = vmatpush1.bf16.msra.mxu0 %v11154_v13  ;;  %v11188_v13 = vpack.c.bf16 %v6270_v6, %v6264_v41  ;;  %v6348_v6 = vld [vmem:[#allocation6 + $0x6d8] sm:$0xff] }
 0xcdd   : > { %11157 = vmatprep.subr.bf16.mxu0 %v11156_v58  ;;  %v6269_v58 = vld [vmem:[#allocation6 + $0x460] sm:$0xff] }
 0xcde   : > { %v11190_v50 = vpack.c.bf16 %v6269_v58, %v6263_v62  ;;  %v11925_v58 = vld [vmem:[%s13278_s30 + $0x30] sm:$0xff] }
 0xce0   : > { %11159 = vmatpush1.bf16.msra.mxu0 %v11158_v20  ;;  %v6275_v20 = vld [vmem:[#allocation6 + $0x490] sm:$0xff] }
 0xce1   : > { %11161 = vmatprep.subr.bf16.mxu0 %v11160_v11  ;;  %v6281_v11 = vld [vmem:[#allocation6 + $0x4c0] sm:$0xff] }
 0xce2   : > { %v11194_v12 = vpack.c.bf16 %v6281_v11, %v6275_v20  ;;  %v6347_v11 = vld [vmem:[#allocation6 + $0x6d0] sm:$0xff] }
 0xce4   : > { %11163 = vmatpush1.bf16.msra.mxu0 %v11162_v37  ;;  %v6287_v37 = vld [vmem:[#allocation6 + $0x4f0] sm:$0xff] }
 0xce5   : > { %11165 = vmatprep.subr.bf16.mxu0 %v11164_v43  ;;  %v6293_v43 = vld [vmem:[#allocation6 + $0x520] sm:$0xff] }
 0xce6   : > { %v11198_v45 = vpack.c.bf16 %v6293_v43, %v6287_v37 }
 0xce8   : > { %11167 = vmatpush1.bf16.msra.mxu0 %v11166_v33  ;;  %v6299_v33 = vld [vmem:[#allocation6 + $0x550] sm:$0xff] }
 0xce9   : > { %11169 = vmatprep.subr.bf16.mxu0 %v11168_v38  ;;  %v6305_v38 = vld [vmem:[#allocation6 + $0x580] sm:$0xff] }
 0xcea   : > { %v11202_v36 = vpack.c.bf16 %v6305_v38, %v6299_v33 }
 0xcec   : > { %11171 = vmatpush1.bf16.msra.mxu0 %v11170_v10  ;;  %v6311_v10 = vld [vmem:[#allocation6 + $0x5b0] sm:$0xff] }
 0xced   : > { %11173 = vmatprep.subr.bf16.mxu0 %v11172_v9  ;;  %v6317_v9 = vld [vmem:[#allocation6 + $0x5e0] sm:$0xff] }
 0xcf0   : > { %11175 = vmatpush1.bf16.msra.mxu0 %v11174_v42  ;;  %v11206_v42 = vpack.c.bf16 %v6317_v9, %v6311_v10 }
 0xcf1   : > { %11177 = vmatprep.subr.bf16.mxu0 %v11176_v53  ;;  %v11208_v53 = vpack.c.bf16 %v6330_v15, %v6324_v48 }
 0xcf4   : > { %11179 = vmatpush1.bf16.msra.mxu0 %v11178_v24  ;;  %v6336_v24 = vld [vmem:[#allocation6 + $0x678] sm:$0xff] }
 0xcf5   : > { %11181 = vmatprep.subr.bf16.mxu0 %v11180_v5  ;;  %v6342_v5 = vld [vmem:[#allocation6 + $0x6a8] sm:$0xff] }
 0xcf8   : > { %11183 = vmatpush1.bf16.msra.mxu0 %v11182_v54  ;;  %v11210_v54 = vpack.c.bf16 %v6329_v18, %v6323_v31  ;;  %v6888_v18 = vld [vmem:[#allocation2 + $0x30] sm:$0xf] }
 0xcf9   : > { %11185 = vmatprep.subr.bf16.mxu0 %v11184_v56  ;;  %v11212_v56 = vpack.c.bf16 %v6342_v5, %v6336_v24 }
 0xcfc   : > { %11187 = vmatpush1.bf16.msra.mxu0 %v11186_v55  ;;  %v6354_v55 = vld [vmem:[#allocation6 + $0x708] sm:$0xf] }
 0xcfd   : > { %11189 = vmatprep.subr.bf16.mxu0 %v11188_v13  ;;  %v11216_v20 = vpack.c.bf16 %v6354_v55, %v6348_v6 }
 0xd00   : > { %11191 = vmatpush1.bf16.msra.mxu0 %v11190_v50  ;;  %v11214_v50 = vpack.c.bf16 %v6341_v2, %v6335_v26 }
 0xd01   : > { %11193 = vmatprep.subr.bf16.mxu0 %v11192_v23  ;;  %v11926_v23 = vld [vmem:[%s13278_s30 + $0x50] sm:$0x3] }
 0xd04   : > { %11195 = vmatpush1.bf16.msra.mxu0 %v11194_v12  ;;  %v11219_v12 = vpack.c.bf16 %v6353_v32, %v6347_v11 }
 0xd05   : > { %11197 = vmatprep.subr.bf16.mxu0 %v11196_v21 }
 0xd08   : > { %11199 = vmatpush1.bf16.msra.mxu0 %v11198_v45 }
 0xd09   : > { %11201 = vmatprep.subr.bf16.mxu0 %v11200_v39  ;;  %v6357_v39 = vld [vmem:[%s17522_s7] sm:$0x3f] }
 0xd0a   : > { %v6378_v5 = vrot.slane %v6357_v39, %v13668_v30 }
 0xd0c   : > { %11203 = vmatpush1.bf16.msra.mxu0 %v11202_v36 }
 0xd0d   : > { %11205 = vmatprep.subr.bf16.mxu0 %v11204_v40 }
 0xd0e   : > { %v5226_v52 = vpop.f32.mrb[40].mxu0  ;;  %v5952_v63 = vpop.f32.mrb[52].mxu1 }
 0xd0f   : > { %v11688_v4 = vadd.f32 %v5226_v52, %v4886_v14  ;;  %v5228_v57 = vpop.f32.mrb[41].mxu0  ;;  %v5954_v34 = vpop.f32.mrb[53].mxu1 }
 0xd10   : > { %v11689_v46 = vadd.f32 %v5228_v57, %v4890_v44  ;;  %11207 = vmatpush1.bf16.msra.mxu0 %v11206_v42  ;;  %v6382_v57 = vrot.slane %v6357_v39, %v13671_v60  ;;  %v7843_v60 = vld [vmem:[#allocation2 + $0x58] sm:$0xf] }
 0xd11   : > { %11209 = vmatprep.subr.bf16.mxu0 %v11208_v53  ;;  %9496 = vmatprep.mubr.f32.mxu1 %v11688_v4 }
 0xd12   : > { %v5232_v27 = vpop.f32.mrb[42].mxu0  ;;  %v5958_v41 = vpop.f32.mrb[54].mxu1 }
 0xd13   : > { %v11690_v13 = vadd.f32 %v5232_v27, %v4886_v14  ;;  %6125 = vst [vmem:[#allocation3 + $0x40] sm:$0x3] %v5958_v41  ;;  %v5234_v62 = vpop.f32.mrb[43].mxu0  ;;  %6632 = vmatmul.mubr.f32.vlgmr.msra.gmra.mrb[52].mxu0 %v11925_v58  ;;  %v5960_v51 = vpop.f32.mrb[55].mxu1  ;;  %v6374_v58 = vrot.slane %v6357_v39, %v13685_v59 }
 0xd14   : > { %v11691_v17 = vadd.f32 %v5234_v62, %v4890_v44  ;;  %11211 = vmatpush1.bf16.msra.mxu0 %v11210_v54  ;;  %6126 = vst [vmem:[#allocation3 + $0x48] sm:$0x3] %v5960_v51  ;;  %6637 = vmatprep.mubr.f32.mxu0 %v11926_v23 }
 0xd15   : > { %5399 = vst [vmem:[#allocation2 + $0x40] sm:$0xf] %v11690_v13  ;;  %11213 = vmatprep.subr.bf16.mxu0 %v11212_v56  ;;  %v6370_v13 = vrot.slane %v6357_v39, %v13682_v8 }
 0xd16   : > { %5400 = vst [vmem:[#allocation2 + $0x48] sm:$0xf] %v11691_v17 }
 0xd17   : > { %6638 = vmatmul.mubr.f32.gmra.mrb[54].mxu0 %v11927_v49 }
 0xd18   : > { %11215 = vmatpush1.bf16.msra.mxu0 %v11214_v50  ;;  %6708 = vmatprep.mubr.f32.mxu0 %v11972_v0 }
 0xd19   : > { %11218 = vmatprep.subr.msk.bf16.mxu0 %vm12081_vm2, %v11216_v20 }
 0xd1a   : > { %v7272_v21 = vld [vmem:[#allocation3 + $0x40] sm:$0x3] }
 0xd1b   : > { %v11320_v37 = vpack.c.bf16 %v7272_v21, %v5952_v63  ;;  %v7463_v43 = vld [vmem:[#allocation3 + $0x48] sm:$0x3] }
 0xd1c   : > { %11221 = vmatpush1.bf16.msk.msra.mxu0 %vm12081_vm2, %v11219_v12  ;;  %v11330_v25 = vpack.c.bf16 %v7463_v43, %v5954_v34  ;;  %v7270_v45 = vld [vmem:[#allocation2 + $0x40] sm:$0xf] }
 0xd1d   : > { %11321 = vmatprep.subr.bf16.mxu1 %v11320_v37  ;;  %v7461_v1 = vld [vmem:[#allocation2 + $0x48] sm:$0xf] }
 0xd1e   : > { %11323 = vmatpush3.bf16.xpose.msra.mxu1 %v11320_v37 }
 0xd1f   : > { %9024 = vmatmul.mubr.msk.f32.vlgmr.msra.gmra.mrb[52].mxu0 %vm711_vm3, %v11928_v47  ;;  %11331 = vmatprep.subr.bf16.mxu1 %v11330_v25 }
 0xd20   : > { %6714 = vmatprep.mubr.f32.mxu0 %v11972_v0  ;;  %v6362_v0 = vrot.slane %v6357_v39, %v13626_v16 }
 0xd23   : > { %9025 = vmatmul.mubr.msk.f32.gmra.mrb[54].mxu0 %vm711_vm3, %v16164_v61  ;;  %v6366_v61 = vrot.slane %v6357_v39, %v13634_v19 }
 0xd24   : > { %9468 = vmatprep.mubr.f32.mxu0 %v16359_v22 }
 0xd25   : > { %9497 = vmatmul.mubr.f32.vlgmr.msra.gmra.mrb[64].mxu1 %v7270_v45 }
 0xd26   : > { %11333 = vmatpush3.bf16.xpose.msra.mxu1 %v11330_v25  ;;  %9510 = vmatprep.mubr.f32.mxu1 %v11689_v46 }
 0xd2d   : > { %9511 = vmatmul.mubr.f32.vlgmr.msra.gmra.mrb[66].mxu1 %v7461_v1 }
 0xd2e   : > { %9538 = vmatprep.mubr.f32.mxu1 %v16363_v28 }
 0xd5a   : > { %v5798_v33 = vpop.f32.mrb[44].mxu0 }
 0xd5b   : > { %v5800_v38 = vpop.f32.mrb[45].mxu0 }
 0xd5c   : > { %v6556_v35 = vpop.f32.mrb[56].mxu1 }
 0xd5d   : > { %v11696_v22 = vadd.f32 %v6556_v35, %v6362_v0  ;;  %v6558_v7 = vpop.f32.mrb[57].mxu1 }
 0xd5e   : > { %v5804_v36 = vpop.f32.mrb[46].mxu0  ;;  %v16434_v40 = vadd.f32 %v6558_v7, %v6366_v61 }
 0xd5f   : > { %6123 = vst [vmem:[#allocation3 + $0x30] sm:$0x3] %v5804_v36  ;;  %v5806_v10 = vpop.f32.mrb[47].mxu0 }
 0xd60   : > { %6124 = vst [vmem:[#allocation3 + $0x38] sm:$0x3] %v5806_v10  ;;  %v6562_v28 = vpop.f32.mrb[58].mxu1  ;;  %v7078_v10 = vld [vmem:[#allocation2 + $0x8] sm:$0xff] }
 0xd61   : > { %v11698_v9 = vadd.f32 %v6562_v28, %v6362_v0  ;;  %v6564_v48 = vpop.f32.mrb[59].mxu1 }
 0xd62   : > { %v11699_v15 = vadd.f32 %v6564_v48, %v6366_v61  ;;  %v7079_v48 = vld [vmem:[#allocation2 + $0x38] sm:$0xf] }
 0xd63   : > { %6881 = vst [vmem:[#allocation4 + $0x30] sm:$0x3] %v11698_v9 }
 0xd64   : > { %6882 = vst [vmem:[#allocation4 + $0x38] sm:$0x3] %v11699_v15 }
 0xd66   : > { %v6890_v14 = vld [vmem:[#allocation3 + $0x30] sm:$0x3] }
 0xd67   : > { %v11300_v44 = vpack.c.bf16 %v6890_v14, %v5798_v33  ;;  %v7081_v31 = vld [vmem:[#allocation3 + $0x38] sm:$0x3] }
 0xd68   : > { %v16438_v52 = vpack.c.bf16 %v7081_v31, %v5800_v38 }
 0xd69   : > { %11301 = vmatprep.subr.bf16.mxu0 %v11300_v44 }
 0xd6a   : > { %11303 = vmatpush3.bf16.xpose.msra.mxu0 %v11300_v44  ;;  %v6892_v42 = vld [vmem:[#allocation4 + $0x30] sm:$0x3] }
 0xd6b   : > { %v11304_v53 = vpack.c.bf16 %v6892_v42, %v11696_v22  ;;  %v7083_v22 = vld [vmem:[#allocation4 + $0x38] sm:$0x3] }
 0xd6c   : > { %v11314_v28 = vpack.c.bf16 %v7083_v22, %v16434_v40 }
 0xd6d   : > { %11306 = vmatprep.subr.msk.bf16.mxu0 %vm13727_vm5, %v11304_v53 }
 0xd71   : > { %9469 = vmatmul.mubr.f32.vlgmr.msra.gmra.mrb[56].mxu0 %v6888_v18 }
 0xd72   : > { %11309 = vmatpush3.bf16.msk.msra.mxu0 %vm13727_vm5, %v11304_v53 }
 0xd73   : > { %11311 = vmatprep.subr.bf16.mxu0 %v16438_v52 }
 0xda6   : > { %v16443_v63 = vpop.f32.mrb[48].mxu0 }
 0xda7   : > { %v6108_v24 = vpop.f32.mrb[49].mxu0 }
 0xda8   : > { %v6864_v4 = vpop.f32.mrb[60].mxu1 }
 0xda9   : > { %v16447_v34 = vadd.f32 %v6864_v4, %v6378_v5  ;;  %v6866_v46 = vpop.f32.mrb[61].mxu1 }
 0xdaa   : > { %v6112_v54 = vpop.f32.mrb[50].mxu0  ;;  %v16449_v56 = vadd.f32 %v6866_v46, %v6382_v57 }
 0xdab   : > { %6127 = vst [vmem:[#allocation3 + $0x50] sm:$0x3] %v6112_v54  ;;  %v6114_v26 = vpop.f32.mrb[51].mxu0 }
 0xdac   : > { %6128 = vst [vmem:[#allocation3 + $0x58] sm:$0x3] %v6114_v26  ;;  %v6870_v2 = vpop.f32.mrb[62].mxu1 }
 0xdad   : > { %v11706_v27 = vadd.f32 %v6870_v2, %v6378_v5  ;;  %v6872_v41 = vpop.f32.mrb[63].mxu1 }
 0xdae   : > { %v11707_v6 = vadd.f32 %v6872_v41, %v6382_v57 }
 0xdaf   : > { %6885 = vst [vmem:[#allocation4 + $0x50] sm:$0x3] %v11706_v27 }
 0xdb0   : > { %6886 = vst [vmem:[#allocation4 + $0x58] sm:$0x3] %v11707_v6 }
 0xdb3   : > { %v7845_v55 = vld [vmem:[#allocation3 + $0x58] sm:$0x3] }
 0xdb4   : > { %v11350_v30 = vpack.c.bf16 %v7845_v55, %v6108_v24 }
 0xdb6   : > { %11351 = vmatprep.subr.bf16.mxu1 %v11350_v30 }
 0xdb7   : > { %11353 = vmatpush3.bf16.xpose.msra.mxu1 %v11350_v30 }
 0xdbe   : > { %9539 = vmatmul.mubr.f32.vlgmr.msra.gmra.mrb[68].mxu1 %v7843_v60 }
 0xdf2   : > { %v6710_v62 = vpop.f32.mrb[52].mxu0 }
 0xdf3   : > { %v11700_v51 = vadd.f32 %v6710_v62, %v6370_v13  ;;  %v6712_v17 = vpop.f32.mrb[53].mxu0 }
 0xdf4   : > { %v16453_v50 = vadd.f32 %v6712_v17, %v6374_v58 }
 0xdf6   : > { %v6716_v23 = vpop.f32.mrb[54].mxu0 }
 0xdf7   : > { %v11702_v20 = vadd.f32 %v6716_v23, %v6370_v13  ;;  %v6718_v11 = vpop.f32.mrb[55].mxu0 }
 0xdf8   : > { %v16455_v32 = vpop.f32.mrb[64].mxu1  ;;  %v11703_v49 = vadd.f32 %v6718_v11, %v6374_v58 }
 0xdf9   : > { %v16457_v12 = vpop.f32.mrb[65].mxu1  ;;  %6883 = vst [vmem:[#allocation4 + $0x40] sm:$0x3] %v11702_v20  ;;  %v7353_v18 = vsel %vm2780_vm7, %v16455_v32, -inf }
 0xdfa   : > { %6884 = vst [vmem:[#allocation4 + $0x48] sm:$0x3] %v11703_v49 }
 0xe00   : > { %v16459_v21 = vpop.f32.mrb[66].mxu1  ;;  %v7274_v9 = vld [vmem:[#allocation4 + $0x40] sm:$0x3] }
 0xe01   : > { %v16461_v37 = vpop.f32.mrb[67].mxu1  ;;  %v11324_v15 = vpack.c.bf16 %v7274_v9, %v11700_v51  ;;  %v7544_v24 = vsel %vm2780_vm7, %v16459_v21, -inf  ;;  %v7465_v20 = vld [vmem:[#allocation4 + $0x48] sm:$0x3] }
 0xe02   : > { %v7541_v5 = vsel %vm2776_vm6, %v16461_v37, -inf  ;;  %v11334_v49 = vpack.c.bf16 %v7465_v20, %v16453_v50  ;;  %v8068_v20 = vld [vmem:[%s17523_s8 + $0xb8] sm:$0xff] }
 0xe44   : > { %v9470_v43 = vpop.f32.mrb[56].mxu0 }
 0xe45   : > { %v6959_v59 = vpop.f32.mrb[57].mxu0  ;;  %v6971_v25 = vsel %vm2780_vm7, %v9470_v43, -inf }
 0xe46   : > { %6972 = vmax.xlane.f32.xlu1 %v6971_v25  ;;  %v6968_v47 = vsel %vm2776_vm6, %v6959_v59, -inf  ;;  %v7656_v25 = vld [vmem:[#allocation4 + $0x50] sm:$0x3] }
 0xe47   : > { %6969 = vmax.xlane.f32.xlu0 %v6968_v47  ;;  %v11344_v47 = vpack.c.bf16 %v7656_v25, %v16447_v34  ;;  %v8098_v34 = vld [vmem:[%s17523_s8 + $0x1a8] sm:$0xff]  ;;  %v8128_v25 = vld [vmem:[%s17523_s8 + $0x298] sm:$0xff] }
 0xe91   : > { %v16465_v45 = vpop.f32.mrb[68].mxu1 }
 0xe92   : > { %v16467_v1 = vpop.f32.mrb[69].mxu1 }
 0xed3   : > { %v6973_v39 = vpop.xlane.xlu1 %6972 }
 0xed4   : > { %v6975_v33 = vsub.f32 %v9470_v43, %v6973_v39  ;;  %v6970_v38 = vpop.xlane.xlu0 %6969  ;;  %v7652_v39 = vld [vmem:[#allocation2 + $0x50] sm:$0xf] }
 0xed5   : > { %v6974_v0 = vsub.f32 %v6959_v59, %v6970_v38 }
 0xed6   : > { %v6978_v35 = vmul.f32 1.442695, %v6975_v33 }
 0xed7   : > { %v6976_v61 = vmul.f32 1.442695, %v6974_v0  ;;  %v8050_v0 = vld [vmem:[%s17523_s8 + $0x28] sm:$0xff] }
 0xed9   : > { %11864 = vpow2.f32 %v6976_v61 }
 0xeda   : > { %11866 = vpow2.f32 %v6978_v35 }
 0xee3   : > { %v16469_v7 = vpop.eup %11864 }
 0xee4   : > { %v16471_v36 = vpop.eup %11866  ;;  %9475 = vmatprep.mubr.msk.f32.mxu0 %vm2776_vm6, %v16469_v7 }
 0xee5   : > { %9476 = vmatmul.mubr.msk.f32.vlgmr.msra.gmra.mrb[58].mxu0 %vm2776_vm6, %v16471_v36 }
 0xee6   : > { %11313 = vmatpush3.bf16.xpose.msra.mxu0 %v16438_v52  ;;  %9482 = vmatprep.mubr.f32.mxu0 %v7078_v10  ;;  %v7350_v52 = vsel %vm2776_vm6, %v16457_v12, -inf }
 0xee7   : > { %11316 = vmatprep.subr.msk.bf16.mxu0 %vm13727_vm5, %v11314_v28 }
 0xeed   : > { %9483 = vmatmul.mubr.f32.vlgmr.msra.gmra.mrb[60].mxu0 %v7079_v48 }
 0xeee   : > { %11319 = vmatpush3.bf16.msk.msra.mxu0 %vm13727_vm5, %v11314_v28 }
 0xeef   : > { %11326 = vmatprep.subr.msk.bf16.mxu0 %vm13727_vm5, %v11324_v15 }
 0xfb8   : > { %v16485_v14 = vpop.f32.mrb[58].mxu0 }
 0xfb9   : > { %v16487_v44 = vpop.f32.mrb[59].mxu0 }
 0xfc0   : > { %v9484_v40 = vpop.f32.mrb[60].mxu0 }
 0xfc1   : > { %v7150_v42 = vpop.f32.mrb[61].mxu0  ;;  %v7162_v53 = vsel %vm2780_vm7, %v9484_v40, -inf }
 0xfc2   : > { %7163 = vmax.xlane.f32.xlu1 %v7162_v53  ;;  %v7159_v31 = vsel %vm2776_vm6, %v7150_v42, -inf }
 0xfc3   : > { %7160 = vmax.xlane.f32.xlu0 %v7159_v31  ;;  %v7926_v31 = vsel %vm2780_vm7, %v16465_v45, -inf }
 0xfc6   : > { %7354 = vmax.xlane.f32.xlu1 %v7353_v18  ;;  %v7923_v18 = vsel %vm2776_vm6, %v16467_v1, -inf }
 0xfc7   : > { %7351 = vmax.xlane.f32.xlu0 %v7350_v52  ;;  %v6980_v52 = vsel %vm2776_vm6, %v16469_v7, 0.0  ;;  %v8053_v7 = vld [vmem:[%s17523_s8 + $0x40] sm:$0xff] }
 0xfca   : > { %7545 = vmax.xlane.f32.xlu1 %v7544_v24 }
 0xfcb   : > { %7542 = vmax.xlane.f32.xlu0 %v7541_v5  ;;  %v8101_v5 = vld [vmem:[%s17523_s8 + $0x1c0] sm:$0xff] }
0x104f   : > { %v7164_v4 = vpop.xlane.xlu1 %7163 }
0x1050   : > { %v7166_v57 = vsub.f32 %v9484_v40, %v7164_v4  ;;  %v7161_v46 = vpop.xlane.xlu0 %7160  ;;  %v8104_v4 = vld [vmem:[%s17523_s8 + $0x1d8] sm:$0xff] }
0x1051   : > { %v7165_v54 = vsub.f32 %v7150_v42, %v7161_v46  ;;  %v11556_v46 = vpack.c.bf16 %v8104_v4, %v8101_v5  ;;  %v8191_v4 = vld [vmem:[%s17523_s8 + $0x490] sm:$0xff] }
0x1052   : > { %v7169_v26 = vmul.f32 1.442695, %v7166_v57  ;;  %v6983_v57 = vsel %vm2780_vm7, %v16471_v36, 0.0  ;;  %v8107_v36 = vld [vmem:[%s17523_s8 + $0x1f0] sm:$0xff] }
0x1053   : > { %v7167_v2 = vmul.f32 1.442695, %v7165_v54  ;;  %v7355_v27 = vpop.xlane.xlu1 %7354  ;;  %v8056_v54 = vld [vmem:[%s17523_s8 + $0x58] sm:$0xff] }
0x1054   : > { %v7357_v41 = vsub.f32 %v16455_v32, %v7355_v27  ;;  %v7352_v6 = vpop.xlane.xlu0 %7351  ;;  %v8110_v27 = vld [vmem:[%s17523_s8 + $0x208] sm:$0xff] }
0x1055   : > { %11868 = vpow2.f32 %v7167_v2  ;;  %v7356_v55 = vsub.f32 %v16457_v12, %v7352_v6  ;;  %v7654_v12 = vld [vmem:[#allocation3 + $0x50] sm:$0x3]  ;;  %v11558_v2 = vpack.c.bf16 %v8056_v54, %v8053_v7  ;;  %v11560_v6 = vpack.c.bf16 %v8110_v27, %v8107_v36 }
0x1056   : > { %11870 = vpow2.f32 %v7169_v26  ;;  %v7360_v30 = vmul.f32 1.442695, %v7357_v41  ;;  %v11340_v43 = vpack.c.bf16 %v7654_v12, %v16443_v63  ;;  %v7847_v63 = vld [vmem:[#allocation4 + $0x58] sm:$0x3]  ;;  %v8122_v12 = vld [vmem:[%s17523_s8 + $0x268] sm:$0xff] }
0x1057   : > { %v7358_v60 = vmul.f32 1.442695, %v7356_v55  ;;  %v7546_v13 = vpop.xlane.xlu1 %7545  ;;  %v16537_v33 = vpack.c.bf16 %v7847_v63, %v16449_v56  ;;  %v8047_v56 = vld [vmem:[%s17523_s8 + $0x10] sm:$0xff]  ;;  %v8077_v63 = vld [vmem:[%s17523_s8 + $0x100] sm:$0xff] }
0x1058   : > { %v7548_v62 = vsub.f32 %v16459_v21, %v7546_v13  ;;  %v7543_v58 = vpop.xlane.xlu0 %7542  ;;  %v11554_v35 = vpack.c.bf16 %v8050_v0, %v8047_v56  ;;  %v8059_v55 = vld [vmem:[%s17523_s8 + $0x70] sm:$0xff]  ;;  %v8134_v56 = vld [vmem:[%s17523_s8 + $0x2c8] sm:$0xff] }
0x1059   : > { %11872 = vpow2.f32 %v7358_v60  ;;  %v7547_v51 = vsub.f32 %v16461_v37, %v7543_v58  ;;  %v8116_v58 = vld [vmem:[%s17523_s8 + $0x238] sm:$0xff]  ;;  %v8083_v0 = vld [vmem:[%s17523_s8 + $0x130] sm:$0xff] }
0x105a   : > { %11874 = vpow2.f32 %v7360_v30  ;;  %v7551_v17 = vmul.f32 1.442695, %v7548_v62  ;;  %v8062_v30 = vld [vmem:[%s17523_s8 + $0x88] sm:$0xff]  ;;  %v8113_v62 = vld [vmem:[%s17523_s8 + $0x220] sm:$0xff] }
0x105b   : > { %v7549_v23 = vmul.f32 1.442695, %v7547_v51  ;;  %v11562_v13 = vpack.c.bf16 %v8062_v30, %v8059_v55 }
0x105d   : > { %11876 = vpow2.f32 %v7549_v23  ;;  %v8065_v23 = vld [vmem:[%s17523_s8 + $0xa0] sm:$0xff] }
0x105e   : > { %11878 = vpow2.f32 %v7551_v17  ;;  %v11564_v17 = vpack.c.bf16 %v8116_v58, %v8113_v62 }
0x105f   : > { %v11869_v11 = vpop.eup %11868 }
0x1060   : > { %v16503_v32 = vpop.eup %11870  ;;  %9489 = vmatprep.mubr.msk.f32.mxu0 %vm2776_vm6, %v11869_v11  ;;  %v7171_v24 = vsel %vm2776_vm6, %v11869_v11, 0.0 }
0x1061   : > { %9490 = vmatmul.mubr.msk.f32.vlgmr.msra.gmra.mrb[62].mxu0 %vm2776_vm6, %v16503_v32  ;;  %v7174_v26 = vsel %vm2780_vm7, %v16503_v32, 0.0  ;;  %v11566_v32 = vpack.c.bf16 %v8068_v20, %v8065_v23  ;;  %v8045_v20 = vld [vmem:[%s17523_s8] sm:$0xff] }
0x1062   : > { %11329 = vmatpush3.bf16.msk.msra.mxu0 %vm13727_vm5, %v11324_v15 }
0x1063   : > { %v16511_v21 = vpop.eup %11872  ;;  %11336 = vmatprep.subr.msk.bf16.mxu0 %vm13727_vm5, %v11334_v49 }
0x1064   : > { %v16515_v37 = vpop.eup %11874  ;;  %9503 = vmatprep.mubr.msk.f32.mxu0 %vm2776_vm6, %v16511_v21  ;;  %v7362_v41 = vsel %vm2776_vm6, %v16511_v21, 0.0 }
0x1065   : > { %9504 = vmatmul.mubr.msk.f32.vlgmr.msra.gmra.mrb[64].mxu0 %vm2776_vm6, %v16515_v37  ;;  %v7365_v51 = vsel %vm2780_vm7, %v16515_v37, 0.0  ;;  %v8071_v37 = vld [vmem:[%s17523_s8 + $0xd0] sm:$0xff] }
0x1066   : > { %11339 = vmatpush3.bf16.msk.msra.mxu0 %vm13727_vm5, %v11334_v49  ;;  %v8119_v49 = vld [vmem:[%s17523_s8 + $0x250] sm:$0xff] }
0x1067   : > { %v16524_v50 = vpop.eup %11876  ;;  %11341 = vmatprep.subr.bf16.mxu0 %v11340_v43  ;;  %v11568_v21 = vpack.c.bf16 %v8122_v12, %v8119_v49 }
0x1068   : > { %v16526_v59 = vpop.eup %11878  ;;  %9517 = vmatprep.mubr.msk.f32.mxu0 %vm2776_vm6, %v16524_v50  ;;  %v7553_v60 = vsel %vm2776_vm6, %v16524_v50, 0.0 }
0x1069   : > { %9518 = vmatmul.mubr.msk.f32.vlgmr.msra.gmra.mrb[66].mxu0 %vm2776_vm6, %v16526_v59  ;;  %v7556_v11 = vsel %vm2780_vm7, %v16526_v59, 0.0  ;;  %v8125_v59 = vld [vmem:[%s17523_s8 + $0x280] sm:$0xff] }
0x106a   : > { %9524 = vmatprep.mubr.f32.mxu0 %v16361_v29  ;;  %v8095_v29 = vld [vmem:[%s17523_s8 + $0x190] sm:$0xff] }
0x106b   : > { %v11552_v38 = vpack.c.bf16 %v8098_v34, %v8095_v29  ;;  %v8131_v34 = vld [vmem:[%s17523_s8 + $0x2b0] sm:$0xff] }
0x106d   : > { %11553 = vmatprep.subr.bf16.mxu1 %v11552_v38  ;;  %v11576_v38 = vpack.c.bf16 %v8134_v56, %v8131_v34 }
0x106e   : > { %11555 = vmatpush3.bf16.msra.mxu1 %v11554_v35  ;;  %v8086_v35 = vld [vmem:[%s17523_s8 + $0x148] sm:$0xff] }
0x106f   : > { %11343 = vmatpush3.bf16.xpose.msra.mxu0 %v11340_v43  ;;  %11557 = vmatprep.subr.bf16.mxu1 %v11556_v46  ;;  %v8074_v43 = vld [vmem:[%s17523_s8 + $0xe8] sm:$0xff] }
0x1070   : > { %11346 = vmatprep.subr.msk.bf16.mxu0 %vm13727_vm5, %v11344_v47  ;;  %v11570_v50 = vpack.c.bf16 %v8074_v43, %v8071_v37  ;;  %v8055_v37 = vld [vmem:[%s17523_s8 + $0x50] sm:$0xff] }
0x1072   : > { %11559 = vmatpush3.bf16.msra.mxu1 %v11558_v2 }
0x1073   : > { %11561 = vmatprep.subr.bf16.mxu1 %v11560_v6 }
0x1076   : > { %9525 = vmatmul.mubr.f32.vlgmr.msra.gmra.mrb[68].mxu0 %v7652_v39  ;;  %11563 = vmatpush3.bf16.msra.mxu1 %v11562_v13  ;;  %v8080_v39 = vld [vmem:[%s17523_s8 + $0x118] sm:$0xff] }
0x1077   : > { %11349 = vmatpush3.bf16.msk.msra.mxu0 %vm13727_vm5, %v11344_v47  ;;  %11565 = vmatprep.subr.bf16.mxu1 %v11564_v17  ;;  %v11572_v47 = vpack.c.bf16 %v8128_v25, %v8125_v59  ;;  %v11574_v29 = vpack.c.bf16 %v8080_v39, %v8077_v63  ;;  %v8051_v63 = vld [vmem:[%s17523_s8 + $0x30] sm:$0xff]  ;;  %v8054_v39 = vld [vmem:[%s17523_s8 + $0x48] sm:$0xff] }
0x1078   : > { %11356 = vmatprep.subr.msk.bf16.mxu0 %vm13727_vm5, %v16537_v33 }
0x107a   : > { %11567 = vmatpush3.bf16.msra.mxu1 %v11566_v32 }
0x107b   : > { %11569 = vmatprep.subr.bf16.mxu1 %v11568_v21  ;;  %v8052_v21 = vld [vmem:[%s17523_s8 + $0x38] sm:$0xff] }
0x107e   : > { %11571 = vmatpush3.bf16.msra.mxu1 %v11570_v50 }
0x107f   : > { %11573 = vmatprep.subr.bf16.mxu1 %v11572_v47  ;;  %v11364_v47 = vpack.c.bf16 %v8055_v37, %v8052_v21  ;;  %v8069_v37 = vld [vmem:[%s17523_s8 + $0xc0] sm:$0xff] }
0x1082   : > { %11575 = vmatpush3.bf16.msra.mxu1 %v11574_v29  ;;  %v8143_v29 = vld [vmem:[%s17523_s8 + $0x310] sm:$0xff] }
0x1083   : > { %11577 = vmatprep.subr.bf16.mxu1 %v11576_v38  ;;  %v8058_v38 = vld [vmem:[%s17523_s8 + $0x68] sm:$0xff] }
0x1134   : > { %v16556_v61 = vpop.f32.mrb[62].mxu0 }
0x1135   : > { %v16558_v22 = vpop.f32.mrb[63].mxu0 }
0x1138   : > { %v16560_v10 = vpop.f32.mrb[64].mxu0 }
0x1139   : > { %v16562_v28 = vpop.f32.mrb[65].mxu0 }
0x113c   : > { %v16564_v9 = vpop.f32.mrb[66].mxu0 }
0x113d   : > { %v16566_v48 = vpop.f32.mrb[67].mxu0 }
0x1149   : > { %v16568_v15 = vpop.f32.mrb[68].mxu0 }
0x114a   : > { %v16570_v40 = vpop.f32.mrb[69].mxu0  ;;  %v7735_v42 = vsel %vm2780_vm7, %v16568_v15, -inf }
0x114b   : > { %7736 = vmax.xlane.f32.xlu1 %v7735_v42  ;;  %v7732_v53 = vsel %vm2776_vm6, %v16570_v40, -inf  ;;  %v11578_v42 = vpack.c.bf16 %v8086_v35, %v8083_v0  ;;  %v8061_v0 = vld [vmem:[%s17523_s8 + $0x80] sm:$0xff]  ;;  %v8146_v35 = vld [vmem:[%s17523_s8 + $0x328] sm:$0xff] }
0x114c   : > { %7733 = vmax.xlane.f32.xlu0 %v7732_v53  ;;  %v8137_v53 = vld [vmem:[%s17523_s8 + $0x2e0] sm:$0xff] }
0x114d   : > { %11579 = vmatpush3.bf16.msra.mxu1 %v11578_v42 }
0x114f   : > { %7927 = vmax.xlane.f32.xlu1 %v7926_v31  ;;  %v8140_v31 = vld [vmem:[%s17523_s8 + $0x2f8] sm:$0xff] }
0x1150   : > { %7924 = vmax.xlane.f32.xlu0 %v7923_v18  ;;  %v11580_v18 = vpack.c.bf16 %v8140_v31, %v8137_v53  ;;  %v8197_v31 = vld [vmem:[%s17523_s8 + $0x4c0] sm:$0xff] }
0x1152   : > { %11581 = vmatprep.subr.bf16.mxu1 %v11580_v18  ;;  %v8200_v18 = vld [vmem:[%s17523_s8 + $0x4d8] sm:$0xff] }
0x1153   : > { %6981 = vadd.xlane.f32.xlu1 %v6980_v52  ;;  %v8089_v52 = vld [vmem:[%s17523_s8 + $0x160] sm:$0xff] }
0x1154   : > { %7172 = vadd.xlane.f32.xlu0 %v7171_v24  ;;  %v8092_v24 = vld [vmem:[%s17523_s8 + $0x178] sm:$0xff] }
0x1155   : > { %v11582_v5 = vpack.c.bf16 %v8092_v24, %v8089_v52 }
0x1157   : > { %6984 = vadd.xlane.f32.xlu1 %v6983_v57  ;;  %11583 = vmatpush3.bf16.msra.mxu1 %v11582_v5  ;;  %v8194_v57 = vld [vmem:[%s17523_s8 + $0x4a8] sm:$0xff]  ;;  %v11366_v5 = vpack.c.bf16 %v8054_v39, %v8051_v63  ;;  %v8161_v39 = vld [vmem:[%s17523_s8 + $0x3a0] sm:$0xff] }
0x1158   : > { %7175 = vadd.xlane.f32.xlu0 %v7174_v26  ;;  %v11584_v46 = vpack.c.bf16 %v8194_v57, %v8191_v4  ;;  %v11368_v57 = vpack.c.bf16 %v8061_v0, %v8058_v38  ;;  %v8075_v38 = vld [vmem:[%s17523_s8 + $0xf0] sm:$0xff]  ;;  %v8078_v0 = vld [vmem:[%s17523_s8 + $0x108] sm:$0xff] }
0x115a   : > { %11585 = vmatprep.subr.bf16.mxu1 %v11584_v46  ;;  %v8057_v46 = vld [vmem:[%s17523_s8 + $0x60] sm:$0xff] }
0x115b   : > { %7363 = vadd.xlane.f32.xlu1 %v7362_v41 }
0x115c   : > { %7554 = vadd.xlane.f32.xlu0 %v7553_v60 }
0x115f   : > { %7366 = vadd.xlane.f32.xlu1 %v7365_v51 }
0x1160   : > { %7557 = vadd.xlane.f32.xlu0 %v7556_v11  ;;  %v8048_v11 = vld [vmem:[%s17523_s8 + $0x18] sm:$0xff] }
0x1161   : > { %v11362_v50 = vpack.c.bf16 %v8048_v11, %v8045_v20  ;;  %v8209_v11 = vld [vmem:[%s17523_s8 + $0x520] sm:$0xff] }
0x11d8   : > { %v7737_v7 = vpop.xlane.xlu1 %7736 }
0x11d9   : > { %v7739_v54 = vsub.f32 %v16568_v15, %v7737_v7  ;;  %v7734_v26 = vpop.xlane.xlu0 %7733  ;;  %v8060_v7 = vld [vmem:[%s17523_s8 + $0x78] sm:$0xff] }
0x11da   : > { %v7738_v2 = vsub.f32 %v16570_v40, %v7734_v26 }
0x11db   : > { %v7742_v36 = vmul.f32 1.442695, %v7739_v54  ;;  %v11586_v54 = vpack.c.bf16 %v8146_v35, %v8143_v29 }
0x11dc   : > { %v7740_v27 = vmul.f32 1.442695, %v7738_v2  ;;  %v7928_v41 = vpop.xlane.xlu1 %7927  ;;  %v8067_v2 = vld [vmem:[%s17523_s8 + $0xb0] sm:$0xff] }
0x11dd   : > { %v7930_v6 = vsub.f32 %v16465_v45, %v7928_v41  ;;  %v7925_v55 = vpop.xlane.xlu0 %7924  ;;  %v8046_v45 = vld [vmem:[%s17523_s8 + $0x8] sm:$0xff] }
0x11de   : > { %11880 = vpow2.f32 %v7740_v27  ;;  %v7929_v30 = vsub.f32 %v16467_v1, %v7925_v55  ;;  %v8049_v1 = vld [vmem:[%s17523_s8 + $0x20] sm:$0xff]  ;;  %v8152_v27 = vld [vmem:[%s17523_s8 + $0x358] sm:$0xff] }
0x11df   : > { %11882 = vpow2.f32 %v7742_v36  ;;  %v7933_v60 = vmul.f32 1.442695, %v7930_v6  ;;  %v11360_v23 = vpack.c.bf16 %v8049_v1, %v8046_v45  ;;  %v11588_v36 = vpack.c.bf16 %v8200_v18, %v8197_v31  ;;  %v8206_v6 = vld [vmem:[%s17523_s8 + $0x508] sm:$0xff]  ;;  %v8073_v1 = vld [vmem:[%s17523_s8 + $0xe0] sm:$0xff] }
0x11e0   : > { %v7931_v13 = vmul.f32 1.442695, %v7929_v30  ;;  %v6982_v62 = vpop.xlane.xlu1 %6981  ;;  %v11370_v30 = vpack.c.bf16 %v8060_v7, %v8057_v46  ;;  %v8085_v31 = vld [vmem:[%s17523_s8 + $0x140] sm:$0xff]  ;;  %v8084_v7 = vld [vmem:[%s17523_s8 + $0x138] sm:$0xff] }
0x11e1   : > { %11884 = vpow2.f32 %v7933_v60  ;;  %v7173_v58 = vpop.xlane.xlu0 %7172  ;;  %v8081_v46 = vld [vmem:[%s17523_s8 + $0x120] sm:$0xff] }
0x11e2   : > { %11886 = vpow2.f32 %v7931_v13 }
0x11e3   : > { %11888 = vrcp.f32 %v6982_v62 }
0x11e4   : > { %11890 = vrcp.f32 %v7173_v58  ;;  %v6985_v15 = vpop.xlane.xlu1 %6984  ;;  %v8063_v58 = vld [vmem:[%s17523_s8 + $0x90] sm:$0xff] }
0x11e5   : > { %11892 = vrcp.f32 %v6985_v15  ;;  %v7176_v40 = vpop.xlane.xlu0 %7175  ;;  %v8066_v15 = vld [vmem:[%s17523_s8 + $0xa8] sm:$0xff] }
0x11e6   : > { %11894 = vrcp.f32 %v7176_v40  ;;  %v11374_v20 = vpack.c.bf16 %v8066_v15, %v8063_v58  ;;  %v8097_v58 = vld [vmem:[%s17523_s8 + $0x1a0] sm:$0xff] }
0x11e8   : > { %v11881_v51 = vpop.eup %11880  ;;  %v7364_v17 = vpop.xlane.xlu1 %7363 }
0x11e9   : > { %v11883_v32 = vpop.eup %11882  ;;  %11896 = vrcp.f32 %v7364_v17  ;;  %9531 = vmatprep.mubr.msk.f32.mxu0 %vm2776_vm6, %v11881_v51  ;;  %v7555_v49 = vpop.xlane.xlu0 %7554  ;;  %v7744_v12 = vsel %vm2776_vm6, %v11881_v51, 0.0  ;;  %v8155_v17 = vld [vmem:[%s17523_s8 + $0x370] sm:$0xff] }
0x11ea   : > { %11898 = vrcp.f32 %v7555_v49  ;;  %9532 = vmatmul.mubr.msk.f32.vlgmr.msra.gmra.mrb[70].mxu0 %vm2776_vm6, %v11883_v32  ;;  %7745 = vadd.xlane.f32.xlu1 %v7744_v12 }
0x11eb   : > { %v11885_v43 = vpop.eup %11884  ;;  %11359 = vmatpush3.bf16.msk.msra.mxu0 %vm13727_vm5, %v16537_v33  ;;  %v7747_v33 = vsel %vm2780_vm7, %v11883_v32, 0.0  ;;  %v8212_v32 = vld [vmem:[%s17523_s8 + $0x538] sm:$0xff] }
0x11ec   : > { %v11887_v59 = vpop.eup %11886  ;;  %v7367_v25 = vpop.xlane.xlu1 %7366  ;;  %11361 = vmatprep.subr.bf16.mxu0 %v11360_v23  ;;  %v7938_v41 = vsel %vm2780_vm7, %v11885_v43, 0.0  ;;  %v8158_v23 = vld [vmem:[%s17523_s8 + $0x388] sm:$0xff]  ;;  %v11596_v63 = vpack.c.bf16 %v8212_v32, %v8209_v11  ;;  %v8100_v32 = vld [vmem:[%s17523_s8 + $0x1b8] sm:$0xff] }
0x11ed   : > { %v11889_v34 = vpop.eup %11888  ;;  %11900 = vrcp.f32 %v7367_v25  ;;  %9545 = vmatprep.mubr.msk.f32.mxu0 %vm2776_vm6, %v11887_v59  ;;  %v7558_v3 = vpop.xlane.xlu0 %7557  ;;  %v7935_v56 = vsel %vm2776_vm6, %v11887_v59, 0.0  ;;  %v11594_v59 = vpack.c.bf16 %v8158_v23, %v8155_v17  ;;  %v8076_v25 = vld [vmem:[%s17523_s8 + $0xf8] sm:$0xff] }
0x11ee   : > { %v11891_v42 = vpop.eup %11890  ;;  %v16735_v53 = vmul.f32 %v11889_v34, %v16487_v44  ;;  %11902 = vrcp.f32 %v7558_v3  ;;  %7748 = vadd.xlane.f32.xlu1 %v7747_v33  ;;  %9546 = vmatmul.mubr.msk.f32.vlgmr.msra.gmra.mrb[72].mxu0 %vm2776_vm6, %v11885_v43  ;;  %v8072_v43 = vld [vmem:[%s17523_s8 + $0xd8] sm:$0xff]  ;;  %v8215_v3 = vld [vmem:[%s17523_s8 + $0x550] sm:$0xff]  ;;  %v8218_v33 = vld [vmem:[%s17523_s8 + $0x568] sm:$0xff] }
0x11ef   : > { %v11893_v52 = vpop.eup %11892  ;;  %v7265_v24 = vmul.f32 %v11891_v42, %v16558_v22  ;;  %11363 = vmatpush1.bf16.msra.mxu0 %v11362_v50  ;;  %7936 = vadd.xlane.f32.xlu0 %v7935_v56  ;;  %v8149_v22 = vld [vmem:[%s17523_s8 + $0x340] sm:$0xff]  ;;  %v11378_v34 = vpack.c.bf16 %v8072_v43, %v8069_v37  ;;  %v8082_v42 = vld [vmem:[%s17523_s8 + $0x128] sm:$0xff]  ;;  %v11600_v18 = vpack.c.bf16 %v8218_v33, %v8215_v3  ;;  %v8236_v17 = vld [vmem:[%s17523_s8 + $0x5f8] sm:$0xff] }
0x11f0   : > { %v11895_v44 = vpop.eup %11894  ;;  %v7075_v4 = vmul.f32 %v11893_v52, %v16485_v14  ;;  %11365 = vmatprep.subr.bf16.mxu0 %v11364_v47  ;;  %v8064_v14 = vld [vmem:[%s17523_s8 + $0x98] sm:$0xff]  ;;  %v11590_v40 = vpack.c.bf16 %v8152_v27, %v8149_v22  ;;  %v8167_v52 = vld [vmem:[%s17523_s8 + $0x3d0] sm:$0xff]  ;;  %v11386_v27 = vpack.c.bf16 %v8084_v7, %v8081_v46  ;;  %v8114_v46 = vld [vmem:[%s17523_s8 + $0x228] sm:$0xff] }
0x11f1   : > { %v7266_v26 = vmul.f32 %v11895_v44, %v16556_v61  ;;  %8414 = vmatprep.mubr.f32.mxu0 %v7265_v24  ;;  %8645 = vmatprep.mubr.f32.mxu1 %v7265_v24  ;;  %v8203_v61 = vld [vmem:[%s17523_s8 + $0x4f0] sm:$0xff]  ;;  %v11372_v62 = vpack.c.bf16 %v8067_v2, %v8064_v14  ;;  %v8170_v24 = vld [vmem:[%s17523_s8 + $0x3e8] sm:$0xff]  ;;  %v8221_v44 = vld [vmem:[%s17523_s8 + $0x580] sm:$0xff] }
0x11f2   : > { %7077 = vst [vmem:[#allocation5 + $0x30] sm:$0xf] %v7075_v4  ;;  %8646 = vmatmul.mubr.f32.vlgmr.msra.gmra.mrb[70].mxu1 %v16735_v53  ;;  %v11592_v51 = vpack.c.bf16 %v8206_v6, %v8203_v61  ;;  %v8224_v4 = vld [vmem:[%s17523_s8 + $0x598] sm:$0xff]  ;;  %v8173_v2 = vld [vmem:[%s17523_s8 + $0x400] sm:$0xff]  ;;  %v8230_v61 = vld [vmem:[%s17523_s8 + $0x5c8] sm:$0xff] }
0x11f3   : > { %v11897_v55 = vpop.eup %11896  ;;  %7268 = vst [vmem:[#allocation5 + $0x38] sm:$0xf] %v7266_v26  ;;  %11367 = vmatpush1.bf16.msra.mxu0 %v11366_v5  ;;  %7939 = vadd.xlane.f32.xlu0 %v7938_v41  ;;  %v11382_v5 = vpack.c.bf16 %v8078_v0, %v8075_v38  ;;  %v8088_v22 = vld [vmem:[%s17523_s8 + $0x158] sm:$0xff]  ;;  %v8091_v26 = vld [vmem:[%s17523_s8 + $0x170] sm:$0xff]  ;;  %v11604_v14 = vpack.c.bf16 %v8224_v4, %v8221_v44  ;;  %v8242_v0 = vld [vmem:[%s17523_s8 + $0x628] sm:$0xff] }
0x11f4   : > { %v11899_v60 = vpop.eup %11898  ;;  %v16774_v13 = vmul.f32 %v11897_v55, %v16562_v28  ;;  %11369 = vmatprep.subr.bf16.mxu0 %v11368_v57  ;;  %11587 = vmatpush3.bf16.msra.mxu1 %v11586_v54  ;;  %v8070_v28 = vld [vmem:[%s17523_s8 + $0xc8] sm:$0xff]  ;;  %v11384_v57 = vpack.c.bf16 %v8085_v31, %v8082_v42  ;;  %v11602_v54 = vpack.c.bf16 %v8170_v24, %v8167_v52  ;;  %v8227_v41 = vld [vmem:[%s17523_s8 + $0x5b0] sm:$0xff]  ;;  %v8188_v37 = vld [vmem:[%s17523_s8 + $0x478] sm:$0xff] }
0x11f5   : > { %v16783_v45 = vmul.f32 %v11899_v60, %v16566_v48  ;;  %11589 = vmatprep.subr.bf16.mxu1 %v11588_v36  ;;  %v11376_v21 = vpack.c.bf16 %v8073_v1, %v8070_v28  ;;  %v8176_v36 = vld [vmem:[%s17523_s8 + $0x418] sm:$0xff]  ;;  %v11388_v6 = vpack.c.bf16 %v8091_v26, %v8088_v22  ;;  %v8087_v55 = vld [vmem:[%s17523_s8 + $0x150] sm:$0xff]  ;;  %v11608_v15 = vpack.c.bf16 %v8230_v61, %v8227_v41  ;;  %v8182_v28 = vld [vmem:[%s17523_s8 + $0x448] sm:$0xff] }
0x11f6   : > { %v11606_v60 = vpack.c.bf16 %v8176_v36, %v8173_v2  ;;  %v8239_v38 = vld [vmem:[%s17523_s8 + $0x610] sm:$0xff]  ;;  %v8108_v42 = vld [vmem:[%s17523_s8 + $0x1f8] sm:$0xff]  ;;  %v8293_v31 = vld [vmem:[%s17523_s8 + $0x7c0] sm:$0xff] }
0x11f7   : > { %v11901_v48 = vpop.eup %11900  ;;  %11371 = vmatpush1.bf16.msra.mxu0 %v11370_v30  ;;  %v8090_v30 = vld [vmem:[%s17523_s8 + $0x168] sm:$0xff]  ;;  %v8112_v52 = vld [vmem:[%s17523_s8 + $0x218] sm:$0xff]  ;;  %v8115_v24 = vld [vmem:[%s17523_s8 + $0x230] sm:$0xff] }
0x11f8   : > { %v11903_v49 = vpop.eup %11902  ;;  %v7457_v12 = vmul.f32 %v11901_v48, %v16560_v10  ;;  %11373 = vmatprep.subr.bf16.mxu0 %v11372_v62  ;;  %11591 = vmatpush3.bf16.msra.mxu1 %v11590_v40  ;;  %v8079_v10 = vld [vmem:[%s17523_s8 + $0x110] sm:$0xff]  ;;  %v8094_v62 = vld [vmem:[%s17523_s8 + $0x188] sm:$0xff]  ;;  %v11390_v1 = vpack.c.bf16 %v8090_v30, %v8087_v55  ;;  %v8093_v48 = vld [vmem:[%s17523_s8 + $0x180] sm:$0xff]  ;;  %v11404_v26 = vpack.c.bf16 %v8115_v24, %v8112_v52 }
0x11f9   : > { %v7648_v50 = vmul.f32 %v11903_v49, %v16564_v9  ;;  %11593 = vmatprep.subr.bf16.mxu1 %v11592_v51  ;;  %v8164_v9 = vld [vmem:[%s17523_s8 + $0x3b8] sm:$0xff]  ;;  %v16826_v29 = vld [vmem:[#allocation5 + $0x30] sm:$0xf]  ;;  %v11380_v56 = vpack.c.bf16 %v8079_v10, %v8076_v25  ;;  %v8233_v51 = vld [vmem:[%s17523_s8 + $0x5e0] sm:$0xff]  ;;  %v11392_v23 = vpack.c.bf16 %v8097_v58, %v8094_v62 }
0x11fa   : > { %7459 = vst [vmem:[#allocation5 + $0x40] sm:$0xf] %v7457_v12  ;;  %v16817_v47 = vld [vmem:[#allocation5 + $0x38] sm:$0xf]  ;;  %v11598_v35 = vpack.c.bf16 %v8164_v9, %v8161_v39  ;;  %v8179_v40 = vld [vmem:[%s17523_s8 + $0x430] sm:$0xff]  ;;  %v11612_v12 = vpack.c.bf16 %v8236_v17, %v8233_v51  ;;  %v8102_v25 = vld [vmem:[%s17523_s8 + $0x1c8] sm:$0xff] }
0x11fb   : > { %7650 = vst [vmem:[#allocation5 + $0x48] sm:$0xf] %v7648_v50  ;;  %11375 = vmatpush1.bf16.msra.mxu0 %v11374_v20  ;;  %8650 = vmatprep.mubr.f32.mxu1 %v16817_v47  ;;  %v8096_v20 = vld [vmem:[%s17523_s8 + $0x198] sm:$0xff]  ;;  %v11610_v11 = vpack.c.bf16 %v8182_v28, %v8179_v40  ;;  %v8103_v49 = vld [vmem:[%s17523_s8 + $0x1d0] sm:$0xff]  ;;  %v8106_v10 = vld [vmem:[%s17523_s8 + $0x1e8] sm:$0xff] }
0x11fc   : > { %8651 = vmatmul.mubr.f32.gmra.mrb[72].mxu1 %v16826_v29  ;;  %11377 = vmatprep.subr.bf16.mxu0 %v11376_v21  ;;  %v8185_v21 = vld [vmem:[%s17523_s8 + $0x460] sm:$0xff]  ;;  %v11394_v43 = vpack.c.bf16 %v8096_v20, %v8093_v48  ;;  %v11396_v50 = vpack.c.bf16 %v8103_v49, %v8100_v32  ;;  %v8287_v9 = vld [vmem:[%s17523_s8 + $0x790] sm:$0xff]  ;;  %v8302_v2 = vld [vmem:[%s17523_s8 + $0x808] sm:$0xff] }
0x11fd   : > { %8720 = vmatprep.mubr.f32.mxu1 %v16783_v45  ;;  %11595 = vmatpush3.bf16.msra.mxu1 %v11594_v59  ;;  %v8099_v59 = vld [vmem:[%s17523_s8 + $0x1b0] sm:$0xff]  ;;  %v8109_v39 = vld [vmem:[%s17523_s8 + $0x200] sm:$0xff]  ;;  %v8118_v36 = vld [vmem:[%s17523_s8 + $0x248] sm:$0xff] }
0x11fe   : > { %11597 = vmatprep.subr.bf16.mxu1 %v11596_v63  ;;  %v11614_v63 = vpack.c.bf16 %v8188_v37, %v8185_v21  ;;  %v11398_v33 = vpack.c.bf16 %v8102_v25, %v8099_v59  ;;  %v8111_v44 = vld [vmem:[%s17523_s8 + $0x210] sm:$0xff]  ;;  %v8245_v7 = vld [vmem:[%s17523_s8 + $0x640] sm:$0xff]  ;;  %v8254_v62 = vld [vmem:[%s17523_s8 + $0x688] sm:$0xff] }
0x11ff   : > { %11379 = vmatpush1.bf16.msra.mxu0 %v11378_v34  ;;  %v8290_v34 = vld [vmem:[%s17523_s8 + $0x7a8] sm:$0xff]  ;;  %v8117_v61 = vld [vmem:[%s17523_s8 + $0x240] sm:$0xff]  ;;  %v11406_v55 = vpack.c.bf16 %v8114_v46, %v8111_v44  ;;  %v8308_v28 = vld [vmem:[%s17523_s8 + $0x838] sm:$0xff] }
0x1200   : > { %11381 = vmatprep.subr.bf16.mxu0 %v11380_v56  ;;  %v11616_v3 = vpack.c.bf16 %v8290_v34, %v8287_v9  ;;  %v8105_v56 = vld [vmem:[%s17523_s8 + $0x1e0] sm:$0xff]  ;;  %v8127_v51 = vld [vmem:[%s17523_s8 + $0x290] sm:$0xff]  ;;  %v8130_v21 = vld [vmem:[%s17523_s8 + $0x2a8] sm:$0xff] }
0x1201   : > { %11599 = vmatpush3.bf16.msra.mxu1 %v11598_v35  ;;  %v11400_v35 = vpack.c.bf16 %v8109_v39, %v8106_v10  ;;  %v16999_v30 = vld [vmem:[#allocation5 + $0x40] sm:$0xf]  ;;  %v8123_v49 = vld [vmem:[%s17523_s8 + $0x270] sm:$0xff]  ;;  %v8132_v10 = vld [vmem:[%s17523_s8 + $0x2b8] sm:$0xff] }
0x1202   : > { %11601 = vmatprep.subr.bf16.mxu1 %v11600_v18  ;;  %v8296_v18 = vld [vmem:[%s17523_s8 + $0x7d8] sm:$0xff]  ;;  %v16981_v22 = vld [vmem:[#allocation5 + $0x48] sm:$0xf]  ;;  %v8305_v40 = vld [vmem:[%s17523_s8 + $0x820] sm:$0xff] }
0x1203   : > { %11383 = vmatpush1.bf16.msra.mxu0 %v11382_v5  ;;  %v11618_v5 = vpack.c.bf16 %v8242_v0, %v8239_v38  ;;  %v11620_v4 = vpack.c.bf16 %v8296_v18, %v8293_v31  ;;  %v8257_v20 = vld [vmem:[%s17523_s8 + $0x6a0] sm:$0xff]  ;;  %v8139_v39 = vld [vmem:[%s17523_s8 + $0x2f0] sm:$0xff]  ;;  %v8144_v31 = vld [vmem:[%s17523_s8 + $0x318] sm:$0xff] }
0x1204   : > { %11385 = vmatprep.subr.bf16.mxu0 %v11384_v57  ;;  %v11402_v57 = vpack.c.bf16 %v8108_v42, %v8105_v56  ;;  %v8133_v37 = vld [vmem:[%s17523_s8 + $0x2c0] sm:$0xff]  ;;  %v8142_v56 = vld [vmem:[%s17523_s8 + $0x308] sm:$0xff]  ;;  %v8148_v18 = vld [vmem:[%s17523_s8 + $0x338] sm:$0xff] }
0x1205   : > { %11603 = vmatpush3.bf16.msra.mxu1 %v11602_v54  ;;  %v8248_v54 = vld [vmem:[%s17523_s8 + $0x658] sm:$0xff]  ;;  %v11416_v59 = vpack.c.bf16 %v8133_v37, %v8130_v21  ;;  %v8129_v25 = vld [vmem:[%s17523_s8 + $0x2a0] sm:$0xff]  ;;  %v8151_v52 = vld [vmem:[%s17523_s8 + $0x350] sm:$0xff] }
0x1206   : > { %11605 = vmatprep.subr.bf16.mxu1 %v11604_v14  ;;  %v8299_v14 = vld [vmem:[%s17523_s8 + $0x7f0] sm:$0xff]  ;;  %v11622_v41 = vpack.c.bf16 %v8248_v54, %v8245_v7  ;;  %v11418_v9 = vpack.c.bf16 %v8132_v10, %v8129_v25  ;;  %v8145_v38 = vld [vmem:[%s17523_s8 + $0x320] sm:$0xff]  ;;  %v8320_v21 = vld [vmem:[%s17523_s8 + $0x898] sm:$0xff] }
0x1207   : > { %11387 = vmatpush1.bf16.msra.mxu0 %v11386_v27  ;;  %v8121_v27 = vld [vmem:[%s17523_s8 + $0x260] sm:$0xff]  ;;  %v8147_v44 = vld [vmem:[%s17523_s8 + $0x330] sm:$0xff] }
0x1208   : > { %11389 = vmatprep.subr.bf16.mxu0 %v11388_v6  ;;  %v11624_v6 = vpack.c.bf16 %v8302_v2, %v8299_v14  ;;  %v11408_v58 = vpack.c.bf16 %v8121_v27, %v8118_v36  ;;  %v8141_v42 = vld [vmem:[%s17523_s8 + $0x300] sm:$0xff]  ;;  %v8156_v14 = vld [vmem:[%s17523_s8 + $0x378] sm:$0xff]  ;;  %v8159_v27 = vld [vmem:[%s17523_s8 + $0x390] sm:$0xff] }
0x1209   : > { %11607 = vmatpush3.bf16.msra.mxu1 %v11606_v60  ;;  %v8251_v60 = vld [vmem:[%s17523_s8 + $0x670] sm:$0xff]  ;;  %v11426_v24 = vpack.c.bf16 %v8144_v31, %v8141_v42  ;;  %v8157_v46 = vld [vmem:[%s17523_s8 + $0x380] sm:$0xff]  ;;  %v8160_v2 = vld [vmem:[%s17523_s8 + $0x398] sm:$0xff] }
0x120a   : > { %11609 = vmatprep.subr.bf16.mxu1 %v11608_v15  ;;  %v8120_v15 = vld [vmem:[%s17523_s8 + $0x258] sm:$0xff]  ;;  %v11626_v17 = vpack.c.bf16 %v8254_v62, %v8251_v60  ;;  %v8311_v62 = vld [vmem:[%s17523_s8 + $0x850] sm:$0xff] }
0x120b   : > { %11391 = vmatpush1.bf16.msra.mxu0 %v11390_v1  ;;  %v8124_v1 = vld [vmem:[%s17523_s8 + $0x278] sm:$0xff]  ;;  %v11410_v48 = vpack.c.bf16 %v8120_v15, %v8117_v61  ;;  %v8166_v61 = vld [vmem:[%s17523_s8 + $0x3c8] sm:$0xff]  ;;  %v8175_v15 = vld [vmem:[%s17523_s8 + $0x410] sm:$0xff] }
0x120c   : > { %11393 = vmatprep.subr.bf16.mxu0 %v11392_v23  ;;  %v11628_v23 = vpack.c.bf16 %v8308_v28, %v8305_v40  ;;  %v11412_v32 = vpack.c.bf16 %v8127_v51, %v8124_v1  ;;  %v8168_v60 = vld [vmem:[%s17523_s8 + $0x3d8] sm:$0xff]  ;;  %v8314_v40 = vld [vmem:[%s17523_s8 + $0x868] sm:$0xff]  ;;  %v8263_v1 = vld [vmem:[%s17523_s8 + $0x6d0] sm:$0xff] }
0x120d   : > { %11611 = vmatpush3.bf16.msra.mxu1 %v11610_v11  ;;  %v8260_v11 = vld [vmem:[%s17523_s8 + $0x6b8] sm:$0xff]  ;;  %v11632_v28 = vpack.c.bf16 %v8314_v40, %v8311_v62  ;;  %v8266_v51 = vld [vmem:[%s17523_s8 + $0x6e8] sm:$0xff]  ;;  %v8201_v62 = vld [vmem:[%s17523_s8 + $0x4e0] sm:$0xff] }
0x120e   : > { %11613 = vmatprep.subr.bf16.mxu1 %v11612_v12  ;;  %v8126_v12 = vld [vmem:[%s17523_s8 + $0x288] sm:$0xff]  ;;  %v8211_v40 = vld [vmem:[%s17523_s8 + $0x530] sm:$0xff] }
0x120f   : > { %11395 = vmatpush1.bf16.msra.mxu0 %v11394_v43  ;;  %v11630_v43 = vpack.c.bf16 %v8260_v11, %v8257_v20  ;;  %v8171_v20 = vld [vmem:[%s17523_s8 + $0x3f0] sm:$0xff]  ;;  %v8174_v11 = vld [vmem:[%s17523_s8 + $0x408] sm:$0xff] }
0x1210   : > { %11397 = vmatprep.subr.bf16.mxu0 %v11396_v50  ;;  %v11414_v50 = vpack.c.bf16 %v8126_v12, %v8123_v49  ;;  %v8178_v49 = vld [vmem:[%s17523_s8 + $0x428] sm:$0xff]  ;;  %v8181_v12 = vld [vmem:[%s17523_s8 + $0x440] sm:$0xff] }
0x1211   : > { %11615 = vmatpush3.bf16.msra.mxu1 %v11614_v63  ;;  %v8136_v63 = vld [vmem:[%s17523_s8 + $0x2d8] sm:$0xff]  ;;  %v11448_v10 = vpack.c.bf16 %v8181_v12, %v8178_v49 }
0x1212   : > { %11617 = vmatprep.subr.bf16.mxu1 %v11616_v3  ;;  %v11420_v34 = vpack.c.bf16 %v8139_v39, %v8136_v63  ;;  %v8135_v3 = vld [vmem:[%s17523_s8 + $0x2d0] sm:$0xff]  ;;  %v8177_v63 = vld [vmem:[%s17523_s8 + $0x420] sm:$0xff]  ;;  %v8180_v39 = vld [vmem:[%s17523_s8 + $0x438] sm:$0xff] }
0x1213   : > { %11399 = vmatpush1.bf16.msra.mxu0 %v11398_v33  ;;  %v8138_v33 = vld [vmem:[%s17523_s8 + $0x2e8] sm:$0xff]  ;;  %v8216_v49 = vld [vmem:[%s17523_s8 + $0x558] sm:$0xff] }
0x1214   : > { %11401 = vmatprep.subr.bf16.mxu0 %v11400_v35  ;;  %8721 = vmatmul.mubr.f32.vlgmr.msra.gmra.mrb[74].mxu1 %v16774_v13  ;;  %v11422_v0 = vpack.c.bf16 %v8138_v33, %v8135_v3  ;;  %v11424_v35 = vpack.c.bf16 %v8145_v38, %v8142_v56  ;;  %v8187_v3 = vld [vmem:[%s17523_s8 + $0x470] sm:$0xff]  ;;  %v8326_v33 = vld [vmem:[%s17523_s8 + $0x8c8] sm:$0xff]  ;;  %v8220_v12 = vld [vmem:[%s17523_s8 + $0x578] sm:$0xff] }
0x1215   : > { %8725 = vmatprep.mubr.f32.mxu1 %v16981_v22  ;;  %11619 = vmatpush3.bf16.msra.mxu1 %v11618_v5  ;;  %v11428_v5 = vpack.c.bf16 %v8151_v52, %v8148_v18  ;;  %v8275_v38 = vld [vmem:[%s17523_s8 + $0x730] sm:$0xff]  ;;  %v8186_v52 = vld [vmem:[%s17523_s8 + $0x468] sm:$0xff] }
0x1216   : > { %11621 = vmatprep.subr.bf16.mxu1 %v11620_v4  ;;  %v8150_v4 = vld [vmem:[%s17523_s8 + $0x348] sm:$0xff]  ;;  %v8183_v18 = vld [vmem:[%s17523_s8 + $0x450] sm:$0xff] }
0x1217   : > { %11403 = vmatpush1.bf16.msra.mxu0 %v11402_v57  ;;  %v8154_v57 = vld [vmem:[%s17523_s8 + $0x368] sm:$0xff]  ;;  %v11430_v7 = vpack.c.bf16 %v8150_v4, %v8147_v44  ;;  %v8193_v44 = vld [vmem:[%s17523_s8 + $0x4a0] sm:$0xff]  ;;  %v8332_v4 = vld [vmem:[%s17523_s8 + $0x8f8] sm:$0xff] }
0x1218   : > { %11405 = vmatprep.subr.bf16.mxu0 %v11404_v26  ;;  %8726 = vmatmul.mubr.f32.gmra.mrb[76].mxu1 %v16999_v30  ;;  %v11432_v54 = vpack.c.bf16 %v8157_v46, %v8154_v57  ;;  %v8153_v26 = vld [vmem:[%s17523_s8 + $0x360] sm:$0xff] }
0x1219   : > { %11623 = vmatpush3.bf16.msra.mxu1 %v11622_v41  ;;  %v8162_v41 = vld [vmem:[%s17523_s8 + $0x3a8] sm:$0xff]  ;;  %v8281_v46 = vld [vmem:[%s17523_s8 + $0x760] sm:$0xff] }
0x121a   : > { %11625 = vmatprep.subr.bf16.mxu1 %v11624_v6 }
0x121b   : > { %11407 = vmatpush1.bf16.msra.mxu0 %v11406_v55  ;;  %v8165_v55 = vld [vmem:[%s17523_s8 + $0x3c0] sm:$0xff] }
0x121c   : > { %11409 = vmatprep.subr.bf16.mxu0 %v11408_v58  ;;  %v8172_v58 = vld [vmem:[%s17523_s8 + $0x3f8] sm:$0xff] }
0x121d   : > { %11627 = vmatpush3.bf16.msra.mxu1 %v11626_v17  ;;  %v11442_v17 = vpack.c.bf16 %v8168_v60, %v8165_v55 }
0x121e   : > { %11629 = vmatprep.subr.bf16.mxu1 %v11628_v23  ;;  %v11634_v23 = vpack.c.bf16 %v8266_v51, %v8263_v1  ;;  %v8207_v51 = vld [vmem:[%s17523_s8 + $0x510] sm:$0xff] }
0x121f   : > { %11411 = vmatpush1.bf16.msra.mxu0 %v11410_v48  ;;  %v11444_v48 = vpack.c.bf16 %v8175_v15, %v8172_v58  ;;  %v8204_v58 = vld [vmem:[%s17523_s8 + $0x4f8] sm:$0xff] }
0x1220   : > { %11413 = vmatprep.subr.bf16.mxu0 %v11412_v32  ;;  %v8317_v32 = vld [vmem:[%s17523_s8 + $0x880] sm:$0xff]  ;;  %v8208_v15 = vld [vmem:[%s17523_s8 + $0x518] sm:$0xff] }
0x1221   : > { %11631 = vmatpush3.bf16.msra.mxu1 %v11630_v43  ;;  %v11636_v37 = vpack.c.bf16 %v8320_v21, %v8317_v32  ;;  %v8269_v43 = vld [vmem:[%s17523_s8 + $0x700] sm:$0xff]  ;;  %v11468_v1 = vpack.c.bf16 %v8211_v40, %v8208_v15  ;;  %v8223_v21 = vld [vmem:[%s17523_s8 + $0x590] sm:$0xff] }
0x1222   : > { %11633 = vmatprep.subr.bf16.mxu1 %v11632_v28  ;;  %v11466_v28 = vpack.c.bf16 %v8204_v58, %v8201_v62  ;;  %v8213_v32 = vld [vmem:[%s17523_s8 + $0x540] sm:$0xff]  ;;  %v8264_v62 = vld [vmem:[%s17523_s8 + $0x6d8] sm:$0xff]  ;;  %v8271_v15 = vld [vmem:[%s17523_s8 + $0x710] sm:$0xff] }
0x1223   : > { %11415 = vmatpush1.bf16.msra.mxu0 %v11414_v50  ;;  %v8272_v50 = vld [vmem:[%s17523_s8 + $0x718] sm:$0xff] }
0x1224   : > { %11417 = vmatprep.subr.bf16.mxu0 %v11416_v59  ;;  %v11446_v59 = vpack.c.bf16 %v8174_v11, %v8171_v20  ;;  %v11638_v25 = vpack.c.bf16 %v8272_v50, %v8269_v43  ;;  %v11476_v43 = vpack.c.bf16 %v8223_v21, %v8220_v12  ;;  %v8219_v50 = vld [vmem:[%s17523_s8 + $0x570] sm:$0xff]  ;;  %v8268_v58 = vld [vmem:[%s17523_s8 + $0x6f8] sm:$0xff] }
0x1225   : > { %11635 = vmatpush3.bf16.msra.mxu1 %v11634_v23  ;;  %v8214_v23 = vld [vmem:[%s17523_s8 + $0x548] sm:$0xff]  ;;  %v8283_v12 = vld [vmem:[%s17523_s8 + $0x770] sm:$0xff] }
0x1226   : > { %11637 = vmatprep.subr.bf16.mxu1 %v11636_v37  ;;  %v11474_v37 = vpack.c.bf16 %v8216_v49, %v8213_v32  ;;  %v8276_v32 = vld [vmem:[%s17523_s8 + $0x738] sm:$0xff] }
0x1227   : > { %11419 = vmatpush1.bf16.msra.mxu0 %v11418_v9  ;;  %v8323_v9 = vld [vmem:[%s17523_s8 + $0x8b0] sm:$0xff]  ;;  %v8280_v49 = vld [vmem:[%s17523_s8 + $0x758] sm:$0xff] }
0x1228   : > { %11421 = vmatprep.subr.bf16.mxu0 %v11420_v34  ;;  %v8184_v34 = vld [vmem:[%s17523_s8 + $0x458] sm:$0xff]  ;;  %v11640_v56 = vpack.c.bf16 %v8326_v33, %v8323_v9  ;;  %v8225_v9 = vld [vmem:[%s17523_s8 + $0x5a0] sm:$0xff]  ;;  %v8235_v33 = vld [vmem:[%s17523_s8 + $0x5f0] sm:$0xff] }
0x1229   : > { %11639 = vmatpush3.bf16.msra.mxu1 %v11638_v25  ;;  %v11452_v31 = vpack.c.bf16 %v8187_v3, %v8184_v34  ;;  %v8226_v25 = vld [vmem:[%s17523_s8 + $0x5a8] sm:$0xff]  ;;  %v8228_v34 = vld [vmem:[%s17523_s8 + $0x5b8] sm:$0xff] }
0x122a   : > { %11641 = vmatprep.subr.bf16.mxu1 %v11640_v56  ;;  %v8232_v3 = vld [vmem:[%s17523_s8 + $0x5d8] sm:$0xff]  ;;  %v11482_v56 = vpack.c.bf16 %v8228_v34, %v8225_v9 }
0x122b   : > { %11423 = vmatpush1.bf16.msra.mxu0 %v11422_v0  ;;  %v8278_v0 = vld [vmem:[%s17523_s8 + $0x748] sm:$0xff]  ;;  %v8288_v9 = vld [vmem:[%s17523_s8 + $0x798] sm:$0xff] }
0x122c   : > { %11425 = vmatprep.subr.bf16.mxu0 %v11424_v35  ;;  %v11450_v35 = vpack.c.bf16 %v8180_v39, %v8177_v63  ;;  %v11642_v42 = vpack.c.bf16 %v8278_v0, %v8275_v38  ;;  %v11484_v38 = vpack.c.bf16 %v8235_v33, %v8232_v3  ;;  %v8231_v0 = vld [vmem:[%s17523_s8 + $0x5d0] sm:$0xff]  ;;  %v8292_v34 = vld [vmem:[%s17523_s8 + $0x7b8] sm:$0xff] }
0x122d   : > { %v8295_v3 = vld [vmem:[%s17523_s8 + $0x7d0] sm:$0xff] }
0x122e   : > { %8415 = vmatmul.mubr.f32.vlgmr.msra.gmra.mrb[74].mxu0 %v16735_v53  ;;  %v8163_v53 = vld [vmem:[%s17523_s8 + $0x3b0] sm:$0xff]  ;;  %11643 = vmatpush3.bf16.msra.mxu1 %v11642_v42  ;;  %v8238_v42 = vld [vmem:[%s17523_s8 + $0x608] sm:$0xff] }
0x122f   : > { %8420 = vmatprep.mubr.f32.mxu0 %v16817_v47  ;;  %11427 = vmatpush1.bf16.msra.mxu0 %v11426_v24  ;;  %v11434_v47 = vpack.c.bf16 %v8156_v14, %v8153_v26  ;;  %v11436_v36 = vpack.c.bf16 %v8163_v53, %v8160_v2  ;;  %v8329_v24 = vld [vmem:[%s17523_s8 + $0x8e0] sm:$0xff]  ;;  %v8192_v53 = vld [vmem:[%s17523_s8 + $0x498] sm:$0xff] }
0x1230   : > { %11429 = vmatprep.subr.bf16.mxu0 %v11428_v5  ;;  %v8190_v5 = vld [vmem:[%s17523_s8 + $0x488] sm:$0xff]  ;;  %v11644_v57 = vpack.c.bf16 %v8332_v4, %v8329_v24  ;;  %v8189_v2 = vld [vmem:[%s17523_s8 + $0x480] sm:$0xff]  ;;  %v8247_v4 = vld [vmem:[%s17523_s8 + $0x650] sm:$0xff] }
0x1231   : > { %v11456_v14 = vpack.c.bf16 %v8193_v44, %v8190_v5  ;;  %v8237_v24 = vld [vmem:[%s17523_s8 + $0x600] sm:$0xff]  ;;  %v8240_v5 = vld [vmem:[%s17523_s8 + $0x618] sm:$0xff] }
0x1232   : > { %8421 = vmatmul.mubr.f32.gmra.mrb[76].mxu0 %v16826_v29  ;;  %v8169_v29 = vld [vmem:[%s17523_s8 + $0x3e0] sm:$0xff]  ;;  %11645 = vmatprep.subr.bf16.mxu1 %v11644_v57  ;;  %v8244_v44 = vld [vmem:[%s17523_s8 + $0x638] sm:$0xff]  ;;  %v11490_v57 = vpack.c.bf16 %v8240_v5, %v8237_v24 }
0x1233   : > { %11431 = vmatpush1.bf16.msra.mxu0 %v11430_v7  ;;  %8491 = vmatprep.mubr.f32.mxu0 %v16783_v45  ;;  %v11438_v45 = vpack.c.bf16 %v8162_v41, %v8159_v27  ;;  %v11440_v6 = vpack.c.bf16 %v8169_v29, %v8166_v61  ;;  %v8284_v7 = vld [vmem:[%s17523_s8 + $0x778] sm:$0xff]  ;;  %v11458_v27 = vpack.c.bf16 %v8192_v53, %v8189_v2  ;;  %v8195_v61 = vld [vmem:[%s17523_s8 + $0x4b0] sm:$0xff]  ;;  %v8198_v29 = vld [vmem:[%s17523_s8 + $0x4c8] sm:$0xff] }
0x1234   : > { %11433 = vmatprep.subr.bf16.mxu0 %v11432_v54  ;;  %v11454_v54 = vpack.c.bf16 %v8186_v52, %v8183_v18  ;;  %v11646_v26 = vpack.c.bf16 %v8284_v7, %v8281_v46  ;;  %v11462_v55 = vpack.c.bf16 %v8198_v29, %v8195_v61  ;;  %v11492_v46 = vpack.c.bf16 %v8247_v4, %v8244_v44  ;;  %v8243_v7 = vld [vmem:[%s17523_s8 + $0x630] sm:$0xff]  ;;  %v8258_v29 = vld [vmem:[%s17523_s8 + $0x6a8] sm:$0xff]  ;;  %v8300_v24 = vld [vmem:[%s17523_s8 + $0x7f8] sm:$0xff] }
0x1235   : > { %v8255_v61 = vld [vmem:[%s17523_s8 + $0x690] sm:$0xff]  ;;  %v8304_v5 = vld [vmem:[%s17523_s8 + $0x818] sm:$0xff] }
0x1236   : > { %11647 = vmatpush3.bf16.msra.mxu1 %v11646_v26  ;;  %v8250_v26 = vld [vmem:[%s17523_s8 + $0x668] sm:$0xff]  ;;  %v8307_v44 = vld [vmem:[%s17523_s8 + $0x830] sm:$0xff] }
0x1237   : > { %11435 = vmatpush1.bf16.msra.mxu0 %v11434_v47  ;;  %v8196_v47 = vld [vmem:[%s17523_s8 + $0x4b8] sm:$0xff] }
0x1238   : > { %11437 = vmatprep.subr.bf16.mxu0 %v11436_v36  ;;  %v8199_v36 = vld [vmem:[%s17523_s8 + $0x4d0] sm:$0xff] }
0x1239   : > { %v11460_v41 = vpack.c.bf16 %v8199_v36, %v8196_v47  ;;  %v8249_v47 = vld [vmem:[%s17523_s8 + $0x660] sm:$0xff]  ;;  %v8252_v36 = vld [vmem:[%s17523_s8 + $0x678] sm:$0xff] }
0x123b   : > { %11439 = vmatpush1.bf16.msra.mxu0 %v11438_v45  ;;  %v8202_v45 = vld [vmem:[%s17523_s8 + $0x4e8] sm:$0xff] }
0x123c   : > { %11441 = vmatprep.subr.bf16.mxu0 %v11440_v6  ;;  %v8205_v6 = vld [vmem:[%s17523_s8 + $0x500] sm:$0xff] }
0x123d   : > { %v11464_v60 = vpack.c.bf16 %v8205_v6, %v8202_v45  ;;  %v8262_v45 = vld [vmem:[%s17523_s8 + $0x6c8] sm:$0xff]  ;;  %v11502_v6 = vpack.c.bf16 %v8258_v29, %v8255_v61 }
0x123e   : > { %v8318_v61 = vld [vmem:[%s17523_s8 + $0x888] sm:$0xff] }
0x123f   : > { %11443 = vmatpush1.bf16.msra.mxu0 %v11442_v17  ;;  %v8210_v17 = vld [vmem:[%s17523_s8 + $0x528] sm:$0xff] }
0x1240   : > { %11445 = vmatprep.subr.bf16.mxu0 %v11444_v48  ;;  %v8217_v48 = vld [vmem:[%s17523_s8 + $0x560] sm:$0xff]  ;;  %v11470_v20 = vpack.c.bf16 %v8210_v17, %v8207_v51  ;;  %v8270_v51 = vld [vmem:[%s17523_s8 + $0x708] sm:$0xff] }
0x1241   : > { %v11472_v11 = vpack.c.bf16 %v8217_v48, %v8214_v23  ;;  %v8274_v17 = vld [vmem:[%s17523_s8 + $0x728] sm:$0xff]  ;;  %v8277_v23 = vld [vmem:[%s17523_s8 + $0x740] sm:$0xff] }
0x1242   : > { %v8322_v29 = vld [vmem:[%s17523_s8 + $0x8a8] sm:$0xff] }
0x1243   : > { %11447 = vmatpush1.bf16.msra.mxu0 %v11446_v59  ;;  %v8222_v59 = vld [vmem:[%s17523_s8 + $0x588] sm:$0xff] }
0x1244   : > { %11449 = vmatprep.subr.bf16.mxu0 %v11448_v10  ;;  %v8229_v10 = vld [vmem:[%s17523_s8 + $0x5c0] sm:$0xff]  ;;  %v11478_v63 = vpack.c.bf16 %v8222_v59, %v8219_v50  ;;  %v8282_v50 = vld [vmem:[%s17523_s8 + $0x768] sm:$0xff] }
0x1245   : > { %v11480_v39 = vpack.c.bf16 %v8229_v10, %v8226_v25  ;;  %v8286_v59 = vld [vmem:[%s17523_s8 + $0x788] sm:$0xff]  ;;  %v8289_v25 = vld [vmem:[%s17523_s8 + $0x7a0] sm:$0xff] }
0x1247   : > { %11451 = vmatpush1.bf16.msra.mxu0 %v11450_v35  ;;  %v8234_v35 = vld [vmem:[%s17523_s8 + $0x5e8] sm:$0xff] }
0x1248   : > { %11453 = vmatprep.subr.bf16.mxu0 %v11452_v31  ;;  %v8241_v31 = vld [vmem:[%s17523_s8 + $0x620] sm:$0xff]  ;;  %v11486_v18 = vpack.c.bf16 %v8234_v35, %v8231_v0  ;;  %v8294_v0 = vld [vmem:[%s17523_s8 + $0x7c8] sm:$0xff] }
0x1249   : > { %v11488_v52 = vpack.c.bf16 %v8241_v31, %v8238_v42  ;;  %v8298_v35 = vld [vmem:[%s17523_s8 + $0x7e8] sm:$0xff]  ;;  %v8301_v42 = vld [vmem:[%s17523_s8 + $0x800] sm:$0xff] }
0x124b   : > { %11455 = vmatpush1.bf16.msra.mxu0 %v11454_v54  ;;  %v8246_v54 = vld [vmem:[%s17523_s8 + $0x648] sm:$0xff] }
0x124c   : > { %11457 = vmatprep.subr.bf16.mxu0 %v11456_v14  ;;  %v8253_v14 = vld [vmem:[%s17523_s8 + $0x680] sm:$0xff]  ;;  %v11494_v2 = vpack.c.bf16 %v8246_v54, %v8243_v7  ;;  %v8306_v7 = vld [vmem:[%s17523_s8 + $0x828] sm:$0xff] }
0x124d   : > { %v11496_v53 = vpack.c.bf16 %v8253_v14, %v8250_v26  ;;  %v8310_v54 = vld [vmem:[%s17523_s8 + $0x848] sm:$0xff]  ;;  %v8313_v26 = vld [vmem:[%s17523_s8 + $0x860] sm:$0xff] }
0x124f   : > { %11459 = vmatpush1.bf16.msra.mxu0 %v11458_v27  ;;  %v8256_v27 = vld [vmem:[%s17523_s8 + $0x698] sm:$0xff] }
0x1250   : > { %11461 = vmatprep.subr.bf16.mxu0 %v11460_v41 }
0x1253   : > { %11463 = vmatpush1.bf16.msra.mxu0 %v11462_v55 }
0x1254   : > { %11465 = vmatprep.subr.bf16.mxu0 %v11464_v60  ;;  %v8261_v60 = vld [vmem:[%s17523_s8 + $0x6c0] sm:$0xff] }
0x1255   : > { %v11506_v40 = vpack.c.bf16 %v8264_v62, %v8261_v60  ;;  %v8324_v60 = vld [vmem:[%s17523_s8 + $0x8b8] sm:$0xff] }
0x1256   : > { %v8328_v62 = vld [vmem:[%s17523_s8 + $0x8d8] sm:$0xff] }
0x1257   : > { %11467 = vmatpush1.bf16.msra.mxu0 %v11466_v28  ;;  %v11508_v28 = vpack.c.bf16 %v8271_v15, %v8268_v58  ;;  %v8331_v58 = vld [vmem:[%s17523_s8 + $0x8f0] sm:$0xff] }
0x1258   : > { %11469 = vmatprep.subr.bf16.mxu0 %v11468_v1  ;;  %v8267_v1 = vld [vmem:[%s17523_s8 + $0x6f0] sm:$0xff] }
0x1259   : > { %v11510_v48 = vpack.c.bf16 %v8270_v51, %v8267_v1  ;;  %v8330_v1 = vld [vmem:[%s17523_s8 + $0x8e8] sm:$0xff] }
0x125b   : > { %11471 = vmatpush1.bf16.msra.mxu0 %v11470_v20  ;;  %v11512_v20 = vpack.c.bf16 %v8277_v23, %v8274_v17 }
0x125c   : > { %11473 = vmatprep.subr.bf16.mxu0 %v11472_v11  ;;  %v8273_v11 = vld [vmem:[%s17523_s8 + $0x720] sm:$0xff] }
0x125d   : > { %v11514_v21 = vpack.c.bf16 %v8276_v32, %v8273_v11 }
0x125f   : > { %11475 = vmatpush1.bf16.msra.mxu0 %v11474_v37  ;;  %v11516_v37 = vpack.c.bf16 %v8283_v12, %v8280_v49 }
0x1260   : > { %11477 = vmatprep.subr.bf16.mxu0 %v11476_v43  ;;  %v8279_v43 = vld [vmem:[%s17523_s8 + $0x750] sm:$0xff] }
0x1261   : > { %v11518_v10 = vpack.c.bf16 %v8282_v50, %v8279_v43 }
0x1263   : > { %11479 = vmatpush1.bf16.msra.mxu0 %v11478_v63  ;;  %v11520_v63 = vpack.c.bf16 %v8289_v25, %v8286_v59 }
0x1264   : > { %11481 = vmatprep.subr.bf16.mxu0 %v11480_v39  ;;  %v8285_v39 = vld [vmem:[%s17523_s8 + $0x780] sm:$0xff] }
0x1265   : > { %v11522_v33 = vpack.c.bf16 %v8288_v9, %v8285_v39 }
0x1267   : > { %11483 = vmatpush1.bf16.msra.mxu0 %v11482_v56  ;;  %v11524_v56 = vpack.c.bf16 %v8295_v3, %v8292_v34 }
0x1268   : > { %11485 = vmatprep.subr.bf16.mxu0 %v11484_v38  ;;  %v8291_v38 = vld [vmem:[%s17523_s8 + $0x7b0] sm:$0xff] }
0x1269   : > { %v11526_v31 = vpack.c.bf16 %v8294_v0, %v8291_v38 }
0x126b   : > { %11487 = vmatpush1.bf16.msra.mxu0 %v11486_v18  ;;  %v11528_v18 = vpack.c.bf16 %v8301_v42, %v8298_v35  ;;  %v8333_v35 = vld [vmem:[%s17524_s9] sm:$0x7] }
0x126c   : > { %11489 = vmatprep.subr.bf16.mxu0 %v11488_v52  ;;  %v8297_v52 = vld [vmem:[%s17523_s8 + $0x7e0] sm:$0xff]  ;;  %v8346_v42 = vrot.slane %v8333_v35, %v13682_v8 }
0x126d   : > { %v11530_v4 = vpack.c.bf16 %v8300_v24, %v8297_v52 }
0x126e   : > { %8492 = vmatmul.mubr.f32.vlgmr.msra.gmra.mrb[74].mxu0 %v16774_v13  ;;  %v8259_v13 = vld [vmem:[%s17523_s8 + $0x6b0] sm:$0xff] }
0x126f   : > { %8497 = vmatprep.mubr.f32.mxu0 %v16981_v22  ;;  %11491 = vmatpush1.bf16.msra.mxu0 %v11490_v57  ;;  %v11498_v22 = vpack.c.bf16 %v8252_v36, %v8249_v47  ;;  %v11500_v41 = vpack.c.bf16 %v8259_v13, %v8256_v27  ;;  %v11532_v57 = vpack.c.bf16 %v8307_v44, %v8304_v5  ;;  %v8312_v47 = vld [vmem:[%s17523_s8 + $0x858] sm:$0xff]  ;;  %v8319_v27 = vld [vmem:[%s17523_s8 + $0x890] sm:$0xff] }
0x1270   : > { %11493 = vmatprep.subr.bf16.mxu0 %v11492_v46  ;;  %v8303_v46 = vld [vmem:[%s17523_s8 + $0x810] sm:$0xff]  ;;  %v8316_v36 = vld [vmem:[%s17523_s8 + $0x878] sm:$0xff] }
0x1271   : > { %v11534_v14 = vpack.c.bf16 %v8306_v7, %v8303_v46 }
0x1272   : > { %8498 = vmatmul.mubr.f32.gmra.mrb[76].mxu0 %v16999_v30  ;;  %v8265_v30 = vld [vmem:[%s17523_s8 + $0x6e0] sm:$0xff] }
0x1273   : > { %11495 = vmatpush1.bf16.msra.mxu0 %v11494_v2  ;;  %v11504_v55 = vpack.c.bf16 %v8265_v30, %v8262_v45  ;;  %v11536_v2 = vpack.c.bf16 %v8313_v26, %v8310_v54  ;;  %v8325_v45 = vld [vmem:[%s17523_s8 + $0x8c0] sm:$0xff]  ;;  %v8338_v54 = vrot.slane %v8333_v35, %v13626_v16  ;;  %v8342_v26 = vrot.slane %v8333_v35, %v13634_v19 }
0x1274   : > { %11497 = vmatprep.subr.bf16.mxu0 %v11496_v53  ;;  %v8309_v53 = vld [vmem:[%s17523_s8 + $0x840] sm:$0xff] }
0x1275   : > { %v11538_v13 = vpack.c.bf16 %v8312_v47, %v8309_v53 }
0x1277   : > { %11499 = vmatpush1.bf16.msra.mxu0 %v11498_v22  ;;  %v11540_v22 = vpack.c.bf16 %v8319_v27, %v8316_v36  ;;  %v7746_v17 = vpop.xlane.xlu1 %7745 }
0x1278   : > { %11501 = vmatprep.subr.bf16.mxu0 %v11500_v41  ;;  %v8315_v41 = vld [vmem:[%s17523_s8 + $0x870] sm:$0xff] }
0x1279   : > { %v11542_v30 = vpack.c.bf16 %v8318_v61, %v8315_v41 }
0x127b   : > { %11503 = vmatpush1.bf16.msra.mxu0 %v11502_v6  ;;  %v11544_v6 = vpack.c.bf16 %v8325_v45, %v8322_v29 }
0x127c   : > { %11505 = vmatprep.subr.bf16.mxu0 %v11504_v55  ;;  %v8321_v55 = vld [vmem:[%s17523_s8 + $0x8a0] sm:$0xff]  ;;  %v7937_v23 = vpop.xlane.xlu0 %7936 }
0x127d   : > { %v11546_v15 = vpack.c.bf16 %v8324_v60, %v8321_v55 }
0x127f   : > { %11507 = vmatpush1.bf16.msra.mxu0 %v11506_v40  ;;  %v11548_v40 = vpack.c.bf16 %v8331_v58, %v8328_v62 }
0x1280   : > { %11509 = vmatprep.subr.bf16.mxu0 %v11508_v28  ;;  %v8327_v28 = vld [vmem:[%s17523_s8 + $0x8d0] sm:$0xff] }
0x1281   : > { %v11550_v51 = vpack.c.bf16 %v8330_v1, %v8327_v28 }
0x1283   : > { %11511 = vmatpush1.bf16.msra.mxu0 %v11510_v48  ;;  %v7749_v48 = vpop.xlane.xlu1 %7748 }
0x1284   : > { %11513 = vmatprep.subr.bf16.mxu0 %v11512_v20  ;;  %11904 = vrcp.f32 %v7749_v48  ;;  %v7940_v20 = vpop.xlane.xlu0 %7939 }
0x1285   : > { %11906 = vrcp.f32 %v7746_v17 }
0x1286   : > { %11908 = vrcp.f32 %v7940_v20 }
0x1287   : > { %11515 = vmatpush1.bf16.msra.mxu0 %v11514_v21  ;;  %11910 = vrcp.f32 %v7937_v23 }
0x1288   : > { %11517 = vmatprep.subr.bf16.mxu0 %v11516_v37 }
0x128b   : > { %11519 = vmatpush1.bf16.msra.mxu0 %v11518_v10 }
0x128c   : > { %11521 = vmatprep.subr.bf16.mxu0 %v11520_v63 }
0x128e   : > { %v11905_v11 = vpop.eup %11904 }
0x128f   : > { %11523 = vmatpush1.bf16.msra.mxu0 %v11522_v33  ;;  %v11907_v49 = vpop.eup %11906 }
0x1290   : > { %11525 = vmatprep.subr.bf16.mxu0 %v11524_v56  ;;  %v11909_v43 = vpop.eup %11908 }
0x1291   : > { %v11911_v59 = vpop.eup %11910 }
0x1293   : > { %11527 = vmatpush1.bf16.msra.mxu0 %v11526_v31 }
0x1294   : > { %11529 = vmatprep.subr.bf16.mxu0 %v11528_v18 }
0x1297   : > { %11531 = vmatpush1.bf16.msra.mxu0 %v11530_v4 }
0x1298   : > { %11533 = vmatprep.subr.bf16.mxu0 %v11532_v57 }
0x129b   : > { %11535 = vmatpush1.bf16.msra.mxu0 %v11534_v14 }
0x129c   : > { %11537 = vmatprep.subr.bf16.mxu0 %v11536_v2 }
0x129f   : > { %11539 = vmatpush1.bf16.msra.mxu0 %v11538_v13 }
0x12a0   : > { %11541 = vmatprep.subr.bf16.mxu0 %v11540_v22 }
0x12a3   : > { %11543 = vmatpush1.bf16.msra.mxu0 %v11542_v30 }
0x12a4   : > { %11545 = vmatprep.subr.bf16.mxu0 %v11544_v6 }
0x12a7   : > { %11547 = vmatpush1.bf16.msra.mxu0 %v11546_v15 }
0x12a8   : > { %11549 = vmatprep.subr.bf16.mxu0 %v11548_v40 }
0x12ab   : > { %11551 = vmatpush1.bf16.msra.mxu0 %v11550_v51 }
0x12bd   : > { %v9533_v32 = vpop.f32.mrb[70].mxu0 }
0x12be   : > { %v7839_v12 = vmul.f32 %v11905_v11, %v9533_v32  ;;  %v7829_v21 = vpop.f32.mrb[71].mxu0 }
0x12bf   : > { %v7838_v37 = vmul.f32 %v11907_v49, %v7829_v21 }
0x12c0   : > { %7841 = vst [vmem:[#allocation5 + $0x50] sm:$0xf] %v7839_v12 }
0x12c1   : > { %7840 = vst [vmem:[#allocation5 + $0x20] sm:$0xff] %v7838_v37  ;;  %v9547_v50 = vpop.f32.mrb[72].mxu0 }
0x12c2   : > { %v8030_v25 = vmul.f32 %v11909_v43, %v9547_v50  ;;  %v8020_v10 = vpop.f32.mrb[73].mxu0 }
0x12c3   : > { %v8029_v63 = vmul.f32 %v11911_v59, %v8020_v10 }
0x12c4   : > { %8032 = vst [vmem:[#allocation5 + $0x58] sm:$0xf] %v8030_v25 }
0x12c5   : > { %v9298_v39 = vpop.f32.mrb[70].mxu1  ;;  %8568 = vmatprep.mubr.f32.mxu0 %v8029_v63  ;;  %8795 = vmatprep.mubr.f32.mxu1 %v8029_v63 }
0x12c6   : > { %v9299_v9 = vpop.f32.mrb[71].mxu1  ;;  %8569 = vmatmul.mubr.f32.vlgmr.msra.gmra.mrb[74].mxu0 %v7838_v37  ;;  %8796 = vmatmul.mubr.f32.vlgmr.msra.gmra.mrb[78].mxu1 %v7838_v37 }
0x12c7   : > { %v9300_v34 = vadd.f32 %v9299_v9, %v9298_v39  ;;  %v8043_v33 = vld [vmem:[#allocation5 + $0x50] sm:$0xf] }
0x12c9   : > { %v8648_v52 = vadd.f32 %v9300_v34, %v8346_v42 }
0x12cb   : > { %v8044_v3 = vld [vmem:[#allocation5 + $0x58] sm:$0xf] }
0x12cc   : > { %8574 = vmatprep.mubr.f32.mxu0 %v8044_v3  ;;  %8800 = vmatprep.mubr.f32.mxu1 %v8044_v3 }
0x12cd   : > { %8575 = vmatmul.mubr.f32.gmra.mrb[76].mxu0 %v8043_v33  ;;  %8801 = vmatmul.mubr.f32.gmra.mrb[80].mxu1 %v8043_v33 }
0x12cf   : > { %v9301_v56 = vpop.f32.mrb[72].mxu1 }
0x12d0   : > { %v9302_v38 = vpop.f32.mrb[73].mxu1 }
0x12d1   : > { %v9303_v0 = vadd.f32 %v9302_v38, %v9301_v56 }
0x12d3   : > { %v8653_v57 = vadd.f32 %v9303_v0, %v8346_v42 }
0x12e7   : > { %v9336_v31 = vpop.f32.mrb[74].mxu1 }
0x12e8   : > { %v9337_v18 = vpop.f32.mrb[75].mxu1 }
0x12e9   : > { %v9338_v24 = vadd.f32 %v9337_v18, %v9336_v31 }
0x12eb   : > { %v8723_v5 = vadd.f32 %v9338_v24, %v8648_v52  ;;  %v9339_v44 = vpop.f32.mrb[76].mxu1 }
0x12ec   : > { %v9340_v4 = vpop.f32.mrb[77].mxu1 }
0x12ed   : > { %v9341_v46 = vadd.f32 %v9340_v4, %v9339_v44 }
0x12ef   : > { %v8728_v7 = vadd.f32 %v9341_v46, %v8653_v57 }
0x1399   : > { %v8570_v14 = vpop.f32.mrb[74].mxu0  ;;  %v9374_v2 = vpop.f32.mrb[78].mxu1 }
0x139a   : > { %v11708_v8 = vadd.f32 %v8570_v14, %v8338_v54  ;;  %v8572_v53 = vpop.f32.mrb[75].mxu0  ;;  %v9375_v47 = vpop.f32.mrb[79].mxu1 }
0x139b   : > { %v11709_v36 = vadd.f32 %v8572_v53, %v8342_v26  ;;  %v9376_v27 = vadd.f32 %v9375_v47, %v9374_v2 }
0x139c   : > { %9048 = vst [vmem:[%s16053_s21 + $0x30] sm:$0xff] %v11708_v8 }
0x139d   : > { %9049 = vst [vmem:[%s16053_s21 + $0x38] sm:$0xff] %v11709_v36  ;;  %v8798_v13 = vadd.f32 %v9376_v27, %v8723_v5 }
0x139f   : > { %9050 = vst.msk [vmem:[%s16053_s21 + $0x40] sm:$0xff] %vm711_vm3, %v8798_v13 }
0x13a0   : > { %v8576_v22 = vpop.f32.mrb[76].mxu0  ;;  %v9377_v41 = vpop.f32.mrb[80].mxu1 }
0x13a1   : > { %v11710_v16 = vadd.f32 %v8576_v22, %v8338_v54  ;;  %v8578_v61 = vpop.f32.mrb[77].mxu0  ;;  %v9378_v19 = vpop.f32.mrb[81].mxu1 }
0x13a2   : > { %v11711_v29 = vadd.f32 %v8578_v61, %v8342_v26  ;;  %v9379_v45 = vadd.f32 %v9378_v19, %v9377_v41 }
0x13a3   : > { %9051 = vst [vmem:[%s16053_s21 + $0x48] sm:$0xf] %v11710_v16 }
0x13a4   : > { %9052 = vst [vmem:[%s16053_s21 + $0x50] sm:$0xf] %v11711_v29  ;;  %v8803_v30 = vadd.f32 %v9379_v45, %v8728_v7 }
0x13a6   : > { %9053 = vst.msk [vmem:[%s16053_s21 + $0x58] sm:$0xf] %vm4622_vm8, %v8803_v30 }
0x13a7 PF: > { %s21_s13 = sadd.s32 1, %s11967_s13  }
0x13a8   : > { %p18_p3 = scmp.ge.s32.totalorder %s21_s13, 6  }
0x13aa   :  { %20 = sbr.rel (!%p18_p3) target bundleno = 1 (0x1), region = 105 }
0x13b1   :  { %8837 = vsyncpa [#allocation7], 1 }
0x13b2   :  { %8839 = vsyncpa [#allocation7 + $0x1], 1 }

</bundles_post_ra>
